<compile_context>
chip_gen: v7x
topology: tpu7x:2x2x1
jax: 0.10.0
libtpu: 0.0.40
codegen_flags: <defaults>
</compile_context>

<pallas_src>
import jax
import jax.numpy as jnp
from jax.experimental import pallas as pl
from jax.experimental.pallas import tpu as pltpu

_VMEM = pl.BlockSpec(memory_space=pltpu.MemorySpace.VMEM)


# ----------------------------- fused Pallas kernel -----------------------------

def _lstm_ae_kernel(
        x_ref,                                   # (T_in, B, F) time-major input
        e0_wih, e0_whh, e0_b,                    # LSTMenc layer 0: F   -> hid
        e1_wih, e1_whh, e1_b,                    # LSTMenc layer 1: hid -> hid
        e2_wih, e2_whh, e2_b,                    # enc LSTM1:       hid -> emb
        efc_w, efc_b,                            # enc Linear:      emb -> lat
        d0_wih, d0_whh, d0_b,                    # LSTMdec:         lat -> emb
        d1_wih, d1_whh, d1_b,                    # dec LSTM1 l0:    emb -> hid
        d2_wih, d2_whh, d2_b,                    # dec LSTM1 l1:    hid -> hid
        dfc_w, dfc_b,                            # dec Linear:      hid -> out
        enc_ref,                                 # out: (B, lat)
        dec_ref,                                 # out: (T_out, B, out) time-major
):
    t_in, B, _ = x_ref.shape
    t_out = dec_ref.shape[0]
    hid = e0_whh.shape[0]
    emb = e2_whh.shape[0]

    mxu_dt = e0_whh.dtype                        # bf16 MXU operands, f32 accumulation

    def in_proj(x, w_ih_ref):
        """(B, D) @ (D, 4H) input projection; bf16 operands, f32 accumulate."""
        return jnp.dot(x.astype(mxu_dt), w_ih_ref[...],
                       preferred_element_type=jnp.float32)

    def lstm_cell(x_proj, h, c, w_hh_ref, b_ref, H):
        """One LSTM step. Gate columns are pre-permuted to (i, f, o, g):
        one sigmoid over the contiguous 3H block, one tanh over the last H block."""
        gates = (x_proj
                 + jnp.dot(h.astype(mxu_dt), w_hh_ref[...],
                           preferred_element_type=jnp.float32)
                 + b_ref[...])
        sig = jax.nn.sigmoid(gates[:, :3 * H])
        g_g = jnp.tanh(gates[:, 3 * H:])
        i_g = sig[:, 0 * H:1 * H]
        f_g = sig[:, 1 * H:2 * H]
        o_g = sig[:, 2 * H:3 * H]
        c_new = f_g * c + i_g * g_g
        h_new = o_g * jnp.tanh(c_new)
        return h_new, c_new

    def run_stack(layer0_xproj, layers, T):
        """Wavefront-interleaved LSTM stack over T fully-unrolled steps.

        layers: list of (w_ih_ref, w_hh_ref, b_ref, H).
        layer0_xproj(t) -> (B, 4H0) input projection of layer 0 at step t
        (layer 0's w_ih is consumed there).  Layer l>0 at step t consumes layer
        l-1's output at step t, produced in the previous wavefront iteration, so
        per-iteration work across layers is independent (shorter critical path).
        Returns (per-layer output sequences as value lists, per-layer final h).
        """
        L = len(layers)
        h = [jnp.zeros((B, layers[l][3]), jnp.float32) for l in range(L)]
        c = [jnp.zeros((B, layers[l][3]), jnp.float32) for l in range(L)]
        outs = [[None] * T for _ in range(L)]
        for s in range(T + L - 1):               # small & static -> fully unrolled
            for l in range(L):
                t = s - l
                if not 0 <= t < T:
                    continue
                w_ih, w_hh, b, H = layers[l]
                xp = layer0_xproj(t) if l == 0 else in_proj(outs[l - 1][t], w_ih)
                h[l], c[l] = lstm_cell(xp, h[l], c[l], w_hh, b, H)
                outs[l][t] = h[l]
        return outs, h

    # ---------------- Encoder: LSTMenc (2 layers) + LSTM1 (1 layer) + Linear ----------------
    enc_layers = [(e0_wih, e0_whh, e0_b, hid),
                  (e1_wih, e1_whh, e1_b, hid),
                  (e2_wih, e2_whh, e2_b, emb)]
    _, enc_h = run_stack(lambda t: in_proj(x_ref[t], e0_wih), enc_layers, t_in)
    encoded = (jnp.dot(enc_h[2].astype(mxu_dt), efc_w[...],
                       preferred_element_type=jnp.float32) + efc_b[...])     # (B, lat)
    enc_ref[...] = encoded

    # ---------------- Decoder: LSTMdec (1 layer) + LSTM1 (2 layers) + Linear ----------------
    dec_layers = [(d0_wih, d0_whh, d0_b, emb),
                  (d1_wih, d1_whh, d1_b, hid),
                  (d2_wih, d2_whh, d2_b, hid)]
    enc_proj = in_proj(encoded, d0_wih)          # same input every step -> project once
    dec_outs, _ = run_stack(lambda t: enc_proj, dec_layers, t_out)
    for t in range(t_out):                       # final Linear + store, per time step
        dec_ref[t] = (jnp.dot(dec_outs[2][t].astype(mxu_dt), dfc_w[...],
                              preferred_element_type=jnp.float32) + dfc_b[...])


# ----------------------------- wrapper -----------------------------

def _reorder_gates(w, H):
    """Permute trailing 4H gate blocks from PyTorch order (i, f, g, o) to (i, f, o, g)."""
    return jnp.concatenate([w[..., :2 * H], w[..., 3 * H:4 * H], w[..., 2 * H:3 * H]],
                           axis=-1)


def _pack_lstm(p):
    """Kernel layout for one LSTM layer: gate-reordered, bf16 weights, f32 bias."""
    H = p["w_hh"].shape[0]
    return (_reorder_gates(p["w_ih"], H).astype(jnp.bfloat16),
            _reorder_gates(p["w_hh"], H).astype(jnp.bfloat16),
            _reorder_gates(p["b"], H))


def lstm_ae_forward(x, params, seq_out):
    """Equivalent of LSTM_AE.forward: returns (x, encoded, decoded)."""
    B, t_in, feat = x.shape
    hid = params["e0"]["w_hh"].shape[0]
    emb = params["e2"]["w_hh"].shape[0]
    lat = params["efc"]["w"].shape[1]
    out = params["dfc"]["w"].shape[1]
    t_out = seq_out

    # time-major (T, B, D): per-step indexing happens on the leading (untiled) axis.
    x_tm = jnp.transpose(x, (1, 0, 2))

    flat_inputs = [x_tm]
    for name in ("e0", "e1", "e2"):
        flat_inputs += list(_pack_lstm(params[name]))
    flat_inputs += [params["efc"]["w"].astype(jnp.bfloat16), params["efc"]["b"]]
    for name in ("d0", "d1", "d2"):
        flat_inputs += list(_pack_lstm(params[name]))
    flat_inputs += [params["dfc"]["w"].astype(jnp.bfloat16), params["dfc"]["b"]]

    encoded, dec_tm = pl.pallas_call(
        _lstm_ae_kernel,
        in_specs=[_VMEM] * len(flat_inputs),
        out_specs=(_VMEM, _VMEM),
        out_shape=(jax.ShapeDtypeStruct((B, lat), jnp.float32),
                   jax.ShapeDtypeStruct((t_out, B, out), jnp.float32)),
    )(*flat_inputs)

    decoded = jnp.transpose(dec_tm, (1, 0, 2))   # back to batch-first (B, T_out, out)
    return x, encoded, decoded


# ----------------------------- parameters -----------------------------

def make_params(cfg, key):
    emb = cfg["embedding_dim"]
    hid = 2 * emb
    feat = cfg["n_features"]
    lat = cfg["latent_dim"]
    out = cfg["output_size"]

    keys = iter(jax.random.split(key, 32))

    def lstm_p(d_in, h):
        # PyTorch LSTM default init: U(-1/sqrt(h), 1/sqrt(h)); bias stored combined (b_ih + b_hh).
        # Layout here is PyTorch gate order (i, f, g, o), transposed to (D, 4H)/(H, 4H);
        # the wrapper permutes gate columns to the kernel's (i, f, o, g) layout.
        s = float(h) ** -0.5
        w_ih = jax.random.uniform(next(keys), (d_in, 4 * h), jnp.float32, -s, s)
        w_hh = jax.random.uniform(next(keys), (h, 4 * h), jnp.float32, -s, s)
        b_ih = jax.random.uniform(next(keys), (1, 4 * h), jnp.float32, -s, s)
        b_hh = jax.random.uniform(next(keys), (1, 4 * h), jnp.float32, -s, s)
        return dict(w_ih=w_ih, w_hh=w_hh, b=b_ih + b_hh)

    def linear_p(d_in, d_out):
        # weight_init: kaiming_normal_ on Linear weight, zero bias.
        std = (2.0 / d_in) ** 0.5
        w = jax.random.normal(next(keys), (d_in, d_out), jnp.float32) * std
        b = jnp.zeros((1, d_out), jnp.float32)
        return dict(w=w, b=b)

    return dict(
        # Encoder: LSTMenc (2 layers, feat->hid), LSTM1 (1 layer, hid->emb), enc Linear(emb->lat)
        e0=lstm_p(feat, hid), e1=lstm_p(hid, hid), e2=lstm_p(hid, emb),
        efc=linear_p(emb, lat),
        # Decoder: LSTMdec (1 layer, lat->emb), LSTM1 (2 layers, emb->hid), fc Linear(hid->out)
        d0=lstm_p(lat, emb), d1=lstm_p(emb, hid), d2=lstm_p(hid, hid),
        dfc=linear_p(hid, out),
    )


# ----------------------------- main -----------------------------

if __name__ == "__main__":
    cfg = dict(
        seq_in=8,
        seq_out=8,
        n_features=4,
        output_size=4,
        embedding_dim=32,   # hidden_size = 64
        latent_dim=16,
        n_layers_1=2,
        n_layers_2=1,
        no_latent=False,
    )
    B = 2

    key = jax.random.PRNGKey(0)
    k_params, k_x = jax.random.split(key)
    params = make_params(cfg, k_params)

    x = jax.random.normal(k_x, (B, cfg["seq_in"], cfg["n_features"]), jnp.float32)

    fwd = jax.jit(lambda xx, pp: lstm_ae_forward(xx, pp, cfg["seq_out"]))
    x_out, encoded, decoded = fwd(x, params)
    jax.block_until_ready((x_out, encoded, decoded))

    assert x_out.shape == (B, cfg["seq_in"], cfg["n_features"])
    assert encoded.shape == (B, cfg["latent_dim"])
    assert decoded.shape == (B, cfg["seq_out"], cfg["output_size"])
    assert bool(jnp.all(jnp.isfinite(encoded))) and bool(jnp.all(jnp.isfinite(decoded)))
    print("KERNEL_OK")
</pallas_src>

<mosaic_0001>
module attributes {stable_mosaic.version = 11 : i64} {
  func.func @_lstm_ae_kernel(%arg0: memref<8x2x4xf32, #tpu.memory_space<vmem>>, %arg1: memref<4x256xbf16, #tpu.memory_space<vmem>>, %arg2: memref<64x256xbf16, #tpu.memory_space<vmem>>, %arg3: memref<1x256xf32, #tpu.memory_space<vmem>>, %arg4: memref<64x256xbf16, #tpu.memory_space<vmem>>, %arg5: memref<64x256xbf16, #tpu.memory_space<vmem>>, %arg6: memref<1x256xf32, #tpu.memory_space<vmem>>, %arg7: memref<64x128xbf16, #tpu.memory_space<vmem>>, %arg8: memref<32x128xbf16, #tpu.memory_space<vmem>>, %arg9: memref<1x128xf32, #tpu.memory_space<vmem>>, %arg10: memref<32x16xbf16, #tpu.memory_space<vmem>>, %arg11: memref<1x16xf32, #tpu.memory_space<vmem>>, %arg12: memref<16x128xbf16, #tpu.memory_space<vmem>>, %arg13: memref<32x128xbf16, #tpu.memory_space<vmem>>, %arg14: memref<1x128xf32, #tpu.memory_space<vmem>>, %arg15: memref<32x256xbf16, #tpu.memory_space<vmem>>, %arg16: memref<64x256xbf16, #tpu.memory_space<vmem>>, %arg17: memref<1x256xf32, #tpu.memory_space<vmem>>, %arg18: memref<64x256xbf16, #tpu.memory_space<vmem>>, %arg19: memref<64x256xbf16, #tpu.memory_space<vmem>>, %arg20: memref<1x256xf32, #tpu.memory_space<vmem>>, %arg21: memref<64x4xbf16, #tpu.memory_space<vmem>>, %arg22: memref<1x4xf32, #tpu.memory_space<vmem>>, %arg23: memref<2x16xf32, #tpu.memory_space<vmem>>, %arg24: memref<8x2x4xf32, #tpu.memory_space<vmem>>) attributes {dimension_semantics = [], scalar_prefetch = 0 : i64, scratch_operands = 0 : i64, tpu.core_type = #tpu.core_type<tc>} {
    %cst = arith.constant 0.000000e+00 : f32
    %0 = vector.broadcast %cst : f32 to vector<2x64xf32>
    %cst_0 = arith.constant 0.000000e+00 : f32
    %1 = vector.broadcast %cst_0 : f32 to vector<2x64xf32>
    %cst_1 = arith.constant 0.000000e+00 : f32
    %2 = vector.broadcast %cst_1 : f32 to vector<2x32xf32>
    %cst_2 = arith.constant 0.000000e+00 : f32
    %3 = vector.broadcast %cst_2 : f32 to vector<2x64xf32>
    %cst_3 = arith.constant 0.000000e+00 : f32
    %4 = vector.broadcast %cst_3 : f32 to vector<2x64xf32>
    %cst_4 = arith.constant 0.000000e+00 : f32
    %5 = vector.broadcast %cst_4 : f32 to vector<2x32xf32>
    %c0 = arith.constant 0 : index
    %c0_5 = arith.constant 0 : index
    %c0_6 = arith.constant 0 : index
    %6 = vector.load %arg0[%c0, %c0_5, %c0_6] : memref<8x2x4xf32, #tpu.memory_space<vmem>>, vector<1x2x4xf32>
    %7 = vector.shape_cast %6 : vector<1x2x4xf32> to vector<2x4xf32>
    %8 = arith.truncf %7 : vector<2x4xf32> to vector<2x4xbf16>
    %c0_7 = arith.constant 0 : index
    %c0_8 = arith.constant 0 : index
    %9 = vector.load %arg1[%c0_7, %c0_8] : memref<4x256xbf16, #tpu.memory_space<vmem>>, vector<4x256xbf16>
    %cst_9 = arith.constant dense<0.000000e+00> : vector<2x256xf32>
    %10 = tpu.matmul %8, %9, %cst_9 {dimension_numbers = #tpu.dot_dimension_numbers<[1], [0], [0], [1], [0, 0, 1, 1], [], []>} : vector<2x4xbf16>, vector<4x256xbf16>, vector<2x256xf32> -> vector<2x256xf32>
    %11 = arith.truncf %0 : vector<2x64xf32> to vector<2x64xbf16>
    %c0_10 = arith.constant 0 : index
    %c0_11 = arith.constant 0 : index
    %12 = vector.load %arg2[%c0_10, %c0_11] : memref<64x256xbf16, #tpu.memory_space<vmem>>, vector<64x256xbf16>
    %cst_12 = arith.constant dense<0.000000e+00> : vector<2x256xf32>
    %13 = tpu.matmul %11, %12, %cst_12 {dimension_numbers = #tpu.dot_dimension_numbers<[1], [0], [0], [1], [0, 0, 1, 1], [], []>} : vector<2x64xbf16>, vector<64x256xbf16>, vector<2x256xf32> -> vector<2x256xf32>
    %14 = arith.addf %10, %13 : vector<2x256xf32>
    %c0_13 = arith.constant 0 : index
    %c0_14 = arith.constant 0 : index
    %15 = vector.load %arg3[%c0_13, %c0_14] : memref<1x256xf32, #tpu.memory_space<vmem>>, vector<1x256xf32>
    %16 = vector.broadcast %15 : vector<1x256xf32> to vector<2x256xf32>
    %17 = arith.addf %14, %16 : vector<2x256xf32>
    %18 = vector.extract_strided_slice %17 {offsets = [0, 0], sizes = [2, 192], strides = [1, 1]} : vector<2x256xf32> to vector<2x192xf32>
    %19 = arith.negf %18 : vector<2x192xf32>
    %20 = math.exp %19 : vector<2x192xf32>
    %cst_15 = arith.constant 1.000000e+00 : f32
    %21 = vector.broadcast %cst_15 : f32 to vector<2x192xf32>
    %22 = arith.addf %21, %20 : vector<2x192xf32>
    %23 = arith.divf %21, %22 : vector<2x192xf32>
    %24 = vector.extract_strided_slice %17 {offsets = [0, 192], sizes = [2, 64], strides = [1, 1]} : vector<2x256xf32> to vector<2x64xf32>
    %25 = math.tanh %24 : vector<2x64xf32>
    %26 = vector.extract_strided_slice %23 {offsets = [0, 0], sizes = [2, 64], strides = [1, 1]} : vector<2x192xf32> to vector<2x64xf32>
    %27 = vector.extract_strided_slice %23 {offsets = [0, 64], sizes = [2, 64], strides = [1, 1]} : vector<2x192xf32> to vector<2x64xf32>
    %28 = vector.extract_strided_slice %23 {offsets = [0, 128], sizes = [2, 64], strides = [1, 1]} : vector<2x192xf32> to vector<2x64xf32>
    %29 = arith.mulf %27, %3 : vector<2x64xf32>
    %30 = arith.mulf %26, %25 : vector<2x64xf32>
    %31 = arith.addf %29, %30 : vector<2x64xf32>
    %32 = math.tanh %31 : vector<2x64xf32>
    %33 = arith.mulf %28, %32 : vector<2x64xf32>
    %c1 = arith.constant 1 : index
    %c0_16 = arith.constant 0 : index
    %c0_17 = arith.constant 0 : index
    %34 = vector.load %arg0[%c1, %c0_16, %c0_17] : memref<8x2x4xf32, #tpu.memory_space<vmem>>, vector<1x2x4xf32>
    %35 = vector.shape_cast %34 : vector<1x2x4xf32> to vector<2x4xf32>
    %36 = arith.truncf %35 : vector<2x4xf32> to vector<2x4xbf16>
    %c0_18 = arith.constant 0 : index
    %c0_19 = arith.constant 0 : index
    %37 = vector.load %arg1[%c0_18, %c0_19] : memref<4x256xbf16, #tpu.memory_space<vmem>>, vector<4x256xbf16>
    %cst_20 = arith.constant dense<0.000000e+00> : vector<2x256xf32>
    %38 = tpu.matmul %36, %37, %cst_20 {dimension_numbers = #tpu.dot_dimension_numbers<[1], [0], [0], [1], [0, 0, 1, 1], [], []>} : vector<2x4xbf16>, vector<4x256xbf16>, vector<2x256xf32> -> vector<2x256xf32>
    %39 = arith.truncf %33 : vector<2x64xf32> to vector<2x64xbf16>
    %c0_21 = arith.constant 0 : index
    %c0_22 = arith.constant 0 : index
    %40 = vector.load %arg2[%c0_21, %c0_22] : memref<64x256xbf16, #tpu.memory_space<vmem>>, vector<64x256xbf16>
    %cst_23 = arith.constant dense<0.000000e+00> : vector<2x256xf32>
    %41 = tpu.matmul %39, %40, %cst_23 {dimension_numbers = #tpu.dot_dimension_numbers<[1], [0], [0], [1], [0, 0, 1, 1], [], []>} : vector<2x64xbf16>, vector<64x256xbf16>, vector<2x256xf32> -> vector<2x256xf32>
    %42 = arith.addf %38, %41 : vector<2x256xf32>
    %c0_24 = arith.constant 0 : index
    %c0_25 = arith.constant 0 : index
    %43 = vector.load %arg3[%c0_24, %c0_25] : memref<1x256xf32, #tpu.memory_space<vmem>>, vector<1x256xf32>
    %44 = vector.broadcast %43 : vector<1x256xf32> to vector<2x256xf32>
    %45 = arith.addf %42, %44 : vector<2x256xf32>
    %46 = vector.extract_strided_slice %45 {offsets = [0, 0], sizes = [2, 192], strides = [1, 1]} : vector<2x256xf32> to vector<2x192xf32>
    %47 = arith.negf %46 : vector<2x192xf32>
    %48 = math.exp %47 : vector<2x192xf32>
    %cst_26 = arith.constant 1.000000e+00 : f32
    %49 = vector.broadcast %cst_26 : f32 to vector<2x192xf32>
    %50 = arith.addf %49, %48 : vector<2x192xf32>
    %51 = arith.divf %49, %50 : vector<2x192xf32>
    %52 = vector.extract_strided_slice %45 {offsets = [0, 192], sizes = [2, 64], strides = [1, 1]} : vector<2x256xf32> to vector<2x64xf32>
    %53 = math.tanh %52 : vector<2x64xf32>
    %54 = vector.extract_strided_slice %51 {offsets = [0, 0], sizes = [2, 64], strides = [1, 1]} : vector<2x192xf32> to vector<2x64xf32>
    %55 = vector.extract_strided_slice %51 {offsets = [0, 64], sizes = [2, 64], strides = [1, 1]} : vector<2x192xf32> to vector<2x64xf32>
    %56 = vector.extract_strided_slice %51 {offsets = [0, 128], sizes = [2, 64], strides = [1, 1]} : vector<2x192xf32> to vector<2x64xf32>
    %57 = arith.mulf %55, %31 : vector<2x64xf32>
    %58 = arith.mulf %54, %53 : vector<2x64xf32>
    %59 = arith.addf %57, %58 : vector<2x64xf32>
    %60 = math.tanh %59 : vector<2x64xf32>
    %61 = arith.mulf %56, %60 : vector<2x64xf32>
    %62 = arith.truncf %33 : vector<2x64xf32> to vector<2x64xbf16>
    %c0_27 = arith.constant 0 : index
    %c0_28 = arith.constant 0 : index
    %63 = vector.load %arg4[%c0_27, %c0_28] : memref<64x256xbf16, #tpu.memory_space<vmem>>, vector<64x256xbf16>
    %cst_29 = arith.constant dense<0.000000e+00> : vector<2x256xf32>
    %64 = tpu.matmul %62, %63, %cst_29 {dimension_numbers = #tpu.dot_dimension_numbers<[1], [0], [0], [1], [0, 0, 1, 1], [], []>} : vector<2x64xbf16>, vector<64x256xbf16>, vector<2x256xf32> -> vector<2x256xf32>
    %65 = arith.truncf %1 : vector<2x64xf32> to vector<2x64xbf16>
    %c0_30 = arith.constant 0 : index
    %c0_31 = arith.constant 0 : index
    %66 = vector.load %arg5[%c0_30, %c0_31] : memref<64x256xbf16, #tpu.memory_space<vmem>>, vector<64x256xbf16>
    %cst_32 = arith.constant dense<0.000000e+00> : vector<2x256xf32>
    %67 = tpu.matmul %65, %66, %cst_32 {dimension_numbers = #tpu.dot_dimension_numbers<[1], [0], [0], [1], [0, 0, 1, 1], [], []>} : vector<2x64xbf16>, vector<64x256xbf16>, vector<2x256xf32> -> vector<2x256xf32>
    %68 = arith.addf %64, %67 : vector<2x256xf32>
    %c0_33 = arith.constant 0 : index
    %c0_34 = arith.constant 0 : index
    %69 = vector.load %arg6[%c0_33, %c0_34] : memref<1x256xf32, #tpu.memory_space<vmem>>, vector<1x256xf32>
    %70 = vector.broadcast %69 : vector<1x256xf32> to vector<2x256xf32>
    %71 = arith.addf %68, %70 : vector<2x256xf32>
    %72 = vector.extract_strided_slice %71 {offsets = [0, 0], sizes = [2, 192], strides = [1, 1]} : vector<2x256xf32> to vector<2x192xf32>
    %73 = arith.negf %72 : vector<2x192xf32>
    %74 = math.exp %73 : vector<2x192xf32>
    %cst_35 = arith.constant 1.000000e+00 : f32
    %75 = vector.broadcast %cst_35 : f32 to vector<2x192xf32>
    %76 = arith.addf %75, %74 : vector<2x192xf32>
    %77 = arith.divf %75, %76 : vector<2x192xf32>
    %78 = vector.extract_strided_slice %71 {offsets = [0, 192], sizes = [2, 64], strides = [1, 1]} : vector<2x256xf32> to vector<2x64xf32>
    %79 = math.tanh %78 : vector<2x64xf32>
    %80 = vector.extract_strided_slice %77 {offsets = [0, 0], sizes = [2, 64], strides = [1, 1]} : vector<2x192xf32> to vector<2x64xf32>
    %81 = vector.extract_strided_slice %77 {offsets = [0, 64], sizes = [2, 64], strides = [1, 1]} : vector<2x192xf32> to vector<2x64xf32>
    %82 = vector.extract_strided_slice %77 {offsets = [0, 128], sizes = [2, 64], strides = [1, 1]} : vector<2x192xf32> to vector<2x64xf32>
    %83 = arith.mulf %81, %4 : vector<2x64xf32>
    %84 = arith.mulf %80, %79 : vector<2x64xf32>
    %85 = arith.addf %83, %84 : vector<2x64xf32>
    %86 = math.tanh %85 : vector<2x64xf32>
    %87 = arith.mulf %82, %86 : vector<2x64xf32>
    %c2 = arith.constant 2 : index
    %c0_36 = arith.constant 0 : index
    %c0_37 = arith.constant 0 : index
    %88 = vector.load %arg0[%c2, %c0_36, %c0_37] : memref<8x2x4xf32, #tpu.memory_space<vmem>>, vector<1x2x4xf32>
    %89 = vector.shape_cast %88 : vector<1x2x4xf32> to vector<2x4xf32>
    %90 = arith.truncf %89 : vector<2x4xf32> to vector<2x4xbf16>
    %c0_38 = arith.constant 0 : index
    %c0_39 = arith.constant 0 : index
    %91 = vector.load %arg1[%c0_38, %c0_39] : memref<4x256xbf16, #tpu.memory_space<vmem>>, vector<4x256xbf16>
    %cst_40 = arith.constant dense<0.000000e+00> : vector<2x256xf32>
    %92 = tpu.matmul %90, %91, %cst_40 {dimension_numbers = #tpu.dot_dimension_numbers<[1], [0], [0], [1], [0, 0, 1, 1], [], []>} : vector<2x4xbf16>, vector<4x256xbf16>, vector<2x256xf32> -> vector<2x256xf32>
    %93 = arith.truncf %61 : vector<2x64xf32> to vector<2x64xbf16>
    %c0_41 = arith.constant 0 : index
    %c0_42 = arith.constant 0 : index
    %94 = vector.load %arg2[%c0_41, %c0_42] : memref<64x256xbf16, #tpu.memory_space<vmem>>, vector<64x256xbf16>
    %cst_43 = arith.constant dense<0.000000e+00> : vector<2x256xf32>
    %95 = tpu.matmul %93, %94, %cst_43 {dimension_numbers = #tpu.dot_dimension_numbers<[1], [0], [0], [1], [0, 0, 1, 1], [], []>} : vector<2x64xbf16>, vector<64x256xbf16>, vector<2x256xf32> -> vector<2x256xf32>
    %96 = arith.addf %92, %95 : vector<2x256xf32>
    %c0_44 = arith.constant 0 : index
    %c0_45 = arith.constant 0 : index
    %97 = vector.load %arg3[%c0_44, %c0_45] : memref<1x256xf32, #tpu.memory_space<vmem>>, vector<1x256xf32>
    %98 = vector.broadcast %97 : vector<1x256xf32> to vector<2x256xf32>
    %99 = arith.addf %96, %98 : vector<2x256xf32>
    %100 = vector.extract_strided_slice %99 {offsets = [0, 0], sizes = [2, 192], strides = [1, 1]} : vector<2x256xf32> to vector<2x192xf32>
    %101 = arith.negf %100 : vector<2x192xf32>
    %102 = math.exp %101 : vector<2x192xf32>
    %cst_46 = arith.constant 1.000000e+00 : f32
    %103 = vector.broadcast %cst_46 : f32 to vector<2x192xf32>
    %104 = arith.addf %103, %102 : vector<2x192xf32>
    %105 = arith.divf %103, %104 : vector<2x192xf32>
    %106 = vector.extract_strided_slice %99 {offsets = [0, 192], sizes = [2, 64], strides = [1, 1]} : vector<2x256xf32> to vector<2x64xf32>
    %107 = math.tanh %106 : vector<2x64xf32>
    %108 = vector.extract_strided_slice %105 {offsets = [0, 0], sizes = [2, 64], strides = [1, 1]} : vector<2x192xf32> to vector<2x64xf32>
    %109 = vector.extract_strided_slice %105 {offsets = [0, 64], sizes = [2, 64], strides = [1, 1]} : vector<2x192xf32> to vector<2x64xf32>
    %110 = vector.extract_strided_slice %105 {offsets = [0, 128], sizes = [2, 64], strides = [1, 1]} : vector<2x192xf32> to vector<2x64xf32>
    %111 = arith.mulf %109, %59 : vector<2x64xf32>
    %112 = arith.mulf %108, %107 : vector<2x64xf32>
    %113 = arith.addf %111, %112 : vector<2x64xf32>
    %114 = math.tanh %113 : vector<2x64xf32>
    %115 = arith.mulf %110, %114 : vector<2x64xf32>
    %116 = arith.truncf %61 : vector<2x64xf32> to vector<2x64xbf16>
    %c0_47 = arith.constant 0 : index
    %c0_48 = arith.constant 0 : index
    %117 = vector.load %arg4[%c0_47, %c0_48] : memref<64x256xbf16, #tpu.memory_space<vmem>>, vector<64x256xbf16>
    %cst_49 = arith.constant dense<0.000000e+00> : vector<2x256xf32>
    %118 = tpu.matmul %116, %117, %cst_49 {dimension_numbers = #tpu.dot_dimension_numbers<[1], [0], [0], [1], [0, 0, 1, 1], [], []>} : vector<2x64xbf16>, vector<64x256xbf16>, vector<2x256xf32> -> vector<2x256xf32>
    %119 = arith.truncf %87 : vector<2x64xf32> to vector<2x64xbf16>
    %c0_50 = arith.constant 0 : index
    %c0_51 = arith.constant 0 : index
    %120 = vector.load %arg5[%c0_50, %c0_51] : memref<64x256xbf16, #tpu.memory_space<vmem>>, vector<64x256xbf16>
    %cst_52 = arith.constant dense<0.000000e+00> : vector<2x256xf32>
    %121 = tpu.matmul %119, %120, %cst_52 {dimension_numbers = #tpu.dot_dimension_numbers<[1], [0], [0], [1], [0, 0, 1, 1], [], []>} : vector<2x64xbf16>, vector<64x256xbf16>, vector<2x256xf32> -> vector<2x256xf32>
    %122 = arith.addf %118, %121 : vector<2x256xf32>
    %c0_53 = arith.constant 0 : index
    %c0_54 = arith.constant 0 : index
    %123 = vector.load %arg6[%c0_53, %c0_54] : memref<1x256xf32, #tpu.memory_space<vmem>>, vector<1x256xf32>
    %124 = vector.broadcast %123 : vector<1x256xf32> to vector<2x256xf32>
    %125 = arith.addf %122, %124 : vector<2x256xf32>
    %126 = vector.extract_strided_slice %125 {offsets = [0, 0], sizes = [2, 192], strides = [1, 1]} : vector<2x256xf32> to vector<2x192xf32>
    %127 = arith.negf %126 : vector<2x192xf32>
    %128 = math.exp %127 : vector<2x192xf32>
    %cst_55 = arith.constant 1.000000e+00 : f32
    %129 = vector.broadcast %cst_55 : f32 to vector<2x192xf32>
    %130 = arith.addf %129, %128 : vector<2x192xf32>
    %131 = arith.divf %129, %130 : vector<2x192xf32>
    %132 = vector.extract_strided_slice %125 {offsets = [0, 192], sizes = [2, 64], strides = [1, 1]} : vector<2x256xf32> to vector<2x64xf32>
    %133 = math.tanh %132 : vector<2x64xf32>
    %134 = vector.extract_strided_slice %131 {offsets = [0, 0], sizes = [2, 64], strides = [1, 1]} : vector<2x192xf32> to vector<2x64xf32>
    %135 = vector.extract_strided_slice %131 {offsets = [0, 64], sizes = [2, 64], strides = [1, 1]} : vector<2x192xf32> to vector<2x64xf32>
    %136 = vector.extract_strided_slice %131 {offsets = [0, 128], sizes = [2, 64], strides = [1, 1]} : vector<2x192xf32> to vector<2x64xf32>
    %137 = arith.mulf %135, %85 : vector<2x64xf32>
    %138 = arith.mulf %134, %133 : vector<2x64xf32>
    %139 = arith.addf %137, %138 : vector<2x64xf32>
    %140 = math.tanh %139 : vector<2x64xf32>
    %141 = arith.mulf %136, %140 : vector<2x64xf32>
    %142 = arith.truncf %87 : vector<2x64xf32> to vector<2x64xbf16>
    %c0_56 = arith.constant 0 : index
    %c0_57 = arith.constant 0 : index
    %143 = vector.load %arg7[%c0_56, %c0_57] : memref<64x128xbf16, #tpu.memory_space<vmem>>, vector<64x128xbf16>
    %cst_58 = arith.constant dense<0.000000e+00> : vector<2x128xf32>
    %144 = tpu.matmul %142, %143, %cst_58 {dimension_numbers = #tpu.dot_dimension_numbers<[1], [0], [0], [1], [0, 0, 1, 1], [], []>} : vector<2x64xbf16>, vector<64x128xbf16>, vector<2x128xf32> -> vector<2x128xf32>
    %145 = arith.truncf %2 : vector<2x32xf32> to vector<2x32xbf16>
    %c0_59 = arith.constant 0 : index
    %c0_60 = arith.constant 0 : index
    %146 = vector.load %arg8[%c0_59, %c0_60] : memref<32x128xbf16, #tpu.memory_space<vmem>>, vector<32x128xbf16>
    %cst_61 = arith.constant dense<0.000000e+00> : vector<2x128xf32>
    %147 = tpu.matmul %145, %146, %cst_61 {dimension_numbers = #tpu.dot_dimension_numbers<[1], [0], [0], [1], [0, 0, 1, 1], [], []>} : vector<2x32xbf16>, vector<32x128xbf16>, vector<2x128xf32> -> vector<2x128xf32>
    %148 = arith.addf %144, %147 : vector<2x128xf32>
    %c0_62 = arith.constant 0 : index
    %c0_63 = arith.constant 0 : index
    %149 = vector.load %arg9[%c0_62, %c0_63] : memref<1x128xf32, #tpu.memory_space<vmem>>, vector<1x128xf32>
    %150 = vector.broadcast %149 : vector<1x128xf32> to vector<2x128xf32>
    %151 = arith.addf %148, %150 : vector<2x128xf32>
    %152 = vector.extract_strided_slice %151 {offsets = [0, 0], sizes = [2, 96], strides = [1, 1]} : vector<2x128xf32> to vector<2x96xf32>
    %153 = arith.negf %152 : vector<2x96xf32>
    %154 = math.exp %153 : vector<2x96xf32>
    %cst_64 = arith.constant 1.000000e+00 : f32
    %155 = vector.broadcast %cst_64 : f32 to vector<2x96xf32>
    %156 = arith.addf %155, %154 : vector<2x96xf32>
    %157 = arith.divf %155, %156 : vector<2x96xf32>
    %158 = vector.extract_strided_slice %151 {offsets = [0, 96], sizes = [2, 32], strides = [1, 1]} : vector<2x128xf32> to vector<2x32xf32>
    %159 = math.tanh %158 : vector<2x32xf32>
    %160 = vector.extract_strided_slice %157 {offsets = [0, 0], sizes = [2, 32], strides = [1, 1]} : vector<2x96xf32> to vector<2x32xf32>
    %161 = vector.extract_strided_slice %157 {offsets = [0, 32], sizes = [2, 32], strides = [1, 1]} : vector<2x96xf32> to vector<2x32xf32>
    %162 = vector.extract_strided_slice %157 {offsets = [0, 64], sizes = [2, 32], strides = [1, 1]} : vector<2x96xf32> to vector<2x32xf32>
    %163 = arith.mulf %161, %5 : vector<2x32xf32>
    %164 = arith.mulf %160, %159 : vector<2x32xf32>
    %165 = arith.addf %163, %164 : vector<2x32xf32>
    %166 = math.tanh %165 : vector<2x32xf32>
    %167 = arith.mulf %162, %166 : vector<2x32xf32>
    %c3 = arith.constant 3 : index
    %c0_65 = arith.constant 0 : index
    %c0_66 = arith.constant 0 : index
    %168 = vector.load %arg0[%c3, %c0_65, %c0_66] : memref<8x2x4xf32, #tpu.memory_space<vmem>>, vector<1x2x4xf32>
    %169 = vector.shape_cast %168 : vector<1x2x4xf32> to vector<2x4xf32>
    %170 = arith.truncf %169 : vector<2x4xf32> to vector<2x4xbf16>
    %c0_67 = arith.constant 0 : index
    %c0_68 = arith.constant 0 : index
    %171 = vector.load %arg1[%c0_67, %c0_68] : memref<4x256xbf16, #tpu.memory_space<vmem>>, vector<4x256xbf16>
    %cst_69 = arith.constant dense<0.000000e+00> : vector<2x256xf32>
    %172 = tpu.matmul %170, %171, %cst_69 {dimension_numbers = #tpu.dot_dimension_numbers<[1], [0], [0], [1], [0, 0, 1, 1], [], []>} : vector<2x4xbf16>, vector<4x256xbf16>, vector<2x256xf32> -> vector<2x256xf32>
    %173 = arith.truncf %115 : vector<2x64xf32> to vector<2x64xbf16>
    %c0_70 = arith.constant 0 : index
    %c0_71 = arith.constant 0 : index
    %174 = vector.load %arg2[%c0_70, %c0_71] : memref<64x256xbf16, #tpu.memory_space<vmem>>, vector<64x256xbf16>
    %cst_72 = arith.constant dense<0.000000e+00> : vector<2x256xf32>
    %175 = tpu.matmul %173, %174, %cst_72 {dimension_numbers = #tpu.dot_dimension_numbers<[1], [0], [0], [1], [0, 0, 1, 1], [], []>} : vector<2x64xbf16>, vector<64x256xbf16>, vector<2x256xf32> -> vector<2x256xf32>
    %176 = arith.addf %172, %175 : vector<2x256xf32>
    %c0_73 = arith.constant 0 : index
    %c0_74 = arith.constant 0 : index
    %177 = vector.load %arg3[%c0_73, %c0_74] : memref<1x256xf32, #tpu.memory_space<vmem>>, vector<1x256xf32>
    %178 = vector.broadcast %177 : vector<1x256xf32> to vector<2x256xf32>
    %179 = arith.addf %176, %178 : vector<2x256xf32>
    %180 = vector.extract_strided_slice %179 {offsets = [0, 0], sizes = [2, 192], strides = [1, 1]} : vector<2x256xf32> to vector<2x192xf32>
    %181 = arith.negf %180 : vector<2x192xf32>
    %182 = math.exp %181 : vector<2x192xf32>
    %cst_75 = arith.constant 1.000000e+00 : f32
    %183 = vector.broadcast %cst_75 : f32 to vector<2x192xf32>
    %184 = arith.addf %183, %182 : vector<2x192xf32>
    %185 = arith.divf %183, %184 : vector<2x192xf32>
    %186 = vector.extract_strided_slice %179 {offsets = [0, 192], sizes = [2, 64], strides = [1, 1]} : vector<2x256xf32> to vector<2x64xf32>
    %187 = math.tanh %186 : vector<2x64xf32>
    %188 = vector.extract_strided_slice %185 {offsets = [0, 0], sizes = [2, 64], strides = [1, 1]} : vector<2x192xf32> to vector<2x64xf32>
    %189 = vector.extract_strided_slice %185 {offsets = [0, 64], sizes = [2, 64], strides = [1, 1]} : vector<2x192xf32> to vector<2x64xf32>
    %190 = vector.extract_strided_slice %185 {offsets = [0, 128], sizes = [2, 64], strides = [1, 1]} : vector<2x192xf32> to vector<2x64xf32>
    %191 = arith.mulf %189, %113 : vector<2x64xf32>
    %192 = arith.mulf %188, %187 : vector<2x64xf32>
    %193 = arith.addf %191, %192 : vector<2x64xf32>
    %194 = math.tanh %193 : vector<2x64xf32>
    %195 = arith.mulf %190, %194 : vector<2x64xf32>
    %196 = arith.truncf %115 : vector<2x64xf32> to vector<2x64xbf16>
    %c0_76 = arith.constant 0 : index
    %c0_77 = arith.constant 0 : index
    %197 = vector.load %arg4[%c0_76, %c0_77] : memref<64x256xbf16, #tpu.memory_space<vmem>>, vector<64x256xbf16>
    %cst_78 = arith.constant dense<0.000000e+00> : vector<2x256xf32>
    %198 = tpu.matmul %196, %197, %cst_78 {dimension_numbers = #tpu.dot_dimension_numbers<[1], [0], [0], [1], [0, 0, 1, 1], [], []>} : vector<2x64xbf16>, vector<64x256xbf16>, vector<2x256xf32> -> vector<2x256xf32>
    %199 = arith.truncf %141 : vector<2x64xf32> to vector<2x64xbf16>
    %c0_79 = arith.constant 0 : index
    %c0_80 = arith.constant 0 : index
    %200 = vector.load %arg5[%c0_79, %c0_80] : memref<64x256xbf16, #tpu.memory_space<vmem>>, vector<64x256xbf16>
    %cst_81 = arith.constant dense<0.000000e+00> : vector<2x256xf32>
    %201 = tpu.matmul %199, %200, %cst_81 {dimension_numbers = #tpu.dot_dimension_numbers<[1], [0], [0], [1], [0, 0, 1, 1], [], []>} : vector<2x64xbf16>, vector<64x256xbf16>, vector<2x256xf32> -> vector<2x256xf32>
    %202 = arith.addf %198, %201 : vector<2x256xf32>
    %c0_82 = arith.constant 0 : index
    %c0_83 = arith.constant 0 : index
    %203 = vector.load %arg6[%c0_82, %c0_83] : memref<1x256xf32, #tpu.memory_space<vmem>>, vector<1x256xf32>
    %204 = vector.broadcast %203 : vector<1x256xf32> to vector<2x256xf32>
    %205 = arith.addf %202, %204 : vector<2x256xf32>
    %206 = vector.extract_strided_slice %205 {offsets = [0, 0], sizes = [2, 192], strides = [1, 1]} : vector<2x256xf32> to vector<2x192xf32>
    %207 = arith.negf %206 : vector<2x192xf32>
    %208 = math.exp %207 : vector<2x192xf32>
    %cst_84 = arith.constant 1.000000e+00 : f32
    %209 = vector.broadcast %cst_84 : f32 to vector<2x192xf32>
    %210 = arith.addf %209, %208 : vector<2x192xf32>
    %211 = arith.divf %209, %210 : vector<2x192xf32>
    %212 = vector.extract_strided_slice %205 {offsets = [0, 192], sizes = [2, 64], strides = [1, 1]} : vector<2x256xf32> to vector<2x64xf32>
    %213 = math.tanh %212 : vector<2x64xf32>
    %214 = vector.extract_strided_slice %211 {offsets = [0, 0], sizes = [2, 64], strides = [1, 1]} : vector<2x192xf32> to vector<2x64xf32>
    %215 = vector.extract_strided_slice %211 {offsets = [0, 64], sizes = [2, 64], strides = [1, 1]} : vector<2x192xf32> to vector<2x64xf32>
    %216 = vector.extract_strided_slice %211 {offsets = [0, 128], sizes = [2, 64], strides = [1, 1]} : vector<2x192xf32> to vector<2x64xf32>
    %217 = arith.mulf %215, %139 : vector<2x64xf32>
    %218 = arith.mulf %214, %213 : vector<2x64xf32>
    %219 = arith.addf %217, %218 : vector<2x64xf32>
    %220 = math.tanh %219 : vector<2x64xf32>
    %221 = arith.mulf %216, %220 : vector<2x64xf32>
    %222 = arith.truncf %141 : vector<2x64xf32> to vector<2x64xbf16>
    %c0_85 = arith.constant 0 : index
    %c0_86 = arith.constant 0 : index
    %223 = vector.load %arg7[%c0_85, %c0_86] : memref<64x128xbf16, #tpu.memory_space<vmem>>, vector<64x128xbf16>
    %cst_87 = arith.constant dense<0.000000e+00> : vector<2x128xf32>
    %224 = tpu.matmul %222, %223, %cst_87 {dimension_numbers = #tpu.dot_dimension_numbers<[1], [0], [0], [1], [0, 0, 1, 1], [], []>} : vector<2x64xbf16>, vector<64x128xbf16>, vector<2x128xf32> -> vector<2x128xf32>
    %225 = arith.truncf %167 : vector<2x32xf32> to vector<2x32xbf16>
    %c0_88 = arith.constant 0 : index
    %c0_89 = arith.constant 0 : index
    %226 = vector.load %arg8[%c0_88, %c0_89] : memref<32x128xbf16, #tpu.memory_space<vmem>>, vector<32x128xbf16>
    %cst_90 = arith.constant dense<0.000000e+00> : vector<2x128xf32>
    %227 = tpu.matmul %225, %226, %cst_90 {dimension_numbers = #tpu.dot_dimension_numbers<[1], [0], [0], [1], [0, 0, 1, 1], [], []>} : vector<2x32xbf16>, vector<32x128xbf16>, vector<2x128xf32> -> vector<2x128xf32>
    %228 = arith.addf %224, %227 : vector<2x128xf32>
    %c0_91 = arith.constant 0 : index
    %c0_92 = arith.constant 0 : index
    %229 = vector.load %arg9[%c0_91, %c0_92] : memref<1x128xf32, #tpu.memory_space<vmem>>, vector<1x128xf32>
    %230 = vector.broadcast %229 : vector<1x128xf32> to vector<2x128xf32>
    %231 = arith.addf %228, %230 : vector<2x128xf32>
    %232 = vector.extract_strided_slice %231 {offsets = [0, 0], sizes = [2, 96], strides = [1, 1]} : vector<2x128xf32> to vector<2x96xf32>
    %233 = arith.negf %232 : vector<2x96xf32>
    %234 = math.exp %233 : vector<2x96xf32>
    %cst_93 = arith.constant 1.000000e+00 : f32
    %235 = vector.broadcast %cst_93 : f32 to vector<2x96xf32>
    %236 = arith.addf %235, %234 : vector<2x96xf32>
    %237 = arith.divf %235, %236 : vector<2x96xf32>
    %238 = vector.extract_strided_slice %231 {offsets = [0, 96], sizes = [2, 32], strides = [1, 1]} : vector<2x128xf32> to vector<2x32xf32>
    %239 = math.tanh %238 : vector<2x32xf32>
    %240 = vector.extract_strided_slice %237 {offsets = [0, 0], sizes = [2, 32], strides = [1, 1]} : vector<2x96xf32> to vector<2x32xf32>
    %241 = vector.extract_strided_slice %237 {offsets = [0, 32], sizes = [2, 32], strides = [1, 1]} : vector<2x96xf32> to vector<2x32xf32>
    %242 = vector.extract_strided_slice %237 {offsets = [0, 64], sizes = [2, 32], strides = [1, 1]} : vector<2x96xf32> to vector<2x32xf32>
    %243 = arith.mulf %241, %165 : vector<2x32xf32>
    %244 = arith.mulf %240, %239 : vector<2x32xf32>
    %245 = arith.addf %243, %244 : vector<2x32xf32>
    %246 = math.tanh %245 : vector<2x32xf32>
    %247 = arith.mulf %242, %246 : vector<2x32xf32>
    %c4 = arith.constant 4 : index
    %c0_94 = arith.constant 0 : index
    %c0_95 = arith.constant 0 : index
    %248 = vector.load %arg0[%c4, %c0_94, %c0_95] : memref<8x2x4xf32, #tpu.memory_space<vmem>>, vector<1x2x4xf32>
    %249 = vector.shape_cast %248 : vector<1x2x4xf32> to vector<2x4xf32>
    %250 = arith.truncf %249 : vector<2x4xf32> to vector<2x4xbf16>
    %c0_96 = arith.constant 0 : index
    %c0_97 = arith.constant 0 : index
    %251 = vector.load %arg1[%c0_96, %c0_97] : memref<4x256xbf16, #tpu.memory_space<vmem>>, vector<4x256xbf16>
    %cst_98 = arith.constant dense<0.000000e+00> : vector<2x256xf32>
    %252 = tpu.matmul %250, %251, %cst_98 {dimension_numbers = #tpu.dot_dimension_numbers<[1], [0], [0], [1], [0, 0, 1, 1], [], []>} : vector<2x4xbf16>, vector<4x256xbf16>, vector<2x256xf32> -> vector<2x256xf32>
    %253 = arith.truncf %195 : vector<2x64xf32> to vector<2x64xbf16>
    %c0_99 = arith.constant 0 : index
    %c0_100 = arith.constant 0 : index
    %254 = vector.load %arg2[%c0_99, %c0_100] : memref<64x256xbf16, #tpu.memory_space<vmem>>, vector<64x256xbf16>
    %cst_101 = arith.constant dense<0.000000e+00> : vector<2x256xf32>
    %255 = tpu.matmul %253, %254, %cst_101 {dimension_numbers = #tpu.dot_dimension_numbers<[1], [0], [0], [1], [0, 0, 1, 1], [], []>} : vector<2x64xbf16>, vector<64x256xbf16>, vector<2x256xf32> -> vector<2x256xf32>
    %256 = arith.addf %252, %255 : vector<2x256xf32>
    %c0_102 = arith.constant 0 : index
    %c0_103 = arith.constant 0 : index
    %257 = vector.load %arg3[%c0_102, %c0_103] : memref<1x256xf32, #tpu.memory_space<vmem>>, vector<1x256xf32>
    %258 = vector.broadcast %257 : vector<1x256xf32> to vector<2x256xf32>
    %259 = arith.addf %256, %258 : vector<2x256xf32>
    %260 = vector.extract_strided_slice %259 {offsets = [0, 0], sizes = [2, 192], strides = [1, 1]} : vector<2x256xf32> to vector<2x192xf32>
    %261 = arith.negf %260 : vector<2x192xf32>
    %262 = math.exp %261 : vector<2x192xf32>
    %cst_104 = arith.constant 1.000000e+00 : f32
    %263 = vector.broadcast %cst_104 : f32 to vector<2x192xf32>
    %264 = arith.addf %263, %262 : vector<2x192xf32>
    %265 = arith.divf %263, %264 : vector<2x192xf32>
    %266 = vector.extract_strided_slice %259 {offsets = [0, 192], sizes = [2, 64], strides = [1, 1]} : vector<2x256xf32> to vector<2x64xf32>
    %267 = math.tanh %266 : vector<2x64xf32>
    %268 = vector.extract_strided_slice %265 {offsets = [0, 0], sizes = [2, 64], strides = [1, 1]} : vector<2x192xf32> to vector<2x64xf32>
    %269 = vector.extract_strided_slice %265 {offsets = [0, 64], sizes = [2, 64], strides = [1, 1]} : vector<2x192xf32> to vector<2x64xf32>
    %270 = vector.extract_strided_slice %265 {offsets = [0, 128], sizes = [2, 64], strides = [1, 1]} : vector<2x192xf32> to vector<2x64xf32>
    %271 = arith.mulf %269, %193 : vector<2x64xf32>
    %272 = arith.mulf %268, %267 : vector<2x64xf32>
    %273 = arith.addf %271, %272 : vector<2x64xf32>
    %274 = math.tanh %273 : vector<2x64xf32>
    %275 = arith.mulf %270, %274 : vector<2x64xf32>
    %276 = arith.truncf %195 : vector<2x64xf32> to vector<2x64xbf16>
    %c0_105 = arith.constant 0 : index
    %c0_106 = arith.constant 0 : index
    %277 = vector.load %arg4[%c0_105, %c0_106] : memref<64x256xbf16, #tpu.memory_space<vmem>>, vector<64x256xbf16>
    %cst_107 = arith.constant dense<0.000000e+00> : vector<2x256xf32>
    %278 = tpu.matmul %276, %277, %cst_107 {dimension_numbers = #tpu.dot_dimension_numbers<[1], [0], [0], [1], [0, 0, 1, 1], [], []>} : vector<2x64xbf16>, vector<64x256xbf16>, vector<2x256xf32> -> vector<2x256xf32>
    %279 = arith.truncf %221 : vector<2x64xf32> to vector<2x64xbf16>
    %c0_108 = arith.constant 0 : index
    %c0_109 = arith.constant 0 : index
    %280 = vector.load %arg5[%c0_108, %c0_109] : memref<64x256xbf16, #tpu.memory_space<vmem>>, vector<64x256xbf16>
    %cst_110 = arith.constant dense<0.000000e+00> : vector<2x256xf32>
    %281 = tpu.matmul %279, %280, %cst_110 {dimension_numbers = #tpu.dot_dimension_numbers<[1], [0], [0], [1], [0, 0, 1, 1], [], []>} : vector<2x64xbf16>, vector<64x256xbf16>, vector<2x256xf32> -> vector<2x256xf32>
    %282 = arith.addf %278, %281 : vector<2x256xf32>
    %c0_111 = arith.constant 0 : index
    %c0_112 = arith.constant 0 : index
    %283 = vector.load %arg6[%c0_111, %c0_112] : memref<1x256xf32, #tpu.memory_space<vmem>>, vector<1x256xf32>
    %284 = vector.broadcast %283 : vector<1x256xf32> to vector<2x256xf32>
    %285 = arith.addf %282, %284 : vector<2x256xf32>
    %286 = vector.extract_strided_slice %285 {offsets = [0, 0], sizes = [2, 192], strides = [1, 1]} : vector<2x256xf32> to vector<2x192xf32>
    %287 = arith.negf %286 : vector<2x192xf32>
    %288 = math.exp %287 : vector<2x192xf32>
    %cst_113 = arith.constant 1.000000e+00 : f32
    %289 = vector.broadcast %cst_113 : f32 to vector<2x192xf32>
    %290 = arith.addf %289, %288 : vector<2x192xf32>
    %291 = arith.divf %289, %290 : vector<2x192xf32>
    %292 = vector.extract_strided_slice %285 {offsets = [0, 192], sizes = [2, 64], strides = [1, 1]} : vector<2x256xf32> to vector<2x64xf32>
    %293 = math.tanh %292 : vector<2x64xf32>
    %294 = vector.extract_strided_slice %291 {offsets = [0, 0], sizes = [2, 64], strides = [1, 1]} : vector<2x192xf32> to vector<2x64xf32>
    %295 = vector.extract_strided_slice %291 {offsets = [0, 64], sizes = [2, 64], strides = [1, 1]} : vector<2x192xf32> to vector<2x64xf32>
    %296 = vector.extract_strided_slice %291 {offsets = [0, 128], sizes = [2, 64], strides = [1, 1]} : vector<2x192xf32> to vector<2x64xf32>
    %297 = arith.mulf %295, %219 : vector<2x64xf32>
    %298 = arith.mulf %294, %293 : vector<2x64xf32>
    %299 = arith.addf %297, %298 : vector<2x64xf32>
    %300 = math.tanh %299 : vector<2x64xf32>
    %301 = arith.mulf %296, %300 : vector<2x64xf32>
    %302 = arith.truncf %221 : vector<2x64xf32> to vector<2x64xbf16>
    %c0_114 = arith.constant 0 : index
    %c0_115 = arith.constant 0 : index
    %303 = vector.load %arg7[%c0_114, %c0_115] : memref<64x128xbf16, #tpu.memory_space<vmem>>, vector<64x128xbf16>
    %cst_116 = arith.constant dense<0.000000e+00> : vector<2x128xf32>
    %304 = tpu.matmul %302, %303, %cst_116 {dimension_numbers = #tpu.dot_dimension_numbers<[1], [0], [0], [1], [0, 0, 1, 1], [], []>} : vector<2x64xbf16>, vector<64x128xbf16>, vector<2x128xf32> -> vector<2x128xf32>
    %305 = arith.truncf %247 : vector<2x32xf32> to vector<2x32xbf16>
    %c0_117 = arith.constant 0 : index
    %c0_118 = arith.constant 0 : index
    %306 = vector.load %arg8[%c0_117, %c0_118] : memref<32x128xbf16, #tpu.memory_space<vmem>>, vector<32x128xbf16>
    %cst_119 = arith.constant dense<0.000000e+00> : vector<2x128xf32>
    %307 = tpu.matmul %305, %306, %cst_119 {dimension_numbers = #tpu.dot_dimension_numbers<[1], [0], [0], [1], [0, 0, 1, 1], [], []>} : vector<2x32xbf16>, vector<32x128xbf16>, vector<2x128xf32> -> vector<2x128xf32>
    %308 = arith.addf %304, %307 : vector<2x128xf32>
    %c0_120 = arith.constant 0 : index
    %c0_121 = arith.constant 0 : index
    %309 = vector.load %arg9[%c0_120, %c0_121] : memref<1x128xf32, #tpu.memory_space<vmem>>, vector<1x128xf32>
    %310 = vector.broadcast %309 : vector<1x128xf32> to vector<2x128xf32>
    %311 = arith.addf %308, %310 : vector<2x128xf32>
    %312 = vector.extract_strided_slice %311 {offsets = [0, 0], sizes = [2, 96], strides = [1, 1]} : vector<2x128xf32> to vector<2x96xf32>
    %313 = arith.negf %312 : vector<2x96xf32>
    %314 = math.exp %313 : vector<2x96xf32>
    %cst_122 = arith.constant 1.000000e+00 : f32
    %315 = vector.broadcast %cst_122 : f32 to vector<2x96xf32>
    %316 = arith.addf %315, %314 : vector<2x96xf32>
    %317 = arith.divf %315, %316 : vector<2x96xf32>
    %318 = vector.extract_strided_slice %311 {offsets = [0, 96], sizes = [2, 32], strides = [1, 1]} : vector<2x128xf32> to vector<2x32xf32>
    %319 = math.tanh %318 : vector<2x32xf32>
    %320 = vector.extract_strided_slice %317 {offsets = [0, 0], sizes = [2, 32], strides = [1, 1]} : vector<2x96xf32> to vector<2x32xf32>
    %321 = vector.extract_strided_slice %317 {offsets = [0, 32], sizes = [2, 32], strides = [1, 1]} : vector<2x96xf32> to vector<2x32xf32>
    %322 = vector.extract_strided_slice %317 {offsets = [0, 64], sizes = [2, 32], strides = [1, 1]} : vector<2x96xf32> to vector<2x32xf32>
    %323 = arith.mulf %321, %245 : vector<2x32xf32>
    %324 = arith.mulf %320, %319 : vector<2x32xf32>
    %325 = arith.addf %323, %324 : vector<2x32xf32>
    %326 = math.tanh %325 : vector<2x32xf32>
    %327 = arith.mulf %322, %326 : vector<2x32xf32>
    %c5 = arith.constant 5 : index
    %c0_123 = arith.constant 0 : index
    %c0_124 = arith.constant 0 : index
    %328 = vector.load %arg0[%c5, %c0_123, %c0_124] : memref<8x2x4xf32, #tpu.memory_space<vmem>>, vector<1x2x4xf32>
    %329 = vector.shape_cast %328 : vector<1x2x4xf32> to vector<2x4xf32>
    %330 = arith.truncf %329 : vector<2x4xf32> to vector<2x4xbf16>
    %c0_125 = arith.constant 0 : index
    %c0_126 = arith.constant 0 : index
    %331 = vector.load %arg1[%c0_125, %c0_126] : memref<4x256xbf16, #tpu.memory_space<vmem>>, vector<4x256xbf16>
    %cst_127 = arith.constant dense<0.000000e+00> : vector<2x256xf32>
    %332 = tpu.matmul %330, %331, %cst_127 {dimension_numbers = #tpu.dot_dimension_numbers<[1], [0], [0], [1], [0, 0, 1, 1], [], []>} : vector<2x4xbf16>, vector<4x256xbf16>, vector<2x256xf32> -> vector<2x256xf32>
    %333 = arith.truncf %275 : vector<2x64xf32> to vector<2x64xbf16>
    %c0_128 = arith.constant 0 : index
    %c0_129 = arith.constant 0 : index
    %334 = vector.load %arg2[%c0_128, %c0_129] : memref<64x256xbf16, #tpu.memory_space<vmem>>, vector<64x256xbf16>
    %cst_130 = arith.constant dense<0.000000e+00> : vector<2x256xf32>
    %335 = tpu.matmul %333, %334, %cst_130 {dimension_numbers = #tpu.dot_dimension_numbers<[1], [0], [0], [1], [0, 0, 1, 1], [], []>} : vector<2x64xbf16>, vector<64x256xbf16>, vector<2x256xf32> -> vector<2x256xf32>
    %336 = arith.addf %332, %335 : vector<2x256xf32>
    %c0_131 = arith.constant 0 : index
    %c0_132 = arith.constant 0 : index
    %337 = vector.load %arg3[%c0_131, %c0_132] : memref<1x256xf32, #tpu.memory_space<vmem>>, vector<1x256xf32>
    %338 = vector.broadcast %337 : vector<1x256xf32> to vector<2x256xf32>
    %339 = arith.addf %336, %338 : vector<2x256xf32>
    %340 = vector.extract_strided_slice %339 {offsets = [0, 0], sizes = [2, 192], strides = [1, 1]} : vector<2x256xf32> to vector<2x192xf32>
    %341 = arith.negf %340 : vector<2x192xf32>
    %342 = math.exp %341 : vector<2x192xf32>
    %cst_133 = arith.constant 1.000000e+00 : f32
    %343 = vector.broadcast %cst_133 : f32 to vector<2x192xf32>
    %344 = arith.addf %343, %342 : vector<2x192xf32>
    %345 = arith.divf %343, %344 : vector<2x192xf32>
    %346 = vector.extract_strided_slice %339 {offsets = [0, 192], sizes = [2, 64], strides = [1, 1]} : vector<2x256xf32> to vector<2x64xf32>
    %347 = math.tanh %346 : vector<2x64xf32>
    %348 = vector.extract_strided_slice %345 {offsets = [0, 0], sizes = [2, 64], strides = [1, 1]} : vector<2x192xf32> to vector<2x64xf32>
    %349 = vector.extract_strided_slice %345 {offsets = [0, 64], sizes = [2, 64], strides = [1, 1]} : vector<2x192xf32> to vector<2x64xf32>
    %350 = vector.extract_strided_slice %345 {offsets = [0, 128], sizes = [2, 64], strides = [1, 1]} : vector<2x192xf32> to vector<2x64xf32>
    %351 = arith.mulf %349, %273 : vector<2x64xf32>
    %352 = arith.mulf %348, %347 : vector<2x64xf32>
    %353 = arith.addf %351, %352 : vector<2x64xf32>
    %354 = math.tanh %353 : vector<2x64xf32>
    %355 = arith.mulf %350, %354 : vector<2x64xf32>
    %356 = arith.truncf %275 : vector<2x64xf32> to vector<2x64xbf16>
    %c0_134 = arith.constant 0 : index
    %c0_135 = arith.constant 0 : index
    %357 = vector.load %arg4[%c0_134, %c0_135] : memref<64x256xbf16, #tpu.memory_space<vmem>>, vector<64x256xbf16>
    %cst_136 = arith.constant dense<0.000000e+00> : vector<2x256xf32>
    %358 = tpu.matmul %356, %357, %cst_136 {dimension_numbers = #tpu.dot_dimension_numbers<[1], [0], [0], [1], [0, 0, 1, 1], [], []>} : vector<2x64xbf16>, vector<64x256xbf16>, vector<2x256xf32> -> vector<2x256xf32>
    %359 = arith.truncf %301 : vector<2x64xf32> to vector<2x64xbf16>
    %c0_137 = arith.constant 0 : index
    %c0_138 = arith.constant 0 : index
    %360 = vector.load %arg5[%c0_137, %c0_138] : memref<64x256xbf16, #tpu.memory_space<vmem>>, vector<64x256xbf16>
    %cst_139 = arith.constant dense<0.000000e+00> : vector<2x256xf32>
    %361 = tpu.matmul %359, %360, %cst_139 {dimension_numbers = #tpu.dot_dimension_numbers<[1], [0], [0], [1], [0, 0, 1, 1], [], []>} : vector<2x64xbf16>, vector<64x256xbf16>, vector<2x256xf32> -> vector<2x256xf32>
    %362 = arith.addf %358, %361 : vector<2x256xf32>
    %c0_140 = arith.constant 0 : index
    %c0_141 = arith.constant 0 : index
    %363 = vector.load %arg6[%c0_140, %c0_141] : memref<1x256xf32, #tpu.memory_space<vmem>>, vector<1x256xf32>
    %364 = vector.broadcast %363 : vector<1x256xf32> to vector<2x256xf32>
    %365 = arith.addf %362, %364 : vector<2x256xf32>
    %366 = vector.extract_strided_slice %365 {offsets = [0, 0], sizes = [2, 192], strides = [1, 1]} : vector<2x256xf32> to vector<2x192xf32>
    %367 = arith.negf %366 : vector<2x192xf32>
    %368 = math.exp %367 : vector<2x192xf32>
    %cst_142 = arith.constant 1.000000e+00 : f32
    %369 = vector.broadcast %cst_142 : f32 to vector<2x192xf32>
    %370 = arith.addf %369, %368 : vector<2x192xf32>
    %371 = arith.divf %369, %370 : vector<2x192xf32>
    %372 = vector.extract_strided_slice %365 {offsets = [0, 192], sizes = [2, 64], strides = [1, 1]} : vector<2x256xf32> to vector<2x64xf32>
    %373 = math.tanh %372 : vector<2x64xf32>
    %374 = vector.extract_strided_slice %371 {offsets = [0, 0], sizes = [2, 64], strides = [1, 1]} : vector<2x192xf32> to vector<2x64xf32>
    %375 = vector.extract_strided_slice %371 {offsets = [0, 64], sizes = [2, 64], strides = [1, 1]} : vector<2x192xf32> to vector<2x64xf32>
    %376 = vector.extract_strided_slice %371 {offsets = [0, 128], sizes = [2, 64], strides = [1, 1]} : vector<2x192xf32> to vector<2x64xf32>
    %377 = arith.mulf %375, %299 : vector<2x64xf32>
    %378 = arith.mulf %374, %373 : vector<2x64xf32>
    %379 = arith.addf %377, %378 : vector<2x64xf32>
    %380 = math.tanh %379 : vector<2x64xf32>
    %381 = arith.mulf %376, %380 : vector<2x64xf32>
    %382 = arith.truncf %301 : vector<2x64xf32> to vector<2x64xbf16>
    %c0_143 = arith.constant 0 : index
    %c0_144 = arith.constant 0 : index
    %383 = vector.load %arg7[%c0_143, %c0_144] : memref<64x128xbf16, #tpu.memory_space<vmem>>, vector<64x128xbf16>
    %cst_145 = arith.constant dense<0.000000e+00> : vector<2x128xf32>
    %384 = tpu.matmul %382, %383, %cst_145 {dimension_numbers = #tpu.dot_dimension_numbers<[1], [0], [0], [1], [0, 0, 1, 1], [], []>} : vector<2x64xbf16>, vector<64x128xbf16>, vector<2x128xf32> -> vector<2x128xf32>
    %385 = arith.truncf %327 : vector<2x32xf32> to vector<2x32xbf16>
    %c0_146 = arith.constant 0 : index
    %c0_147 = arith.constant 0 : index
    %386 = vector.load %arg8[%c0_146, %c0_147] : memref<32x128xbf16, #tpu.memory_space<vmem>>, vector<32x128xbf16>
    %cst_148 = arith.constant dense<0.000000e+00> : vector<2x128xf32>
    %387 = tpu.matmul %385, %386, %cst_148 {dimension_numbers = #tpu.dot_dimension_numbers<[1], [0], [0], [1], [0, 0, 1, 1], [], []>} : vector<2x32xbf16>, vector<32x128xbf16>, vector<2x128xf32> -> vector<2x128xf32>
    %388 = arith.addf %384, %387 : vector<2x128xf32>
    %c0_149 = arith.constant 0 : index
    %c0_150 = arith.constant 0 : index
    %389 = vector.load %arg9[%c0_149, %c0_150] : memref<1x128xf32, #tpu.memory_space<vmem>>, vector<1x128xf32>
    %390 = vector.broadcast %389 : vector<1x128xf32> to vector<2x128xf32>
    %391 = arith.addf %388, %390 : vector<2x128xf32>
    %392 = vector.extract_strided_slice %391 {offsets = [0, 0], sizes = [2, 96], strides = [1, 1]} : vector<2x128xf32> to vector<2x96xf32>
    %393 = arith.negf %392 : vector<2x96xf32>
    %394 = math.exp %393 : vector<2x96xf32>
    %cst_151 = arith.constant 1.000000e+00 : f32
    %395 = vector.broadcast %cst_151 : f32 to vector<2x96xf32>
    %396 = arith.addf %395, %394 : vector<2x96xf32>
    %397 = arith.divf %395, %396 : vector<2x96xf32>
    %398 = vector.extract_strided_slice %391 {offsets = [0, 96], sizes = [2, 32], strides = [1, 1]} : vector<2x128xf32> to vector<2x32xf32>
    %399 = math.tanh %398 : vector<2x32xf32>
    %400 = vector.extract_strided_slice %397 {offsets = [0, 0], sizes = [2, 32], strides = [1, 1]} : vector<2x96xf32> to vector<2x32xf32>
    %401 = vector.extract_strided_slice %397 {offsets = [0, 32], sizes = [2, 32], strides = [1, 1]} : vector<2x96xf32> to vector<2x32xf32>
    %402 = vector.extract_strided_slice %397 {offsets = [0, 64], sizes = [2, 32], strides = [1, 1]} : vector<2x96xf32> to vector<2x32xf32>
    %403 = arith.mulf %401, %325 : vector<2x32xf32>
    %404 = arith.mulf %400, %399 : vector<2x32xf32>
    %405 = arith.addf %403, %404 : vector<2x32xf32>
    %406 = math.tanh %405 : vector<2x32xf32>
    %407 = arith.mulf %402, %406 : vector<2x32xf32>
    %c6 = arith.constant 6 : index
    %c0_152 = arith.constant 0 : index
    %c0_153 = arith.constant 0 : index
    %408 = vector.load %arg0[%c6, %c0_152, %c0_153] : memref<8x2x4xf32, #tpu.memory_space<vmem>>, vector<1x2x4xf32>
    %409 = vector.shape_cast %408 : vector<1x2x4xf32> to vector<2x4xf32>
    %410 = arith.truncf %409 : vector<2x4xf32> to vector<2x4xbf16>
    %c0_154 = arith.constant 0 : index
    %c0_155 = arith.constant 0 : index
    %411 = vector.load %arg1[%c0_154, %c0_155] : memref<4x256xbf16, #tpu.memory_space<vmem>>, vector<4x256xbf16>
    %cst_156 = arith.constant dense<0.000000e+00> : vector<2x256xf32>
    %412 = tpu.matmul %410, %411, %cst_156 {dimension_numbers = #tpu.dot_dimension_numbers<[1], [0], [0], [1], [0, 0, 1, 1], [], []>} : vector<2x4xbf16>, vector<4x256xbf16>, vector<2x256xf32> -> vector<2x256xf32>
    %413 = arith.truncf %355 : vector<2x64xf32> to vector<2x64xbf16>
    %c0_157 = arith.constant 0 : index
    %c0_158 = arith.constant 0 : index
    %414 = vector.load %arg2[%c0_157, %c0_158] : memref<64x256xbf16, #tpu.memory_space<vmem>>, vector<64x256xbf16>
    %cst_159 = arith.constant dense<0.000000e+00> : vector<2x256xf32>
    %415 = tpu.matmul %413, %414, %cst_159 {dimension_numbers = #tpu.dot_dimension_numbers<[1], [0], [0], [1], [0, 0, 1, 1], [], []>} : vector<2x64xbf16>, vector<64x256xbf16>, vector<2x256xf32> -> vector<2x256xf32>
    %416 = arith.addf %412, %415 : vector<2x256xf32>
    %c0_160 = arith.constant 0 : index
    %c0_161 = arith.constant 0 : index
    %417 = vector.load %arg3[%c0_160, %c0_161] : memref<1x256xf32, #tpu.memory_space<vmem>>, vector<1x256xf32>
    %418 = vector.broadcast %417 : vector<1x256xf32> to vector<2x256xf32>
    %419 = arith.addf %416, %418 : vector<2x256xf32>
    %420 = vector.extract_strided_slice %419 {offsets = [0, 0], sizes = [2, 192], strides = [1, 1]} : vector<2x256xf32> to vector<2x192xf32>
    %421 = arith.negf %420 : vector<2x192xf32>
    %422 = math.exp %421 : vector<2x192xf32>
    %cst_162 = arith.constant 1.000000e+00 : f32
    %423 = vector.broadcast %cst_162 : f32 to vector<2x192xf32>
    %424 = arith.addf %423, %422 : vector<2x192xf32>
    %425 = arith.divf %423, %424 : vector<2x192xf32>
    %426 = vector.extract_strided_slice %419 {offsets = [0, 192], sizes = [2, 64], strides = [1, 1]} : vector<2x256xf32> to vector<2x64xf32>
    %427 = math.tanh %426 : vector<2x64xf32>
    %428 = vector.extract_strided_slice %425 {offsets = [0, 0], sizes = [2, 64], strides = [1, 1]} : vector<2x192xf32> to vector<2x64xf32>
    %429 = vector.extract_strided_slice %425 {offsets = [0, 64], sizes = [2, 64], strides = [1, 1]} : vector<2x192xf32> to vector<2x64xf32>
    %430 = vector.extract_strided_slice %425 {offsets = [0, 128], sizes = [2, 64], strides = [1, 1]} : vector<2x192xf32> to vector<2x64xf32>
    %431 = arith.mulf %429, %353 : vector<2x64xf32>
    %432 = arith.mulf %428, %427 : vector<2x64xf32>
    %433 = arith.addf %431, %432 : vector<2x64xf32>
    %434 = math.tanh %433 : vector<2x64xf32>
    %435 = arith.mulf %430, %434 : vector<2x64xf32>
    %436 = arith.truncf %355 : vector<2x64xf32> to vector<2x64xbf16>
    %c0_163 = arith.constant 0 : index
    %c0_164 = arith.constant 0 : index
    %437 = vector.load %arg4[%c0_163, %c0_164] : memref<64x256xbf16, #tpu.memory_space<vmem>>, vector<64x256xbf16>
    %cst_165 = arith.constant dense<0.000000e+00> : vector<2x256xf32>
    %438 = tpu.matmul %436, %437, %cst_165 {dimension_numbers = #tpu.dot_dimension_numbers<[1], [0], [0], [1], [0, 0, 1, 1], [], []>} : vector<2x64xbf16>, vector<64x256xbf16>, vector<2x256xf32> -> vector<2x256xf32>
    %439 = arith.truncf %381 : vector<2x64xf32> to vector<2x64xbf16>
    %c0_166 = arith.constant 0 : index
    %c0_167 = arith.constant 0 : index
    %440 = vector.load %arg5[%c0_166, %c0_167] : memref<64x256xbf16, #tpu.memory_space<vmem>>, vector<64x256xbf16>
    %cst_168 = arith.constant dense<0.000000e+00> : vector<2x256xf32>
    %441 = tpu.matmul %439, %440, %cst_168 {dimension_numbers = #tpu.dot_dimension_numbers<[1], [0], [0], [1], [0, 0, 1, 1], [], []>} : vector<2x64xbf16>, vector<64x256xbf16>, vector<2x256xf32> -> vector<2x256xf32>
    %442 = arith.addf %438, %441 : vector<2x256xf32>
    %c0_169 = arith.constant 0 : index
    %c0_170 = arith.constant 0 : index
    %443 = vector.load %arg6[%c0_169, %c0_170] : memref<1x256xf32, #tpu.memory_space<vmem>>, vector<1x256xf32>
    %444 = vector.broadcast %443 : vector<1x256xf32> to vector<2x256xf32>
    %445 = arith.addf %442, %444 : vector<2x256xf32>
    %446 = vector.extract_strided_slice %445 {offsets = [0, 0], sizes = [2, 192], strides = [1, 1]} : vector<2x256xf32> to vector<2x192xf32>
    %447 = arith.negf %446 : vector<2x192xf32>
    %448 = math.exp %447 : vector<2x192xf32>
    %cst_171 = arith.constant 1.000000e+00 : f32
    %449 = vector.broadcast %cst_171 : f32 to vector<2x192xf32>
    %450 = arith.addf %449, %448 : vector<2x192xf32>
    %451 = arith.divf %449, %450 : vector<2x192xf32>
    %452 = vector.extract_strided_slice %445 {offsets = [0, 192], sizes = [2, 64], strides = [1, 1]} : vector<2x256xf32> to vector<2x64xf32>
    %453 = math.tanh %452 : vector<2x64xf32>
    %454 = vector.extract_strided_slice %451 {offsets = [0, 0], sizes = [2, 64], strides = [1, 1]} : vector<2x192xf32> to vector<2x64xf32>
    %455 = vector.extract_strided_slice %451 {offsets = [0, 64], sizes = [2, 64], strides = [1, 1]} : vector<2x192xf32> to vector<2x64xf32>
    %456 = vector.extract_strided_slice %451 {offsets = [0, 128], sizes = [2, 64], strides = [1, 1]} : vector<2x192xf32> to vector<2x64xf32>
    %457 = arith.mulf %455, %379 : vector<2x64xf32>
    %458 = arith.mulf %454, %453 : vector<2x64xf32>
    %459 = arith.addf %457, %458 : vector<2x64xf32>
    %460 = math.tanh %459 : vector<2x64xf32>
    %461 = arith.mulf %456, %460 : vector<2x64xf32>
    %462 = arith.truncf %381 : vector<2x64xf32> to vector<2x64xbf16>
    %c0_172 = arith.constant 0 : index
    %c0_173 = arith.constant 0 : index
    %463 = vector.load %arg7[%c0_172, %c0_173] : memref<64x128xbf16, #tpu.memory_space<vmem>>, vector<64x128xbf16>
    %cst_174 = arith.constant dense<0.000000e+00> : vector<2x128xf32>
    %464 = tpu.matmul %462, %463, %cst_174 {dimension_numbers = #tpu.dot_dimension_numbers<[1], [0], [0], [1], [0, 0, 1, 1], [], []>} : vector<2x64xbf16>, vector<64x128xbf16>, vector<2x128xf32> -> vector<2x128xf32>
    %465 = arith.truncf %407 : vector<2x32xf32> to vector<2x32xbf16>
    %c0_175 = arith.constant 0 : index
    %c0_176 = arith.constant 0 : index
    %466 = vector.load %arg8[%c0_175, %c0_176] : memref<32x128xbf16, #tpu.memory_space<vmem>>, vector<32x128xbf16>
    %cst_177 = arith.constant dense<0.000000e+00> : vector<2x128xf32>
    %467 = tpu.matmul %465, %466, %cst_177 {dimension_numbers = #tpu.dot_dimension_numbers<[1], [0], [0], [1], [0, 0, 1, 1], [], []>} : vector<2x32xbf16>, vector<32x128xbf16>, vector<2x128xf32> -> vector<2x128xf32>
    %468 = arith.addf %464, %467 : vector<2x128xf32>
    %c0_178 = arith.constant 0 : index
    %c0_179 = arith.constant 0 : index
    %469 = vector.load %arg9[%c0_178, %c0_179] : memref<1x128xf32, #tpu.memory_space<vmem>>, vector<1x128xf32>
    %470 = vector.broadcast %469 : vector<1x128xf32> to vector<2x128xf32>
    %471 = arith.addf %468, %470 : vector<2x128xf32>
    %472 = vector.extract_strided_slice %471 {offsets = [0, 0], sizes = [2, 96], strides = [1, 1]} : vector<2x128xf32> to vector<2x96xf32>
    %473 = arith.negf %472 : vector<2x96xf32>
    %474 = math.exp %473 : vector<2x96xf32>
    %cst_180 = arith.constant 1.000000e+00 : f32
    %475 = vector.broadcast %cst_180 : f32 to vector<2x96xf32>
    %476 = arith.addf %475, %474 : vector<2x96xf32>
    %477 = arith.divf %475, %476 : vector<2x96xf32>
    %478 = vector.extract_strided_slice %471 {offsets = [0, 96], sizes = [2, 32], strides = [1, 1]} : vector<2x128xf32> to vector<2x32xf32>
    %479 = math.tanh %478 : vector<2x32xf32>
    %480 = vector.extract_strided_slice %477 {offsets = [0, 0], sizes = [2, 32], strides = [1, 1]} : vector<2x96xf32> to vector<2x32xf32>
    %481 = vector.extract_strided_slice %477 {offsets = [0, 32], sizes = [2, 32], strides = [1, 1]} : vector<2x96xf32> to vector<2x32xf32>
    %482 = vector.extract_strided_slice %477 {offsets = [0, 64], sizes = [2, 32], strides = [1, 1]} : vector<2x96xf32> to vector<2x32xf32>
    %483 = arith.mulf %481, %405 : vector<2x32xf32>
    %484 = arith.mulf %480, %479 : vector<2x32xf32>
    %485 = arith.addf %483, %484 : vector<2x32xf32>
    %486 = math.tanh %485 : vector<2x32xf32>
    %487 = arith.mulf %482, %486 : vector<2x32xf32>
    %c7 = arith.constant 7 : index
    %c0_181 = arith.constant 0 : index
    %c0_182 = arith.constant 0 : index
    %488 = vector.load %arg0[%c7, %c0_181, %c0_182] : memref<8x2x4xf32, #tpu.memory_space<vmem>>, vector<1x2x4xf32>
    %489 = vector.shape_cast %488 : vector<1x2x4xf32> to vector<2x4xf32>
    %490 = arith.truncf %489 : vector<2x4xf32> to vector<2x4xbf16>
    %c0_183 = arith.constant 0 : index
    %c0_184 = arith.constant 0 : index
    %491 = vector.load %arg1[%c0_183, %c0_184] : memref<4x256xbf16, #tpu.memory_space<vmem>>, vector<4x256xbf16>
    %cst_185 = arith.constant dense<0.000000e+00> : vector<2x256xf32>
    %492 = tpu.matmul %490, %491, %cst_185 {dimension_numbers = #tpu.dot_dimension_numbers<[1], [0], [0], [1], [0, 0, 1, 1], [], []>} : vector<2x4xbf16>, vector<4x256xbf16>, vector<2x256xf32> -> vector<2x256xf32>
    %493 = arith.truncf %435 : vector<2x64xf32> to vector<2x64xbf16>
    %c0_186 = arith.constant 0 : index
    %c0_187 = arith.constant 0 : index
    %494 = vector.load %arg2[%c0_186, %c0_187] : memref<64x256xbf16, #tpu.memory_space<vmem>>, vector<64x256xbf16>
    %cst_188 = arith.constant dense<0.000000e+00> : vector<2x256xf32>
    %495 = tpu.matmul %493, %494, %cst_188 {dimension_numbers = #tpu.dot_dimension_numbers<[1], [0], [0], [1], [0, 0, 1, 1], [], []>} : vector<2x64xbf16>, vector<64x256xbf16>, vector<2x256xf32> -> vector<2x256xf32>
    %496 = arith.addf %492, %495 : vector<2x256xf32>
    %c0_189 = arith.constant 0 : index
    %c0_190 = arith.constant 0 : index
    %497 = vector.load %arg3[%c0_189, %c0_190] : memref<1x256xf32, #tpu.memory_space<vmem>>, vector<1x256xf32>
    %498 = vector.broadcast %497 : vector<1x256xf32> to vector<2x256xf32>
    %499 = arith.addf %496, %498 : vector<2x256xf32>
    %500 = vector.extract_strided_slice %499 {offsets = [0, 0], sizes = [2, 192], strides = [1, 1]} : vector<2x256xf32> to vector<2x192xf32>
    %501 = arith.negf %500 : vector<2x192xf32>
    %502 = math.exp %501 : vector<2x192xf32>
    %cst_191 = arith.constant 1.000000e+00 : f32
    %503 = vector.broadcast %cst_191 : f32 to vector<2x192xf32>
    %504 = arith.addf %503, %502 : vector<2x192xf32>
    %505 = arith.divf %503, %504 : vector<2x192xf32>
    %506 = vector.extract_strided_slice %499 {offsets = [0, 192], sizes = [2, 64], strides = [1, 1]} : vector<2x256xf32> to vector<2x64xf32>
    %507 = math.tanh %506 : vector<2x64xf32>
    %508 = vector.extract_strided_slice %505 {offsets = [0, 0], sizes = [2, 64], strides = [1, 1]} : vector<2x192xf32> to vector<2x64xf32>
    %509 = vector.extract_strided_slice %505 {offsets = [0, 64], sizes = [2, 64], strides = [1, 1]} : vector<2x192xf32> to vector<2x64xf32>
    %510 = vector.extract_strided_slice %505 {offsets = [0, 128], sizes = [2, 64], strides = [1, 1]} : vector<2x192xf32> to vector<2x64xf32>
    %511 = arith.mulf %509, %433 : vector<2x64xf32>
    %512 = arith.mulf %508, %507 : vector<2x64xf32>
    %513 = arith.addf %511, %512 : vector<2x64xf32>
    %514 = math.tanh %513 : vector<2x64xf32>
    %515 = arith.mulf %510, %514 : vector<2x64xf32>
    %516 = arith.truncf %435 : vector<2x64xf32> to vector<2x64xbf16>
    %c0_192 = arith.constant 0 : index
    %c0_193 = arith.constant 0 : index
    %517 = vector.load %arg4[%c0_192, %c0_193] : memref<64x256xbf16, #tpu.memory_space<vmem>>, vector<64x256xbf16>
    %cst_194 = arith.constant dense<0.000000e+00> : vector<2x256xf32>
    %518 = tpu.matmul %516, %517, %cst_194 {dimension_numbers = #tpu.dot_dimension_numbers<[1], [0], [0], [1], [0, 0, 1, 1], [], []>} : vector<2x64xbf16>, vector<64x256xbf16>, vector<2x256xf32> -> vector<2x256xf32>
    %519 = arith.truncf %461 : vector<2x64xf32> to vector<2x64xbf16>
    %c0_195 = arith.constant 0 : index
    %c0_196 = arith.constant 0 : index
    %520 = vector.load %arg5[%c0_195, %c0_196] : memref<64x256xbf16, #tpu.memory_space<vmem>>, vector<64x256xbf16>
    %cst_197 = arith.constant dense<0.000000e+00> : vector<2x256xf32>
    %521 = tpu.matmul %519, %520, %cst_197 {dimension_numbers = #tpu.dot_dimension_numbers<[1], [0], [0], [1], [0, 0, 1, 1], [], []>} : vector<2x64xbf16>, vector<64x256xbf16>, vector<2x256xf32> -> vector<2x256xf32>
    %522 = arith.addf %518, %521 : vector<2x256xf32>
    %c0_198 = arith.constant 0 : index
    %c0_199 = arith.constant 0 : index
    %523 = vector.load %arg6[%c0_198, %c0_199] : memref<1x256xf32, #tpu.memory_space<vmem>>, vector<1x256xf32>
    %524 = vector.broadcast %523 : vector<1x256xf32> to vector<2x256xf32>
    %525 = arith.addf %522, %524 : vector<2x256xf32>
    %526 = vector.extract_strided_slice %525 {offsets = [0, 0], sizes = [2, 192], strides = [1, 1]} : vector<2x256xf32> to vector<2x192xf32>
    %527 = arith.negf %526 : vector<2x192xf32>
    %528 = math.exp %527 : vector<2x192xf32>
    %cst_200 = arith.constant 1.000000e+00 : f32
    %529 = vector.broadcast %cst_200 : f32 to vector<2x192xf32>
    %530 = arith.addf %529, %528 : vector<2x192xf32>
    %531 = arith.divf %529, %530 : vector<2x192xf32>
    %532 = vector.extract_strided_slice %525 {offsets = [0, 192], sizes = [2, 64], strides = [1, 1]} : vector<2x256xf32> to vector<2x64xf32>
    %533 = math.tanh %532 : vector<2x64xf32>
    %534 = vector.extract_strided_slice %531 {offsets = [0, 0], sizes = [2, 64], strides = [1, 1]} : vector<2x192xf32> to vector<2x64xf32>
    %535 = vector.extract_strided_slice %531 {offsets = [0, 64], sizes = [2, 64], strides = [1, 1]} : vector<2x192xf32> to vector<2x64xf32>
    %536 = vector.extract_strided_slice %531 {offsets = [0, 128], sizes = [2, 64], strides = [1, 1]} : vector<2x192xf32> to vector<2x64xf32>
    %537 = arith.mulf %535, %459 : vector<2x64xf32>
    %538 = arith.mulf %534, %533 : vector<2x64xf32>
    %539 = arith.addf %537, %538 : vector<2x64xf32>
    %540 = math.tanh %539 : vector<2x64xf32>
    %541 = arith.mulf %536, %540 : vector<2x64xf32>
    %542 = arith.truncf %461 : vector<2x64xf32> to vector<2x64xbf16>
    %c0_201 = arith.constant 0 : index
    %c0_202 = arith.constant 0 : index
    %543 = vector.load %arg7[%c0_201, %c0_202] : memref<64x128xbf16, #tpu.memory_space<vmem>>, vector<64x128xbf16>
    %cst_203 = arith.constant dense<0.000000e+00> : vector<2x128xf32>
    %544 = tpu.matmul %542, %543, %cst_203 {dimension_numbers = #tpu.dot_dimension_numbers<[1], [0], [0], [1], [0, 0, 1, 1], [], []>} : vector<2x64xbf16>, vector<64x128xbf16>, vector<2x128xf32> -> vector<2x128xf32>
    %545 = arith.truncf %487 : vector<2x32xf32> to vector<2x32xbf16>
    %c0_204 = arith.constant 0 : index
    %c0_205 = arith.constant 0 : index
    %546 = vector.load %arg8[%c0_204, %c0_205] : memref<32x128xbf16, #tpu.memory_space<vmem>>, vector<32x128xbf16>
    %cst_206 = arith.constant dense<0.000000e+00> : vector<2x128xf32>
    %547 = tpu.matmul %545, %546, %cst_206 {dimension_numbers = #tpu.dot_dimension_numbers<[1], [0], [0], [1], [0, 0, 1, 1], [], []>} : vector<2x32xbf16>, vector<32x128xbf16>, vector<2x128xf32> -> vector<2x128xf32>
    %548 = arith.addf %544, %547 : vector<2x128xf32>
    %c0_207 = arith.constant 0 : index
    %c0_208 = arith.constant 0 : index
    %549 = vector.load %arg9[%c0_207, %c0_208] : memref<1x128xf32, #tpu.memory_space<vmem>>, vector<1x128xf32>
    %550 = vector.broadcast %549 : vector<1x128xf32> to vector<2x128xf32>
    %551 = arith.addf %548, %550 : vector<2x128xf32>
    %552 = vector.extract_strided_slice %551 {offsets = [0, 0], sizes = [2, 96], strides = [1, 1]} : vector<2x128xf32> to vector<2x96xf32>
    %553 = arith.negf %552 : vector<2x96xf32>
    %554 = math.exp %553 : vector<2x96xf32>
    %cst_209 = arith.constant 1.000000e+00 : f32
    %555 = vector.broadcast %cst_209 : f32 to vector<2x96xf32>
    %556 = arith.addf %555, %554 : vector<2x96xf32>
    %557 = arith.divf %555, %556 : vector<2x96xf32>
    %558 = vector.extract_strided_slice %551 {offsets = [0, 96], sizes = [2, 32], strides = [1, 1]} : vector<2x128xf32> to vector<2x32xf32>
    %559 = math.tanh %558 : vector<2x32xf32>
    %560 = vector.extract_strided_slice %557 {offsets = [0, 0], sizes = [2, 32], strides = [1, 1]} : vector<2x96xf32> to vector<2x32xf32>
    %561 = vector.extract_strided_slice %557 {offsets = [0, 32], sizes = [2, 32], strides = [1, 1]} : vector<2x96xf32> to vector<2x32xf32>
    %562 = vector.extract_strided_slice %557 {offsets = [0, 64], sizes = [2, 32], strides = [1, 1]} : vector<2x96xf32> to vector<2x32xf32>
    %563 = arith.mulf %561, %485 : vector<2x32xf32>
    %564 = arith.mulf %560, %559 : vector<2x32xf32>
    %565 = arith.addf %563, %564 : vector<2x32xf32>
    %566 = math.tanh %565 : vector<2x32xf32>
    %567 = arith.mulf %562, %566 : vector<2x32xf32>
    %568 = arith.truncf %515 : vector<2x64xf32> to vector<2x64xbf16>
    %c0_210 = arith.constant 0 : index
    %c0_211 = arith.constant 0 : index
    %569 = vector.load %arg4[%c0_210, %c0_211] : memref<64x256xbf16, #tpu.memory_space<vmem>>, vector<64x256xbf16>
    %cst_212 = arith.constant dense<0.000000e+00> : vector<2x256xf32>
    %570 = tpu.matmul %568, %569, %cst_212 {dimension_numbers = #tpu.dot_dimension_numbers<[1], [0], [0], [1], [0, 0, 1, 1], [], []>} : vector<2x64xbf16>, vector<64x256xbf16>, vector<2x256xf32> -> vector<2x256xf32>
    %571 = arith.truncf %541 : vector<2x64xf32> to vector<2x64xbf16>
    %c0_213 = arith.constant 0 : index
    %c0_214 = arith.constant 0 : index
    %572 = vector.load %arg5[%c0_213, %c0_214] : memref<64x256xbf16, #tpu.memory_space<vmem>>, vector<64x256xbf16>
    %cst_215 = arith.constant dense<0.000000e+00> : vector<2x256xf32>
    %573 = tpu.matmul %571, %572, %cst_215 {dimension_numbers = #tpu.dot_dimension_numbers<[1], [0], [0], [1], [0, 0, 1, 1], [], []>} : vector<2x64xbf16>, vector<64x256xbf16>, vector<2x256xf32> -> vector<2x256xf32>
    %574 = arith.addf %570, %573 : vector<2x256xf32>
    %c0_216 = arith.constant 0 : index
    %c0_217 = arith.constant 0 : index
    %575 = vector.load %arg6[%c0_216, %c0_217] : memref<1x256xf32, #tpu.memory_space<vmem>>, vector<1x256xf32>
    %576 = vector.broadcast %575 : vector<1x256xf32> to vector<2x256xf32>
    %577 = arith.addf %574, %576 : vector<2x256xf32>
    %578 = vector.extract_strided_slice %577 {offsets = [0, 0], sizes = [2, 192], strides = [1, 1]} : vector<2x256xf32> to vector<2x192xf32>
    %579 = arith.negf %578 : vector<2x192xf32>
    %580 = math.exp %579 : vector<2x192xf32>
    %cst_218 = arith.constant 1.000000e+00 : f32
    %581 = vector.broadcast %cst_218 : f32 to vector<2x192xf32>
    %582 = arith.addf %581, %580 : vector<2x192xf32>
    %583 = arith.divf %581, %582 : vector<2x192xf32>
    %584 = vector.extract_strided_slice %577 {offsets = [0, 192], sizes = [2, 64], strides = [1, 1]} : vector<2x256xf32> to vector<2x64xf32>
    %585 = math.tanh %584 : vector<2x64xf32>
    %586 = vector.extract_strided_slice %583 {offsets = [0, 0], sizes = [2, 64], strides = [1, 1]} : vector<2x192xf32> to vector<2x64xf32>
    %587 = vector.extract_strided_slice %583 {offsets = [0, 64], sizes = [2, 64], strides = [1, 1]} : vector<2x192xf32> to vector<2x64xf32>
    %588 = vector.extract_strided_slice %583 {offsets = [0, 128], sizes = [2, 64], strides = [1, 1]} : vector<2x192xf32> to vector<2x64xf32>
    %589 = arith.mulf %587, %539 : vector<2x64xf32>
    %590 = arith.mulf %586, %585 : vector<2x64xf32>
    %591 = arith.addf %589, %590 : vector<2x64xf32>
    %592 = math.tanh %591 : vector<2x64xf32>
    %593 = arith.mulf %588, %592 : vector<2x64xf32>
    %594 = arith.truncf %541 : vector<2x64xf32> to vector<2x64xbf16>
    %c0_219 = arith.constant 0 : index
    %c0_220 = arith.constant 0 : index
    %595 = vector.load %arg7[%c0_219, %c0_220] : memref<64x128xbf16, #tpu.memory_space<vmem>>, vector<64x128xbf16>
    %cst_221 = arith.constant dense<0.000000e+00> : vector<2x128xf32>
    %596 = tpu.matmul %594, %595, %cst_221 {dimension_numbers = #tpu.dot_dimension_numbers<[1], [0], [0], [1], [0, 0, 1, 1], [], []>} : vector<2x64xbf16>, vector<64x128xbf16>, vector<2x128xf32> -> vector<2x128xf32>
    %597 = arith.truncf %567 : vector<2x32xf32> to vector<2x32xbf16>
    %c0_222 = arith.constant 0 : index
    %c0_223 = arith.constant 0 : index
    %598 = vector.load %arg8[%c0_222, %c0_223] : memref<32x128xbf16, #tpu.memory_space<vmem>>, vector<32x128xbf16>
    %cst_224 = arith.constant dense<0.000000e+00> : vector<2x128xf32>
    %599 = tpu.matmul %597, %598, %cst_224 {dimension_numbers = #tpu.dot_dimension_numbers<[1], [0], [0], [1], [0, 0, 1, 1], [], []>} : vector<2x32xbf16>, vector<32x128xbf16>, vector<2x128xf32> -> vector<2x128xf32>
    %600 = arith.addf %596, %599 : vector<2x128xf32>
    %c0_225 = arith.constant 0 : index
    %c0_226 = arith.constant 0 : index
    %601 = vector.load %arg9[%c0_225, %c0_226] : memref<1x128xf32, #tpu.memory_space<vmem>>, vector<1x128xf32>
    %602 = vector.broadcast %601 : vector<1x128xf32> to vector<2x128xf32>
    %603 = arith.addf %600, %602 : vector<2x128xf32>
    %604 = vector.extract_strided_slice %603 {offsets = [0, 0], sizes = [2, 96], strides = [1, 1]} : vector<2x128xf32> to vector<2x96xf32>
    %605 = arith.negf %604 : vector<2x96xf32>
    %606 = math.exp %605 : vector<2x96xf32>
    %cst_227 = arith.constant 1.000000e+00 : f32
    %607 = vector.broadcast %cst_227 : f32 to vector<2x96xf32>
    %608 = arith.addf %607, %606 : vector<2x96xf32>
    %609 = arith.divf %607, %608 : vector<2x96xf32>
    %610 = vector.extract_strided_slice %603 {offsets = [0, 96], sizes = [2, 32], strides = [1, 1]} : vector<2x128xf32> to vector<2x32xf32>
    %611 = math.tanh %610 : vector<2x32xf32>
    %612 = vector.extract_strided_slice %609 {offsets = [0, 0], sizes = [2, 32], strides = [1, 1]} : vector<2x96xf32> to vector<2x32xf32>
    %613 = vector.extract_strided_slice %609 {offsets = [0, 32], sizes = [2, 32], strides = [1, 1]} : vector<2x96xf32> to vector<2x32xf32>
    %614 = vector.extract_strided_slice %609 {offsets = [0, 64], sizes = [2, 32], strides = [1, 1]} : vector<2x96xf32> to vector<2x32xf32>
    %615 = arith.mulf %613, %565 : vector<2x32xf32>
    %616 = arith.mulf %612, %611 : vector<2x32xf32>
    %617 = arith.addf %615, %616 : vector<2x32xf32>
    %618 = math.tanh %617 : vector<2x32xf32>
    %619 = arith.mulf %614, %618 : vector<2x32xf32>
    %620 = arith.truncf %593 : vector<2x64xf32> to vector<2x64xbf16>
    %c0_228 = arith.constant 0 : index
    %c0_229 = arith.constant 0 : index
    %621 = vector.load %arg7[%c0_228, %c0_229] : memref<64x128xbf16, #tpu.memory_space<vmem>>, vector<64x128xbf16>
    %cst_230 = arith.constant dense<0.000000e+00> : vector<2x128xf32>
    %622 = tpu.matmul %620, %621, %cst_230 {dimension_numbers = #tpu.dot_dimension_numbers<[1], [0], [0], [1], [0, 0, 1, 1], [], []>} : vector<2x64xbf16>, vector<64x128xbf16>, vector<2x128xf32> -> vector<2x128xf32>
    %623 = arith.truncf %619 : vector<2x32xf32> to vector<2x32xbf16>
    %c0_231 = arith.constant 0 : index
    %c0_232 = arith.constant 0 : index
    %624 = vector.load %arg8[%c0_231, %c0_232] : memref<32x128xbf16, #tpu.memory_space<vmem>>, vector<32x128xbf16>
    %cst_233 = arith.constant dense<0.000000e+00> : vector<2x128xf32>
    %625 = tpu.matmul %623, %624, %cst_233 {dimension_numbers = #tpu.dot_dimension_numbers<[1], [0], [0], [1], [0, 0, 1, 1], [], []>} : vector<2x32xbf16>, vector<32x128xbf16>, vector<2x128xf32> -> vector<2x128xf32>
    %626 = arith.addf %622, %625 : vector<2x128xf32>
    %c0_234 = arith.constant 0 : index
    %c0_235 = arith.constant 0 : index
    %627 = vector.load %arg9[%c0_234, %c0_235] : memref<1x128xf32, #tpu.memory_space<vmem>>, vector<1x128xf32>
    %628 = vector.broadcast %627 : vector<1x128xf32> to vector<2x128xf32>
    %629 = arith.addf %626, %628 : vector<2x128xf32>
    %630 = vector.extract_strided_slice %629 {offsets = [0, 0], sizes = [2, 96], strides = [1, 1]} : vector<2x128xf32> to vector<2x96xf32>
    %631 = arith.negf %630 : vector<2x96xf32>
    %632 = math.exp %631 : vector<2x96xf32>
    %cst_236 = arith.constant 1.000000e+00 : f32
    %633 = vector.broadcast %cst_236 : f32 to vector<2x96xf32>
    %634 = arith.addf %633, %632 : vector<2x96xf32>
    %635 = arith.divf %633, %634 : vector<2x96xf32>
    %636 = vector.extract_strided_slice %629 {offsets = [0, 96], sizes = [2, 32], strides = [1, 1]} : vector<2x128xf32> to vector<2x32xf32>
    %637 = math.tanh %636 : vector<2x32xf32>
    %638 = vector.extract_strided_slice %635 {offsets = [0, 0], sizes = [2, 32], strides = [1, 1]} : vector<2x96xf32> to vector<2x32xf32>
    %639 = vector.extract_strided_slice %635 {offsets = [0, 32], sizes = [2, 32], strides = [1, 1]} : vector<2x96xf32> to vector<2x32xf32>
    %640 = vector.extract_strided_slice %635 {offsets = [0, 64], sizes = [2, 32], strides = [1, 1]} : vector<2x96xf32> to vector<2x32xf32>
    %641 = arith.mulf %639, %617 : vector<2x32xf32>
    %642 = arith.mulf %638, %637 : vector<2x32xf32>
    %643 = arith.addf %641, %642 : vector<2x32xf32>
    %644 = math.tanh %643 : vector<2x32xf32>
    %645 = arith.mulf %640, %644 : vector<2x32xf32>
    %646 = arith.truncf %645 : vector<2x32xf32> to vector<2x32xbf16>
    %c0_237 = arith.constant 0 : index
    %c0_238 = arith.constant 0 : index
    %647 = vector.load %arg10[%c0_237, %c0_238] : memref<32x16xbf16, #tpu.memory_space<vmem>>, vector<32x16xbf16>
    %cst_239 = arith.constant dense<0.000000e+00> : vector<2x16xf32>
    %648 = tpu.matmul %646, %647, %cst_239 {dimension_numbers = #tpu.dot_dimension_numbers<[1], [0], [0], [1], [0, 0, 1, 1], [], []>} : vector<2x32xbf16>, vector<32x16xbf16>, vector<2x16xf32> -> vector<2x16xf32>
    %c0_240 = arith.constant 0 : index
    %c0_241 = arith.constant 0 : index
    %649 = vector.load %arg11[%c0_240, %c0_241] : memref<1x16xf32, #tpu.memory_space<vmem>>, vector<1x16xf32>
    %650 = vector.broadcast %649 : vector<1x16xf32> to vector<2x16xf32>
    %651 = arith.addf %648, %650 : vector<2x16xf32>
    %c0_242 = arith.constant 0 : index
    %c0_243 = arith.constant 0 : index
    %652 = vector.load %arg23[%c0_242, %c0_243] : memref<2x16xf32, #tpu.memory_space<vmem>>, vector<2x16xf32>
    tpu.vector_store %arg23[%c0_242, %c0_243], %651 {strides = array<i32>} : memref<2x16xf32, #tpu.memory_space<vmem>>, vector<2x16xf32>,
    %653 = arith.truncf %651 : vector<2x16xf32> to vector<2x16xbf16>
    %c0_244 = arith.constant 0 : index
    %c0_245 = arith.constant 0 : index
    %654 = vector.load %arg12[%c0_244, %c0_245] : memref<16x128xbf16, #tpu.memory_space<vmem>>, vector<16x128xbf16>
    %cst_246 = arith.constant dense<0.000000e+00> : vector<2x128xf32>
    %655 = tpu.matmul %653, %654, %cst_246 {dimension_numbers = #tpu.dot_dimension_numbers<[1], [0], [0], [1], [0, 0, 1, 1], [], []>} : vector<2x16xbf16>, vector<16x128xbf16>, vector<2x128xf32> -> vector<2x128xf32>
    %cst_247 = arith.constant 0.000000e+00 : f32
    %656 = vector.broadcast %cst_247 : f32 to vector<2x32xf32>
    %cst_248 = arith.constant 0.000000e+00 : f32
    %657 = vector.broadcast %cst_248 : f32 to vector<2x64xf32>
    %cst_249 = arith.constant 0.000000e+00 : f32
    %658 = vector.broadcast %cst_249 : f32 to vector<2x64xf32>
    %cst_250 = arith.constant 0.000000e+00 : f32
    %659 = vector.broadcast %cst_250 : f32 to vector<2x32xf32>
    %cst_251 = arith.constant 0.000000e+00 : f32
    %660 = vector.broadcast %cst_251 : f32 to vector<2x64xf32>
    %cst_252 = arith.constant 0.000000e+00 : f32
    %661 = vector.broadcast %cst_252 : f32 to vector<2x64xf32>
    %662 = arith.truncf %656 : vector<2x32xf32> to vector<2x32xbf16>
    %c0_253 = arith.constant 0 : index
    %c0_254 = arith.constant 0 : index
    %663 = vector.load %arg13[%c0_253, %c0_254] : memref<32x128xbf16, #tpu.memory_space<vmem>>, vector<32x128xbf16>
    %cst_255 = arith.constant dense<0.000000e+00> : vector<2x128xf32>
    %664 = tpu.matmul %662, %663, %cst_255 {dimension_numbers = #tpu.dot_dimension_numbers<[1], [0], [0], [1], [0, 0, 1, 1], [], []>} : vector<2x32xbf16>, vector<32x128xbf16>, vector<2x128xf32> -> vector<2x128xf32>
    %665 = arith.addf %655, %664 : vector<2x128xf32>
    %c0_256 = arith.constant 0 : index
    %c0_257 = arith.constant 0 : index
    %666 = vector.load %arg14[%c0_256, %c0_257] : memref<1x128xf32, #tpu.memory_space<vmem>>, vector<1x128xf32>
    %667 = vector.broadcast %666 : vector<1x128xf32> to vector<2x128xf32>
    %668 = arith.addf %665, %667 : vector<2x128xf32>
    %669 = vector.extract_strided_slice %668 {offsets = [0, 0], sizes = [2, 96], strides = [1, 1]} : vector<2x128xf32> to vector<2x96xf32>
    %670 = arith.negf %669 : vector<2x96xf32>
    %671 = math.exp %670 : vector<2x96xf32>
    %cst_258 = arith.constant 1.000000e+00 : f32
    %672 = vector.broadcast %cst_258 : f32 to vector<2x96xf32>
    %673 = arith.addf %672, %671 : vector<2x96xf32>
    %674 = arith.divf %672, %673 : vector<2x96xf32>
    %675 = vector.extract_strided_slice %668 {offsets = [0, 96], sizes = [2, 32], strides = [1, 1]} : vector<2x128xf32> to vector<2x32xf32>
    %676 = math.tanh %675 : vector<2x32xf32>
    %677 = vector.extract_strided_slice %674 {offsets = [0, 0], sizes = [2, 32], strides = [1, 1]} : vector<2x96xf32> to vector<2x32xf32>
    %678 = vector.extract_strided_slice %674 {offsets = [0, 32], sizes = [2, 32], strides = [1, 1]} : vector<2x96xf32> to vector<2x32xf32>
    %679 = vector.extract_strided_slice %674 {offsets = [0, 64], sizes = [2, 32], strides = [1, 1]} : vector<2x96xf32> to vector<2x32xf32>
    %680 = arith.mulf %678, %659 : vector<2x32xf32>
    %681 = arith.mulf %677, %676 : vector<2x32xf32>
    %682 = arith.addf %680, %681 : vector<2x32xf32>
    %683 = math.tanh %682 : vector<2x32xf32>
    %684 = arith.mulf %679, %683 : vector<2x32xf32>
    %685 = arith.truncf %684 : vector<2x32xf32> to vector<2x32xbf16>
    %c0_259 = arith.constant 0 : index
    %c0_260 = arith.constant 0 : index
    %686 = vector.load %arg13[%c0_259, %c0_260] : memref<32x128xbf16, #tpu.memory_space<vmem>>, vector<32x128xbf16>
    %cst_261 = arith.constant dense<0.000000e+00> : vector<2x128xf32>
    %687 = tpu.matmul %685, %686, %cst_261 {dimension_numbers = #tpu.dot_dimension_numbers<[1], [0], [0], [1], [0, 0, 1, 1], [], []>} : vector<2x32xbf16>, vector<32x128xbf16>, vector<2x128xf32> -> vector<2x128xf32>
    %688 = arith.addf %655, %687 : vector<2x128xf32>
    %c0_262 = arith.constant 0 : index
    %c0_263 = arith.constant 0 : index
    %689 = vector.load %arg14[%c0_262, %c0_263] : memref<1x128xf32, #tpu.memory_space<vmem>>, vector<1x128xf32>
    %690 = vector.broadcast %689 : vector<1x128xf32> to vector<2x128xf32>
    %691 = arith.addf %688, %690 : vector<2x128xf32>
    %692 = vector.extract_strided_slice %691 {offsets = [0, 0], sizes = [2, 96], strides = [1, 1]} : vector<2x128xf32> to vector<2x96xf32>
    %693 = arith.negf %692 : vector<2x96xf32>
    %694 = math.exp %693 : vector<2x96xf32>
    %cst_264 = arith.constant 1.000000e+00 : f32
    %695 = vector.broadcast %cst_264 : f32 to vector<2x96xf32>
    %696 = arith.addf %695, %694 : vector<2x96xf32>
    %697 = arith.divf %695, %696 : vector<2x96xf32>
    %698 = vector.extract_strided_slice %691 {offsets = [0, 96], sizes = [2, 32], strides = [1, 1]} : vector<2x128xf32> to vector<2x32xf32>
    %699 = math.tanh %698 : vector<2x32xf32>
    %700 = vector.extract_strided_slice %697 {offsets = [0, 0], sizes = [2, 32], strides = [1, 1]} : vector<2x96xf32> to vector<2x32xf32>
    %701 = vector.extract_strided_slice %697 {offsets = [0, 32], sizes = [2, 32], strides = [1, 1]} : vector<2x96xf32> to vector<2x32xf32>
    %702 = vector.extract_strided_slice %697 {offsets = [0, 64], sizes = [2, 32], strides = [1, 1]} : vector<2x96xf32> to vector<2x32xf32>
    %703 = arith.mulf %701, %682 : vector<2x32xf32>
    %704 = arith.mulf %700, %699 : vector<2x32xf32>
    %705 = arith.addf %703, %704 : vector<2x32xf32>
    %706 = math.tanh %705 : vector<2x32xf32>
    %707 = arith.mulf %702, %706 : vector<2x32xf32>
    %708 = arith.truncf %684 : vector<2x32xf32> to vector<2x32xbf16>
    %c0_265 = arith.constant 0 : index
    %c0_266 = arith.constant 0 : index
    %709 = vector.load %arg15[%c0_265, %c0_266] : memref<32x256xbf16, #tpu.memory_space<vmem>>, vector<32x256xbf16>
    %cst_267 = arith.constant dense<0.000000e+00> : vector<2x256xf32>
    %710 = tpu.matmul %708, %709, %cst_267 {dimension_numbers = #tpu.dot_dimension_numbers<[1], [0], [0], [1], [0, 0, 1, 1], [], []>} : vector<2x32xbf16>, vector<32x256xbf16>, vector<2x256xf32> -> vector<2x256xf32>
    %711 = arith.truncf %657 : vector<2x64xf32> to vector<2x64xbf16>
    %c0_268 = arith.constant 0 : index
    %c0_269 = arith.constant 0 : index
    %712 = vector.load %arg16[%c0_268, %c0_269] : memref<64x256xbf16, #tpu.memory_space<vmem>>, vector<64x256xbf16>
    %cst_270 = arith.constant dense<0.000000e+00> : vector<2x256xf32>
    %713 = tpu.matmul %711, %712, %cst_270 {dimension_numbers = #tpu.dot_dimension_numbers<[1], [0], [0], [1], [0, 0, 1, 1], [], []>} : vector<2x64xbf16>, vector<64x256xbf16>, vector<2x256xf32> -> vector<2x256xf32>
    %714 = arith.addf %710, %713 : vector<2x256xf32>
    %c0_271 = arith.constant 0 : index
    %c0_272 = arith.constant 0 : index
    %715 = vector.load %arg17[%c0_271, %c0_272] : memref<1x256xf32, #tpu.memory_space<vmem>>, vector<1x256xf32>
    %716 = vector.broadcast %715 : vector<1x256xf32> to vector<2x256xf32>
    %717 = arith.addf %714, %716 : vector<2x256xf32>
    %718 = vector.extract_strided_slice %717 {offsets = [0, 0], sizes = [2, 192], strides = [1, 1]} : vector<2x256xf32> to vector<2x192xf32>
    %719 = arith.negf %718 : vector<2x192xf32>
    %720 = math.exp %719 : vector<2x192xf32>
    %cst_273 = arith.constant 1.000000e+00 : f32
    %721 = vector.broadcast %cst_273 : f32 to vector<2x192xf32>
    %722 = arith.addf %721, %720 : vector<2x192xf32>
    %723 = arith.divf %721, %722 : vector<2x192xf32>
    %724 = vector.extract_strided_slice %717 {offsets = [0, 192], sizes = [2, 64], strides = [1, 1]} : vector<2x256xf32> to vector<2x64xf32>
    %725 = math.tanh %724 : vector<2x64xf32>
    %726 = vector.extract_strided_slice %723 {offsets = [0, 0], sizes = [2, 64], strides = [1, 1]} : vector<2x192xf32> to vector<2x64xf32>
    %727 = vector.extract_strided_slice %723 {offsets = [0, 64], sizes = [2, 64], strides = [1, 1]} : vector<2x192xf32> to vector<2x64xf32>
    %728 = vector.extract_strided_slice %723 {offsets = [0, 128], sizes = [2, 64], strides = [1, 1]} : vector<2x192xf32> to vector<2x64xf32>
    %729 = arith.mulf %727, %660 : vector<2x64xf32>
    %730 = arith.mulf %726, %725 : vector<2x64xf32>
    %731 = arith.addf %729, %730 : vector<2x64xf32>
    %732 = math.tanh %731 : vector<2x64xf32>
    %733 = arith.mulf %728, %732 : vector<2x64xf32>
    %734 = arith.truncf %707 : vector<2x32xf32> to vector<2x32xbf16>
    %c0_274 = arith.constant 0 : index
    %c0_275 = arith.constant 0 : index
    %735 = vector.load %arg13[%c0_274, %c0_275] : memref<32x128xbf16, #tpu.memory_space<vmem>>, vector<32x128xbf16>
    %cst_276 = arith.constant dense<0.000000e+00> : vector<2x128xf32>
    %736 = tpu.matmul %734, %735, %cst_276 {dimension_numbers = #tpu.dot_dimension_numbers<[1], [0], [0], [1], [0, 0, 1, 1], [], []>} : vector<2x32xbf16>, vector<32x128xbf16>, vector<2x128xf32> -> vector<2x128xf32>
    %737 = arith.addf %655, %736 : vector<2x128xf32>
    %c0_277 = arith.constant 0 : index
    %c0_278 = arith.constant 0 : index
    %738 = vector.load %arg14[%c0_277, %c0_278] : memref<1x128xf32, #tpu.memory_space<vmem>>, vector<1x128xf32>
    %739 = vector.broadcast %738 : vector<1x128xf32> to vector<2x128xf32>
    %740 = arith.addf %737, %739 : vector<2x128xf32>
    %741 = vector.extract_strided_slice %740 {offsets = [0, 0], sizes = [2, 96], strides = [1, 1]} : vector<2x128xf32> to vector<2x96xf32>
    %742 = arith.negf %741 : vector<2x96xf32>
    %743 = math.exp %742 : vector<2x96xf32>
    %cst_279 = arith.constant 1.000000e+00 : f32
    %744 = vector.broadcast %cst_279 : f32 to vector<2x96xf32>
    %745 = arith.addf %744, %743 : vector<2x96xf32>
    %746 = arith.divf %744, %745 : vector<2x96xf32>
    %747 = vector.extract_strided_slice %740 {offsets = [0, 96], sizes = [2, 32], strides = [1, 1]} : vector<2x128xf32> to vector<2x32xf32>
    %748 = math.tanh %747 : vector<2x32xf32>
    %749 = vector.extract_strided_slice %746 {offsets = [0, 0], sizes = [2, 32], strides = [1, 1]} : vector<2x96xf32> to vector<2x32xf32>
    %750 = vector.extract_strided_slice %746 {offsets = [0, 32], sizes = [2, 32], strides = [1, 1]} : vector<2x96xf32> to vector<2x32xf32>
    %751 = vector.extract_strided_slice %746 {offsets = [0, 64], sizes = [2, 32], strides = [1, 1]} : vector<2x96xf32> to vector<2x32xf32>
    %752 = arith.mulf %750, %705 : vector<2x32xf32>
    %753 = arith.mulf %749, %748 : vector<2x32xf32>
    %754 = arith.addf %752, %753 : vector<2x32xf32>
    %755 = math.tanh %754 : vector<2x32xf32>
    %756 = arith.mulf %751, %755 : vector<2x32xf32>
    %757 = arith.truncf %707 : vector<2x32xf32> to vector<2x32xbf16>
    %c0_280 = arith.constant 0 : index
    %c0_281 = arith.constant 0 : index
    %758 = vector.load %arg15[%c0_280, %c0_281] : memref<32x256xbf16, #tpu.memory_space<vmem>>, vector<32x256xbf16>
    %cst_282 = arith.constant dense<0.000000e+00> : vector<2x256xf32>
    %759 = tpu.matmul %757, %758, %cst_282 {dimension_numbers = #tpu.dot_dimension_numbers<[1], [0], [0], [1], [0, 0, 1, 1], [], []>} : vector<2x32xbf16>, vector<32x256xbf16>, vector<2x256xf32> -> vector<2x256xf32>
    %760 = arith.truncf %733 : vector<2x64xf32> to vector<2x64xbf16>
    %c0_283 = arith.constant 0 : index
    %c0_284 = arith.constant 0 : index
    %761 = vector.load %arg16[%c0_283, %c0_284] : memref<64x256xbf16, #tpu.memory_space<vmem>>, vector<64x256xbf16>
    %cst_285 = arith.constant dense<0.000000e+00> : vector<2x256xf32>
    %762 = tpu.matmul %760, %761, %cst_285 {dimension_numbers = #tpu.dot_dimension_numbers<[1], [0], [0], [1], [0, 0, 1, 1], [], []>} : vector<2x64xbf16>, vector<64x256xbf16>, vector<2x256xf32> -> vector<2x256xf32>
    %763 = arith.addf %759, %762 : vector<2x256xf32>
    %c0_286 = arith.constant 0 : index
    %c0_287 = arith.constant 0 : index
    %764 = vector.load %arg17[%c0_286, %c0_287] : memref<1x256xf32, #tpu.memory_space<vmem>>, vector<1x256xf32>
    %765 = vector.broadcast %764 : vector<1x256xf32> to vector<2x256xf32>
    %766 = arith.addf %763, %765 : vector<2x256xf32>
    %767 = vector.extract_strided_slice %766 {offsets = [0, 0], sizes = [2, 192], strides = [1, 1]} : vector<2x256xf32> to vector<2x192xf32>
    %768 = arith.negf %767 : vector<2x192xf32>
    %769 = math.exp %768 : vector<2x192xf32>
    %cst_288 = arith.constant 1.000000e+00 : f32
    %770 = vector.broadcast %cst_288 : f32 to vector<2x192xf32>
    %771 = arith.addf %770, %769 : vector<2x192xf32>
    %772 = arith.divf %770, %771 : vector<2x192xf32>
    %773 = vector.extract_strided_slice %766 {offsets = [0, 192], sizes = [2, 64], strides = [1, 1]} : vector<2x256xf32> to vector<2x64xf32>
    %774 = math.tanh %773 : vector<2x64xf32>
    %775 = vector.extract_strided_slice %772 {offsets = [0, 0], sizes = [2, 64], strides = [1, 1]} : vector<2x192xf32> to vector<2x64xf32>
    %776 = vector.extract_strided_slice %772 {offsets = [0, 64], sizes = [2, 64], strides = [1, 1]} : vector<2x192xf32> to vector<2x64xf32>
    %777 = vector.extract_strided_slice %772 {offsets = [0, 128], sizes = [2, 64], strides = [1, 1]} : vector<2x192xf32> to vector<2x64xf32>
    %778 = arith.mulf %776, %731 : vector<2x64xf32>
    %779 = arith.mulf %775, %774 : vector<2x64xf32>
    %780 = arith.addf %778, %779 : vector<2x64xf32>
    %781 = math.tanh %780 : vector<2x64xf32>
    %782 = arith.mulf %777, %781 : vector<2x64xf32>
    %783 = arith.truncf %733 : vector<2x64xf32> to vector<2x64xbf16>
    %c0_289 = arith.constant 0 : index
    %c0_290 = arith.constant 0 : index
    %784 = vector.load %arg18[%c0_289, %c0_290] : memref<64x256xbf16, #tpu.memory_space<vmem>>, vector<64x256xbf16>
    %cst_291 = arith.constant dense<0.000000e+00> : vector<2x256xf32>
    %785 = tpu.matmul %783, %784, %cst_291 {dimension_numbers = #tpu.dot_dimension_numbers<[1], [0], [0], [1], [0, 0, 1, 1], [], []>} : vector<2x64xbf16>, vector<64x256xbf16>, vector<2x256xf32> -> vector<2x256xf32>
    %786 = arith.truncf %658 : vector<2x64xf32> to vector<2x64xbf16>
    %c0_292 = arith.constant 0 : index
    %c0_293 = arith.constant 0 : index
    %787 = vector.load %arg19[%c0_292, %c0_293] : memref<64x256xbf16, #tpu.memory_space<vmem>>, vector<64x256xbf16>
    %cst_294 = arith.constant dense<0.000000e+00> : vector<2x256xf32>
    %788 = tpu.matmul %786, %787, %cst_294 {dimension_numbers = #tpu.dot_dimension_numbers<[1], [0], [0], [1], [0, 0, 1, 1], [], []>} : vector<2x64xbf16>, vector<64x256xbf16>, vector<2x256xf32> -> vector<2x256xf32>
    %789 = arith.addf %785, %788 : vector<2x256xf32>
    %c0_295 = arith.constant 0 : index
    %c0_296 = arith.constant 0 : index
    %790 = vector.load %arg20[%c0_295, %c0_296] : memref<1x256xf32, #tpu.memory_space<vmem>>, vector<1x256xf32>
    %791 = vector.broadcast %790 : vector<1x256xf32> to vector<2x256xf32>
    %792 = arith.addf %789, %791 : vector<2x256xf32>
    %793 = vector.extract_strided_slice %792 {offsets = [0, 0], sizes = [2, 192], strides = [1, 1]} : vector<2x256xf32> to vector<2x192xf32>
    %794 = arith.negf %793 : vector<2x192xf32>
    %795 = math.exp %794 : vector<2x192xf32>
    %cst_297 = arith.constant 1.000000e+00 : f32
    %796 = vector.broadcast %cst_297 : f32 to vector<2x192xf32>
    %797 = arith.addf %796, %795 : vector<2x192xf32>
    %798 = arith.divf %796, %797 : vector<2x192xf32>
    %799 = vector.extract_strided_slice %792 {offsets = [0, 192], sizes = [2, 64], strides = [1, 1]} : vector<2x256xf32> to vector<2x64xf32>
    %800 = math.tanh %799 : vector<2x64xf32>
    %801 = vector.extract_strided_slice %798 {offsets = [0, 0], sizes = [2, 64], strides = [1, 1]} : vector<2x192xf32> to vector<2x64xf32>
    %802 = vector.extract_strided_slice %798 {offsets = [0, 64], sizes = [2, 64], strides = [1, 1]} : vector<2x192xf32> to vector<2x64xf32>
    %803 = vector.extract_strided_slice %798 {offsets = [0, 128], sizes = [2, 64], strides = [1, 1]} : vector<2x192xf32> to vector<2x64xf32>
    %804 = arith.mulf %802, %661 : vector<2x64xf32>
    %805 = arith.mulf %801, %800 : vector<2x64xf32>
    %806 = arith.addf %804, %805 : vector<2x64xf32>
    %807 = math.tanh %806 : vector<2x64xf32>
    %808 = arith.mulf %803, %807 : vector<2x64xf32>
    %809 = arith.truncf %756 : vector<2x32xf32> to vector<2x32xbf16>
    %c0_298 = arith.constant 0 : index
    %c0_299 = arith.constant 0 : index
    %810 = vector.load %arg13[%c0_298, %c0_299] : memref<32x128xbf16, #tpu.memory_space<vmem>>, vector<32x128xbf16>
    %cst_300 = arith.constant dense<0.000000e+00> : vector<2x128xf32>
    %811 = tpu.matmul %809, %810, %cst_300 {dimension_numbers = #tpu.dot_dimension_numbers<[1], [0], [0], [1], [0, 0, 1, 1], [], []>} : vector<2x32xbf16>, vector<32x128xbf16>, vector<2x128xf32> -> vector<2x128xf32>
    %812 = arith.addf %655, %811 : vector<2x128xf32>
    %c0_301 = arith.constant 0 : index
    %c0_302 = arith.constant 0 : index
    %813 = vector.load %arg14[%c0_301, %c0_302] : memref<1x128xf32, #tpu.memory_space<vmem>>, vector<1x128xf32>
    %814 = vector.broadcast %813 : vector<1x128xf32> to vector<2x128xf32>
    %815 = arith.addf %812, %814 : vector<2x128xf32>
    %816 = vector.extract_strided_slice %815 {offsets = [0, 0], sizes = [2, 96], strides = [1, 1]} : vector<2x128xf32> to vector<2x96xf32>
    %817 = arith.negf %816 : vector<2x96xf32>
    %818 = math.exp %817 : vector<2x96xf32>
    %cst_303 = arith.constant 1.000000e+00 : f32
    %819 = vector.broadcast %cst_303 : f32 to vector<2x96xf32>
    %820 = arith.addf %819, %818 : vector<2x96xf32>
    %821 = arith.divf %819, %820 : vector<2x96xf32>
    %822 = vector.extract_strided_slice %815 {offsets = [0, 96], sizes = [2, 32], strides = [1, 1]} : vector<2x128xf32> to vector<2x32xf32>
    %823 = math.tanh %822 : vector<2x32xf32>
    %824 = vector.extract_strided_slice %821 {offsets = [0, 0], sizes = [2, 32], strides = [1, 1]} : vector<2x96xf32> to vector<2x32xf32>
    %825 = vector.extract_strided_slice %821 {offsets = [0, 32], sizes = [2, 32], strides = [1, 1]} : vector<2x96xf32> to vector<2x32xf32>
    %826 = vector.extract_strided_slice %821 {offsets = [0, 64], sizes = [2, 32], strides = [1, 1]} : vector<2x96xf32> to vector<2x32xf32>
    %827 = arith.mulf %825, %754 : vector<2x32xf32>
    %828 = arith.mulf %824, %823 : vector<2x32xf32>
    %829 = arith.addf %827, %828 : vector<2x32xf32>
    %830 = math.tanh %829 : vector<2x32xf32>
    %831 = arith.mulf %826, %830 : vector<2x32xf32>
    %832 = arith.truncf %756 : vector<2x32xf32> to vector<2x32xbf16>
    %c0_304 = arith.constant 0 : index
    %c0_305 = arith.constant 0 : index
    %833 = vector.load %arg15[%c0_304, %c0_305] : memref<32x256xbf16, #tpu.memory_space<vmem>>, vector<32x256xbf16>
    %cst_306 = arith.constant dense<0.000000e+00> : vector<2x256xf32>
    %834 = tpu.matmul %832, %833, %cst_306 {dimension_numbers = #tpu.dot_dimension_numbers<[1], [0], [0], [1], [0, 0, 1, 1], [], []>} : vector<2x32xbf16>, vector<32x256xbf16>, vector<2x256xf32> -> vector<2x256xf32>
    %835 = arith.truncf %782 : vector<2x64xf32> to vector<2x64xbf16>
    %c0_307 = arith.constant 0 : index
    %c0_308 = arith.constant 0 : index
    %836 = vector.load %arg16[%c0_307, %c0_308] : memref<64x256xbf16, #tpu.memory_space<vmem>>, vector<64x256xbf16>
    %cst_309 = arith.constant dense<0.000000e+00> : vector<2x256xf32>
    %837 = tpu.matmul %835, %836, %cst_309 {dimension_numbers = #tpu.dot_dimension_numbers<[1], [0], [0], [1], [0, 0, 1, 1], [], []>} : vector<2x64xbf16>, vector<64x256xbf16>, vector<2x256xf32> -> vector<2x256xf32>
    %838 = arith.addf %834, %837 : vector<2x256xf32>
    %c0_310 = arith.constant 0 : index
    %c0_311 = arith.constant 0 : index
    %839 = vector.load %arg17[%c0_310, %c0_311] : memref<1x256xf32, #tpu.memory_space<vmem>>, vector<1x256xf32>
    %840 = vector.broadcast %839 : vector<1x256xf32> to vector<2x256xf32>
    %841 = arith.addf %838, %840 : vector<2x256xf32>
    %842 = vector.extract_strided_slice %841 {offsets = [0, 0], sizes = [2, 192], strides = [1, 1]} : vector<2x256xf32> to vector<2x192xf32>
    %843 = arith.negf %842 : vector<2x192xf32>
    %844 = math.exp %843 : vector<2x192xf32>
    %cst_312 = arith.constant 1.000000e+00 : f32
    %845 = vector.broadcast %cst_312 : f32 to vector<2x192xf32>
    %846 = arith.addf %845, %844 : vector<2x192xf32>
    %847 = arith.divf %845, %846 : vector<2x192xf32>
    %848 = vector.extract_strided_slice %841 {offsets = [0, 192], sizes = [2, 64], strides = [1, 1]} : vector<2x256xf32> to vector<2x64xf32>
    %849 = math.tanh %848 : vector<2x64xf32>
    %850 = vector.extract_strided_slice %847 {offsets = [0, 0], sizes = [2, 64], strides = [1, 1]} : vector<2x192xf32> to vector<2x64xf32>
    %851 = vector.extract_strided_slice %847 {offsets = [0, 64], sizes = [2, 64], strides = [1, 1]} : vector<2x192xf32> to vector<2x64xf32>
    %852 = vector.extract_strided_slice %847 {offsets = [0, 128], sizes = [2, 64], strides = [1, 1]} : vector<2x192xf32> to vector<2x64xf32>
    %853 = arith.mulf %851, %780 : vector<2x64xf32>
    %854 = arith.mulf %850, %849 : vector<2x64xf32>
    %855 = arith.addf %853, %854 : vector<2x64xf32>
    %856 = math.tanh %855 : vector<2x64xf32>
    %857 = arith.mulf %852, %856 : vector<2x64xf32>
    %858 = arith.truncf %782 : vector<2x64xf32> to vector<2x64xbf16>
    %c0_313 = arith.constant 0 : index
    %c0_314 = arith.constant 0 : index
    %859 = vector.load %arg18[%c0_313, %c0_314] : memref<64x256xbf16, #tpu.memory_space<vmem>>, vector<64x256xbf16>
    %cst_315 = arith.constant dense<0.000000e+00> : vector<2x256xf32>
    %860 = tpu.matmul %858, %859, %cst_315 {dimension_numbers = #tpu.dot_dimension_numbers<[1], [0], [0], [1], [0, 0, 1, 1], [], []>} : vector<2x64xbf16>, vector<64x256xbf16>, vector<2x256xf32> -> vector<2x256xf32>
    %861 = arith.truncf %808 : vector<2x64xf32> to vector<2x64xbf16>
    %c0_316 = arith.constant 0 : index
    %c0_317 = arith.constant 0 : index
    %862 = vector.load %arg19[%c0_316, %c0_317] : memref<64x256xbf16, #tpu.memory_space<vmem>>, vector<64x256xbf16>
    %cst_318 = arith.constant dense<0.000000e+00> : vector<2x256xf32>
    %863 = tpu.matmul %861, %862, %cst_318 {dimension_numbers = #tpu.dot_dimension_numbers<[1], [0], [0], [1], [0, 0, 1, 1], [], []>} : vector<2x64xbf16>, vector<64x256xbf16>, vector<2x256xf32> -> vector<2x256xf32>
    %864 = arith.addf %860, %863 : vector<2x256xf32>
    %c0_319 = arith.constant 0 : index
    %c0_320 = arith.constant 0 : index
    %865 = vector.load %arg20[%c0_319, %c0_320] : memref<1x256xf32, #tpu.memory_space<vmem>>, vector<1x256xf32>
    %866 = vector.broadcast %865 : vector<1x256xf32> to vector<2x256xf32>
    %867 = arith.addf %864, %866 : vector<2x256xf32>
    %868 = vector.extract_strided_slice %867 {offsets = [0, 0], sizes = [2, 192], strides = [1, 1]} : vector<2x256xf32> to vector<2x192xf32>
    %869 = arith.negf %868 : vector<2x192xf32>
    %870 = math.exp %869 : vector<2x192xf32>
    %cst_321 = arith.constant 1.000000e+00 : f32
    %871 = vector.broadcast %cst_321 : f32 to vector<2x192xf32>
    %872 = arith.addf %871, %870 : vector<2x192xf32>
    %873 = arith.divf %871, %872 : vector<2x192xf32>
    %874 = vector.extract_strided_slice %867 {offsets = [0, 192], sizes = [2, 64], strides = [1, 1]} : vector<2x256xf32> to vector<2x64xf32>
    %875 = math.tanh %874 : vector<2x64xf32>
    %876 = vector.extract_strided_slice %873 {offsets = [0, 0], sizes = [2, 64], strides = [1, 1]} : vector<2x192xf32> to vector<2x64xf32>
    %877 = vector.extract_strided_slice %873 {offsets = [0, 64], sizes = [2, 64], strides = [1, 1]} : vector<2x192xf32> to vector<2x64xf32>
    %878 = vector.extract_strided_slice %873 {offsets = [0, 128], sizes = [2, 64], strides = [1, 1]} : vector<2x192xf32> to vector<2x64xf32>
    %879 = arith.mulf %877, %806 : vector<2x64xf32>
    %880 = arith.mulf %876, %875 : vector<2x64xf32>
    %881 = arith.addf %879, %880 : vector<2x64xf32>
    %882 = math.tanh %881 : vector<2x64xf32>
    %883 = arith.mulf %878, %882 : vector<2x64xf32>
    %884 = arith.truncf %831 : vector<2x32xf32> to vector<2x32xbf16>
    %c0_322 = arith.constant 0 : index
    %c0_323 = arith.constant 0 : index
    %885 = vector.load %arg13[%c0_322, %c0_323] : memref<32x128xbf16, #tpu.memory_space<vmem>>, vector<32x128xbf16>
    %cst_324 = arith.constant dense<0.000000e+00> : vector<2x128xf32>
    %886 = tpu.matmul %884, %885, %cst_324 {dimension_numbers = #tpu.dot_dimension_numbers<[1], [0], [0], [1], [0, 0, 1, 1], [], []>} : vector<2x32xbf16>, vector<32x128xbf16>, vector<2x128xf32> -> vector<2x128xf32>
    %887 = arith.addf %655, %886 : vector<2x128xf32>
    %c0_325 = arith.constant 0 : index
    %c0_326 = arith.constant 0 : index
    %888 = vector.load %arg14[%c0_325, %c0_326] : memref<1x128xf32, #tpu.memory_space<vmem>>, vector<1x128xf32>
    %889 = vector.broadcast %888 : vector<1x128xf32> to vector<2x128xf32>
    %890 = arith.addf %887, %889 : vector<2x128xf32>
    %891 = vector.extract_strided_slice %890 {offsets = [0, 0], sizes = [2, 96], strides = [1, 1]} : vector<2x128xf32> to vector<2x96xf32>
    %892 = arith.negf %891 : vector<2x96xf32>
    %893 = math.exp %892 : vector<2x96xf32>
    %cst_327 = arith.constant 1.000000e+00 : f32
    %894 = vector.broadcast %cst_327 : f32 to vector<2x96xf32>
    %895 = arith.addf %894, %893 : vector<2x96xf32>
    %896 = arith.divf %894, %895 : vector<2x96xf32>
    %897 = vector.extract_strided_slice %890 {offsets = [0, 96], sizes = [2, 32], strides = [1, 1]} : vector<2x128xf32> to vector<2x32xf32>
    %898 = math.tanh %897 : vector<2x32xf32>
    %899 = vector.extract_strided_slice %896 {offsets = [0, 0], sizes = [2, 32], strides = [1, 1]} : vector<2x96xf32> to vector<2x32xf32>
    %900 = vector.extract_strided_slice %896 {offsets = [0, 32], sizes = [2, 32], strides = [1, 1]} : vector<2x96xf32> to vector<2x32xf32>
    %901 = vector.extract_strided_slice %896 {offsets = [0, 64], sizes = [2, 32], strides = [1, 1]} : vector<2x96xf32> to vector<2x32xf32>
    %902 = arith.mulf %900, %829 : vector<2x32xf32>
    %903 = arith.mulf %899, %898 : vector<2x32xf32>
    %904 = arith.addf %902, %903 : vector<2x32xf32>
    %905 = math.tanh %904 : vector<2x32xf32>
    %906 = arith.mulf %901, %905 : vector<2x32xf32>
    %907 = arith.truncf %831 : vector<2x32xf32> to vector<2x32xbf16>
    %c0_328 = arith.constant 0 : index
    %c0_329 = arith.constant 0 : index
    %908 = vector.load %arg15[%c0_328, %c0_329] : memref<32x256xbf16, #tpu.memory_space<vmem>>, vector<32x256xbf16>
    %cst_330 = arith.constant dense<0.000000e+00> : vector<2x256xf32>
    %909 = tpu.matmul %907, %908, %cst_330 {dimension_numbers = #tpu.dot_dimension_numbers<[1], [0], [0], [1], [0, 0, 1, 1], [], []>} : vector<2x32xbf16>, vector<32x256xbf16>, vector<2x256xf32> -> vector<2x256xf32>
    %910 = arith.truncf %857 : vector<2x64xf32> to vector<2x64xbf16>
    %c0_331 = arith.constant 0 : index
    %c0_332 = arith.constant 0 : index
    %911 = vector.load %arg16[%c0_331, %c0_332] : memref<64x256xbf16, #tpu.memory_space<vmem>>, vector<64x256xbf16>
    %cst_333 = arith.constant dense<0.000000e+00> : vector<2x256xf32>
    %912 = tpu.matmul %910, %911, %cst_333 {dimension_numbers = #tpu.dot_dimension_numbers<[1], [0], [0], [1], [0, 0, 1, 1], [], []>} : vector<2x64xbf16>, vector<64x256xbf16>, vector<2x256xf32> -> vector<2x256xf32>
    %913 = arith.addf %909, %912 : vector<2x256xf32>
    %c0_334 = arith.constant 0 : index
    %c0_335 = arith.constant 0 : index
    %914 = vector.load %arg17[%c0_334, %c0_335] : memref<1x256xf32, #tpu.memory_space<vmem>>, vector<1x256xf32>
    %915 = vector.broadcast %914 : vector<1x256xf32> to vector<2x256xf32>
    %916 = arith.addf %913, %915 : vector<2x256xf32>
    %917 = vector.extract_strided_slice %916 {offsets = [0, 0], sizes = [2, 192], strides = [1, 1]} : vector<2x256xf32> to vector<2x192xf32>
    %918 = arith.negf %917 : vector<2x192xf32>
    %919 = math.exp %918 : vector<2x192xf32>
    %cst_336 = arith.constant 1.000000e+00 : f32
    %920 = vector.broadcast %cst_336 : f32 to vector<2x192xf32>
    %921 = arith.addf %920, %919 : vector<2x192xf32>
    %922 = arith.divf %920, %921 : vector<2x192xf32>
    %923 = vector.extract_strided_slice %916 {offsets = [0, 192], sizes = [2, 64], strides = [1, 1]} : vector<2x256xf32> to vector<2x64xf32>
    %924 = math.tanh %923 : vector<2x64xf32>
    %925 = vector.extract_strided_slice %922 {offsets = [0, 0], sizes = [2, 64], strides = [1, 1]} : vector<2x192xf32> to vector<2x64xf32>
    %926 = vector.extract_strided_slice %922 {offsets = [0, 64], sizes = [2, 64], strides = [1, 1]} : vector<2x192xf32> to vector<2x64xf32>
    %927 = vector.extract_strided_slice %922 {offsets = [0, 128], sizes = [2, 64], strides = [1, 1]} : vector<2x192xf32> to vector<2x64xf32>
    %928 = arith.mulf %926, %855 : vector<2x64xf32>
    %929 = arith.mulf %925, %924 : vector<2x64xf32>
    %930 = arith.addf %928, %929 : vector<2x64xf32>
    %931 = math.tanh %930 : vector<2x64xf32>
    %932 = arith.mulf %927, %931 : vector<2x64xf32>
    %933 = arith.truncf %857 : vector<2x64xf32> to vector<2x64xbf16>
    %c0_337 = arith.constant 0 : index
    %c0_338 = arith.constant 0 : index
    %934 = vector.load %arg18[%c0_337, %c0_338] : memref<64x256xbf16, #tpu.memory_space<vmem>>, vector<64x256xbf16>
    %cst_339 = arith.constant dense<0.000000e+00> : vector<2x256xf32>
    %935 = tpu.matmul %933, %934, %cst_339 {dimension_numbers = #tpu.dot_dimension_numbers<[1], [0], [0], [1], [0, 0, 1, 1], [], []>} : vector<2x64xbf16>, vector<64x256xbf16>, vector<2x256xf32> -> vector<2x256xf32>
    %936 = arith.truncf %883 : vector<2x64xf32> to vector<2x64xbf16>
    %c0_340 = arith.constant 0 : index
    %c0_341 = arith.constant 0 : index
    %937 = vector.load %arg19[%c0_340, %c0_341] : memref<64x256xbf16, #tpu.memory_space<vmem>>, vector<64x256xbf16>
    %cst_342 = arith.constant dense<0.000000e+00> : vector<2x256xf32>
    %938 = tpu.matmul %936, %937, %cst_342 {dimension_numbers = #tpu.dot_dimension_numbers<[1], [0], [0], [1], [0, 0, 1, 1], [], []>} : vector<2x64xbf16>, vector<64x256xbf16>, vector<2x256xf32> -> vector<2x256xf32>
    %939 = arith.addf %935, %938 : vector<2x256xf32>
    %c0_343 = arith.constant 0 : index
    %c0_344 = arith.constant 0 : index
    %940 = vector.load %arg20[%c0_343, %c0_344] : memref<1x256xf32, #tpu.memory_space<vmem>>, vector<1x256xf32>
    %941 = vector.broadcast %940 : vector<1x256xf32> to vector<2x256xf32>
    %942 = arith.addf %939, %941 : vector<2x256xf32>
    %943 = vector.extract_strided_slice %942 {offsets = [0, 0], sizes = [2, 192], strides = [1, 1]} : vector<2x256xf32> to vector<2x192xf32>
    %944 = arith.negf %943 : vector<2x192xf32>
    %945 = math.exp %944 : vector<2x192xf32>
    %cst_345 = arith.constant 1.000000e+00 : f32
    %946 = vector.broadcast %cst_345 : f32 to vector<2x192xf32>
    %947 = arith.addf %946, %945 : vector<2x192xf32>
    %948 = arith.divf %946, %947 : vector<2x192xf32>
    %949 = vector.extract_strided_slice %942 {offsets = [0, 192], sizes = [2, 64], strides = [1, 1]} : vector<2x256xf32> to vector<2x64xf32>
    %950 = math.tanh %949 : vector<2x64xf32>
    %951 = vector.extract_strided_slice %948 {offsets = [0, 0], sizes = [2, 64], strides = [1, 1]} : vector<2x192xf32> to vector<2x64xf32>
    %952 = vector.extract_strided_slice %948 {offsets = [0, 64], sizes = [2, 64], strides = [1, 1]} : vector<2x192xf32> to vector<2x64xf32>
    %953 = vector.extract_strided_slice %948 {offsets = [0, 128], sizes = [2, 64], strides = [1, 1]} : vector<2x192xf32> to vector<2x64xf32>
    %954 = arith.mulf %952, %881 : vector<2x64xf32>
    %955 = arith.mulf %951, %950 : vector<2x64xf32>
    %956 = arith.addf %954, %955 : vector<2x64xf32>
    %957 = math.tanh %956 : vector<2x64xf32>
    %958 = arith.mulf %953, %957 : vector<2x64xf32>
    %959 = arith.truncf %906 : vector<2x32xf32> to vector<2x32xbf16>
    %c0_346 = arith.constant 0 : index
    %c0_347 = arith.constant 0 : index
    %960 = vector.load %arg13[%c0_346, %c0_347] : memref<32x128xbf16, #tpu.memory_space<vmem>>, vector<32x128xbf16>
    %cst_348 = arith.constant dense<0.000000e+00> : vector<2x128xf32>
    %961 = tpu.matmul %959, %960, %cst_348 {dimension_numbers = #tpu.dot_dimension_numbers<[1], [0], [0], [1], [0, 0, 1, 1], [], []>} : vector<2x32xbf16>, vector<32x128xbf16>, vector<2x128xf32> -> vector<2x128xf32>
    %962 = arith.addf %655, %961 : vector<2x128xf32>
    %c0_349 = arith.constant 0 : index
    %c0_350 = arith.constant 0 : index
    %963 = vector.load %arg14[%c0_349, %c0_350] : memref<1x128xf32, #tpu.memory_space<vmem>>, vector<1x128xf32>
    %964 = vector.broadcast %963 : vector<1x128xf32> to vector<2x128xf32>
    %965 = arith.addf %962, %964 : vector<2x128xf32>
    %966 = vector.extract_strided_slice %965 {offsets = [0, 0], sizes = [2, 96], strides = [1, 1]} : vector<2x128xf32> to vector<2x96xf32>
    %967 = arith.negf %966 : vector<2x96xf32>
    %968 = math.exp %967 : vector<2x96xf32>
    %cst_351 = arith.constant 1.000000e+00 : f32
    %969 = vector.broadcast %cst_351 : f32 to vector<2x96xf32>
    %970 = arith.addf %969, %968 : vector<2x96xf32>
    %971 = arith.divf %969, %970 : vector<2x96xf32>
    %972 = vector.extract_strided_slice %965 {offsets = [0, 96], sizes = [2, 32], strides = [1, 1]} : vector<2x128xf32> to vector<2x32xf32>
    %973 = math.tanh %972 : vector<2x32xf32>
    %974 = vector.extract_strided_slice %971 {offsets = [0, 0], sizes = [2, 32], strides = [1, 1]} : vector<2x96xf32> to vector<2x32xf32>
    %975 = vector.extract_strided_slice %971 {offsets = [0, 32], sizes = [2, 32], strides = [1, 1]} : vector<2x96xf32> to vector<2x32xf32>
    %976 = vector.extract_strided_slice %971 {offsets = [0, 64], sizes = [2, 32], strides = [1, 1]} : vector<2x96xf32> to vector<2x32xf32>
    %977 = arith.mulf %975, %904 : vector<2x32xf32>
    %978 = arith.mulf %974, %973 : vector<2x32xf32>
    %979 = arith.addf %977, %978 : vector<2x32xf32>
    %980 = math.tanh %979 : vector<2x32xf32>
    %981 = arith.mulf %976, %980 : vector<2x32xf32>
    %982 = arith.truncf %906 : vector<2x32xf32> to vector<2x32xbf16>
    %c0_352 = arith.constant 0 : index
    %c0_353 = arith.constant 0 : index
    %983 = vector.load %arg15[%c0_352, %c0_353] : memref<32x256xbf16, #tpu.memory_space<vmem>>, vector<32x256xbf16>
    %cst_354 = arith.constant dense<0.000000e+00> : vector<2x256xf32>
    %984 = tpu.matmul %982, %983, %cst_354 {dimension_numbers = #tpu.dot_dimension_numbers<[1], [0], [0], [1], [0, 0, 1, 1], [], []>} : vector<2x32xbf16>, vector<32x256xbf16>, vector<2x256xf32> -> vector<2x256xf32>
    %985 = arith.truncf %932 : vector<2x64xf32> to vector<2x64xbf16>
    %c0_355 = arith.constant 0 : index
    %c0_356 = arith.constant 0 : index
    %986 = vector.load %arg16[%c0_355, %c0_356] : memref<64x256xbf16, #tpu.memory_space<vmem>>, vector<64x256xbf16>
    %cst_357 = arith.constant dense<0.000000e+00> : vector<2x256xf32>
    %987 = tpu.matmul %985, %986, %cst_357 {dimension_numbers = #tpu.dot_dimension_numbers<[1], [0], [0], [1], [0, 0, 1, 1], [], []>} : vector<2x64xbf16>, vector<64x256xbf16>, vector<2x256xf32> -> vector<2x256xf32>
    %988 = arith.addf %984, %987 : vector<2x256xf32>
    %c0_358 = arith.constant 0 : index
    %c0_359 = arith.constant 0 : index
    %989 = vector.load %arg17[%c0_358, %c0_359] : memref<1x256xf32, #tpu.memory_space<vmem>>, vector<1x256xf32>
    %990 = vector.broadcast %989 : vector<1x256xf32> to vector<2x256xf32>
    %991 = arith.addf %988, %990 : vector<2x256xf32>
    %992 = vector.extract_strided_slice %991 {offsets = [0, 0], sizes = [2, 192], strides = [1, 1]} : vector<2x256xf32> to vector<2x192xf32>
    %993 = arith.negf %992 : vector<2x192xf32>
    %994 = math.exp %993 : vector<2x192xf32>
    %cst_360 = arith.constant 1.000000e+00 : f32
    %995 = vector.broadcast %cst_360 : f32 to vector<2x192xf32>
    %996 = arith.addf %995, %994 : vector<2x192xf32>
    %997 = arith.divf %995, %996 : vector<2x192xf32>
    %998 = vector.extract_strided_slice %991 {offsets = [0, 192], sizes = [2, 64], strides = [1, 1]} : vector<2x256xf32> to vector<2x64xf32>
    %999 = math.tanh %998 : vector<2x64xf32>
    %1000 = vector.extract_strided_slice %997 {offsets = [0, 0], sizes = [2, 64], strides = [1, 1]} : vector<2x192xf32> to vector<2x64xf32>
    %1001 = vector.extract_strided_slice %997 {offsets = [0, 64], sizes = [2, 64], strides = [1, 1]} : vector<2x192xf32> to vector<2x64xf32>
    %1002 = vector.extract_strided_slice %997 {offsets = [0, 128], sizes = [2, 64], strides = [1, 1]} : vector<2x192xf32> to vector<2x64xf32>
    %1003 = arith.mulf %1001, %930 : vector<2x64xf32>
    %1004 = arith.mulf %1000, %999 : vector<2x64xf32>
    %1005 = arith.addf %1003, %1004 : vector<2x64xf32>
    %1006 = math.tanh %1005 : vector<2x64xf32>
    %1007 = arith.mulf %1002, %1006 : vector<2x64xf32>
    %1008 = arith.truncf %932 : vector<2x64xf32> to vector<2x64xbf16>
    %c0_361 = arith.constant 0 : index
    %c0_362 = arith.constant 0 : index
    %1009 = vector.load %arg18[%c0_361, %c0_362] : memref<64x256xbf16, #tpu.memory_space<vmem>>, vector<64x256xbf16>
    %cst_363 = arith.constant dense<0.000000e+00> : vector<2x256xf32>
    %1010 = tpu.matmul %1008, %1009, %cst_363 {dimension_numbers = #tpu.dot_dimension_numbers<[1], [0], [0], [1], [0, 0, 1, 1], [], []>} : vector<2x64xbf16>, vector<64x256xbf16>, vector<2x256xf32> -> vector<2x256xf32>
    %1011 = arith.truncf %958 : vector<2x64xf32> to vector<2x64xbf16>
    %c0_364 = arith.constant 0 : index
    %c0_365 = arith.constant 0 : index
    %1012 = vector.load %arg19[%c0_364, %c0_365] : memref<64x256xbf16, #tpu.memory_space<vmem>>, vector<64x256xbf16>
    %cst_366 = arith.constant dense<0.000000e+00> : vector<2x256xf32>
    %1013 = tpu.matmul %1011, %1012, %cst_366 {dimension_numbers = #tpu.dot_dimension_numbers<[1], [0], [0], [1], [0, 0, 1, 1], [], []>} : vector<2x64xbf16>, vector<64x256xbf16>, vector<2x256xf32> -> vector<2x256xf32>
    %1014 = arith.addf %1010, %1013 : vector<2x256xf32>
    %c0_367 = arith.constant 0 : index
    %c0_368 = arith.constant 0 : index
    %1015 = vector.load %arg20[%c0_367, %c0_368] : memref<1x256xf32, #tpu.memory_space<vmem>>, vector<1x256xf32>
    %1016 = vector.broadcast %1015 : vector<1x256xf32> to vector<2x256xf32>
    %1017 = arith.addf %1014, %1016 : vector<2x256xf32>
    %1018 = vector.extract_strided_slice %1017 {offsets = [0, 0], sizes = [2, 192], strides = [1, 1]} : vector<2x256xf32> to vector<2x192xf32>
    %1019 = arith.negf %1018 : vector<2x192xf32>
    %1020 = math.exp %1019 : vector<2x192xf32>
    %cst_369 = arith.constant 1.000000e+00 : f32
    %1021 = vector.broadcast %cst_369 : f32 to vector<2x192xf32>
    %1022 = arith.addf %1021, %1020 : vector<2x192xf32>
    %1023 = arith.divf %1021, %1022 : vector<2x192xf32>
    %1024 = vector.extract_strided_slice %1017 {offsets = [0, 192], sizes = [2, 64], strides = [1, 1]} : vector<2x256xf32> to vector<2x64xf32>
    %1025 = math.tanh %1024 : vector<2x64xf32>
    %1026 = vector.extract_strided_slice %1023 {offsets = [0, 0], sizes = [2, 64], strides = [1, 1]} : vector<2x192xf32> to vector<2x64xf32>
    %1027 = vector.extract_strided_slice %1023 {offsets = [0, 64], sizes = [2, 64], strides = [1, 1]} : vector<2x192xf32> to vector<2x64xf32>
    %1028 = vector.extract_strided_slice %1023 {offsets = [0, 128], sizes = [2, 64], strides = [1, 1]} : vector<2x192xf32> to vector<2x64xf32>
    %1029 = arith.mulf %1027, %956 : vector<2x64xf32>
    %1030 = arith.mulf %1026, %1025 : vector<2x64xf32>
    %1031 = arith.addf %1029, %1030 : vector<2x64xf32>
    %1032 = math.tanh %1031 : vector<2x64xf32>
    %1033 = arith.mulf %1028, %1032 : vector<2x64xf32>
    %1034 = arith.truncf %981 : vector<2x32xf32> to vector<2x32xbf16>
    %c0_370 = arith.constant 0 : index
    %c0_371 = arith.constant 0 : index
    %1035 = vector.load %arg13[%c0_370, %c0_371] : memref<32x128xbf16, #tpu.memory_space<vmem>>, vector<32x128xbf16>
    %cst_372 = arith.constant dense<0.000000e+00> : vector<2x128xf32>
    %1036 = tpu.matmul %1034, %1035, %cst_372 {dimension_numbers = #tpu.dot_dimension_numbers<[1], [0], [0], [1], [0, 0, 1, 1], [], []>} : vector<2x32xbf16>, vector<32x128xbf16>, vector<2x128xf32> -> vector<2x128xf32>
    %1037 = arith.addf %655, %1036 : vector<2x128xf32>
    %c0_373 = arith.constant 0 : index
    %c0_374 = arith.constant 0 : index
    %1038 = vector.load %arg14[%c0_373, %c0_374] : memref<1x128xf32, #tpu.memory_space<vmem>>, vector<1x128xf32>
    %1039 = vector.broadcast %1038 : vector<1x128xf32> to vector<2x128xf32>
    %1040 = arith.addf %1037, %1039 : vector<2x128xf32>
    %1041 = vector.extract_strided_slice %1040 {offsets = [0, 0], sizes = [2, 96], strides = [1, 1]} : vector<2x128xf32> to vector<2x96xf32>
    %1042 = arith.negf %1041 : vector<2x96xf32>
    %1043 = math.exp %1042 : vector<2x96xf32>
    %cst_375 = arith.constant 1.000000e+00 : f32
    %1044 = vector.broadcast %cst_375 : f32 to vector<2x96xf32>
    %1045 = arith.addf %1044, %1043 : vector<2x96xf32>
    %1046 = arith.divf %1044, %1045 : vector<2x96xf32>
    %1047 = vector.extract_strided_slice %1040 {offsets = [0, 96], sizes = [2, 32], strides = [1, 1]} : vector<2x128xf32> to vector<2x32xf32>
    %1048 = math.tanh %1047 : vector<2x32xf32>
    %1049 = vector.extract_strided_slice %1046 {offsets = [0, 0], sizes = [2, 32], strides = [1, 1]} : vector<2x96xf32> to vector<2x32xf32>
    %1050 = vector.extract_strided_slice %1046 {offsets = [0, 32], sizes = [2, 32], strides = [1, 1]} : vector<2x96xf32> to vector<2x32xf32>
    %1051 = vector.extract_strided_slice %1046 {offsets = [0, 64], sizes = [2, 32], strides = [1, 1]} : vector<2x96xf32> to vector<2x32xf32>
    %1052 = arith.mulf %1050, %979 : vector<2x32xf32>
    %1053 = arith.mulf %1049, %1048 : vector<2x32xf32>
    %1054 = arith.addf %1052, %1053 : vector<2x32xf32>
    %1055 = math.tanh %1054 : vector<2x32xf32>
    %1056 = arith.mulf %1051, %1055 : vector<2x32xf32>
    %1057 = arith.truncf %981 : vector<2x32xf32> to vector<2x32xbf16>
    %c0_376 = arith.constant 0 : index
    %c0_377 = arith.constant 0 : index
    %1058 = vector.load %arg15[%c0_376, %c0_377] : memref<32x256xbf16, #tpu.memory_space<vmem>>, vector<32x256xbf16>
    %cst_378 = arith.constant dense<0.000000e+00> : vector<2x256xf32>
    %1059 = tpu.matmul %1057, %1058, %cst_378 {dimension_numbers = #tpu.dot_dimension_numbers<[1], [0], [0], [1], [0, 0, 1, 1], [], []>} : vector<2x32xbf16>, vector<32x256xbf16>, vector<2x256xf32> -> vector<2x256xf32>
    %1060 = arith.truncf %1007 : vector<2x64xf32> to vector<2x64xbf16>
    %c0_379 = arith.constant 0 : index
    %c0_380 = arith.constant 0 : index
    %1061 = vector.load %arg16[%c0_379, %c0_380] : memref<64x256xbf16, #tpu.memory_space<vmem>>, vector<64x256xbf16>
    %cst_381 = arith.constant dense<0.000000e+00> : vector<2x256xf32>
    %1062 = tpu.matmul %1060, %1061, %cst_381 {dimension_numbers = #tpu.dot_dimension_numbers<[1], [0], [0], [1], [0, 0, 1, 1], [], []>} : vector<2x64xbf16>, vector<64x256xbf16>, vector<2x256xf32> -> vector<2x256xf32>
    %1063 = arith.addf %1059, %1062 : vector<2x256xf32>
    %c0_382 = arith.constant 0 : index
    %c0_383 = arith.constant 0 : index
    %1064 = vector.load %arg17[%c0_382, %c0_383] : memref<1x256xf32, #tpu.memory_space<vmem>>, vector<1x256xf32>
    %1065 = vector.broadcast %1064 : vector<1x256xf32> to vector<2x256xf32>
    %1066 = arith.addf %1063, %1065 : vector<2x256xf32>
    %1067 = vector.extract_strided_slice %1066 {offsets = [0, 0], sizes = [2, 192], strides = [1, 1]} : vector<2x256xf32> to vector<2x192xf32>
    %1068 = arith.negf %1067 : vector<2x192xf32>
    %1069 = math.exp %1068 : vector<2x192xf32>
    %cst_384 = arith.constant 1.000000e+00 : f32
    %1070 = vector.broadcast %cst_384 : f32 to vector<2x192xf32>
    %1071 = arith.addf %1070, %1069 : vector<2x192xf32>
    %1072 = arith.divf %1070, %1071 : vector<2x192xf32>
    %1073 = vector.extract_strided_slice %1066 {offsets = [0, 192], sizes = [2, 64], strides = [1, 1]} : vector<2x256xf32> to vector<2x64xf32>
    %1074 = math.tanh %1073 : vector<2x64xf32>
    %1075 = vector.extract_strided_slice %1072 {offsets = [0, 0], sizes = [2, 64], strides = [1, 1]} : vector<2x192xf32> to vector<2x64xf32>
    %1076 = vector.extract_strided_slice %1072 {offsets = [0, 64], sizes = [2, 64], strides = [1, 1]} : vector<2x192xf32> to vector<2x64xf32>
    %1077 = vector.extract_strided_slice %1072 {offsets = [0, 128], sizes = [2, 64], strides = [1, 1]} : vector<2x192xf32> to vector<2x64xf32>
    %1078 = arith.mulf %1076, %1005 : vector<2x64xf32>
    %1079 = arith.mulf %1075, %1074 : vector<2x64xf32>
    %1080 = arith.addf %1078, %1079 : vector<2x64xf32>
    %1081 = math.tanh %1080 : vector<2x64xf32>
    %1082 = arith.mulf %1077, %1081 : vector<2x64xf32>
    %1083 = arith.truncf %1007 : vector<2x64xf32> to vector<2x64xbf16>
    %c0_385 = arith.constant 0 : index
    %c0_386 = arith.constant 0 : index
    %1084 = vector.load %arg18[%c0_385, %c0_386] : memref<64x256xbf16, #tpu.memory_space<vmem>>, vector<64x256xbf16>
    %cst_387 = arith.constant dense<0.000000e+00> : vector<2x256xf32>
    %1085 = tpu.matmul %1083, %1084, %cst_387 {dimension_numbers = #tpu.dot_dimension_numbers<[1], [0], [0], [1], [0, 0, 1, 1], [], []>} : vector<2x64xbf16>, vector<64x256xbf16>, vector<2x256xf32> -> vector<2x256xf32>
    %1086 = arith.truncf %1033 : vector<2x64xf32> to vector<2x64xbf16>
    %c0_388 = arith.constant 0 : index
    %c0_389 = arith.constant 0 : index
    %1087 = vector.load %arg19[%c0_388, %c0_389] : memref<64x256xbf16, #tpu.memory_space<vmem>>, vector<64x256xbf16>
    %cst_390 = arith.constant dense<0.000000e+00> : vector<2x256xf32>
    %1088 = tpu.matmul %1086, %1087, %cst_390 {dimension_numbers = #tpu.dot_dimension_numbers<[1], [0], [0], [1], [0, 0, 1, 1], [], []>} : vector<2x64xbf16>, vector<64x256xbf16>, vector<2x256xf32> -> vector<2x256xf32>
    %1089 = arith.addf %1085, %1088 : vector<2x256xf32>
    %c0_391 = arith.constant 0 : index
    %c0_392 = arith.constant 0 : index
    %1090 = vector.load %arg20[%c0_391, %c0_392] : memref<1x256xf32, #tpu.memory_space<vmem>>, vector<1x256xf32>
    %1091 = vector.broadcast %1090 : vector<1x256xf32> to vector<2x256xf32>
    %1092 = arith.addf %1089, %1091 : vector<2x256xf32>
    %1093 = vector.extract_strided_slice %1092 {offsets = [0, 0], sizes = [2, 192], strides = [1, 1]} : vector<2x256xf32> to vector<2x192xf32>
    %1094 = arith.negf %1093 : vector<2x192xf32>
    %1095 = math.exp %1094 : vector<2x192xf32>
    %cst_393 = arith.constant 1.000000e+00 : f32
    %1096 = vector.broadcast %cst_393 : f32 to vector<2x192xf32>
    %1097 = arith.addf %1096, %1095 : vector<2x192xf32>
    %1098 = arith.divf %1096, %1097 : vector<2x192xf32>
    %1099 = vector.extract_strided_slice %1092 {offsets = [0, 192], sizes = [2, 64], strides = [1, 1]} : vector<2x256xf32> to vector<2x64xf32>
    %1100 = math.tanh %1099 : vector<2x64xf32>
    %1101 = vector.extract_strided_slice %1098 {offsets = [0, 0], sizes = [2, 64], strides = [1, 1]} : vector<2x192xf32> to vector<2x64xf32>
    %1102 = vector.extract_strided_slice %1098 {offsets = [0, 64], sizes = [2, 64], strides = [1, 1]} : vector<2x192xf32> to vector<2x64xf32>
    %1103 = vector.extract_strided_slice %1098 {offsets = [0, 128], sizes = [2, 64], strides = [1, 1]} : vector<2x192xf32> to vector<2x64xf32>
    %1104 = arith.mulf %1102, %1031 : vector<2x64xf32>
    %1105 = arith.mulf %1101, %1100 : vector<2x64xf32>
    %1106 = arith.addf %1104, %1105 : vector<2x64xf32>
    %1107 = math.tanh %1106 : vector<2x64xf32>
    %1108 = arith.mulf %1103, %1107 : vector<2x64xf32>
    %1109 = arith.truncf %1056 : vector<2x32xf32> to vector<2x32xbf16>
    %c0_394 = arith.constant 0 : index
    %c0_395 = arith.constant 0 : index
    %1110 = vector.load %arg13[%c0_394, %c0_395] : memref<32x128xbf16, #tpu.memory_space<vmem>>, vector<32x128xbf16>
    %cst_396 = arith.constant dense<0.000000e+00> : vector<2x128xf32>
    %1111 = tpu.matmul %1109, %1110, %cst_396 {dimension_numbers = #tpu.dot_dimension_numbers<[1], [0], [0], [1], [0, 0, 1, 1], [], []>} : vector<2x32xbf16>, vector<32x128xbf16>, vector<2x128xf32> -> vector<2x128xf32>
    %1112 = arith.addf %655, %1111 : vector<2x128xf32>
    %c0_397 = arith.constant 0 : index
    %c0_398 = arith.constant 0 : index
    %1113 = vector.load %arg14[%c0_397, %c0_398] : memref<1x128xf32, #tpu.memory_space<vmem>>, vector<1x128xf32>
    %1114 = vector.broadcast %1113 : vector<1x128xf32> to vector<2x128xf32>
    %1115 = arith.addf %1112, %1114 : vector<2x128xf32>
    %1116 = vector.extract_strided_slice %1115 {offsets = [0, 0], sizes = [2, 96], strides = [1, 1]} : vector<2x128xf32> to vector<2x96xf32>
    %1117 = arith.negf %1116 : vector<2x96xf32>
    %1118 = math.exp %1117 : vector<2x96xf32>
    %cst_399 = arith.constant 1.000000e+00 : f32
    %1119 = vector.broadcast %cst_399 : f32 to vector<2x96xf32>
    %1120 = arith.addf %1119, %1118 : vector<2x96xf32>
    %1121 = arith.divf %1119, %1120 : vector<2x96xf32>
    %1122 = vector.extract_strided_slice %1115 {offsets = [0, 96], sizes = [2, 32], strides = [1, 1]} : vector<2x128xf32> to vector<2x32xf32>
    %1123 = math.tanh %1122 : vector<2x32xf32>
    %1124 = vector.extract_strided_slice %1121 {offsets = [0, 0], sizes = [2, 32], strides = [1, 1]} : vector<2x96xf32> to vector<2x32xf32>
    %1125 = vector.extract_strided_slice %1121 {offsets = [0, 32], sizes = [2, 32], strides = [1, 1]} : vector<2x96xf32> to vector<2x32xf32>
    %1126 = vector.extract_strided_slice %1121 {offsets = [0, 64], sizes = [2, 32], strides = [1, 1]} : vector<2x96xf32> to vector<2x32xf32>
    %1127 = arith.mulf %1125, %1054 : vector<2x32xf32>
    %1128 = arith.mulf %1124, %1123 : vector<2x32xf32>
    %1129 = arith.addf %1127, %1128 : vector<2x32xf32>
    %1130 = math.tanh %1129 : vector<2x32xf32>
    %1131 = arith.mulf %1126, %1130 : vector<2x32xf32>
    %1132 = arith.truncf %1056 : vector<2x32xf32> to vector<2x32xbf16>
    %c0_400 = arith.constant 0 : index
    %c0_401 = arith.constant 0 : index
    %1133 = vector.load %arg15[%c0_400, %c0_401] : memref<32x256xbf16, #tpu.memory_space<vmem>>, vector<32x256xbf16>
    %cst_402 = arith.constant dense<0.000000e+00> : vector<2x256xf32>
    %1134 = tpu.matmul %1132, %1133, %cst_402 {dimension_numbers = #tpu.dot_dimension_numbers<[1], [0], [0], [1], [0, 0, 1, 1], [], []>} : vector<2x32xbf16>, vector<32x256xbf16>, vector<2x256xf32> -> vector<2x256xf32>
    %1135 = arith.truncf %1082 : vector<2x64xf32> to vector<2x64xbf16>
    %c0_403 = arith.constant 0 : index
    %c0_404 = arith.constant 0 : index
    %1136 = vector.load %arg16[%c0_403, %c0_404] : memref<64x256xbf16, #tpu.memory_space<vmem>>, vector<64x256xbf16>
    %cst_405 = arith.constant dense<0.000000e+00> : vector<2x256xf32>
    %1137 = tpu.matmul %1135, %1136, %cst_405 {dimension_numbers = #tpu.dot_dimension_numbers<[1], [0], [0], [1], [0, 0, 1, 1], [], []>} : vector<2x64xbf16>, vector<64x256xbf16>, vector<2x256xf32> -> vector<2x256xf32>
    %1138 = arith.addf %1134, %1137 : vector<2x256xf32>
    %c0_406 = arith.constant 0 : index
    %c0_407 = arith.constant 0 : index
    %1139 = vector.load %arg17[%c0_406, %c0_407] : memref<1x256xf32, #tpu.memory_space<vmem>>, vector<1x256xf32>
    %1140 = vector.broadcast %1139 : vector<1x256xf32> to vector<2x256xf32>
    %1141 = arith.addf %1138, %1140 : vector<2x256xf32>
    %1142 = vector.extract_strided_slice %1141 {offsets = [0, 0], sizes = [2, 192], strides = [1, 1]} : vector<2x256xf32> to vector<2x192xf32>
    %1143 = arith.negf %1142 : vector<2x192xf32>
    %1144 = math.exp %1143 : vector<2x192xf32>
    %cst_408 = arith.constant 1.000000e+00 : f32
    %1145 = vector.broadcast %cst_408 : f32 to vector<2x192xf32>
    %1146 = arith.addf %1145, %1144 : vector<2x192xf32>
    %1147 = arith.divf %1145, %1146 : vector<2x192xf32>
    %1148 = vector.extract_strided_slice %1141 {offsets = [0, 192], sizes = [2, 64], strides = [1, 1]} : vector<2x256xf32> to vector<2x64xf32>
    %1149 = math.tanh %1148 : vector<2x64xf32>
    %1150 = vector.extract_strided_slice %1147 {offsets = [0, 0], sizes = [2, 64], strides = [1, 1]} : vector<2x192xf32> to vector<2x64xf32>
    %1151 = vector.extract_strided_slice %1147 {offsets = [0, 64], sizes = [2, 64], strides = [1, 1]} : vector<2x192xf32> to vector<2x64xf32>
    %1152 = vector.extract_strided_slice %1147 {offsets = [0, 128], sizes = [2, 64], strides = [1, 1]} : vector<2x192xf32> to vector<2x64xf32>
    %1153 = arith.mulf %1151, %1080 : vector<2x64xf32>
    %1154 = arith.mulf %1150, %1149 : vector<2x64xf32>
    %1155 = arith.addf %1153, %1154 : vector<2x64xf32>
    %1156 = math.tanh %1155 : vector<2x64xf32>
    %1157 = arith.mulf %1152, %1156 : vector<2x64xf32>
    %1158 = arith.truncf %1082 : vector<2x64xf32> to vector<2x64xbf16>
    %c0_409 = arith.constant 0 : index
    %c0_410 = arith.constant 0 : index
    %1159 = vector.load %arg18[%c0_409, %c0_410] : memref<64x256xbf16, #tpu.memory_space<vmem>>, vector<64x256xbf16>
    %cst_411 = arith.constant dense<0.000000e+00> : vector<2x256xf32>
    %1160 = tpu.matmul %1158, %1159, %cst_411 {dimension_numbers = #tpu.dot_dimension_numbers<[1], [0], [0], [1], [0, 0, 1, 1], [], []>} : vector<2x64xbf16>, vector<64x256xbf16>, vector<2x256xf32> -> vector<2x256xf32>
    %1161 = arith.truncf %1108 : vector<2x64xf32> to vector<2x64xbf16>
    %c0_412 = arith.constant 0 : index
    %c0_413 = arith.constant 0 : index
    %1162 = vector.load %arg19[%c0_412, %c0_413] : memref<64x256xbf16, #tpu.memory_space<vmem>>, vector<64x256xbf16>
    %cst_414 = arith.constant dense<0.000000e+00> : vector<2x256xf32>
    %1163 = tpu.matmul %1161, %1162, %cst_414 {dimension_numbers = #tpu.dot_dimension_numbers<[1], [0], [0], [1], [0, 0, 1, 1], [], []>} : vector<2x64xbf16>, vector<64x256xbf16>, vector<2x256xf32> -> vector<2x256xf32>
    %1164 = arith.addf %1160, %1163 : vector<2x256xf32>
    %c0_415 = arith.constant 0 : index
    %c0_416 = arith.constant 0 : index
    %1165 = vector.load %arg20[%c0_415, %c0_416] : memref<1x256xf32, #tpu.memory_space<vmem>>, vector<1x256xf32>
    %1166 = vector.broadcast %1165 : vector<1x256xf32> to vector<2x256xf32>
    %1167 = arith.addf %1164, %1166 : vector<2x256xf32>
    %1168 = vector.extract_strided_slice %1167 {offsets = [0, 0], sizes = [2, 192], strides = [1, 1]} : vector<2x256xf32> to vector<2x192xf32>
    %1169 = arith.negf %1168 : vector<2x192xf32>
    %1170 = math.exp %1169 : vector<2x192xf32>
    %cst_417 = arith.constant 1.000000e+00 : f32
    %1171 = vector.broadcast %cst_417 : f32 to vector<2x192xf32>
    %1172 = arith.addf %1171, %1170 : vector<2x192xf32>
    %1173 = arith.divf %1171, %1172 : vector<2x192xf32>
    %1174 = vector.extract_strided_slice %1167 {offsets = [0, 192], sizes = [2, 64], strides = [1, 1]} : vector<2x256xf32> to vector<2x64xf32>
    %1175 = math.tanh %1174 : vector<2x64xf32>
    %1176 = vector.extract_strided_slice %1173 {offsets = [0, 0], sizes = [2, 64], strides = [1, 1]} : vector<2x192xf32> to vector<2x64xf32>
    %1177 = vector.extract_strided_slice %1173 {offsets = [0, 64], sizes = [2, 64], strides = [1, 1]} : vector<2x192xf32> to vector<2x64xf32>
    %1178 = vector.extract_strided_slice %1173 {offsets = [0, 128], sizes = [2, 64], strides = [1, 1]} : vector<2x192xf32> to vector<2x64xf32>
    %1179 = arith.mulf %1177, %1106 : vector<2x64xf32>
    %1180 = arith.mulf %1176, %1175 : vector<2x64xf32>
    %1181 = arith.addf %1179, %1180 : vector<2x64xf32>
    %1182 = math.tanh %1181 : vector<2x64xf32>
    %1183 = arith.mulf %1178, %1182 : vector<2x64xf32>
    %1184 = arith.truncf %1131 : vector<2x32xf32> to vector<2x32xbf16>
    %c0_418 = arith.constant 0 : index
    %c0_419 = arith.constant 0 : index
    %1185 = vector.load %arg15[%c0_418, %c0_419] : memref<32x256xbf16, #tpu.memory_space<vmem>>, vector<32x256xbf16>
    %cst_420 = arith.constant dense<0.000000e+00> : vector<2x256xf32>
    %1186 = tpu.matmul %1184, %1185, %cst_420 {dimension_numbers = #tpu.dot_dimension_numbers<[1], [0], [0], [1], [0, 0, 1, 1], [], []>} : vector<2x32xbf16>, vector<32x256xbf16>, vector<2x256xf32> -> vector<2x256xf32>
    %1187 = arith.truncf %1157 : vector<2x64xf32> to vector<2x64xbf16>
    %c0_421 = arith.constant 0 : index
    %c0_422 = arith.constant 0 : index
    %1188 = vector.load %arg16[%c0_421, %c0_422] : memref<64x256xbf16, #tpu.memory_space<vmem>>, vector<64x256xbf16>
    %cst_423 = arith.constant dense<0.000000e+00> : vector<2x256xf32>
    %1189 = tpu.matmul %1187, %1188, %cst_423 {dimension_numbers = #tpu.dot_dimension_numbers<[1], [0], [0], [1], [0, 0, 1, 1], [], []>} : vector<2x64xbf16>, vector<64x256xbf16>, vector<2x256xf32> -> vector<2x256xf32>
    %1190 = arith.addf %1186, %1189 : vector<2x256xf32>
    %c0_424 = arith.constant 0 : index
    %c0_425 = arith.constant 0 : index
    %1191 = vector.load %arg17[%c0_424, %c0_425] : memref<1x256xf32, #tpu.memory_space<vmem>>, vector<1x256xf32>
    %1192 = vector.broadcast %1191 : vector<1x256xf32> to vector<2x256xf32>
    %1193 = arith.addf %1190, %1192 : vector<2x256xf32>
    %1194 = vector.extract_strided_slice %1193 {offsets = [0, 0], sizes = [2, 192], strides = [1, 1]} : vector<2x256xf32> to vector<2x192xf32>
    %1195 = arith.negf %1194 : vector<2x192xf32>
    %1196 = math.exp %1195 : vector<2x192xf32>
    %cst_426 = arith.constant 1.000000e+00 : f32
    %1197 = vector.broadcast %cst_426 : f32 to vector<2x192xf32>
    %1198 = arith.addf %1197, %1196 : vector<2x192xf32>
    %1199 = arith.divf %1197, %1198 : vector<2x192xf32>
    %1200 = vector.extract_strided_slice %1193 {offsets = [0, 192], sizes = [2, 64], strides = [1, 1]} : vector<2x256xf32> to vector<2x64xf32>
    %1201 = math.tanh %1200 : vector<2x64xf32>
    %1202 = vector.extract_strided_slice %1199 {offsets = [0, 0], sizes = [2, 64], strides = [1, 1]} : vector<2x192xf32> to vector<2x64xf32>
    %1203 = vector.extract_strided_slice %1199 {offsets = [0, 64], sizes = [2, 64], strides = [1, 1]} : vector<2x192xf32> to vector<2x64xf32>
    %1204 = vector.extract_strided_slice %1199 {offsets = [0, 128], sizes = [2, 64], strides = [1, 1]} : vector<2x192xf32> to vector<2x64xf32>
    %1205 = arith.mulf %1203, %1155 : vector<2x64xf32>
    %1206 = arith.mulf %1202, %1201 : vector<2x64xf32>
    %1207 = arith.addf %1205, %1206 : vector<2x64xf32>
    %1208 = math.tanh %1207 : vector<2x64xf32>
    %1209 = arith.mulf %1204, %1208 : vector<2x64xf32>
    %1210 = arith.truncf %1157 : vector<2x64xf32> to vector<2x64xbf16>
    %c0_427 = arith.constant 0 : index
    %c0_428 = arith.constant 0 : index
    %1211 = vector.load %arg18[%c0_427, %c0_428] : memref<64x256xbf16, #tpu.memory_space<vmem>>, vector<64x256xbf16>
    %cst_429 = arith.constant dense<0.000000e+00> : vector<2x256xf32>
    %1212 = tpu.matmul %1210, %1211, %cst_429 {dimension_numbers = #tpu.dot_dimension_numbers<[1], [0], [0], [1], [0, 0, 1, 1], [], []>} : vector<2x64xbf16>, vector<64x256xbf16>, vector<2x256xf32> -> vector<2x256xf32>
    %1213 = arith.truncf %1183 : vector<2x64xf32> to vector<2x64xbf16>
    %c0_430 = arith.constant 0 : index
    %c0_431 = arith.constant 0 : index
    %1214 = vector.load %arg19[%c0_430, %c0_431] : memref<64x256xbf16, #tpu.memory_space<vmem>>, vector<64x256xbf16>
    %cst_432 = arith.constant dense<0.000000e+00> : vector<2x256xf32>
    %1215 = tpu.matmul %1213, %1214, %cst_432 {dimension_numbers = #tpu.dot_dimension_numbers<[1], [0], [0], [1], [0, 0, 1, 1], [], []>} : vector<2x64xbf16>, vector<64x256xbf16>, vector<2x256xf32> -> vector<2x256xf32>
    %1216 = arith.addf %1212, %1215 : vector<2x256xf32>
    %c0_433 = arith.constant 0 : index
    %c0_434 = arith.constant 0 : index
    %1217 = vector.load %arg20[%c0_433, %c0_434] : memref<1x256xf32, #tpu.memory_space<vmem>>, vector<1x256xf32>
    %1218 = vector.broadcast %1217 : vector<1x256xf32> to vector<2x256xf32>
    %1219 = arith.addf %1216, %1218 : vector<2x256xf32>
    %1220 = vector.extract_strided_slice %1219 {offsets = [0, 0], sizes = [2, 192], strides = [1, 1]} : vector<2x256xf32> to vector<2x192xf32>
    %1221 = arith.negf %1220 : vector<2x192xf32>
    %1222 = math.exp %1221 : vector<2x192xf32>
    %cst_435 = arith.constant 1.000000e+00 : f32
    %1223 = vector.broadcast %cst_435 : f32 to vector<2x192xf32>
    %1224 = arith.addf %1223, %1222 : vector<2x192xf32>
    %1225 = arith.divf %1223, %1224 : vector<2x192xf32>
    %1226 = vector.extract_strided_slice %1219 {offsets = [0, 192], sizes = [2, 64], strides = [1, 1]} : vector<2x256xf32> to vector<2x64xf32>
    %1227 = math.tanh %1226 : vector<2x64xf32>
    %1228 = vector.extract_strided_slice %1225 {offsets = [0, 0], sizes = [2, 64], strides = [1, 1]} : vector<2x192xf32> to vector<2x64xf32>
    %1229 = vector.extract_strided_slice %1225 {offsets = [0, 64], sizes = [2, 64], strides = [1, 1]} : vector<2x192xf32> to vector<2x64xf32>
    %1230 = vector.extract_strided_slice %1225 {offsets = [0, 128], sizes = [2, 64], strides = [1, 1]} : vector<2x192xf32> to vector<2x64xf32>
    %1231 = arith.mulf %1229, %1181 : vector<2x64xf32>
    %1232 = arith.mulf %1228, %1227 : vector<2x64xf32>
    %1233 = arith.addf %1231, %1232 : vector<2x64xf32>
    %1234 = math.tanh %1233 : vector<2x64xf32>
    %1235 = arith.mulf %1230, %1234 : vector<2x64xf32>
    %1236 = arith.truncf %1209 : vector<2x64xf32> to vector<2x64xbf16>
    %c0_436 = arith.constant 0 : index
    %c0_437 = arith.constant 0 : index
    %1237 = vector.load %arg18[%c0_436, %c0_437] : memref<64x256xbf16, #tpu.memory_space<vmem>>, vector<64x256xbf16>
    %cst_438 = arith.constant dense<0.000000e+00> : vector<2x256xf32>
    %1238 = tpu.matmul %1236, %1237, %cst_438 {dimension_numbers = #tpu.dot_dimension_numbers<[1], [0], [0], [1], [0, 0, 1, 1], [], []>} : vector<2x64xbf16>, vector<64x256xbf16>, vector<2x256xf32> -> vector<2x256xf32>
    %1239 = arith.truncf %1235 : vector<2x64xf32> to vector<2x64xbf16>
    %c0_439 = arith.constant 0 : index
    %c0_440 = arith.constant 0 : index
    %1240 = vector.load %arg19[%c0_439, %c0_440] : memref<64x256xbf16, #tpu.memory_space<vmem>>, vector<64x256xbf16>
    %cst_441 = arith.constant dense<0.000000e+00> : vector<2x256xf32>
    %1241 = tpu.matmul %1239, %1240, %cst_441 {dimension_numbers = #tpu.dot_dimension_numbers<[1], [0], [0], [1], [0, 0, 1, 1], [], []>} : vector<2x64xbf16>, vector<64x256xbf16>, vector<2x256xf32> -> vector<2x256xf32>
    %1242 = arith.addf %1238, %1241 : vector<2x256xf32>
    %c0_442 = arith.constant 0 : index
    %c0_443 = arith.constant 0 : index
    %1243 = vector.load %arg20[%c0_442, %c0_443] : memref<1x256xf32, #tpu.memory_space<vmem>>, vector<1x256xf32>
    %1244 = vector.broadcast %1243 : vector<1x256xf32> to vector<2x256xf32>
    %1245 = arith.addf %1242, %1244 : vector<2x256xf32>
    %1246 = vector.extract_strided_slice %1245 {offsets = [0, 0], sizes = [2, 192], strides = [1, 1]} : vector<2x256xf32> to vector<2x192xf32>
    %1247 = arith.negf %1246 : vector<2x192xf32>
    %1248 = math.exp %1247 : vector<2x192xf32>
    %cst_444 = arith.constant 1.000000e+00 : f32
    %1249 = vector.broadcast %cst_444 : f32 to vector<2x192xf32>
    %1250 = arith.addf %1249, %1248 : vector<2x192xf32>
    %1251 = arith.divf %1249, %1250 : vector<2x192xf32>
    %1252 = vector.extract_strided_slice %1245 {offsets = [0, 192], sizes = [2, 64], strides = [1, 1]} : vector<2x256xf32> to vector<2x64xf32>
    %1253 = math.tanh %1252 : vector<2x64xf32>
    %1254 = vector.extract_strided_slice %1251 {offsets = [0, 0], sizes = [2, 64], strides = [1, 1]} : vector<2x192xf32> to vector<2x64xf32>
    %1255 = vector.extract_strided_slice %1251 {offsets = [0, 64], sizes = [2, 64], strides = [1, 1]} : vector<2x192xf32> to vector<2x64xf32>
    %1256 = vector.extract_strided_slice %1251 {offsets = [0, 128], sizes = [2, 64], strides = [1, 1]} : vector<2x192xf32> to vector<2x64xf32>
    %1257 = arith.mulf %1255, %1233 : vector<2x64xf32>
    %1258 = arith.mulf %1254, %1253 : vector<2x64xf32>
    %1259 = arith.addf %1257, %1258 : vector<2x64xf32>
    %1260 = math.tanh %1259 : vector<2x64xf32>
    %1261 = arith.mulf %1256, %1260 : vector<2x64xf32>
    %1262 = arith.truncf %808 : vector<2x64xf32> to vector<2x64xbf16>
    %c0_445 = arith.constant 0 : index
    %c0_446 = arith.constant 0 : index
    %1263 = vector.load %arg21[%c0_445, %c0_446] : memref<64x4xbf16, #tpu.memory_space<vmem>>, vector<64x4xbf16>
    %cst_447 = arith.constant dense<0.000000e+00> : vector<2x4xf32>
    %1264 = tpu.matmul %1262, %1263, %cst_447 {dimension_numbers = #tpu.dot_dimension_numbers<[1], [0], [0], [1], [0, 0, 1, 1], [], []>} : vector<2x64xbf16>, vector<64x4xbf16>, vector<2x4xf32> -> vector<2x4xf32>
    %c0_448 = arith.constant 0 : index
    %c0_449 = arith.constant 0 : index
    %1265 = vector.load %arg22[%c0_448, %c0_449] : memref<1x4xf32, #tpu.memory_space<vmem>>, vector<1x4xf32>
    %1266 = vector.broadcast %1265 : vector<1x4xf32> to vector<2x4xf32>
    %1267 = arith.addf %1264, %1266 : vector<2x4xf32>
    %c0_450 = arith.constant 0 : index
    %c0_451 = arith.constant 0 : index
    %c0_452 = arith.constant 0 : index
    %1268 = vector.load %arg24[%c0_450, %c0_451, %c0_452] : memref<8x2x4xf32, #tpu.memory_space<vmem>>, vector<1x2x4xf32>
    %1269 = vector.shape_cast %1268 : vector<1x2x4xf32> to vector<2x4xf32>
    %1270 = vector.shape_cast %1267 : vector<2x4xf32> to vector<1x2x4xf32>
    tpu.vector_store %arg24[%c0_450, %c0_451, %c0_452], %1270 {strides = array<i32>} : memref<8x2x4xf32, #tpu.memory_space<vmem>>, vector<1x2x4xf32>,
    %1271 = arith.truncf %883 : vector<2x64xf32> to vector<2x64xbf16>
    %c0_453 = arith.constant 0 : index
    %c0_454 = arith.constant 0 : index
    %1272 = vector.load %arg21[%c0_453, %c0_454] : memref<64x4xbf16, #tpu.memory_space<vmem>>, vector<64x4xbf16>
    %cst_455 = arith.constant dense<0.000000e+00> : vector<2x4xf32>
    %1273 = tpu.matmul %1271, %1272, %cst_455 {dimension_numbers = #tpu.dot_dimension_numbers<[1], [0], [0], [1], [0, 0, 1, 1], [], []>} : vector<2x64xbf16>, vector<64x4xbf16>, vector<2x4xf32> -> vector<2x4xf32>
    %c0_456 = arith.constant 0 : index
    %c0_457 = arith.constant 0 : index
    %1274 = vector.load %arg22[%c0_456, %c0_457] : memref<1x4xf32, #tpu.memory_space<vmem>>, vector<1x4xf32>
    %1275 = vector.broadcast %1274 : vector<1x4xf32> to vector<2x4xf32>
    %1276 = arith.addf %1273, %1275 : vector<2x4xf32>
    %c1_458 = arith.constant 1 : index
    %c0_459 = arith.constant 0 : index
    %c0_460 = arith.constant 0 : index
    %1277 = vector.load %arg24[%c1_458, %c0_459, %c0_460] : memref<8x2x4xf32, #tpu.memory_space<vmem>>, vector<1x2x4xf32>
    %1278 = vector.shape_cast %1277 : vector<1x2x4xf32> to vector<2x4xf32>
    %1279 = vector.shape_cast %1276 : vector<2x4xf32> to vector<1x2x4xf32>
    tpu.vector_store %arg24[%c1_458, %c0_459, %c0_460], %1279 {strides = array<i32>} : memref<8x2x4xf32, #tpu.memory_space<vmem>>, vector<1x2x4xf32>,
    %1280 = arith.truncf %958 : vector<2x64xf32> to vector<2x64xbf16>
    %c0_461 = arith.constant 0 : index
    %c0_462 = arith.constant 0 : index
    %1281 = vector.load %arg21[%c0_461, %c0_462] : memref<64x4xbf16, #tpu.memory_space<vmem>>, vector<64x4xbf16>
    %cst_463 = arith.constant dense<0.000000e+00> : vector<2x4xf32>
    %1282 = tpu.matmul %1280, %1281, %cst_463 {dimension_numbers = #tpu.dot_dimension_numbers<[1], [0], [0], [1], [0, 0, 1, 1], [], []>} : vector<2x64xbf16>, vector<64x4xbf16>, vector<2x4xf32> -> vector<2x4xf32>
    %c0_464 = arith.constant 0 : index
    %c0_465 = arith.constant 0 : index
    %1283 = vector.load %arg22[%c0_464, %c0_465] : memref<1x4xf32, #tpu.memory_space<vmem>>, vector<1x4xf32>
    %1284 = vector.broadcast %1283 : vector<1x4xf32> to vector<2x4xf32>
    %1285 = arith.addf %1282, %1284 : vector<2x4xf32>
    %c2_466 = arith.constant 2 : index
    %c0_467 = arith.constant 0 : index
    %c0_468 = arith.constant 0 : index
    %1286 = vector.load %arg24[%c2_466, %c0_467, %c0_468] : memref<8x2x4xf32, #tpu.memory_space<vmem>>, vector<1x2x4xf32>
    %1287 = vector.shape_cast %1286 : vector<1x2x4xf32> to vector<2x4xf32>
    %1288 = vector.shape_cast %1285 : vector<2x4xf32> to vector<1x2x4xf32>
    tpu.vector_store %arg24[%c2_466, %c0_467, %c0_468], %1288 {strides = array<i32>} : memref<8x2x4xf32, #tpu.memory_space<vmem>>, vector<1x2x4xf32>,
    %1289 = arith.truncf %1033 : vector<2x64xf32> to vector<2x64xbf16>
    %c0_469 = arith.constant 0 : index
    %c0_470 = arith.constant 0 : index
    %1290 = vector.load %arg21[%c0_469, %c0_470] : memref<64x4xbf16, #tpu.memory_space<vmem>>, vector<64x4xbf16>
    %cst_471 = arith.constant dense<0.000000e+00> : vector<2x4xf32>
    %1291 = tpu.matmul %1289, %1290, %cst_471 {dimension_numbers = #tpu.dot_dimension_numbers<[1], [0], [0], [1], [0, 0, 1, 1], [], []>} : vector<2x64xbf16>, vector<64x4xbf16>, vector<2x4xf32> -> vector<2x4xf32>
    %c0_472 = arith.constant 0 : index
    %c0_473 = arith.constant 0 : index
    %1292 = vector.load %arg22[%c0_472, %c0_473] : memref<1x4xf32, #tpu.memory_space<vmem>>, vector<1x4xf32>
    %1293 = vector.broadcast %1292 : vector<1x4xf32> to vector<2x4xf32>
    %1294 = arith.addf %1291, %1293 : vector<2x4xf32>
    %c3_474 = arith.constant 3 : index
    %c0_475 = arith.constant 0 : index
    %c0_476 = arith.constant 0 : index
    %1295 = vector.load %arg24[%c3_474, %c0_475, %c0_476] : memref<8x2x4xf32, #tpu.memory_space<vmem>>, vector<1x2x4xf32>
    %1296 = vector.shape_cast %1295 : vector<1x2x4xf32> to vector<2x4xf32>
    %1297 = vector.shape_cast %1294 : vector<2x4xf32> to vector<1x2x4xf32>
    tpu.vector_store %arg24[%c3_474, %c0_475, %c0_476], %1297 {strides = array<i32>} : memref<8x2x4xf32, #tpu.memory_space<vmem>>, vector<1x2x4xf32>,
    %1298 = arith.truncf %1108 : vector<2x64xf32> to vector<2x64xbf16>
    %c0_477 = arith.constant 0 : index
    %c0_478 = arith.constant 0 : index
    %1299 = vector.load %arg21[%c0_477, %c0_478] : memref<64x4xbf16, #tpu.memory_space<vmem>>, vector<64x4xbf16>
    %cst_479 = arith.constant dense<0.000000e+00> : vector<2x4xf32>
    %1300 = tpu.matmul %1298, %1299, %cst_479 {dimension_numbers = #tpu.dot_dimension_numbers<[1], [0], [0], [1], [0, 0, 1, 1], [], []>} : vector<2x64xbf16>, vector<64x4xbf16>, vector<2x4xf32> -> vector<2x4xf32>
    %c0_480 = arith.constant 0 : index
    %c0_481 = arith.constant 0 : index
    %1301 = vector.load %arg22[%c0_480, %c0_481] : memref<1x4xf32, #tpu.memory_space<vmem>>, vector<1x4xf32>
    %1302 = vector.broadcast %1301 : vector<1x4xf32> to vector<2x4xf32>
    %1303 = arith.addf %1300, %1302 : vector<2x4xf32>
    %c4_482 = arith.constant 4 : index
    %c0_483 = arith.constant 0 : index
    %c0_484 = arith.constant 0 : index
    %1304 = vector.load %arg24[%c4_482, %c0_483, %c0_484] : memref<8x2x4xf32, #tpu.memory_space<vmem>>, vector<1x2x4xf32>
    %1305 = vector.shape_cast %1304 : vector<1x2x4xf32> to vector<2x4xf32>
    %1306 = vector.shape_cast %1303 : vector<2x4xf32> to vector<1x2x4xf32>
    tpu.vector_store %arg24[%c4_482, %c0_483, %c0_484], %1306 {strides = array<i32>} : memref<8x2x4xf32, #tpu.memory_space<vmem>>, vector<1x2x4xf32>,
    %1307 = arith.truncf %1183 : vector<2x64xf32> to vector<2x64xbf16>
    %c0_485 = arith.constant 0 : index
    %c0_486 = arith.constant 0 : index
    %1308 = vector.load %arg21[%c0_485, %c0_486] : memref<64x4xbf16, #tpu.memory_space<vmem>>, vector<64x4xbf16>
    %cst_487 = arith.constant dense<0.000000e+00> : vector<2x4xf32>
    %1309 = tpu.matmul %1307, %1308, %cst_487 {dimension_numbers = #tpu.dot_dimension_numbers<[1], [0], [0], [1], [0, 0, 1, 1], [], []>} : vector<2x64xbf16>, vector<64x4xbf16>, vector<2x4xf32> -> vector<2x4xf32>
    %c0_488 = arith.constant 0 : index
    %c0_489 = arith.constant 0 : index
    %1310 = vector.load %arg22[%c0_488, %c0_489] : memref<1x4xf32, #tpu.memory_space<vmem>>, vector<1x4xf32>
    %1311 = vector.broadcast %1310 : vector<1x4xf32> to vector<2x4xf32>
    %1312 = arith.addf %1309, %1311 : vector<2x4xf32>
    %c5_490 = arith.constant 5 : index
    %c0_491 = arith.constant 0 : index
    %c0_492 = arith.constant 0 : index
    %1313 = vector.load %arg24[%c5_490, %c0_491, %c0_492] : memref<8x2x4xf32, #tpu.memory_space<vmem>>, vector<1x2x4xf32>
    %1314 = vector.shape_cast %1313 : vector<1x2x4xf32> to vector<2x4xf32>
    %1315 = vector.shape_cast %1312 : vector<2x4xf32> to vector<1x2x4xf32>
    tpu.vector_store %arg24[%c5_490, %c0_491, %c0_492], %1315 {strides = array<i32>} : memref<8x2x4xf32, #tpu.memory_space<vmem>>, vector<1x2x4xf32>,
    %1316 = arith.truncf %1235 : vector<2x64xf32> to vector<2x64xbf16>
    %c0_493 = arith.constant 0 : index
    %c0_494 = arith.constant 0 : index
    %1317 = vector.load %arg21[%c0_493, %c0_494] : memref<64x4xbf16, #tpu.memory_space<vmem>>, vector<64x4xbf16>
    %cst_495 = arith.constant dense<0.000000e+00> : vector<2x4xf32>
    %1318 = tpu.matmul %1316, %1317, %cst_495 {dimension_numbers = #tpu.dot_dimension_numbers<[1], [0], [0], [1], [0, 0, 1, 1], [], []>} : vector<2x64xbf16>, vector<64x4xbf16>, vector<2x4xf32> -> vector<2x4xf32>
    %c0_496 = arith.constant 0 : index
    %c0_497 = arith.constant 0 : index
    %1319 = vector.load %arg22[%c0_496, %c0_497] : memref<1x4xf32, #tpu.memory_space<vmem>>, vector<1x4xf32>
    %1320 = vector.broadcast %1319 : vector<1x4xf32> to vector<2x4xf32>
    %1321 = arith.addf %1318, %1320 : vector<2x4xf32>
    %c6_498 = arith.constant 6 : index
    %c0_499 = arith.constant 0 : index
    %c0_500 = arith.constant 0 : index
    %1322 = vector.load %arg24[%c6_498, %c0_499, %c0_500] : memref<8x2x4xf32, #tpu.memory_space<vmem>>, vector<1x2x4xf32>
    %1323 = vector.shape_cast %1322 : vector<1x2x4xf32> to vector<2x4xf32>
    %1324 = vector.shape_cast %1321 : vector<2x4xf32> to vector<1x2x4xf32>
    tpu.vector_store %arg24[%c6_498, %c0_499, %c0_500], %1324 {strides = array<i32>} : memref<8x2x4xf32, #tpu.memory_space<vmem>>, vector<1x2x4xf32>,
    %1325 = arith.truncf %1261 : vector<2x64xf32> to vector<2x64xbf16>
    %c0_501 = arith.constant 0 : index
    %c0_502 = arith.constant 0 : index
    %1326 = vector.load %arg21[%c0_501, %c0_502] : memref<64x4xbf16, #tpu.memory_space<vmem>>, vector<64x4xbf16>
    %cst_503 = arith.constant dense<0.000000e+00> : vector<2x4xf32>
    %1327 = tpu.matmul %1325, %1326, %cst_503 {dimension_numbers = #tpu.dot_dimension_numbers<[1], [0], [0], [1], [0, 0, 1, 1], [], []>} : vector<2x64xbf16>, vector<64x4xbf16>, vector<2x4xf32> -> vector<2x4xf32>
    %c0_504 = arith.constant 0 : index
    %c0_505 = arith.constant 0 : index
    %1328 = vector.load %arg22[%c0_504, %c0_505] : memref<1x4xf32, #tpu.memory_space<vmem>>, vector<1x4xf32>
    %1329 = vector.broadcast %1328 : vector<1x4xf32> to vector<2x4xf32>
    %1330 = arith.addf %1327, %1329 : vector<2x4xf32>
    %c7_506 = arith.constant 7 : index
    %c0_507 = arith.constant 0 : index
    %c0_508 = arith.constant 0 : index
    %1331 = vector.load %arg24[%c7_506, %c0_507, %c0_508] : memref<8x2x4xf32, #tpu.memory_space<vmem>>, vector<1x2x4xf32>
    %1332 = vector.shape_cast %1331 : vector<1x2x4xf32> to vector<2x4xf32>
    %1333 = vector.shape_cast %1330 : vector<2x4xf32> to vector<1x2x4xf32>
    tpu.vector_store %arg24[%c7_506, %c0_507, %c0_508], %1333 {strides = array<i32>} : memref<8x2x4xf32, #tpu.memory_space<vmem>>, vector<1x2x4xf32>,
    return
  }
}

</mosaic_0001>

<bundles_post_ra>
// kernel: _lambda_.1
= control target key start
LH: loop header
LB: loop body
LE: loop exit
PB: predicated region body
PF: predicated region fallthrough
CT: control target
= control target key end

     0   :  { %s10491_s0 = inlined_call_operand.vmem [shape: f32[8,2,4], index: 0, kind: input, shape index: {}]   ;;  %s10492_s1 = inlined_call_operand.vmem [shape: bf16[4,256], index: 1, kind: input, shape index: {}]   ;;  %s10493_s2 = inlined_call_operand.vmem [shape: bf16[64,256], index: 2, kind: input, shape index: {}]   ;;  %s10494_s3 = inlined_call_operand.vmem [shape: f32[1,256], index: 3, kind: input, shape index: {}]   ;;  %s10495_s4 = inlined_call_operand.vmem [shape: bf16[64,256], index: 4, kind: input, shape index: {}]   ;;  %s10496_s5 = inlined_call_operand.vmem [shape: bf16[64,256], index: 5, kind: input, shape index: {}]   ;;  %s10497_s6 = inlined_call_operand.vmem [shape: f32[1,256], index: 6, kind: input, shape index: {}]   ;;  %s10498_s7 = inlined_call_operand.vmem [shape: bf16[64,128], index: 7, kind: input, shape index: {}]   ;;  %s10499_s8 = inlined_call_operand.vmem [shape: bf16[32,128], index: 8, kind: input, shape index: {}]   ;;  %s10500_s9 = inlined_call_operand.vmem [shape: f32[1,128], index: 9, kind: input, shape index: {}]   ;;  %s10501_s10 = inlined_call_operand.vmem [shape: bf16[32,16], index: 10, kind: input, shape index: {}]   ;;  %s10502_s11 = inlined_call_operand.vmem [shape: f32[1,16], index: 11, kind: input, shape index: {}]   ;;  %s10503_s12 = inlined_call_operand.vmem [shape: bf16[16,128], index: 12, kind: input, shape index: {}]   ;;  %s10504_s13 = inlined_call_operand.vmem [shape: bf16[32,128], index: 13, kind: input, shape index: {}]   ;;  %s10505_s14 = inlined_call_operand.vmem [shape: f32[1,128], index: 14, kind: input, shape index: {}]   ;;  %s10506_s15 = inlined_call_operand.vmem [shape: bf16[32,256], index: 15, kind: input, shape index: {}]   ;;  %s10507_s16 = inlined_call_operand.vmem [shape: bf16[64,256], index: 16, kind: input, shape index: {}]   ;;  %s10508_s17 = inlined_call_operand.vmem [shape: f32[1,256], index: 17, kind: input, shape index: {}]   ;;  %s10509_s18 = inlined_call_operand.vmem [shape: bf16[64,256], index: 18, kind: input, shape index: {}]   ;;  %s10510_s19 = inlined_call_operand.vmem [shape: bf16[64,256], index: 19, kind: input, shape index: {}]   ;;  %s10511_s20 = inlined_call_operand.vmem [shape: f32[1,256], index: 20, kind: input, shape index: {}]   ;;  %s10512_s21 = inlined_call_operand.vmem [shape: bf16[64,4], index: 21, kind: input, shape index: {}]   ;;  %s10513_s22 = inlined_call_operand.vmem [shape: f32[1,4], index: 22, kind: input, shape index: {}]   ;;  %s10514_s23 = inlined_call_operand.hbm [shape: f32[2,16], index: 23, kind: output, shape index: {0}]   ;;  %s10515_s24 = inlined_call_operand.vmem [shape: f32[8,2,4], index: 24, kind: output, shape index: {1}]  }
   0x1   :  { %10524 = sst [smem:[#allocation5_spill]] %s10491_s0 }
   0x2   :  { %10525 = sst [smem:[#allocation6_spill]] %s10492_s1 }
   0x3   :  { %10526 = sst [smem:[#allocation7_spill]] %s10493_s2 }
   0x4   :  { %10527 = sst [smem:[#allocation8_spill]] %s10494_s3 }
   0x5   :  { %10528 = sst [smem:[#allocation9_spill]] %s10495_s4 }
   0x6   :  { %10529 = sst [smem:[#allocation10_spill]] %s10496_s5 }
   0x7   :  { %10530 = sst [smem:[#allocation11_spill]] %s10497_s6 }
   0x8   :  { %10531 = sst [smem:[#allocation12_spill]] %s10498_s7 }
   0x9   :  { %10532 = sst [smem:[#allocation13_spill]] %s10499_s8 }
   0xa   :  { %s10533_s27 = sld [smem:[#allocation7_spill]]  ;;  %v8121_v2 = vmov 0   ;;  %vm187_vm0 = vcmask 1041408   ;;  %s10534_s4 = sld [smem:[#allocation6_spill]]  ;;  %vm183_vm1 = vcmask 31744  }
   0xb   :  { %226 = vmatprep.mubr.bf16.mxu1 %v8121_v2  ;;  %165 = vmatprep.mubr.bf16.mxu0 %v8121_v2  ;;  %s10535_s29 = sld [smem:[#allocation5_spill]] }
  0x10   :  { %v8255_v0 = vld [vmem:[%s10533_s27 + $0x4] ss:$8 sps:$4 sm:$0xff]   ;;  %v8260_v1 = vld [vmem:[%s10533_s27] ss:$8 sps:$4 sm:$0xff]   ;;  %v8268_v3 = vld [vmem:[%s10533_s27 + $0x14] ss:$8 sps:$4 sm:$0xff]  }
  0x11   :  { %133 = vmatprep.subr.bf16.mxu0 %v8255_v0  ;;  %v8274_v4 = vld [vmem:[%s10533_s27 + $0x10] ss:$8 sps:$4 sm:$0xff]   ;;  %v8279_v5 = vld [vmem:[%s10533_s27 + $0x24] ss:$8 sps:$4 sm:$0xff]   ;;  %v8288_v7 = vld [vmem:[%s10533_s27 + $0x20] ss:$8 sps:$4 sm:$0xff]  }
  0x12   :  { %134 = vmatpush1.bf16.msra.mxu0 %v8260_v1  ;;  %v6636_v6 = vld.sshfl [vmem:[%s10534_s4] sm:$0x33 pattern:$0x76325410]  ;;  %v8298_v10 = vld [vmem:[%s10533_s27 + $0x34] ss:$8 sps:$4 sm:$0xff]  }
  0x13   :  { %135 = vmatprep.subr.bf16.mxu0 %v8268_v3  ;;  %v8290_v8 = vcombine.high %v6636_v6, %v6636_v6  ;;  %v8293_v9 = vsel %vm187_vm0, %v6636_v6, 0  ;;  %v78_v11 = vld [vmem:[%s10535_s29] sm:$0x3]  ;;  %v8311_v13 = vld [vmem:[%s10533_s27 + $0x30] ss:$8 sps:$4 sm:$0xff]  }
  0x14   :  { %v79_v12 = vpack.c.bf16 %v78_v11, %v78_v11 }
  0x15   :  { %6637 = vmatprep.subr.msk.bf16.mxu1 %vm187_vm0, %v8290_v8 }
  0x16   :  { %136 = vmatpush1.bf16.msra.mxu0 %v8274_v4  ;;  %195 = vmatpush1.bf16.msra.mxu1 %v8293_v9 }
  0x17   :  { %137 = vmatprep.subr.bf16.mxu0 %v8279_v5  ;;  %286 = vmatprep.subr.bf16.mxu1 %v8255_v0 }
  0x19   :  { %6638 = vmatmul.mubr.msk.bf16.vlgmr.msra.gmra.mrb[0].mxu1 %vm183_vm1, %v79_v12 }
  0x1a   :  { %138 = vmatpush1.bf16.msra.mxu0 %v8288_v7  ;;  %287 = vmatpush1.bf16.msra.mxu1 %v8260_v1 }
  0x1b   :  { %139 = vmatprep.subr.bf16.mxu0 %v8298_v10  ;;  %288 = vmatprep.subr.bf16.mxu1 %v8268_v3 }
  0x1c   :  { %318 = vmatprep.mubr.bf16.mxu1 %v8121_v2 }
  0x1e   :  { %140 = vmatpush1.bf16.msra.mxu0 %v8311_v13  ;;  %289 = vmatpush1.bf16.msra.mxu1 %v8274_v4 }
  0x1f   :  { %6643 = vmatprep.subr.msk.bf16.mxu0 %vm187_vm0, %v8290_v8  ;;  %290 = vmatprep.subr.bf16.mxu1 %v8279_v5 }
  0x21   :  { %166 = vmatmul.mubr.bf16.vlgmr.msra.gmra.mrb[0].mxu0 %v8121_v2 }
  0x22   :  { %331 = vmatpush1.bf16.msra.mxu0 %v8293_v9  ;;  %362 = vmatprep.mubr.bf16.mxu0 %v8121_v2 }
  0x23   :  { %291 = vmatpush1.bf16.msra.mxu1 %v8288_v7 }
  0x24   :  { %292 = vmatprep.subr.bf16.mxu1 %v8298_v10 }
  0x27   :  { %293 = vmatpush1.bf16.msra.mxu1 %v8311_v13 }
  0x28   :  { %30 = vsyncpa [#allocation3], 0  ;;  %v237_v14 = vlaneseq  ;;  %s10536_s25 = sld [smem:[#allocation8_spill]]  ;;  %s8122_s8 = smov 64   ;;  %v6641_v41 = vld [vmem:[%s10535_s29 + $0x2] sm:$0x3] }
  0x29   :  { %s10537_s5 = sld [smem:[#allocation9_spill]]  ;;  %v281_v43 = vpack.c.bf16 %v6641_v41, %v6641_v41  ;;  %s10538_s3 = sld [smem:[#allocation10_spill]]  ;;  %vm129_vm2 = vcmask 523264   ;;  %vm8124_vm3 = vmmov 0   ;;  %vm891_vm4 = vcmask 261120  }
  0x2a   :  { %v238_v15 = vshrl.u32 %v237_v14, 7  ;;  %s10539_s2 = sld [smem:[#allocation11_spill]]  ;;  %s10540_s4 = sld [smem:[#allocation12_spill]]  ;;  %vm3220_vm5 = vcmask 123904   ;;  %vm3231_vm6 = vcmask 130048   ;;  %vm6037_vm7 = vcmask 25600  }
  0x2b   :  { %6644 = vmatmul.mubr.msk.bf16.vlgmr.msra.gmra.mrb[4].mxu0 %vm183_vm1, %v281_v43  ;;  %s10541_s28 = sld [smem:[#allocation13_spill]]  ;;  %s8125_s0 = smov 32  }
  0x2c   :  { %v8331_v20 = vsub.s32 1, %v238_v15  ;;  %v8341_v31 = vsub.s32 0, %v238_v15  ;;  %572 = vmatprep.mubr.bf16.mxu0 %v8121_v2 }
  0x2e   :  { %v235_v21 = vld [vmem:[%s10536_s25] sm:$0x3] }
  0x2f   :  { %v8337_v23 = vrot.slane %v235_v21, %v8331_v20  ;;  %v8344_v32 = vrot.slane %v235_v21, %v8341_v31  ;;  %v8351_v40 = vld [vmem:[%s10537_s5 + $0x4] ss:$8 sps:$4 sm:$0xff]   ;;  %v8359_v42 = vld [vmem:[%s10537_s5] ss:$8 sps:$4 sm:$0xff]   ;;  %v8364_v44 = vld [vmem:[%s10537_s5 + $0x14] ss:$8 sps:$4 sm:$0xff]  }
  0x30   :  { %540 = vmatprep.subr.bf16.mxu0 %v8351_v40  ;;  %v8372_v45 = vld [vmem:[%s10537_s5 + $0x10] ss:$8 sps:$4 sm:$0xff]   ;;  %v8379_v46 = vld [vmem:[%s10537_s5 + $0x24] ss:$8 sps:$4 sm:$0xff]   ;;  %v8385_v47 = vld [vmem:[%s10537_s5 + $0x20] ss:$8 sps:$4 sm:$0xff]  }
  0x31   :  { %541 = vmatpush1.bf16.msra.mxu0 %v8359_v42  ;;  %v8392_v49 = vld [vmem:[%s10537_s5 + $0x34] ss:$8 sps:$4 sm:$0xff]   ;;  %v8397_v51 = vld [vmem:[%s10537_s5 + $0x30] ss:$8 sps:$4 sm:$0xff]   ;;  %v8406_v53 = vld [vmem:[%s10538_s3 + $0x4] ss:$8 sps:$4 sm:$0xff]  }
  0x32   :  { %542 = vmatprep.subr.bf16.mxu0 %v8364_v44  ;;  %459 = vmatprep.subr.bf16.mxu1 %v8406_v53  ;;  %v8416_v11 = vld [vmem:[%s10538_s3] ss:$8 sps:$4 sm:$0xff]   ;;  %v8421_v14 = vld [vmem:[%s10538_s3 + $0x14] ss:$8 sps:$4 sm:$0xff]   ;;  %v8429_v15 = vld [vmem:[%s10538_s3 + $0x10] ss:$8 sps:$4 sm:$0xff]  }
  0x35   :  { %543 = vmatpush1.bf16.msra.mxu0 %v8372_v45 }
  0x36   :  { %544 = vmatprep.subr.bf16.mxu0 %v8379_v46 }
  0x39   :  { %545 = vmatpush1.bf16.msra.mxu0 %v8385_v47 }
  0x3a   :  { %546 = vmatprep.subr.bf16.mxu0 %v8392_v49 }
  0x3d   :  { %547 = vmatpush1.bf16.msra.mxu0 %v8397_v51 }
  0x3e   :  { %6668 = vmatprep.subr.msk.bf16.mxu0 %vm187_vm0, %v8290_v8 }
  0xec   :  { %v228_v16 = vpop.f32.mrb[0].mxu1 }
  0xed   :  { %v230_v17 = vpop.f32.mrb[1].mxu1 }
  0xee   :  { %v232_v18 = vpop.f32.mrb[2].mxu1 }
  0xef   :  { %v233_v19 = vpop.f32.mrb[3].mxu1  ;;  %v8451_v18 = vld [vmem:[%s10538_s3 + $0x34] ss:$8 sps:$4 sm:$0xff]  }
  0xf0   :  { %v8457_v19 = vld [vmem:[%s10538_s3 + $0x30] ss:$8 sps:$4 sm:$0xff]  }
  0xf4   :  { %v167_v22 = vpop.f32.mrb[0].mxu0 }
  0xf5   :  { %v229_v24 = vadd.f32 %v228_v16, %v167_v22  ;;  %v169_v25 = vpop.f32.mrb[1].mxu0  ;;  %v8436_v16 = vld [vmem:[%s10538_s3 + $0x24] ss:$8 sps:$4 sm:$0xff]  }
  0xf6   :  { %v231_v26 = vadd.f32 %v230_v17, %v169_v25  ;;  %v171_v27 = vpop.f32.mrb[2].mxu0  ;;  %v8445_v17 = vld [vmem:[%s10538_s3 + $0x20] ss:$8 sps:$4 sm:$0xff]  }
  0xf7   :  { %v172_v28 = vpop.f32.mrb[3].mxu0  ;;  %v247_v33 = vadd.f32 %v8344_v32, %v229_v24 }
  0xf8   :  { %v248_v29 = vadd.f32 %v8337_v23, %v231_v26 }
  0xf9   :  { %v6639_v34 = vmul.f32 -1.442695, %v247_v33 }
  0xfa   :  { %7523 = vtanh.f32 %v248_v29  ;;  %v6640_v55 = vmul.f32 -1.442695, %v248_v29 }
  0xfb   :  { %7525 = vpow2.f32 %v6639_v34 }
  0xfe   :  { %v364_v56 = vpop.f32.mrb[4].mxu0 }
  0xff   :  { %v366_v57 = vpop.f32.mrb[5].mxu0 }
 0x100   :  { %v368_v58 = vpop.f32.mrb[6].mxu0 }
 0x101   :  { %v369_v59 = vpop.f32.mrb[7].mxu0 }
 0x104   :  { %v7524_v30 = vpop.eup %7523 }
 0x105   :  { %264 = vrot.lane.b32.xlu0 %v7524_v30, %s8122_s8  ;;  %v7526_v35 = vpop.eup %7525 }
 0x106   :  { %v255_v36 = vadd.f32 1.0, %v7526_v35  ;;  %v581_v35 = vld [vmem:[%s10539_s2] sm:$0x3] }
 0x107   :  { %v8484_v58 = vrot.slane %v581_v35, %v8341_v31 }
 0x108   :  { %7527 = vrcp.f32 %v255_v36 }
 0x112   :  { %v7528_v37 = vpop.eup %7527 }
 0x113   :  { %v262_v48 = vmul.f32 0.0, %v7528_v37 }
 0x177   :  { %v265_v38 = vpop.permute.xlu0 %264 }
 0x178   :  { %v267_v39 = vmul.f32 %v7528_v37, %v265_v38  ;;  %v8477_v38 = vrot.slane %v581_v35, %v8331_v20 }
 0x17a   :  { %269 = vrot.lane.b32.xlu0 %v267_v39, %s8122_s8 }
 0x1ec   :  { %v270_v50 = vpop.permute.xlu0 %269 }
 0x1ed   :  { %v8399_v52 = vadd.f32 %v270_v50, %v262_v48 }
 0x1ef   :  { %7529 = vtanh.f32 %v8399_v52 }
 0x1f0   :  { %7531 = vpow2.f32 %v6640_v55 }
 0x1f9   :  { %v7530_v54 = vpop.eup %7529 }
 0x1fa   :  { %275 = vrot.lane.b32.xlu1 %v7530_v54, %s8122_s8  ;;  %v7532_v60 = vpop.eup %7531 }
 0x1fb   :  { %v256_v61 = vadd.f32 1.0, %v7532_v60 }
 0x1fd   :  { %7533 = vrcp.f32 %v256_v61 }
 0x207   :  { %v7534_v62 = vpop.eup %7533 }
 0x26c   :  { %v276_v63 = vpop.permute.xlu1 %275 }
 0x26d   :  { %v278_v6 = vmul.f32 %v7534_v62, %v276_v63 }
 0x26f   :  { %v282_v12 = vpack.c.bf16 %v278_v6, %v278_v6 }
 0x271   :  { %6642 = vmatmul.mubr.msk.bf16.vlgmr.msra.gmra.mrb[4].mxu1 %vm129_vm2, %v282_v12  ;;  %6663 = vmatmul.mubr.msk.bf16.vlgmr.msra.gmra.mrb[8].mxu0 %vm129_vm2, %v282_v12 }
 0x272   :  { %460 = vmatpush1.bf16.msra.mxu1 %v8416_v11  ;;  %491 = vmatprep.mubr.bf16.mxu1 %v8121_v2 }
 0x273   :  { %461 = vmatprep.subr.bf16.mxu1 %v8421_v14  ;;  %677 = vmatpush1.bf16.msra.mxu0 %v8293_v9 }
 0x274   :  { %708 = vmatprep.mubr.bf16.mxu0 %v8121_v2  ;;  %753 = vmatprep.subr.bf16.mxu0 %v8406_v53 }
 0x276   :  { %462 = vmatpush1.bf16.msra.mxu1 %v8429_v15 }
 0x277   :  { %463 = vmatprep.subr.bf16.mxu1 %v8436_v16 }
 0x27a   :  { %464 = vmatpush1.bf16.msra.mxu1 %v8445_v17 }
 0x27b   :  { %465 = vmatprep.subr.bf16.mxu1 %v8451_v18 }
 0x27e   :  { %466 = vmatpush1.bf16.msra.mxu1 %v8457_v19 }
 0x27f   :  { %632 = vmatprep.subr.bf16.mxu1 %v8255_v0 }
 0x281   :  { %492 = vmatmul.mubr.bf16.vlgmr.msra.gmra.mrb[8].mxu1 %v8121_v2 }
 0x282   :  { %633 = vmatpush1.bf16.msra.mxu1 %v8260_v1  ;;  %664 = vmatprep.mubr.bf16.mxu1 %v8121_v2 }
 0x283   :  { %634 = vmatprep.subr.bf16.mxu1 %v8268_v3 }
 0x286   :  { %635 = vmatpush1.bf16.msra.mxu1 %v8274_v4 }
 0x287   :  { %636 = vmatprep.subr.bf16.mxu1 %v8279_v5 }
 0x28a   :  { %637 = vmatpush1.bf16.msra.mxu1 %v8288_v7 }
 0x28b   :  { %638 = vmatprep.subr.bf16.mxu1 %v8298_v10 }
 0x28e   :  { %639 = vmatpush1.bf16.msra.mxu1 %v8311_v13 }
 0x28f   :  { %794 = vmatprep.subr.bf16.mxu1 %v8351_v40 }
 0x344   :  { %v320_v21 = vpop.f32.mrb[4].mxu1  ;;  %v574_v22 = vpop.f32.mrb[8].mxu0 }
 0x345   :  { %v365_v24 = vadd.f32 %v364_v56, %v320_v21  ;;  %v322_v25 = vpop.f32.mrb[5].mxu1  ;;  %v576_v26 = vpop.f32.mrb[9].mxu0 }
 0x346   :  { %v367_v27 = vadd.f32 %v366_v57, %v322_v25  ;;  %v324_v28 = vpop.f32.mrb[6].mxu1  ;;  %v578_v29 = vpop.f32.mrb[10].mxu0 }
 0x347   :  { %v325_v30 = vpop.f32.mrb[7].mxu1  ;;  %v579_v33 = vpop.f32.mrb[11].mxu0  ;;  %v371_v56 = vadd.f32 %v365_v24, %v8344_v32 }
 0x348   :  { %v372_v34 = vadd.f32 %v367_v27, %v8337_v23  ;;  %v6666_v30 = vld [vmem:[%s10535_s29 + $0x4] sm:$0x3] }
 0x349   :  { %v6645_v57 = vmul.f32 -1.442695, %v371_v56  ;;  %v627_v33 = vpack.c.bf16 %v6666_v30, %v6666_v30 }
 0x34a   :  { %7535 = vtanh.f32 %v372_v34 }
 0x34b   :  { %6669 = vmatmul.mubr.msk.bf16.vlgmr.msra.gmra.mrb[12].mxu0 %vm183_vm1, %v627_v33 }
 0x34c   :  { %754 = vmatpush1.bf16.msra.mxu0 %v8416_v11  ;;  %785 = vmatprep.mubr.bf16.mxu0 %v8121_v2 }
 0x34d   :  { %755 = vmatprep.subr.bf16.mxu0 %v8421_v14 }
 0x350   :  { %756 = vmatpush1.bf16.msra.mxu0 %v8429_v15 }
 0x351   :  { %757 = vmatprep.subr.bf16.mxu0 %v8436_v16 }
 0x354   :  { %v7536_v36 = vpop.eup %7535  ;;  %v493_v37 = vpop.f32.mrb[8].mxu1  ;;  %758 = vmatpush1.bf16.msra.mxu0 %v8445_v17 }
 0x355   :  { %v575_v39 = vadd.f32 %v574_v22, %v493_v37  ;;  %v495_v41 = vpop.f32.mrb[9].mxu1  ;;  %388 = vrot.lane.b32.xlu1 %v7536_v36, %s8122_s8  ;;  %759 = vmatprep.subr.bf16.mxu0 %v8451_v18 }
 0x356   :  { %v577_v43 = vadd.f32 %v576_v26, %v495_v41  ;;  %v497_v48 = vpop.f32.mrb[10].mxu1 }
 0x357   :  { %v498_v50 = vpop.f32.mrb[11].mxu1  ;;  %v593_v59 = vadd.f32 %v8484_v58, %v575_v39  ;;  %v10522_v39 = vmov 0.0  }
 0x358   :  { %v594_v54 = vadd.f32 %v8477_v38, %v577_v43  ;;  %760 = vmatpush1.bf16.msra.mxu0 %v8457_v19  ;;  %v6646_v43 = vmul.f32 -1.442695, %v372_v34 }
 0x359   :  { %v6664_v61 = vmul.f32 -1.442695, %v593_v59  ;;  %7062 = vmatprep.subr.bf16.mxu0 %v10522_v39 }
 0x35a   :  { %7537 = vtanh.f32 %v594_v54  ;;  %v6665_v50 = vmul.f32 -1.442695, %v594_v54 }
 0x35b   :  { %7539 = vpow2.f32 %v6645_v57 }
 0x35c   :  { %7541 = vpow2.f32 %v6664_v61 }
 0x364   :  { %v7538_v55 = vpop.eup %7537 }
 0x365   :  { %610 = vrot.lane.b32.xlu0 %v7538_v55, %s8122_s8  ;;  %v7540_v60 = vpop.eup %7539 }
 0x366   :  { %v379_v62 = vadd.f32 1.0, %v7540_v60  ;;  %v7542_v63 = vpop.eup %7541 }
 0x367   :  { %v601_v22 = vadd.f32 1.0, %v7542_v63 }
 0x368   :  { %7543 = vrcp.f32 %v379_v62 }
 0x369   :  { %7545 = vrcp.f32 %v601_v22  ;;  %v8537_v22 = vld [vmem:[%s10540_s4 + $0x8] sm:$0xff]  }
 0x372   :  { %v7544_v6 = vpop.eup %7543 }
 0x373   :  { %v7546_v24 = vpop.eup %7545  ;;  %v386_v27 = vmul.f32 %v7544_v6, %v8399_v52 }
 0x374   :  { %v608_v35 = vmul.f32 0.0, %v7546_v24 }
 0x3c7   :  { %v389_v12 = vpop.permute.xlu1 %388 }
 0x3c8   :  { %v391_v21 = vmul.f32 %v7544_v6, %v389_v12  ;;  %v8523_v6 = vld [vmem:[%s10540_s4] sm:$0xff]  }
 0x3c9   :  { %v8528_v12 = vld [vmem:[%s10541_s28] sm:$0xff]  }
 0x3ca   :  { %393 = vrot.lane.b32.xlu1 %v391_v21, %s8122_s8 }
 0x3d7   :  { %v611_v25 = vpop.permute.xlu0 %610 }
 0x3d8   :  { %v613_v26 = vmul.f32 %v7546_v24, %v611_v25  ;;  %v8543_v24 = vld [vmem:[%s10541_s28 + $0x8] sm:$0xff]   ;;  %v8555_v25 = vld [vmem:[%s10540_s4 + $0x10] sm:$0xff]  }
 0x3da   :  { %615 = vrot.lane.b32.xlu0 %v613_v26, %s8122_s8  ;;  %v8565_v26 = vld [vmem:[%s10540_s4 + $0x18] sm:$0xff]  }
 0x43c   :  { %v394_v28 = vpop.permute.xlu1 %393 }
 0x43d   :  { %v8490_v29 = vadd.f32 %v394_v28, %v386_v27 }
 0x43f   :  { %7547 = vtanh.f32 %v8490_v29 }
 0x449   :  { %v7548_v52 = vpop.eup %7547 }
 0x44a   :  { %399 = vrot.lane.b32.xlu1 %v7548_v52, %s8122_s8 }
 0x44c   :  { %v616_v36 = vpop.permute.xlu0 %615 }
 0x44d   :  { %v8505_v37 = vadd.f32 %v616_v36, %v608_v35 }
 0x44f   :  { %7549 = vtanh.f32 %v8505_v37 }
 0x450   :  { %7551 = vpow2.f32 %v6646_v43 }
 0x451   :  { %7553 = vpow2.f32 %v6665_v50 }
 0x459   :  { %v7550_v41 = vpop.eup %7549 }
 0x45a   :  { %621 = vrot.lane.b32.xlu0 %v7550_v41, %s8122_s8  ;;  %v7552_v48 = vpop.eup %7551 }
 0x45b   :  { %v380_v55 = vadd.f32 1.0, %v7552_v48  ;;  %v7554_v56 = vpop.eup %7553 }
 0x45c   :  { %v602_v61 = vadd.f32 1.0, %v7554_v56 }
 0x45d   :  { %7555 = vrcp.f32 %v380_v55 }
 0x45e   :  { %7557 = vrcp.f32 %v602_v61 }
 0x467   :  { %v7556_v57 = vpop.eup %7555 }
 0x468   :  { %v7558_v34 = vpop.eup %7557 }
 0x4bc   :  { %v400_v59 = vpop.permute.xlu1 %399 }
 0x4bd   :  { %v402_v60 = vmul.f32 %v7556_v57, %v400_v59 }
 0x4bf   :  { %v628_v62 = vpack.c.bf16 %v402_v60, %v402_v60 }
 0x4c1   :  { %6667 = vmatmul.mubr.msk.bf16.vlgmr.msra.gmra.mrb[12].mxu1 %vm129_vm2, %v628_v62 }
 0x4c2   :  { %795 = vmatpush1.bf16.msra.mxu1 %v8359_v42  ;;  %826 = vmatprep.mubr.bf16.mxu1 %v8121_v2 }
 0x4c3   :  { %796 = vmatprep.subr.bf16.mxu1 %v8364_v44 }
 0x4c6   :  { %797 = vmatpush1.bf16.msra.mxu1 %v8372_v45 }
 0x4c7   :  { %798 = vmatprep.subr.bf16.mxu1 %v8379_v46 }
 0x4ca   :  { %799 = vmatpush1.bf16.msra.mxu1 %v8385_v47 }
 0x4cb   :  { %800 = vmatprep.subr.bf16.mxu1 %v8392_v49 }
 0x4cc   :  { %v622_v54 = vpop.permute.xlu0 %621 }
 0x4cd   :  { %v624_v63 = vmul.f32 %v7558_v34, %v622_v54  ;;  %v8592_v54 = vld [vmem:[%s10500_s9] ss:$0 sm:$0xff] }
 0x4ce   :  { %801 = vmatpush1.bf16.msra.mxu1 %v8397_v51 }
 0x4cf   :  { %v749_v21 = vpack.c.bf16 %v624_v63, %v624_v63  ;;  %7070 = vmatprep.subr.bf16.mxu1 %v10522_v39 }
 0x4d1   :  { %6672 = vmatmul.mubr.msk.bf16.vlgmr.msra.gmra.mrb[16].mxu0 %vm129_vm2, %v749_v21  ;;  %6673 = vmatmul.mubr.msk.bf16.vlgmr.msra.gmra.mrb[16].mxu1 %vm129_vm2, %v628_v62 }
 0x4d2   :  { %7071 = vmatpush3.bf16.msra.mxu1 %v8523_v6  ;;  %7063 = vmatpush3.bf16.msra.mxu0 %v8528_v12 }
 0x4d3   :  { %7072 = vmatprep.subr.bf16.mxu1 %v10522_v39  ;;  %7064 = vmatprep.subr.bf16.mxu0 %v10522_v39 }
 0x4d4   :  { %7066 = vmatprep.mubr.msk.bf16.mxu0 %vm8124_vm3, %v10522_v39  ;;  %7078 = vmatprep.mubr.msk.bf16.mxu1 %vm8124_vm3, %v10522_v39 }
 0x4d6   :  { %7073 = vmatpush3.bf16.msra.mxu1 %v8537_v22  ;;  %7065 = vmatpush3.bf16.msra.mxu0 %v8543_v24 }
 0x4d7   :  { %7074 = vmatprep.subr.bf16.mxu1 %v10522_v39  ;;  %1037 = vmatprep.subr.bf16.mxu0 %v8255_v0  ;;  %v710_v0 = vpop.f32.mrb[12].mxu0 }
 0x4d9   :  { %7067 = vmatmul.mubr.bf16.vlgmr.msra.gmra.mrb[20].mxu0 %v8121_v2 }
 0x4da   :  { %7075 = vmatpush3.bf16.msra.mxu1 %v8555_v25  ;;  %1038 = vmatpush1.bf16.msra.mxu0 %v8260_v1  ;;  %v712_v1 = vpop.f32.mrb[13].mxu0 }
 0x4db   :  { %7076 = vmatprep.subr.bf16.mxu1 %v10522_v39  ;;  %1039 = vmatprep.subr.bf16.mxu0 %v8268_v3  ;;  %v714_v3 = vpop.f32.mrb[14].mxu0 }
 0x4dc   :  { %1069 = vmatprep.mubr.bf16.mxu0 %v8121_v2 }
 0x4de   :  { %7077 = vmatpush3.bf16.msra.mxu1 %v8565_v26  ;;  %1040 = vmatpush1.bf16.msra.mxu0 %v8274_v4  ;;  %v715_v4 = vpop.f32.mrb[15].mxu0 }
 0x4df   :  { %6687 = vmatprep.subr.msk.bf16.mxu1 %vm187_vm0, %v8290_v8  ;;  %1041 = vmatprep.subr.bf16.mxu0 %v8279_v5 }
 0x4e1   :  { %7079 = vmatmul.mubr.msk.bf16.vlgmr.msra.gmra.mrb[20].mxu1 %vm129_vm2, %v749_v21 }
 0x4e2   :  { %1082 = vmatpush1.bf16.msra.mxu1 %v8293_v9  ;;  %1113 = vmatprep.mubr.bf16.mxu1 %v8121_v2 }
 0x4e3   :  { %1199 = vmatprep.subr.bf16.mxu1 %v8351_v40  ;;  %1042 = vmatpush1.bf16.msra.mxu0 %v8288_v7 }
 0x4e4   :  { %1043 = vmatprep.subr.bf16.mxu0 %v8298_v10 }
 0x4e7   :  { %1044 = vmatpush1.bf16.msra.mxu0 %v8311_v13 }
 0x4e8   :  { %1158 = vmatprep.subr.bf16.mxu0 %v8406_v53 }
 0x594   :  { %v666_v5 = vpop.f32.mrb[12].mxu1 }
 0x595   :  { %v711_v27 = vadd.f32 %v710_v0, %v666_v5  ;;  %v668_v28 = vpop.f32.mrb[13].mxu1 }
 0x596   :  { %v713_v30 = vadd.f32 %v712_v1, %v668_v28  ;;  %v670_v33 = vpop.f32.mrb[14].mxu1 }
 0x597   :  { %v671_v52 = vpop.f32.mrb[15].mxu1 }
 0x598   :  { %v8585_v35 = vadd.f32 %v713_v30, %v8337_v23  ;;  %v717_v30 = vadd.f32 %v711_v27, %v8344_v32 }
 0x59a   :  { %7559 = vtanh.f32 %v8585_v35  ;;  %v6670_v33 = vmul.f32 -1.442695, %v717_v30 }
 0x5a4   :  { %v7560_v7 = vpop.eup %7559  ;;  %v787_v10 = vpop.f32.mrb[16].mxu0 }
 0x5a5   :  { %v828_v13 = vpop.f32.mrb[16].mxu1  ;;  %v789_v41 = vpop.f32.mrb[17].mxu0  ;;  %734 = vrot.lane.b32.xlu0 %v7560_v7, %s8122_s8 }
 0x5a6   :  { %v829_v36 = vadd.f32 %v828_v13, %v787_v10  ;;  %v830_v43 = vpop.f32.mrb[17].mxu1  ;;  %v791_v50 = vpop.f32.mrb[18].mxu0 }
 0x5a7   :  { %v831_v48 = vadd.f32 %v830_v43, %v789_v41  ;;  %v832_v55 = vpop.f32.mrb[18].mxu1  ;;  %v792_v56 = vpop.f32.mrb[19].mxu0 }
 0x5a8   :  { %v833_v57 = vpop.f32.mrb[19].mxu1  ;;  %v835_v41 = vadd.f32 %v829_v36, %v8484_v58 }
 0x5a9   :  { %v8596_v4 = vadd.f32 %v831_v48, %v8477_v38 }
 0x5aa   :  { %v6674_v50 = vmul.f32 -1.442695, %v835_v41  ;;  %v6671_v41 = vmul.f32 -1.442695, %v8585_v35 }
 0x5ac   :  { %v928_v59 = vpop.f32.mrb[20].mxu0 }
 0x5ad   :  { %v7068_v60 = vpop.f32.mrb[21].mxu0 }
 0x5ae   :  { %v931_v61 = vpop.f32.mrb[22].mxu0 }
 0x5af   :  { %v7069_v62 = vpop.f32.mrb[23].mxu0 }
 0x5b4   :  { %v992_v34 = vpop.f32.mrb[20].mxu1 }
 0x5b5   :  { %v993_v63 = vadd.f32 %v992_v34, %v928_v59  ;;  %v7080_v21 = vpop.f32.mrb[21].mxu1 }
 0x5b6   :  { %v995_v0 = vpop.f32.mrb[22].mxu1 }
 0x5b7   :  { %v1005_v1 = vadd.f32 %v8592_v54, %v993_v63  ;;  %v7081_v3 = vpop.f32.mrb[23].mxu1  ;;  %v6685_v63 = vld [vmem:[%s10535_s29 + $0x6] sm:$0x3] }
 0x5b8   :  { %v1032_v21 = vpack.c.bf16 %v6685_v63, %v6685_v63 }
 0x5b9   :  { %7561 = vtanh.f32 %v1005_v1  ;;  %v6684_v43 = vmul.f32 -1.442695, %v1005_v1 }
 0x5ba   :  { %7563 = vtanh.f32 %v8596_v4  ;;  %6688 = vmatmul.mubr.msk.bf16.vlgmr.msra.gmra.mrb[24].mxu1 %vm183_vm1, %v1032_v21 }
 0x5bb   :  { %7565 = vpow2.f32 %v6670_v33  ;;  %1200 = vmatpush1.bf16.msra.mxu1 %v8359_v42  ;;  %1231 = vmatprep.mubr.bf16.mxu1 %v8121_v2 }
 0x5bc   :  { %1201 = vmatprep.subr.bf16.mxu1 %v8364_v44 }
 0x5bf   :  { %1202 = vmatpush1.bf16.msra.mxu1 %v8372_v45 }
 0x5c0   :  { %1203 = vmatprep.subr.bf16.mxu1 %v8379_v46 }
 0x5c3   :  { %v7562_v5 = vpop.eup %7561  ;;  %1204 = vmatpush1.bf16.msra.mxu1 %v8385_v47 }
 0x5c4   :  { %1015 = vrot.lane.b32.xlu1 %v7562_v5, %s8125_s0  ;;  %v7564_v28 = vpop.eup %7563  ;;  %1205 = vmatprep.subr.bf16.mxu1 %v8392_v49 }
 0x5c5   :  { %v7566_v52 = vpop.eup %7565 }
 0x5c6   :  { %v725_v7 = vadd.f32 1.0, %v7566_v52 }
 0x5c7   :  { %1206 = vmatpush1.bf16.msra.mxu1 %v8397_v51 }
 0x5c8   :  { %852 = vrot.lane.b32.xlu1 %v7564_v28, %s8122_s8  ;;  %7567 = vrcp.f32 %v725_v7  ;;  %7090 = vmatprep.subr.bf16.mxu1 %v10522_v39 }
 0x5c9   :  { %7569 = vpow2.f32 %v6684_v43 }
 0x5ca   :  { %7571 = vpow2.f32 %v6674_v50 }
 0x5d2   :  { %v7568_v10 = vpop.eup %7567 }
 0x5d3   :  { %v7570_v55 = vpop.eup %7569  ;;  %v732_v0 = vmul.f32 %v7568_v10, %v8490_v29 }
 0x5d4   :  { %v1009_v56 = vadd.f32 1.0, %v7570_v55  ;;  %v7572_v57 = vpop.eup %7571 }
 0x5d5   :  { %v843_v27 = vadd.f32 1.0, %v7572_v57  ;;  %v6675_v57 = vmul.f32 -1.442695, %v8596_v4 }
 0x5d6   :  { %7573 = vrcp.f32 %v1009_v56 }
 0x5d7   :  { %7575 = vrcp.f32 %v843_v27 }
 0x5e0   :  { %v8604_v59 = vpop.eup %7573 }
 0x5e1   :  { %v7576_v36 = vpop.eup %7575  ;;  %v1013_v28 = vmul.f32 0.0, %v8604_v59 }
 0x5e2   :  { %v850_v52 = vmul.f32 %v7576_v36, %v8505_v37 }
 0x617   :  { %v735_v13 = vpop.permute.xlu0 %734 }
 0x618   :  { %v737_v48 = vmul.f32 %v7568_v10, %v735_v13 }
 0x61a   :  { %739 = vrot.lane.b32.xlu1 %v737_v48, %s8122_s8 }
 0x636   :  { %v1016_v60 = vpop.permute.xlu1 %1015 }
 0x637   :  { %v1018_v61 = vmul.f32 %v8604_v59, %v1016_v60 }
 0x639   :  { %1020 = vrot.lane.b32.xlu0 %v1018_v61, %s8125_s0 }
 0x63a   :  { %v853_v62 = vpop.permute.xlu1 %852 }
 0x63b   :  { %v855_v34 = vmul.f32 %v7576_v36, %v853_v62 }
 0x63d   :  { %857 = vrot.lane.b32.xlu0 %v855_v34, %s8122_s8 }
 0x68c   :  { %v740_v1 = vpop.permute.xlu1 %739 }
 0x68d   :  { %v8623_v3 = vadd.f32 %v740_v1, %v732_v0  ;;  %v1115_v27 = vpop.f32.mrb[24].mxu1 }
 0x68e   :  { %v1117_v60 = vpop.f32.mrb[25].mxu1 }
 0x68f   :  { %7577 = vtanh.f32 %v8623_v3  ;;  %v1119_v61 = vpop.f32.mrb[26].mxu1 }
 0x690   :  { %v1120_v36 = vpop.f32.mrb[27].mxu1 }
 0x699   :  { %v7578_v5 = vpop.eup %7577 }
 0x69a   :  { %745 = vrot.lane.b32.xlu0 %v7578_v5, %s8122_s8 }
 0x6ab   :  { %v1021_v30 = vpop.permute.xlu0 %1020 }
 0x6ac   :  { %v8628_v33 = vadd.f32 %v1021_v30, %v1013_v28  ;;  %v8683_v30 = vld [vmem:[%s10533_s27] ss:$8 sps:$4 sm:$0xff]  }
 0x6ae   :  { %7579 = vtanh.f32 %v8628_v33 }
 0x6af   :  { %v858_v7 = vpop.permute.xlu0 %857 }
 0x6b0   :  { %v8632_v13 = vadd.f32 %v858_v7, %v850_v52  ;;  %v8696_v52 = vld [vmem:[%s10533_s27 + $0x10] ss:$8 sps:$4 sm:$0xff]   ;;  %v8702_v7 = vld [vmem:[%s10533_s27 + $0x24] ss:$8 sps:$4 sm:$0xff]  }
 0x6b2   :  { %7581 = vtanh.f32 %v8632_v13 }
 0x6b3   :  { %7583 = vpow2.f32 %v6671_v41  ;;  %v8720_v41 = vld [vmem:[%s10533_s27 + $0x30] ss:$8 sps:$4 sm:$0xff]  }
 0x6b8   :  { %v7580_v29 = vpop.eup %7579 }
 0x6b9   :  { %1026 = vrot.lane.b32.xlu1 %v7580_v29, %s8125_s0  ;;  %v8708_v29 = vld [vmem:[%s10533_s27 + $0x20] ss:$8 sps:$4 sm:$0xff]  }
 0x6bc   :  { %v7582_v10 = vpop.eup %7581 }
 0x6bd   :  { %863 = vrot.lane.b32.xlu1 %v7582_v10, %s8122_s8  ;;  %v7584_v43 = vpop.eup %7583  ;;  %v8714_v10 = vld [vmem:[%s10533_s27 + $0x34] ss:$8 sps:$4 sm:$0xff]  }
 0x6be   :  { %v726_v48 = vadd.f32 1.0, %v7584_v43 }
 0x6c0   :  { %7585 = vrcp.f32 %v726_v48 }
 0x6c1   :  { %7587 = vpow2.f32 %v6675_v57 }
 0x6ca   :  { %v7586_v50 = vpop.eup %7585 }
 0x6cb   :  { %v7588_v35 = vpop.eup %7587 }
 0x6cc   :  { %v844_v4 = vadd.f32 1.0, %v7588_v35 }
 0x6ce   :  { %7589 = vrcp.f32 %v844_v4 }
 0x6d8   :  { %v7590_v21 = vpop.eup %7589 }
 0x70c   :  { %v746_v55 = vpop.permute.xlu0 %745 }
 0x70d   :  { %v748_v37 = vmul.f32 %v7586_v50, %v746_v55 }
 0x70f   :  { %v1033_v56 = vpack.c.bf16 %v748_v37, %v748_v37 }
 0x711   :  { %6686 = vmatmul.mubr.msk.bf16.vlgmr.msra.gmra.mrb[24].mxu0 %vm129_vm2, %v1033_v56  ;;  %6692 = vmatmul.mubr.msk.bf16.vlgmr.msra.gmra.mrb[28].mxu1 %vm129_vm2, %v1033_v56 }
 0x712   :  { %1159 = vmatpush1.bf16.msra.mxu0 %v8416_v11  ;;  %7091 = vmatpush3.bf16.msra.mxu1 %v8523_v6 }
 0x713   :  { %1160 = vmatprep.subr.bf16.mxu0 %v8421_v14  ;;  %7092 = vmatprep.subr.bf16.mxu1 %v10522_v39 }
 0x714   :  { %1190 = vmatprep.mubr.bf16.mxu0 %v8121_v2  ;;  %7098 = vmatprep.mubr.msk.bf16.mxu1 %vm8124_vm3, %v10522_v39 }
 0x716   :  { %1161 = vmatpush1.bf16.msra.mxu0 %v8429_v15  ;;  %7093 = vmatpush3.bf16.msra.mxu1 %v8537_v22 }
 0x717   :  { %1162 = vmatprep.subr.bf16.mxu0 %v8436_v16  ;;  %7094 = vmatprep.subr.bf16.mxu1 %v10522_v39 }
 0x71a   :  { %1163 = vmatpush1.bf16.msra.mxu0 %v8445_v17  ;;  %7095 = vmatpush3.bf16.msra.mxu1 %v8555_v25 }
 0x71b   :  { %1164 = vmatprep.subr.bf16.mxu0 %v8451_v18  ;;  %7096 = vmatprep.subr.bf16.mxu1 %v10522_v39 }
 0x71e   :  { %1165 = vmatpush1.bf16.msra.mxu0 %v8457_v19  ;;  %7097 = vmatpush3.bf16.msra.mxu1 %v8565_v26 }
 0x71f   :  { %7082 = vmatprep.subr.bf16.mxu0 %v10522_v39  ;;  %6700 = vmatprep.subr.msk.bf16.mxu1 %vm187_vm0, %v8290_v8 }
 0x72b   :  { %v1027_v62 = vpop.permute.xlu1 %1026 }
 0x72c   :  { %v1029_v34 = vmul.f32 %v8604_v59, %v1027_v62  ;;  %v8676_v59 = vld [vmem:[%s10533_s27 + $0x4] ss:$8 sps:$4 sm:$0xff]  }
 0x72e   :  { %v1272_v63 = vpack.c.bf16 %v1029_v34, %v1029_v34 }
 0x72f   :  { %v864_v0 = vpop.permute.xlu1 %863 }
 0x730   :  { %v866_v1 = vmul.f32 %v7590_v21, %v864_v0  ;;  %1274 = vrot.lane.b32.xlu0 %v1272_v63, %s8122_s8 }
 0x732   :  { %v1154_v5 = vpack.c.bf16 %v866_v1, %v866_v1 }
 0x734   :  { %6691 = vmatmul.mubr.msk.bf16.vlgmr.msra.gmra.mrb[28].mxu0 %vm129_vm2, %v1154_v5  ;;  %7099 = vmatmul.mubr.msk.bf16.vlgmr.msra.gmra.mrb[32].mxu1 %vm129_vm2, %v1154_v5 }
 0x735   :  { %7083 = vmatpush3.bf16.msra.mxu0 %v8528_v12  ;;  %7086 = vmatprep.mubr.msk.bf16.mxu0 %vm8124_vm3, %v10522_v39 }
 0x736   :  { %7084 = vmatprep.subr.bf16.mxu0 %v10522_v39  ;;  %1436 = vmatpush1.bf16.msra.mxu1 %v8293_v9 }
 0x737   :  { %1467 = vmatprep.mubr.bf16.mxu1 %v8121_v2  ;;  %1553 = vmatprep.subr.bf16.mxu1 %v8351_v40  ;;  %v8690_v40 = vld [vmem:[%s10533_s27 + $0x14] ss:$8 sps:$4 sm:$0xff]  }
 0x739   :  { %7085 = vmatpush3.bf16.msra.mxu0 %v8543_v24 }
 0x73a   :  { %1391 = vmatprep.subr.bf16.mxu0 %v8676_v59 }
 0x7a2   :  { %v1275_v28 = vpop.permute.xlu0 %1274 }
 0x7a3   :  { %7087 = vmatmul.mubr.msk.bf16.vlgmr.msra.gmra.mrb[32].mxu0 %vm891_vm4, %v1275_v28 }
 0x7a4   :  { %1392 = vmatpush1.bf16.msra.mxu0 %v8683_v30  ;;  %1423 = vmatprep.mubr.bf16.mxu0 %v8121_v2 }
 0x7a5   :  { %1393 = vmatprep.subr.bf16.mxu0 %v8690_v40 }
 0x7a8   :  { %1394 = vmatpush1.bf16.msra.mxu0 %v8696_v52 }
 0x7a9   :  { %1395 = vmatprep.subr.bf16.mxu0 %v8702_v7 }
 0x7ac   :  { %1396 = vmatpush1.bf16.msra.mxu0 %v8708_v29 }
 0x7ad   :  { %1397 = vmatprep.subr.bf16.mxu0 %v8714_v10 }
 0x7b0   :  { %1398 = vmatpush1.bf16.msra.mxu0 %v8720_v41 }
 0x7b1   :  { %1512 = vmatprep.subr.bf16.mxu0 %v8406_v53 }
 0x7e4   :  { %v1071_v43 = vpop.f32.mrb[24].mxu0  ;;  %v1233_v48 = vpop.f32.mrb[28].mxu1 }
 0x7e5   :  { %v1116_v50 = vadd.f32 %v1115_v27, %v1071_v43  ;;  %v1073_v55 = vpop.f32.mrb[25].mxu0  ;;  %v1235_v37 = vpop.f32.mrb[29].mxu1 }
 0x7e6   :  { %v1118_v56 = vadd.f32 %v1117_v60, %v1073_v55  ;;  %v1075_v57 = vpop.f32.mrb[26].mxu0  ;;  %v1237_v35 = vpop.f32.mrb[30].mxu1 }
 0x7e7   :  { %v1076_v4 = vpop.f32.mrb[27].mxu0  ;;  %v1238_v61 = vpop.f32.mrb[31].mxu1  ;;  %v1122_v43 = vadd.f32 %v1116_v50, %v8344_v32 }
 0x7e8   :  { %v8725_v36 = vadd.f32 %v1118_v56, %v8337_v23 }
 0x7e9   :  { %v6689_v55 = vmul.f32 -1.442695, %v1122_v43 }
 0x7ea   :  { %7591 = vtanh.f32 %v8725_v36 }
 0x7eb   :  { %7593 = vpow2.f32 %v6689_v55  ;;  %v6698_v55 = vld [vmem:[%s10535_s29 + $0x8] sm:$0x3] }
 0x7f4   :  { %v7592_v62 = vpop.eup %7591 }
 0x7f5   :  { %1139 = vrot.lane.b32.xlu0 %v7592_v62, %s8122_s8  ;;  %v7594_v39 = vpop.eup %7593 }
 0x807   :  { %v1192_v34 = vpop.f32.mrb[28].mxu0  ;;  %v1353_v53 = vpop.f32.mrb[32].mxu1 }
 0x808   :  { %v1234_v63 = vadd.f32 %v1233_v48, %v1192_v34  ;;  %v1194_v21 = vpop.f32.mrb[29].mxu0  ;;  %v7100_v27 = vpop.f32.mrb[33].mxu1 }
 0x809   :  { %v1236_v0 = vadd.f32 %v1235_v37, %v1194_v21  ;;  %v1196_v1 = vpop.f32.mrb[30].mxu0  ;;  %v1356_v60 = vpop.f32.mrb[34].mxu1  ;;  %v1130_v37 = vadd.f32 1.0, %v7594_v39 }
 0x80a   :  { %v1197_v5 = vpop.f32.mrb[31].mxu0  ;;  %v7101_v28 = vpop.f32.mrb[35].mxu1  ;;  %v1240_v1 = vadd.f32 %v1234_v63, %v8484_v58 }
 0x80b   :  { %v8732_v48 = vadd.f32 %v1236_v0, %v8477_v38 }
 0x80c   :  { %v6693_v60 = vmul.f32 -1.442695, %v1240_v1 }
 0x867   :  { %v1140_v21 = vpop.permute.xlu0 %1139 }
 0x876   :  { %v1313_v56 = vpop.f32.mrb[32].mxu0 }
 0x877   :  { %v1354_v57 = vadd.f32 %v1353_v53, %v1313_v56  ;;  %v7088_v35 = vpop.f32.mrb[33].mxu0  ;;  %v1386_v56 = vpack.c.bf16 %v6698_v55, %v6698_v55 }
 0x878   :  { %v1316_v4 = vpop.f32.mrb[34].mxu0 }
 0x879   :  { %v1359_v61 = vadd.f32 %v8592_v54, %v1354_v57  ;;  %v7089_v62 = vpop.f32.mrb[35].mxu0  ;;  %6701 = vmatmul.mubr.msk.bf16.vlgmr.msra.gmra.mrb[36].mxu1 %vm183_vm1, %v1386_v56 }
 0x87a   :  { %1554 = vmatpush1.bf16.msra.mxu1 %v8359_v42  ;;  %1585 = vmatprep.mubr.bf16.mxu1 %v8121_v2 }
 0x87b   :  { %7595 = vtanh.f32 %v1359_v61  ;;  %v6697_v0 = vmul.f32 -1.442695, %v1359_v61  ;;  %1555 = vmatprep.subr.bf16.mxu1 %v8364_v44 }
 0x87c   :  { %7597 = vtanh.f32 %v8732_v48 }
 0x87d   :  { %7599 = vrcp.f32 %v1130_v37 }
 0x87e   :  { %7601 = vpow2.f32 %v6697_v0  ;;  %1556 = vmatpush1.bf16.msra.mxu1 %v8372_v45  ;;  %v10542_v45 = vmov 0.0  }
 0x87f   :  { %7603 = vpow2.f32 %v6693_v60  ;;  %1557 = vmatprep.subr.bf16.mxu1 %v8379_v46  ;;  %v6690_v46 = vmul.f32 -1.442695, %v8725_v36 }
 0x882   :  { %1558 = vmatpush1.bf16.msra.mxu1 %v8385_v47 }
 0x883   :  { %1559 = vmatprep.subr.bf16.mxu1 %v8392_v49 }
 0x885   :  { %v7596_v34 = vpop.eup %7595 }
 0x886   :  { %1369 = vrot.lane.b32.xlu1 %v7596_v34, %s8125_s0  ;;  %v7598_v50 = vpop.eup %7597  ;;  %1560 = vmatpush1.bf16.msra.mxu1 %v8397_v51 }
 0x887   :  { %v7600_v53 = vpop.eup %7599  ;;  %7110 = vmatprep.subr.bf16.mxu1 %v10542_v45 }
 0x888   :  { %v1142_v27 = vmul.f32 %v7600_v53, %v1140_v21  ;;  %v7602_v39 = vpop.eup %7601  ;;  %v1137_v42 = vmul.f32 %v7600_v53, %v8623_v3 }
 0x889   :  { %v1363_v5 = vadd.f32 1.0, %v7602_v39  ;;  %v7604_v28 = vpop.eup %7603 }
 0x88a   :  { %1257 = vrot.lane.b32.xlu1 %v7598_v50, %s8122_s8  ;;  %v1248_v43 = vadd.f32 1.0, %v7604_v28 }
 0x88b   :  { %7605 = vrcp.f32 %v1363_v5 }
 0x88c   :  { %7607 = vrcp.f32 %v1248_v43 }
 0x88e   :  { %1144 = vrot.lane.b32.xlu1 %v1142_v27, %s8122_s8 }
 0x895   :  { %v8745_v63 = vpop.eup %7605 }
 0x896   :  { %v7608_v4 = vpop.eup %7607  ;;  %v1367_v47 = vmul.f32 %v8745_v63, %v8628_v33 }
 0x897   :  { %v1255_v21 = vmul.f32 %v7608_v4, %v8632_v13 }
 0x8f8   :  { %v1370_v57 = vpop.permute.xlu1 %1369 }
 0x8f9   :  { %v1372_v35 = vmul.f32 %v8745_v63, %v1370_v57 }
 0x8fb   :  { %1374 = vrot.lane.b32.xlu0 %v1372_v35, %s8125_s0 }
 0x8fc   :  { %v1258_v61 = vpop.permute.xlu1 %1257 }
 0x8fd   :  { %v1260_v62 = vmul.f32 %v7608_v4, %v1258_v61 }
 0x8ff   :  { %1262 = vrot.lane.b32.xlu0 %v1260_v62, %s8122_s8 }
 0x900   :  { %v1145_v37 = vpop.permute.xlu1 %1144 }
 0x901   :  { %v8756_v44 = vadd.f32 %v1145_v37, %v1137_v42 }
 0x903   :  { %7609 = vtanh.f32 %v8756_v44 }
 0x904   :  { %7611 = vpow2.f32 %v6690_v46 }
 0x90d   :  { %v7610_v34 = vpop.eup %7609 }
 0x90e   :  { %1150 = vrot.lane.b32.xlu0 %v7610_v34, %s8122_s8  ;;  %v7612_v49 = vpop.eup %7611 }
 0x90f   :  { %v1131_v53 = vadd.f32 1.0, %v7612_v49  ;;  %v8832_v49 = vld [vmem:[%s10538_s3 + $0x4] ss:$8 sps:$4 sm:$0xff]  }
 0x96d   :  { %v1375_v3 = vpop.permute.xlu0 %1374 }
 0x96e   :  { %v8765_v50 = vadd.f32 %v1375_v3, %v1367_v47 }
 0x970   :  { %7613 = vtanh.f32 %v8765_v50 }
 0x971   :  { %v1263_v51 = vpop.permute.xlu0 %1262 }
 0x972   :  { %v8769_v27 = vadd.f32 %v1263_v51, %v1255_v21 }
 0x974   :  { %7615 = vtanh.f32 %v8769_v27 }
 0x975   :  { %7617 = vrcp.f32 %v1131_v53 }
 0x97a   :  { %v7614_v36 = vpop.eup %7613 }
 0x97b   :  { %1380 = vrot.lane.b32.xlu1 %v7614_v36, %s8125_s0 }
 0x97e   :  { %v7616_v1 = vpop.eup %7615 }
 0x97f   :  { %1268 = vrot.lane.b32.xlu1 %v7616_v1, %s8122_s8  ;;  %v7618_v33 = vpop.eup %7617 }
 0x980   :  { %v1151_v0 = vpop.permute.xlu0 %1150 }
 0x981   :  { %v1153_v60 = vmul.f32 %v7618_v33, %v1151_v0 }
 0x983   :  { %v1387_v39 = vpack.c.bf16 %v1153_v60, %v1153_v60 }
 0x985   :  { %6699 = vmatmul.mubr.msk.bf16.vlgmr.msra.gmra.mrb[36].mxu0 %vm129_vm2, %v1387_v39  ;;  %6705 = vmatmul.mubr.msk.bf16.vlgmr.msra.gmra.mrb[40].mxu1 %vm129_vm2, %v1387_v39 }
 0x986   :  { %1513 = vmatpush1.bf16.msra.mxu0 %v8416_v11  ;;  %7111 = vmatpush3.bf16.msra.mxu1 %v8523_v6  ;;  %v1469_v11 = vpop.f32.mrb[36].mxu1 }
 0x987   :  { %1514 = vmatprep.subr.bf16.mxu0 %v8421_v14  ;;  %7112 = vmatprep.subr.bf16.mxu1 %v10542_v45  ;;  %v1471_v14 = vpop.f32.mrb[37].mxu1 }
 0x988   :  { %1544 = vmatprep.mubr.bf16.mxu0 %v8121_v2  ;;  %7118 = vmatprep.mubr.msk.bf16.mxu1 %vm8124_vm3, %v10542_v45 }
 0x98a   :  { %1515 = vmatpush1.bf16.msra.mxu0 %v8429_v15  ;;  %7113 = vmatpush3.bf16.msra.mxu1 %v8537_v22  ;;  %v1473_v15 = vpop.f32.mrb[38].mxu1 }
 0x98b   :  { %1516 = vmatprep.subr.bf16.mxu0 %v8436_v16  ;;  %7114 = vmatprep.subr.bf16.mxu1 %v10542_v45  ;;  %v1474_v16 = vpop.f32.mrb[39].mxu1 }
 0x98e   :  { %1517 = vmatpush1.bf16.msra.mxu0 %v8445_v17  ;;  %7115 = vmatpush3.bf16.msra.mxu1 %v8555_v25  ;;  %v6694_v17 = vmul.f32 -1.442695, %v8732_v48  ;;  %v8810_v48 = vld [vmem:[%s10537_s5 + $0x4] ss:$8 sps:$4 sm:$0xff]  }
 0x98f   :  { %1518 = vmatprep.subr.bf16.mxu0 %v8451_v18  ;;  %7116 = vmatprep.subr.bf16.mxu1 %v10542_v45 }
 0x990   :  { %7619 = vpow2.f32 %v6694_v17 }
 0x992   :  { %1519 = vmatpush1.bf16.msra.mxu0 %v8457_v19  ;;  %7117 = vmatpush3.bf16.msra.mxu1 %v8565_v26 }
 0x993   :  { %7102 = vmatprep.subr.bf16.mxu0 %v10542_v45  ;;  %6713 = vmatprep.subr.msk.bf16.mxu1 %vm187_vm0, %v8290_v8 }
 0x99a   :  { %v7620_v13 = vpop.eup %7619 }
 0x99b   :  { %v1249_v18 = vadd.f32 1.0, %v7620_v13 }
 0x99d   :  { %7621 = vrcp.f32 %v1249_v18 }
 0x9a7   :  { %v7622_v43 = vpop.eup %7621 }
 0x9ed   :  { %v1381_v5 = vpop.permute.xlu1 %1380 }
 0x9ee   :  { %v1383_v19 = vmul.f32 %v8745_v63, %v1381_v5 }
 0x9f0   :  { %v1626_v28 = vpack.c.bf16 %v1383_v19, %v1383_v19 }
 0x9f1   :  { %v1269_v55 = vpop.permute.xlu1 %1268 }
 0x9f2   :  { %v1271_v56 = vmul.f32 %v7622_v43, %v1269_v55  ;;  %1628 = vrot.lane.b32.xlu0 %v1626_v28, %s8122_s8 }
 0x9f4   :  { %v1508_v57 = vpack.c.bf16 %v1271_v56, %v1271_v56 }
 0x9f6   :  { %6704 = vmatmul.mubr.msk.bf16.vlgmr.msra.gmra.mrb[40].mxu0 %vm129_vm2, %v1508_v57  ;;  %7119 = vmatmul.mubr.msk.bf16.vlgmr.msra.gmra.mrb[44].mxu1 %vm129_vm2, %v1508_v57 }
 0x9f7   :  { %7103 = vmatpush3.bf16.msra.mxu0 %v8528_v12  ;;  %7106 = vmatprep.mubr.msk.bf16.mxu0 %vm8124_vm3, %v10542_v45 }
 0x9f8   :  { %7104 = vmatprep.subr.bf16.mxu0 %v10542_v45  ;;  %1790 = vmatpush1.bf16.msra.mxu1 %v8293_v9 }
 0x9f9   :  { %1821 = vmatprep.mubr.bf16.mxu1 %v8121_v2  ;;  %1907 = vmatprep.subr.bf16.mxu1 %v8810_v48 }
 0x9fb   :  { %7105 = vmatpush3.bf16.msra.mxu0 %v8543_v24 }
 0x9fc   :  { %1745 = vmatprep.subr.bf16.mxu0 %v8676_v59 }
 0xa58   :  { %v1425_v12 = vpop.f32.mrb[36].mxu0  ;;  %v1587_v63 = vpop.f32.mrb[40].mxu1 }
 0xa59   :  { %v1470_v35 = vadd.f32 %v1469_v11, %v1425_v12  ;;  %v1427_v4 = vpop.f32.mrb[37].mxu0  ;;  %v1589_v61 = vpop.f32.mrb[41].mxu1 }
 0xa5a   :  { %v1472_v62 = vadd.f32 %v1471_v14, %v1427_v4  ;;  %v1429_v42 = vpop.f32.mrb[38].mxu0  ;;  %v1591_v37 = vpop.f32.mrb[42].mxu1 }
 0xa5b   :  { %v1430_v34 = vpop.f32.mrb[39].mxu0  ;;  %v1592_v46 = vpop.f32.mrb[43].mxu1  ;;  %v1476_v14 = vadd.f32 %v1470_v35, %v8344_v32 }
 0xa5c   :  { %v8816_v47 = vadd.f32 %v1472_v62, %v8337_v23 }
 0xa5d   :  { %v6702_v15 = vmul.f32 -1.442695, %v1476_v14 }
 0xa5e   :  { %7623 = vtanh.f32 %v8816_v47 }
 0xa5f   :  { %7625 = vpow2.f32 %v6702_v15  ;;  %v8883_v15 = vld [vmem:[%s10537_s5 + $0x20] ss:$8 sps:$4 sm:$0xff]  }
 0xa64   :  { %v1629_v3 = vpop.permute.xlu0 %1628 }
 0xa65   :  { %7107 = vmatmul.mubr.msk.bf16.vlgmr.msra.gmra.mrb[44].mxu0 %vm891_vm4, %v1629_v3  ;;  %v6711_v3 = vld [vmem:[%s10535_s29 + $0xa] sm:$0x3] }
 0xa66   :  { %1746 = vmatpush1.bf16.msra.mxu0 %v8683_v30  ;;  %1777 = vmatprep.mubr.bf16.mxu0 %v8121_v2 }
 0xa67   :  { %1747 = vmatprep.subr.bf16.mxu0 %v8690_v40 }
 0xa68   :  { %v7624_v24 = vpop.eup %7623 }
 0xa69   :  { %1493 = vrot.lane.b32.xlu0 %v7624_v24, %s8122_s8  ;;  %v7626_v28 = vpop.eup %7625  ;;  %v1740_v24 = vpack.c.bf16 %v6711_v3, %v6711_v3  ;;  %v8965_v3 = vld [vmem:[%s10538_s3 + $0x30] ss:$8 sps:$4 sm:$0xff]  }
 0xa6a   :  { %1748 = vmatpush1.bf16.msra.mxu0 %v8696_v52  ;;  %v1484_v55 = vadd.f32 1.0, %v7626_v28 }
 0xa6b   :  { %1749 = vmatprep.subr.bf16.mxu0 %v8702_v7  ;;  %6714 = vmatmul.mubr.msk.bf16.vlgmr.msra.gmra.mrb[48].mxu1 %vm183_vm1, %v1740_v24 }
 0xa6c   :  { %1939 = vmatprep.mubr.bf16.mxu1 %v8121_v2 }
 0xa6e   :  { %1750 = vmatpush1.bf16.msra.mxu0 %v8708_v29 }
 0xa6f   :  { %1751 = vmatprep.subr.bf16.mxu0 %v8714_v10 }
 0xa72   :  { %1752 = vmatpush1.bf16.msra.mxu0 %v8720_v41 }
 0xa73   :  { %1866 = vmatprep.subr.bf16.mxu0 %v8832_v49 }
 0xac9   :  { %v1546_v21 = vpop.f32.mrb[40].mxu0  ;;  %v1707_v51 = vpop.f32.mrb[44].mxu1 }
 0xaca   :  { %v1588_v53 = vadd.f32 %v1587_v63, %v1546_v21  ;;  %v1548_v36 = vpop.f32.mrb[41].mxu0  ;;  %v7120_v1 = vpop.f32.mrb[45].mxu1  ;;  %v8852_v21 = vld [vmem:[%s10537_s5] ss:$8 sps:$4 sm:$0xff]  }
 0xacb   :  { %v1590_v33 = vadd.f32 %v1589_v61, %v1548_v36  ;;  %v1550_v0 = vpop.f32.mrb[42].mxu0  ;;  %v1710_v60 = vpop.f32.mrb[46].mxu1  ;;  %1908 = vmatpush1.bf16.msra.mxu1 %v8852_v21  ;;  %v8861_v36 = vld [vmem:[%s10537_s5 + $0x14] ss:$8 sps:$4 sm:$0xff]  }
 0xacc   :  { %v1551_v39 = vpop.f32.mrb[43].mxu0  ;;  %v7121_v11 = vpop.f32.mrb[47].mxu1  ;;  %v1594_v4 = vadd.f32 %v1588_v53, %v8484_v58  ;;  %1909 = vmatprep.subr.bf16.mxu1 %v8861_v36 }
 0xacd   :  { %v8838_v43 = vadd.f32 %v1590_v33, %v8477_v38  ;;  %v8869_v33 = vld [vmem:[%s10537_s5 + $0x10] ss:$8 sps:$4 sm:$0xff]   ;;  %v8875_v39 = vld [vmem:[%s10537_s5 + $0x24] ss:$8 sps:$4 sm:$0xff]  }
 0xace   :  { %v6706_v62 = vmul.f32 -1.442695, %v1594_v4 }
 0xacf   :  { %1910 = vmatpush1.bf16.msra.mxu1 %v8869_v33 }
 0xad0   :  { %1911 = vmatprep.subr.bf16.mxu1 %v8875_v39 }
 0xad3   :  { %1912 = vmatpush1.bf16.msra.mxu1 %v8883_v15 }
 0xadb   :  { %v1494_v12 = vpop.permute.xlu0 %1493 }
 0xb38   :  { %v1667_v16 = vpop.f32.mrb[44].mxu0 }
 0xb39   :  { %v1708_v17 = vadd.f32 %v1707_v51, %v1667_v16  ;;  %v7108_v13 = vpop.f32.mrb[45].mxu0 }
 0xb3a   :  { %v1670_v18 = vpop.f32.mrb[46].mxu0 }
 0xb3b   :  { %v1713_v5 = vadd.f32 %v8592_v54, %v1708_v17  ;;  %v7109_v19 = vpop.f32.mrb[47].mxu0  ;;  %v8889_v17 = vld [vmem:[%s10537_s5 + $0x34] ss:$8 sps:$4 sm:$0xff]  }
 0xb3c   :  { %1913 = vmatprep.subr.bf16.mxu1 %v8889_v17 }
 0xb3d   :  { %7627 = vtanh.f32 %v1713_v5  ;;  %v6710_v61 = vmul.f32 -1.442695, %v1713_v5  ;;  %v6703_v5 = vmul.f32 -1.442695, %v8816_v47 }
 0xb3e   :  { %7629 = vtanh.f32 %v8838_v43 }
 0xb3f   :  { %7631 = vrcp.f32 %v1484_v55 }
 0xb40   :  { %7633 = vpow2.f32 %v6710_v61 }
 0xb41   :  { %7635 = vpow2.f32 %v6706_v62 }
 0xb47   :  { %v7628_v56 = vpop.eup %7627 }
 0xb48   :  { %1723 = vrot.lane.b32.xlu1 %v7628_v56, %s8125_s0  ;;  %v7630_v57 = vpop.eup %7629 }
 0xb49   :  { %v7632_v63 = vpop.eup %7631 }
 0xb4a   :  { %v1496_v35 = vmul.f32 %v7632_v63, %v1494_v12  ;;  %v7634_v42 = vpop.eup %7633  ;;  %v1491_v14 = vmul.f32 %v7632_v63, %v8756_v44  ;;  %v8898_v44 = vld [vmem:[%s10537_s5 + $0x30] ss:$8 sps:$4 sm:$0xff]  }
 0xb4b   :  { %v1717_v37 = vadd.f32 1.0, %v7634_v42  ;;  %v7636_v34 = vpop.eup %7635  ;;  %1914 = vmatpush1.bf16.msra.mxu1 %v8898_v44 }
 0xb4c   :  { %1611 = vrot.lane.b32.xlu1 %v7630_v57, %s8122_s8  ;;  %v1602_v46 = vadd.f32 1.0, %v7636_v34  ;;  %7130 = vmatprep.subr.bf16.mxu1 %v10542_v45  ;;  %v8937_v34 = vld [vmem:[%s10538_s3 + $0x10] ss:$8 sps:$4 sm:$0xff]  }
 0xb4d   :  { %7637 = vrcp.f32 %v1717_v37  ;;  %v8927_v37 = vld [vmem:[%s10538_s3 + $0x14] ss:$8 sps:$4 sm:$0xff]  }
 0xb4e   :  { %7639 = vrcp.f32 %v1602_v46  ;;  %v8951_v46 = vld [vmem:[%s10538_s3 + $0x20] ss:$8 sps:$4 sm:$0xff]  }
 0xb50   :  { %1498 = vrot.lane.b32.xlu1 %v1496_v35, %s8122_s8 }
 0xb57   :  { %v8856_v51 = vpop.eup %7637 }
 0xb58   :  { %v7640_v0 = vpop.eup %7639  ;;  %v1721_v19 = vmul.f32 %v8856_v51, %v8765_v50 }
 0xb59   :  { %v1609_v57 = vmul.f32 %v7640_v0, %v8769_v27  ;;  %v8920_v27 = vld [vmem:[%s10538_s3] ss:$8 sps:$4 sm:$0xff]  }
 0xbba   :  { %v1724_v53 = vpop.permute.xlu1 %1723 }
 0xbbb   :  { %v1726_v1 = vmul.f32 %v8856_v51, %v1724_v53 }
 0xbbd   :  { %1728 = vrot.lane.b32.xlu0 %v1726_v1, %s8125_s0 }
 0xbbe   :  { %v1612_v60 = vpop.permute.xlu1 %1611 }
 0xbbf   :  { %v1614_v11 = vmul.f32 %v7640_v0, %v1612_v60  ;;  %v6707_v0 = vmul.f32 -1.442695, %v8838_v43  ;;  %v8980_v43 = vld [vmem:[%s10541_s28] sm:$0xff]  }
 0xbc1   :  { %1616 = vrot.lane.b32.xlu0 %v1614_v11, %s8122_s8 }
 0xbc2   :  { %v1499_v16 = vpop.permute.xlu1 %1498 }
 0xbc3   :  { %v8892_v13 = vadd.f32 %v1499_v16, %v1491_v14 }
 0xbc5   :  { %7641 = vtanh.f32 %v8892_v13 }
 0xbc6   :  { %7643 = vpow2.f32 %v6703_v5 }
 0xbcf   :  { %v7642_v18 = vpop.eup %7641 }
 0xbd0   :  { %1504 = vrot.lane.b32.xlu0 %v7642_v18, %s8122_s8  ;;  %v7644_v56 = vpop.eup %7643 }
 0xbd1   :  { %v1485_v63 = vadd.f32 1.0, %v7644_v56 }
 0xc2f   :  { %v1729_v28 = vpop.permute.xlu0 %1728 }
 0xc30   :  { %v8906_v55 = vadd.f32 %v1729_v28, %v1721_v19 }
 0xc32   :  { %7645 = vtanh.f32 %v8906_v55 }
 0xc33   :  { %v1617_v12 = vpop.permute.xlu0 %1616 }
 0xc34   :  { %v8910_v35 = vadd.f32 %v1617_v12, %v1609_v57 }
 0xc36   :  { %7647 = vtanh.f32 %v8910_v35 }
 0xc37   :  { %7649 = vrcp.f32 %v1485_v63 }
 0xc38   :  { %7651 = vpow2.f32 %v6707_v0 }
 0xc3c   :  { %v7646_v47 = vpop.eup %7645 }
 0xc3d   :  { %1734 = vrot.lane.b32.xlu1 %v7646_v47, %s8125_s0 }
 0xc40   :  { %v7648_v4 = vpop.eup %7647 }
 0xc41   :  { %1622 = vrot.lane.b32.xlu1 %v7648_v4, %s8122_s8  ;;  %v7650_v50 = vpop.eup %7649 }
 0xc42   :  { %v1505_v61 = vpop.permute.xlu0 %1504  ;;  %v7652_v60 = vpop.eup %7651 }
 0xc43   :  { %v1507_v62 = vmul.f32 %v7650_v50, %v1505_v61  ;;  %v1603_v11 = vadd.f32 1.0, %v7652_v60 }
 0xc45   :  { %v1741_v42 = vpack.c.bf16 %v1507_v62, %v1507_v62  ;;  %7653 = vrcp.f32 %v1603_v11 }
 0xc47   :  { %6712 = vmatmul.mubr.msk.bf16.vlgmr.msra.gmra.mrb[48].mxu0 %vm129_vm2, %v1741_v42  ;;  %6718 = vmatmul.mubr.msk.bf16.vlgmr.msra.gmra.mrb[52].mxu1 %vm129_vm2, %v1741_v42 }
 0xc48   :  { %1867 = vmatpush1.bf16.msra.mxu0 %v8920_v27  ;;  %7131 = vmatpush3.bf16.msra.mxu1 %v8523_v6  ;;  %v8944_v6 = vld [vmem:[%s10538_s3 + $0x24] ss:$8 sps:$4 sm:$0xff]  }
 0xc49   :  { %1868 = vmatprep.subr.bf16.mxu0 %v8927_v37  ;;  %7132 = vmatprep.subr.bf16.mxu1 %v10542_v45 }
 0xc4a   :  { %1898 = vmatprep.mubr.bf16.mxu0 %v8121_v2  ;;  %7138 = vmatprep.mubr.msk.bf16.mxu1 %vm8124_vm3, %v10542_v45 }
 0xc4c   :  { %1869 = vmatpush1.bf16.msra.mxu0 %v8937_v34  ;;  %7133 = vmatpush3.bf16.msra.mxu1 %v8537_v22  ;;  %v8958_v22 = vld [vmem:[%s10538_s3 + $0x34] ss:$8 sps:$4 sm:$0xff]  }
 0xc4d   :  { %1870 = vmatprep.subr.bf16.mxu0 %v8944_v6  ;;  %7134 = vmatprep.subr.bf16.mxu1 %v10542_v45 }
 0xc50   :  { %1871 = vmatpush1.bf16.msra.mxu0 %v8951_v46  ;;  %7135 = vmatpush3.bf16.msra.mxu1 %v8555_v25  ;;  %v1823_v25 = vpop.f32.mrb[48].mxu1 }
 0xc51   :  { %1872 = vmatprep.subr.bf16.mxu0 %v8958_v22  ;;  %7136 = vmatprep.subr.bf16.mxu1 %v10542_v45  ;;  %v1825_v24 = vpop.f32.mrb[49].mxu1 }
 0xc52   :  { %v1827_v53 = vpop.f32.mrb[50].mxu1 }
 0xc53   :  { %v1828_v1 = vpop.f32.mrb[51].mxu1 }
 0xc54   :  { %1873 = vmatpush1.bf16.msra.mxu0 %v8965_v3  ;;  %7137 = vmatpush3.bf16.msra.mxu1 %v8565_v26  ;;  %v7654_v26 = vpop.eup %7653 }
 0xc55   :  { %7122 = vmatprep.subr.bf16.mxu0 %v10542_v45  ;;  %6726 = vmatprep.subr.msk.bf16.mxu1 %vm187_vm0, %v8290_v8 }
 0xcaf   :  { %v1735_v14 = vpop.permute.xlu1 %1734 }
 0xcb0   :  { %v1737_v16 = vmul.f32 %v8856_v51, %v1735_v14  ;;  %v8992_v51 = vld [vmem:[%s10541_s28 + $0x8] sm:$0xff]  }
 0xcb2   :  { %v1980_v18 = vpack.c.bf16 %v1737_v16, %v1737_v16 }
 0xcb3   :  { %v1623_v5 = vpop.permute.xlu1 %1622 }
 0xcb4   :  { %v1625_v19 = vmul.f32 %v7654_v26, %v1623_v5  ;;  %1982 = vrot.lane.b32.xlu0 %v1980_v18, %s8122_s8 }
 0xcb6   :  { %v1862_v28 = vpack.c.bf16 %v1625_v19, %v1625_v19 }
 0xcb8   :  { %6717 = vmatmul.mubr.msk.bf16.vlgmr.msra.gmra.mrb[52].mxu0 %vm129_vm2, %v1862_v28  ;;  %7139 = vmatmul.mubr.msk.bf16.vlgmr.msra.gmra.mrb[56].mxu1 %vm129_vm2, %v1862_v28 }
 0xcb9   :  { %7123 = vmatpush3.bf16.msra.mxu0 %v8980_v43  ;;  %7126 = vmatprep.mubr.msk.bf16.mxu0 %vm8124_vm3, %v10542_v45 }
 0xcba   :  { %7124 = vmatprep.subr.bf16.mxu0 %v10542_v45  ;;  %2144 = vmatpush1.bf16.msra.mxu1 %v8293_v9 }
 0xcbb   :  { %2175 = vmatprep.mubr.bf16.mxu1 %v8121_v2  ;;  %2261 = vmatprep.subr.bf16.mxu1 %v8810_v48 }
 0xcbd   :  { %7125 = vmatpush3.bf16.msra.mxu0 %v8992_v51 }
 0xcbe   :  { %2099 = vmatprep.subr.bf16.mxu0 %v8676_v59 }
 0xd1a   :  { %v1779_v56 = vpop.f32.mrb[48].mxu0  ;;  %v1941_v57 = vpop.f32.mrb[52].mxu1 }
 0xd1b   :  { %v1824_v12 = vadd.f32 %v1823_v25, %v1779_v56  ;;  %v1781_v63 = vpop.f32.mrb[49].mxu0  ;;  %v1943_v47 = vpop.f32.mrb[53].mxu1 }
 0xd1c   :  { %v1826_v4 = vadd.f32 %v1825_v24, %v1781_v63  ;;  %v1783_v50 = vpop.f32.mrb[50].mxu0  ;;  %v1945_v61 = vpop.f32.mrb[54].mxu1 }
 0xd1d   :  { %v1784_v62 = vpop.f32.mrb[51].mxu0  ;;  %v1946_v42 = vpop.f32.mrb[55].mxu1  ;;  %v1830_v28 = vadd.f32 %v1824_v12, %v8344_v32 }
 0xd1e   :  { %v8997_v53 = vadd.f32 %v1826_v4, %v8337_v23 }
 0xd1f   :  { %v6715_v56 = vmul.f32 -1.442695, %v1830_v28  ;;  %v6724_v28 = vld [vmem:[%s10535_s29 + $0xc] sm:$0x3] }
 0xd20   :  { %7655 = vtanh.f32 %v8997_v53 }
 0xd21   :  { %7657 = vpow2.f32 %v6715_v56  ;;  %v2094_v56 = vpack.c.bf16 %v6724_v28, %v6724_v28 }
 0xd23   :  { %6727 = vmatmul.mubr.msk.bf16.vlgmr.msra.gmra.mrb[60].mxu1 %vm183_vm1, %v2094_v56  ;;  %v9074_v56 = vld [vmem:[%s10540_s4 + $0x8] sm:$0xff]  }
 0xd24   :  { %2262 = vmatpush1.bf16.msra.mxu1 %v8852_v21  ;;  %2293 = vmatprep.mubr.bf16.mxu1 %v8121_v2 }
 0xd25   :  { %2263 = vmatprep.subr.bf16.mxu1 %v8861_v36 }
 0xd26   :  { %v1983_v1 = vpop.permute.xlu0 %1982 }
 0xd27   :  { %7127 = vmatmul.mubr.msk.bf16.vlgmr.msra.gmra.mrb[56].mxu0 %vm891_vm4, %v1983_v1 }
 0xd28   :  { %2100 = vmatpush1.bf16.msra.mxu0 %v8683_v30  ;;  %2131 = vmatprep.mubr.bf16.mxu0 %v8121_v2 }
 0xd29   :  { %2101 = vmatprep.subr.bf16.mxu0 %v8690_v40  ;;  %2264 = vmatpush1.bf16.msra.mxu1 %v8869_v33 }
 0xd2a   :  { %v7656_v25 = vpop.eup %7655  ;;  %2265 = vmatprep.subr.bf16.mxu1 %v8875_v39 }
 0xd2b   :  { %1847 = vrot.lane.b32.xlu0 %v7656_v25, %s8122_s8  ;;  %v7658_v1 = vpop.eup %7657 }
 0xd2c   :  { %2102 = vmatpush1.bf16.msra.mxu0 %v8696_v52 }
 0xd2d   :  { %2103 = vmatprep.subr.bf16.mxu0 %v8702_v7  ;;  %2266 = vmatpush1.bf16.msra.mxu1 %v8883_v15 }
 0xd2e   :  { %2267 = vmatprep.subr.bf16.mxu1 %v8889_v17 }
 0xd30   :  { %2104 = vmatpush1.bf16.msra.mxu0 %v8708_v29 }
 0xd31   :  { %2105 = vmatprep.subr.bf16.mxu0 %v8714_v10  ;;  %2268 = vmatpush1.bf16.msra.mxu1 %v8898_v44 }
 0xd32   :  { %7150 = vmatprep.subr.bf16.mxu1 %v10542_v45 }
 0xd34   :  { %2106 = vmatpush1.bf16.msra.mxu0 %v8720_v41 }
 0xd35   :  { %2220 = vmatprep.subr.bf16.mxu0 %v8832_v49 }
 0xd8b   :  { %v1900_v24 = vpop.f32.mrb[52].mxu0  ;;  %v2061_v0 = vpop.f32.mrb[56].mxu1 }
 0xd8c   :  { %v1942_v60 = vadd.f32 %v1941_v57, %v1900_v24  ;;  %v1902_v11 = vpop.f32.mrb[53].mxu0  ;;  %v7140_v14 = vpop.f32.mrb[57].mxu1 }
 0xd8d   :  { %v1944_v16 = vadd.f32 %v1943_v47, %v1902_v11  ;;  %v1904_v18 = vpop.f32.mrb[54].mxu0  ;;  %v2064_v26 = vpop.f32.mrb[58].mxu1  ;;  %v1838_v47 = vadd.f32 1.0, %v7658_v1 }
 0xd8e   :  { %v1905_v5 = vpop.f32.mrb[55].mxu0  ;;  %v7141_v19 = vpop.f32.mrb[59].mxu1 }
 0xd8f   :  { %v9014_v57 = vadd.f32 %v1944_v16, %v8477_v38 }
 0xd9d   :  { %v1848_v24 = vpop.permute.xlu0 %1847 }
 0xdfa   :  { %v2021_v63 = vpop.f32.mrb[56].mxu0 }
 0xdfb   :  { %v2062_v4 = vadd.f32 %v2061_v0, %v2021_v63  ;;  %v7128_v50 = vpop.f32.mrb[57].mxu0 }
 0xdfc   :  { %v2024_v61 = vpop.f32.mrb[58].mxu0 }
 0xdfd   :  { %v2067_v62 = vadd.f32 %v8592_v54, %v2062_v4  ;;  %v7129_v42 = vpop.f32.mrb[59].mxu0  ;;  %v1948_v54 = vadd.f32 %v1942_v60, %v8484_v58 }
 0xdff   :  { %7659 = vtanh.f32 %v2067_v62  ;;  %v6723_v14 = vmul.f32 -1.442695, %v2067_v62  ;;  %v6719_v16 = vmul.f32 -1.442695, %v1948_v54 }
 0xe00   :  { %7661 = vtanh.f32 %v9014_v57 }
 0xe01   :  { %7663 = vrcp.f32 %v1838_v47 }
 0xe02   :  { %7665 = vpow2.f32 %v6723_v14 }
 0xe03   :  { %7667 = vpow2.f32 %v6719_v16 }
 0xe09   :  { %v7660_v25 = vpop.eup %7659 }
 0xe0a   :  { %2077 = vrot.lane.b32.xlu1 %v7660_v25, %s8125_s0  ;;  %v7662_v12 = vpop.eup %7661 }
 0xe0b   :  { %v7664_v0 = vpop.eup %7663 }
 0xe0c   :  { %v1850_v11 = vmul.f32 %v7664_v0, %v1848_v24  ;;  %v7666_v18 = vpop.eup %7665  ;;  %v1845_v42 = vmul.f32 %v7664_v0, %v8892_v13 }
 0xe0d   :  { %v2071_v26 = vadd.f32 1.0, %v7666_v18  ;;  %v7668_v5 = vpop.eup %7667 }
 0xe0e   :  { %1965 = vrot.lane.b32.xlu1 %v7662_v12, %s8122_s8  ;;  %v1956_v19 = vadd.f32 1.0, %v7668_v5  ;;  %v6716_v12 = vmul.f32 -1.442695, %v8997_v53 }
 0xe0f   :  { %7669 = vrcp.f32 %v2071_v26 }
 0xe10   :  { %7671 = vrcp.f32 %v1956_v19 }
 0xe12   :  { %1852 = vrot.lane.b32.xlu1 %v1850_v11, %s8122_s8 }
 0xe19   :  { %v9027_v60 = vpop.eup %7669 }
 0xe1a   :  { %v7672_v50 = vpop.eup %7671  ;;  %v2075_v13 = vmul.f32 %v9027_v60, %v8906_v55 }
 0xe1b   :  { %v1963_v54 = vmul.f32 %v7672_v50, %v8910_v35  ;;  %v9062_v35 = vld [vmem:[%s10540_s4] sm:$0xff]  }
 0xe7c   :  { %v2078_v63 = vpop.permute.xlu1 %2077 }
 0xe7d   :  { %v2080_v4 = vmul.f32 %v9027_v60, %v2078_v63  ;;  %v9083_v63 = vld [vmem:[%s10540_s4 + $0x10] sm:$0xff]  }
 0xe7f   :  { %2082 = vrot.lane.b32.xlu0 %v2080_v4, %s8125_s0  ;;  %v9092_v4 = vld [vmem:[%s10540_s4 + $0x18] sm:$0xff]  }
 0xe80   :  { %v1966_v61 = vpop.permute.xlu1 %1965 }
 0xe81   :  { %v1968_v62 = vmul.f32 %v7672_v50, %v1966_v61  ;;  %v2177_v50 = vpop.f32.mrb[60].mxu1 }
 0xe82   :  { %v2179_v61 = vpop.f32.mrb[61].mxu1 }
 0xe83   :  { %1970 = vrot.lane.b32.xlu0 %v1968_v62, %s8122_s8  ;;  %v2181_v62 = vpop.f32.mrb[62].mxu1 }
 0xe84   :  { %v1853_v1 = vpop.permute.xlu1 %1852 }
 0xe85   :  { %v9038_v47 = vadd.f32 %v1853_v1, %v1845_v42  ;;  %v2182_v42 = vpop.f32.mrb[63].mxu1  ;;  %v6720_v1 = vmul.f32 -1.442695, %v9014_v57 }
 0xe87   :  { %7673 = vtanh.f32 %v9038_v47 }
 0xe88   :  { %7675 = vpow2.f32 %v6716_v12 }
 0xe91   :  { %v7674_v25 = vpop.eup %7673 }
 0xe92   :  { %1858 = vrot.lane.b32.xlu0 %v7674_v25, %s8122_s8  ;;  %v7676_v11 = vpop.eup %7675 }
 0xe93   :  { %v1839_v16 = vadd.f32 1.0, %v7676_v11 }
 0xef1   :  { %v2083_v24 = vpop.permute.xlu0 %2082 }
 0xef2   :  { %v9047_v0 = vadd.f32 %v2083_v24, %v2075_v13 }
 0xef4   :  { %7677 = vtanh.f32 %v9047_v0 }
 0xef5   :  { %v1971_v14 = vpop.permute.xlu0 %1970 }
 0xef6   :  { %v9051_v18 = vadd.f32 %v1971_v14, %v1963_v54 }
 0xef8   :  { %7679 = vtanh.f32 %v9051_v18 }
 0xef9   :  { %7681 = vrcp.f32 %v1839_v16 }
 0xefa   :  { %7683 = vpow2.f32 %v6720_v1 }
 0xefe   :  { %v7678_v53 = vpop.eup %7677 }
 0xeff   :  { %2088 = vrot.lane.b32.xlu1 %v7678_v53, %s8125_s0 }
 0xf02   :  { %v7680_v26 = vpop.eup %7679 }
 0xf03   :  { %1976 = vrot.lane.b32.xlu1 %v7680_v26, %s8122_s8  ;;  %v7682_v55 = vpop.eup %7681 }
 0xf04   :  { %v1859_v5 = vpop.permute.xlu0 %1858  ;;  %v7684_v25 = vpop.eup %7683 }
 0xf05   :  { %v1861_v19 = vmul.f32 %v7682_v55, %v1859_v5  ;;  %v1957_v12 = vadd.f32 1.0, %v7684_v25 }
 0xf07   :  { %v2095_v28 = vpack.c.bf16 %v1861_v19, %v1861_v19  ;;  %7685 = vrcp.f32 %v1957_v12 }
 0xf09   :  { %6725 = vmatmul.mubr.msk.bf16.vlgmr.msra.gmra.mrb[60].mxu0 %vm129_vm2, %v2095_v28  ;;  %6731 = vmatmul.mubr.msk.bf16.vlgmr.msra.gmra.mrb[64].mxu1 %vm129_vm2, %v2095_v28 }
 0xf0a   :  { %2221 = vmatpush1.bf16.msra.mxu0 %v8920_v27  ;;  %7151 = vmatpush3.bf16.msra.mxu1 %v9062_v35 }
 0xf0b   :  { %2222 = vmatprep.subr.bf16.mxu0 %v8927_v37  ;;  %7152 = vmatprep.subr.bf16.mxu1 %v10542_v45 }
 0xf0c   :  { %2252 = vmatprep.mubr.bf16.mxu0 %v8121_v2  ;;  %7158 = vmatprep.mubr.msk.bf16.mxu1 %vm8124_vm3, %v10542_v45 }
 0xf0e   :  { %2223 = vmatpush1.bf16.msra.mxu0 %v8937_v34  ;;  %7153 = vmatpush3.bf16.msra.mxu1 %v9074_v56 }
 0xf0f   :  { %2224 = vmatprep.subr.bf16.mxu0 %v8944_v6  ;;  %7154 = vmatprep.subr.bf16.mxu1 %v10542_v45 }
 0xf11   :  { %v7686_v54 = vpop.eup %7685 }
 0xf12   :  { %2225 = vmatpush1.bf16.msra.mxu0 %v8951_v46  ;;  %7155 = vmatpush3.bf16.msra.mxu1 %v9083_v63 }
 0xf13   :  { %2226 = vmatprep.subr.bf16.mxu0 %v8958_v22  ;;  %7156 = vmatprep.subr.bf16.mxu1 %v10542_v45 }
 0xf16   :  { %2227 = vmatpush1.bf16.msra.mxu0 %v8965_v3  ;;  %7157 = vmatpush3.bf16.msra.mxu1 %v9092_v4 }
 0xf17   :  { %7142 = vmatprep.subr.bf16.mxu0 %v10542_v45  ;;  %6739 = vmatprep.subr.msk.bf16.mxu1 %vm187_vm0, %v8290_v8 }
 0xf71   :  { %v2089_v13 = vpop.permute.xlu1 %2088 }
 0xf72   :  { %v2091_v24 = vmul.f32 %v9027_v60, %v2089_v13 }
 0xf74   :  { %v2334_v11 = vpack.c.bf16 %v2091_v24, %v2091_v24 }
 0xf75   :  { %v1977_v14 = vpop.permute.xlu1 %1976 }
 0xf76   :  { %v1979_v16 = vmul.f32 %v7686_v54, %v1977_v14  ;;  %2336 = vrot.lane.b32.xlu0 %v2334_v11, %s8122_s8 }
 0xf78   :  { %v2216_v8 = vpack.c.bf16 %v1979_v16, %v1979_v16  ;;  %v9131_v16 = vld [vmem:[%s10500_s9] ss:$0 sm:$0xff] }
 0xf7a   :  { %6730 = vmatmul.mubr.msk.bf16.vlgmr.msra.gmra.mrb[64].mxu0 %vm129_vm2, %v2216_v8  ;;  %7159 = vmatmul.mubr.msk.bf16.vlgmr.msra.gmra.mrb[68].mxu1 %vm129_vm2, %v2216_v8 }
 0xf7b   :  { %7143 = vmatpush3.bf16.msra.mxu0 %v8980_v43  ;;  %7146 = vmatprep.mubr.msk.bf16.mxu0 %vm8124_vm3, %v10542_v45 }
 0xf7c   :  { %7144 = vmatprep.subr.bf16.mxu0 %v10542_v45  ;;  %2498 = vmatpush1.bf16.msra.mxu1 %v8293_v9 }
 0xf7d   :  { %2529 = vmatprep.mubr.bf16.mxu1 %v8121_v2  ;;  %2615 = vmatprep.subr.bf16.mxu1 %v8810_v48 }
 0xf7f   :  { %7145 = vmatpush3.bf16.msra.mxu0 %v8992_v51 }
 0xf80   :  { %2453 = vmatprep.subr.bf16.mxu0 %v8676_v59 }
 0xfdc   :  { %v2133_v57 = vpop.f32.mrb[60].mxu0  ;;  %v2295_v60 = vpop.f32.mrb[64].mxu1 }
 0xfdd   :  { %v2178_v53 = vadd.f32 %v2177_v50, %v2133_v57  ;;  %v2135_v26 = vpop.f32.mrb[61].mxu0  ;;  %v2297_v55 = vpop.f32.mrb[65].mxu1 }
 0xfde   :  { %v2180_v5 = vadd.f32 %v2179_v61, %v2135_v26  ;;  %v2137_v19 = vpop.f32.mrb[62].mxu0  ;;  %v2299_v28 = vpop.f32.mrb[66].mxu1 }
 0xfdf   :  { %v2138_v62 = vpop.f32.mrb[63].mxu0  ;;  %v2300_v42 = vpop.f32.mrb[67].mxu1 }
 0xfe0   :  { %v9113_v9 = vadd.f32 %v2180_v5, %v8337_v23 }
 0xfe2   :  { %7687 = vtanh.f32 %v9113_v9 }
 0xfe8   :  { %v2337_v1 = vpop.permute.xlu0 %2336 }
 0xfe9   :  { %7147 = vmatmul.mubr.msk.bf16.vlgmr.msra.gmra.mrb[68].mxu0 %vm891_vm4, %v2337_v1 }
 0xfea   :  { %2454 = vmatpush1.bf16.msra.mxu0 %v8683_v30  ;;  %2485 = vmatprep.mubr.bf16.mxu0 %v8121_v2 }
 0xfeb   :  { %2455 = vmatprep.subr.bf16.mxu0 %v8690_v40 }
 0xfec   :  { %v7688_v59 = vpop.eup %7687 }
 0xfed   :  { %2201 = vrot.lane.b32.xlu0 %v7688_v59, %s8122_s8 }
 0xfee   :  { %2456 = vmatpush1.bf16.msra.mxu0 %v8696_v52 }
 0xfef   :  { %2457 = vmatprep.subr.bf16.mxu0 %v8702_v7  ;;  %v2184_v7 = vadd.f32 %v2178_v53, %v8344_v32 }
 0xff1   :  { %v6728_v54 = vmul.f32 -1.442695, %v2184_v7 }
 0xff2   :  { %2458 = vmatpush1.bf16.msra.mxu0 %v8708_v29 }
 0xff3   :  { %2459 = vmatprep.subr.bf16.mxu0 %v8714_v10  ;;  %7689 = vpow2.f32 %v6728_v54 }
 0xff6   :  { %2460 = vmatpush1.bf16.msra.mxu0 %v8720_v41 }
 0xff7   :  { %2574 = vmatprep.subr.bf16.mxu0 %v8832_v49 }
0x104d   :  { %v2254_v30 = vpop.f32.mrb[64].mxu0  ;;  %v2415_v50 = vpop.f32.mrb[68].mxu1 }
0x104e   :  { %v2296_v61 = vadd.f32 %v2295_v60, %v2254_v30  ;;  %v2256_v25 = vpop.f32.mrb[65].mxu0  ;;  %v7160_v40 = vpop.f32.mrb[69].mxu1 }
0x104f   :  { %v2298_v12 = vadd.f32 %v2297_v55, %v2256_v25  ;;  %v2258_v13 = vpop.f32.mrb[66].mxu0  ;;  %v2418_v24 = vpop.f32.mrb[70].mxu1 }
0x1050   :  { %v2259_v11 = vpop.f32.mrb[67].mxu0  ;;  %v7161_v52 = vpop.f32.mrb[71].mxu1  ;;  %v2302_v42 = vadd.f32 %v2296_v61, %v8484_v58 }
0x1051   :  { %v7690_v60 = vpop.eup %7689  ;;  %v9135_v26 = vadd.f32 %v2298_v12, %v8477_v38  ;;  %v6737_v12 = vld [vmem:[%s10535_s29 + $0xe] sm:$0x3] }
0x1052   :  { %v2192_v53 = vadd.f32 1.0, %v7690_v60  ;;  %v6732_v59 = vmul.f32 -1.442695, %v2302_v42  ;;  %v2448_v13 = vpack.c.bf16 %v6737_v12, %v6737_v12 }
0x1054   :  { %6740 = vmatmul.mubr.msk.bf16.vlgmr.msra.gmra.mrb[72].mxu1 %vm183_vm1, %v2448_v13 }
0x1055   :  { %2616 = vmatpush1.bf16.msra.mxu1 %v8852_v21  ;;  %2647 = vmatprep.mubr.bf16.mxu1 %v8121_v2 }
0x1056   :  { %2617 = vmatprep.subr.bf16.mxu1 %v8861_v36 }
0x1059   :  { %2618 = vmatpush1.bf16.msra.mxu1 %v8869_v33 }
0x105a   :  { %2619 = vmatprep.subr.bf16.mxu1 %v8875_v39 }
0x105d   :  { %2620 = vmatpush1.bf16.msra.mxu1 %v8883_v15 }
0x105e   :  { %2621 = vmatprep.subr.bf16.mxu1 %v8889_v17 }
0x105f   :  { %v2202_v19 = vpop.permute.xlu0 %2201 }
0x1061   :  { %2622 = vmatpush1.bf16.msra.mxu1 %v8898_v44 }
0x1062   :  { %7170 = vmatprep.subr.bf16.mxu1 %v10542_v45 }
0x10bc   :  { %v2375_v29 = vpop.f32.mrb[68].mxu0 }
0x10bd   :  { %v2416_v10 = vadd.f32 %v2415_v50, %v2375_v29  ;;  %v7148_v14 = vpop.f32.mrb[69].mxu0 }
0x10be   :  { %v2378_v41 = vpop.f32.mrb[70].mxu0 }
0x10bf   :  { %v2421_v8 = vadd.f32 %v9131_v16, %v2416_v10  ;;  %v7149_v57 = vpop.f32.mrb[71].mxu0 }
0x10c1   :  { %7691 = vtanh.f32 %v2421_v8  ;;  %v6736_v1 = vmul.f32 -1.442695, %v2421_v8  ;;  %v6729_v8 = vmul.f32 -1.442695, %v9113_v9 }
0x10c2   :  { %7693 = vtanh.f32 %v9135_v26 }
0x10c3   :  { %7695 = vrcp.f32 %v2192_v53 }
0x10c4   :  { %7697 = vpow2.f32 %v6736_v1 }
0x10c5   :  { %7699 = vpow2.f32 %v6732_v59 }
0x10cb   :  { %v7692_v55 = vpop.eup %7691 }
0x10cc   :  { %2431 = vrot.lane.b32.xlu1 %v7692_v55, %s8125_s0  ;;  %v7694_v5 = vpop.eup %7693 }
0x10cd   :  { %v7696_v28 = vpop.eup %7695 }
0x10ce   :  { %v2204_v62 = vmul.f32 %v7696_v28, %v2202_v19  ;;  %v7698_v30 = vpop.eup %7697  ;;  %v2199_v29 = vmul.f32 %v7696_v28, %v9038_v47 }
0x10cf   :  { %v2425_v50 = vadd.f32 1.0, %v7698_v30  ;;  %v7700_v25 = vpop.eup %7699 }
0x10d0   :  { %2319 = vrot.lane.b32.xlu1 %v7694_v5, %s8122_s8  ;;  %v2310_v40 = vadd.f32 1.0, %v7700_v25 }
0x10d1   :  { %7701 = vrcp.f32 %v2425_v50 }
0x10d2   :  { %7703 = vrcp.f32 %v2310_v40  ;;  %v6733_v40 = vmul.f32 -1.442695, %v9135_v26 }
0x10d4   :  { %2206 = vrot.lane.b32.xlu1 %v2204_v62, %s8122_s8 }
0x10db   :  { %v9148_v61 = vpop.eup %7701 }
0x10dc   :  { %v7704_v52 = vpop.eup %7703  ;;  %v2429_v47 = vmul.f32 %v9148_v61, %v9047_v0 }
0x10dd   :  { %v2317_v55 = vmul.f32 %v7704_v52, %v9051_v18 }
0x1127   :  { %v2531_v18 = vpop.f32.mrb[72].mxu1 }
0x1128   :  { %v2533_v30 = vpop.f32.mrb[73].mxu1 }
0x1129   :  { %v2535_v50 = vpop.f32.mrb[74].mxu1 }
0x112a   :  { %v2536_v25 = vpop.f32.mrb[75].mxu1 }
0x113e   :  { %v2432_v24 = vpop.permute.xlu1 %2431 }
0x113f   :  { %v2434_v11 = vmul.f32 %v9148_v61, %v2432_v24 }
0x1141   :  { %2436 = vrot.lane.b32.xlu0 %v2434_v11, %s8125_s0 }
0x1142   :  { %v2320_v7 = vpop.permute.xlu1 %2319 }
0x1143   :  { %v2322_v54 = vmul.f32 %v7704_v52, %v2320_v7 }
0x1145   :  { %2324 = vrot.lane.b32.xlu0 %v2322_v54, %s8122_s8 }
0x1146   :  { %v2207_v10 = vpop.permute.xlu1 %2206 }
0x1147   :  { %v9159_v14 = vadd.f32 %v2207_v10, %v2199_v29 }
0x1149   :  { %7705 = vtanh.f32 %v9159_v14 }
0x114a   :  { %7707 = vpow2.f32 %v6729_v8 }
0x1153   :  { %v7706_v41 = vpop.eup %7705 }
0x1154   :  { %2212 = vrot.lane.b32.xlu0 %v7706_v41, %s8122_s8  ;;  %v7708_v53 = vpop.eup %7707 }
0x1155   :  { %v2193_v19 = vadd.f32 1.0, %v7708_v53 }
0x11b3   :  { %v2437_v57 = vpop.permute.xlu0 %2436 }
0x11b4   :  { %v9168_v60 = vadd.f32 %v2437_v57, %v2429_v47 }
0x11b6   :  { %7709 = vtanh.f32 %v9168_v60 }
0x11b7   :  { %v2325_v5 = vpop.permute.xlu0 %2324 }
0x11b8   :  { %v9172_v28 = vadd.f32 %v2325_v5, %v2317_v55 }
0x11ba   :  { %7711 = vtanh.f32 %v9172_v28 }
0x11bb   :  { %7713 = vrcp.f32 %v2193_v19 }
0x11bc   :  { %7715 = vpow2.f32 %v6733_v40 }
0x11c0   :  { %v7710_v9 = vpop.eup %7709 }
0x11c1   :  { %2442 = vrot.lane.b32.xlu1 %v7710_v9, %s8125_s0 }
0x11c4   :  { %v7712_v62 = vpop.eup %7711 }
0x11c5   :  { %2330 = vrot.lane.b32.xlu1 %v7712_v62, %s8122_s8  ;;  %v7714_v0 = vpop.eup %7713 }
0x11c6   :  { %v2213_v42 = vpop.permute.xlu0 %2212  ;;  %v7716_v12 = vpop.eup %7715 }
0x11c7   :  { %v2215_v1 = vmul.f32 %v7714_v0, %v2213_v42  ;;  %v2311_v13 = vadd.f32 1.0, %v7716_v12 }
0x11c9   :  { %v2449_v59 = vpack.c.bf16 %v2215_v1, %v2215_v1  ;;  %7717 = vrcp.f32 %v2311_v13 }
0x11cb   :  { %6738 = vmatmul.mubr.msk.bf16.vlgmr.msra.gmra.mrb[72].mxu0 %vm129_vm2, %v2449_v59  ;;  %6744 = vmatmul.mubr.msk.bf16.vlgmr.msra.gmra.mrb[76].mxu1 %vm129_vm2, %v2449_v59 }
0x11cc   :  { %2575 = vmatpush1.bf16.msra.mxu0 %v8920_v27  ;;  %7171 = vmatpush3.bf16.msra.mxu1 %v9062_v35 }
0x11cd   :  { %2576 = vmatprep.subr.bf16.mxu0 %v8927_v37  ;;  %7172 = vmatprep.subr.bf16.mxu1 %v10542_v45 }
0x11ce   :  { %2606 = vmatprep.mubr.bf16.mxu0 %v8121_v2  ;;  %7178 = vmatprep.mubr.msk.bf16.mxu1 %vm8124_vm3, %v10542_v45 }
0x11d0   :  { %2577 = vmatpush1.bf16.msra.mxu0 %v8937_v34  ;;  %7173 = vmatpush3.bf16.msra.mxu1 %v9074_v56 }
0x11d1   :  { %2578 = vmatprep.subr.bf16.mxu0 %v8944_v6  ;;  %7174 = vmatprep.subr.bf16.mxu1 %v10542_v45 }
0x11d3   :  { %v7718_v7 = vpop.eup %7717 }
0x11d4   :  { %2579 = vmatpush1.bf16.msra.mxu0 %v8951_v46  ;;  %7175 = vmatpush3.bf16.msra.mxu1 %v9083_v63 }
0x11d5   :  { %2580 = vmatprep.subr.bf16.mxu0 %v8958_v22  ;;  %7176 = vmatprep.subr.bf16.mxu1 %v10542_v45 }
0x11d8   :  { %2581 = vmatpush1.bf16.msra.mxu0 %v8965_v3  ;;  %7177 = vmatpush3.bf16.msra.mxu1 %v9092_v4 }
0x11d9   :  { %7162 = vmatprep.subr.bf16.mxu0 %v10542_v45  ;;  %2849 = vmatprep.subr.bf16.mxu1 %v8810_v48 }
0x1233   :  { %v2443_v24 = vpop.permute.xlu1 %2442 }
0x1234   :  { %v2445_v11 = vmul.f32 %v9148_v61, %v2443_v24 }
0x1236   :  { %v2688_v52 = vpack.c.bf16 %v2445_v11, %v2445_v11 }
0x1237   :  { %v2331_v54 = vpop.permute.xlu1 %2330 }
0x1238   :  { %v2333_v29 = vmul.f32 %v7718_v7, %v2331_v54  ;;  %2690 = vrot.lane.b32.xlu0 %v2688_v52, %s8122_s8 }
0x123a   :  { %v2570_v48 = vpack.c.bf16 %v2333_v29, %v2333_v29 }
0x123c   :  { %6743 = vmatmul.mubr.msk.bf16.vlgmr.msra.gmra.mrb[76].mxu0 %vm129_vm2, %v2570_v48  ;;  %7179 = vmatmul.mubr.msk.bf16.vlgmr.msra.gmra.mrb[80].mxu1 %vm129_vm2, %v2570_v48 }
0x123d   :  { %7163 = vmatpush3.bf16.msra.mxu0 %v8980_v43  ;;  %7166 = vmatprep.mubr.msk.bf16.mxu0 %vm8124_vm3, %v10542_v45 }
0x123e   :  { %7164 = vmatprep.subr.bf16.mxu0 %v10542_v45  ;;  %2850 = vmatpush1.bf16.msra.mxu1 %v8852_v21 }
0x123f   :  { %2851 = vmatprep.subr.bf16.mxu1 %v8861_v36  ;;  %2881 = vmatprep.mubr.bf16.mxu1 %v8121_v2 }
0x1241   :  { %7165 = vmatpush3.bf16.msra.mxu0 %v8992_v51 }
0x1242   :  { %2805 = vmatprep.subr.bf16.mxu0 %v8832_v49  ;;  %2852 = vmatpush1.bf16.msra.mxu1 %v8869_v33 }
0x1243   :  { %2853 = vmatprep.subr.bf16.mxu1 %v8875_v39 }
0x1246   :  { %2854 = vmatpush1.bf16.msra.mxu1 %v8883_v15 }
0x1247   :  { %2855 = vmatprep.subr.bf16.mxu1 %v8889_v17 }
0x124a   :  { %2856 = vmatpush1.bf16.msra.mxu1 %v8898_v44 }
0x124b   :  { %7202 = vmatprep.subr.bf16.mxu1 %v10542_v45 }
0x129e   :  { %v2487_v21 = vpop.f32.mrb[72].mxu0  ;;  %v2649_v36 = vpop.f32.mrb[76].mxu1 }
0x129f   :  { %v9218_v26 = vadd.f32 %v2531_v18, %v2487_v21  ;;  %v2489_v61 = vpop.f32.mrb[73].mxu0  ;;  %v2651_v10 = vpop.f32.mrb[77].mxu1 }
0x12a0   :  { %v2534_v41 = vadd.f32 %v2533_v30, %v2489_v61  ;;  %v2491_v49 = vpop.f32.mrb[74].mxu0  ;;  %v2653_v8 = vpop.f32.mrb[78].mxu1 }
0x12a1   :  { %v2492_v33 = vpop.f32.mrb[75].mxu0  ;;  %v2654_v47 = vpop.f32.mrb[79].mxu1  ;;  %v2538_v29 = vadd.f32 %v9218_v26, %v8344_v32 }
0x12a2   :  { %v9235_v30 = vadd.f32 %v2534_v41, %v8337_v23 }
0x12a3   :  { %v6741_v48 = vmul.f32 -1.442695, %v2538_v29 }
0x12aa   :  { %v2691_v39 = vpop.permute.xlu0 %2690 }
0x12ab   :  { %7167 = vmatmul.mubr.msk.bf16.vlgmr.msra.gmra.mrb[80].mxu0 %vm891_vm4, %v2691_v39 }
0x12ac   :  { %2806 = vmatpush1.bf16.msra.mxu0 %v8920_v27  ;;  %2837 = vmatprep.mubr.bf16.mxu0 %v8121_v2 }
0x12ad   :  { %2807 = vmatprep.subr.bf16.mxu0 %v8927_v37 }
0x12b0   :  { %2808 = vmatpush1.bf16.msra.mxu0 %v8937_v34 }
0x12b1   :  { %2809 = vmatprep.subr.bf16.mxu0 %v8944_v6 }
0x12b4   :  { %2810 = vmatpush1.bf16.msra.mxu0 %v8951_v46 }
0x12b5   :  { %2811 = vmatprep.subr.bf16.mxu0 %v8958_v22 }
0x12b8   :  { %2812 = vmatpush1.bf16.msra.mxu0 %v8965_v3 }
0x12b9   :  { %7182 = vmatprep.subr.bf16.mxu0 %v10542_v45 }
0x130f   :  { %v2608_v15 = vpop.f32.mrb[76].mxu0  ;;  %v2769_v17 = vpop.f32.mrb[80].mxu1 }
0x1310   :  { %v2650_v44 = vadd.f32 %v2649_v36, %v2608_v15  ;;  %v2610_v27 = vpop.f32.mrb[77].mxu0  ;;  %v7180_v57 = vpop.f32.mrb[81].mxu1 }
0x1311   :  { %v2652_v53 = vadd.f32 %v2651_v10, %v2610_v27  ;;  %v2612_v55 = vpop.f32.mrb[78].mxu0  ;;  %v2772_v37 = vpop.f32.mrb[82].mxu1 }
0x1312   :  { %v2613_v5 = vpop.f32.mrb[79].mxu0  ;;  %v7181_v34 = vpop.f32.mrb[83].mxu1  ;;  %v2656_v22 = vadd.f32 %v2650_v44, %v8484_v58 }
0x1313   :  { %v2657_v6 = vadd.f32 %v2652_v53, %v8477_v38 }
0x1314   :  { %v6745_v3 = vmul.f32 -1.442695, %v2656_v22 }
0x1315   :  { %7719 = vtanh.f32 %v2657_v6  ;;  %v6746_v39 = vmul.f32 -1.442695, %v2657_v6 }
0x1316   :  { %7721 = vpow2.f32 %v6745_v3 }
0x131f   :  { %v7720_v46 = vpop.eup %7719 }
0x1320   :  { %2673 = vrot.lane.b32.xlu0 %v7720_v46, %s8122_s8  ;;  %v7722_v42 = vpop.eup %7721 }
0x1321   :  { %v2664_v18 = vadd.f32 1.0, %v7722_v42 }
0x137e   :  { %v2729_v19 = vpop.f32.mrb[80].mxu0 }
0x137f   :  { %v2770_v9 = vadd.f32 %v2769_v17, %v2729_v19  ;;  %v7168_v62 = vpop.f32.mrb[81].mxu0 }
0x1380   :  { %v2732_v0 = vpop.f32.mrb[82].mxu0 }
0x1381   :  { %v2775_v1 = vadd.f32 %v9131_v16, %v2770_v9  ;;  %v7169_v59 = vpop.f32.mrb[83].mxu0 }
0x1383   :  { %7723 = vtanh.f32 %v2775_v1  ;;  %v6749_v24 = vmul.f32 -1.442695, %v2775_v1 }
0x1384   :  { %7725 = vrcp.f32 %v2664_v18 }
0x1385   :  { %7727 = vtanh.f32 %v9235_v30 }
0x1386   :  { %7729 = vpow2.f32 %v6749_v24 }
0x138d   :  { %v7724_v50 = vpop.eup %7723 }
0x138e   :  { %2785 = vrot.lane.b32.xlu1 %v7724_v50, %s8125_s0  ;;  %v7726_v25 = vpop.eup %7725 }
0x138f   :  { %v7728_v13 = vpop.eup %7727  ;;  %v2671_v10 = vmul.f32 %v7726_v25, %v9172_v28 }
0x1390   :  { %v7730_v11 = vpop.eup %7729 }
0x1391   :  { %v2779_v52 = vadd.f32 1.0, %v7730_v11 }
0x1392   :  { %v2674_v40 = vpop.permute.xlu0 %2673 }
0x1393   :  { %v2676_v12 = vmul.f32 %v7726_v25, %v2674_v40  ;;  %7731 = vrcp.f32 %v2779_v52 }
0x1394   :  { %7733 = vpow2.f32 %v6741_v48 }
0x1395   :  { %2678 = vrot.lane.b32.xlu0 %v2676_v12, %s8122_s8 }
0x1399   :  { %2555 = vrot.lane.b32.xlu0 %v7728_v13, %s8122_s8 }
0x139d   :  { %v7732_v23 = vpop.eup %7731 }
0x139e   :  { %v2783_v21 = vmul.f32 %v7732_v23, %v9168_v60  ;;  %v7734_v49 = vpop.eup %7733 }
0x139f   :  { %v2546_v33 = vadd.f32 1.0, %v7734_v49 }
0x1400   :  { %v2786_v7 = vpop.permute.xlu1 %2785 }
0x1401   :  { %v2788_v54 = vmul.f32 %v7732_v23, %v2786_v7 }
0x1403   :  { %2790 = vrot.lane.b32.xlu1 %v2788_v54, %s8125_s0 }
0x1407   :  { %v2679_v36 = vpop.permute.xlu0 %2678 }
0x1408   :  { %v9248_v8 = vadd.f32 %v2679_v36, %v2671_v10 }
0x140b   :  { %v2556_v60 = vpop.permute.xlu0 %2555 }
0x1475   :  { %v2791_v61 = vpop.permute.xlu1 %2790 }
0x1476   :  { %v9246_v41 = vadd.f32 %v2791_v61, %v2783_v21 }
0x1478   :  { %7735 = vtanh.f32 %v9246_v41 }
0x1479   :  { %7737 = vtanh.f32 %v9248_v8 }
0x147a   :  { %7739 = vrcp.f32 %v2546_v33 }
0x147b   :  { %7741 = vpow2.f32 %v6746_v39 }
0x1482   :  { %v7736_v32 = vpop.eup %7735 }
0x1483   :  { %2796 = vrot.lane.b32.xlu1 %v7736_v32, %s8125_s0  ;;  %v7738_v26 = vpop.eup %7737 }
0x1484   :  { %v7740_v47 = vpop.eup %7739 }
0x1485   :  { %v2558_v28 = vmul.f32 %v7740_v47, %v2556_v60  ;;  %v7742_v15 = vpop.eup %7741  ;;  %v2553_v34 = vmul.f32 %v7740_v47, %v9159_v14  ;;  %v6742_v14 = vmul.f32 -1.442695, %v9235_v30 }
0x1486   :  { %v2665_v17 = vadd.f32 1.0, %v7742_v15 }
0x1487   :  { %2684 = vrot.lane.b32.xlu1 %v7738_v26, %s8122_s8 }
0x1488   :  { %7743 = vrcp.f32 %v2665_v17 }
0x148b   :  { %2560 = vrot.lane.b32.xlu1 %v2558_v28, %s8122_s8 }
0x1492   :  { %v7744_v53 = vpop.eup %7743 }
0x14f5   :  { %v2797_v44 = vpop.permute.xlu1 %2796 }
0x14f6   :  { %v2799_v27 = vmul.f32 %v7732_v23, %v2797_v44 }
0x14f8   :  { %v2922_v57 = vpack.c.bf16 %v2799_v27, %v2799_v27 }
0x14f9   :  { %v2685_v55 = vpop.permute.xlu1 %2684 }
0x14fa   :  { %v2687_v37 = vmul.f32 %v7744_v53, %v2685_v55  ;;  %2924 = vrot.lane.b32.xlu0 %v2922_v57, %s8122_s8 }
0x14fc   :  { %v2801_v5 = vpack.c.bf16 %v2687_v37, %v2687_v37 }
0x14fd   :  { %v2561_v46 = vpop.permute.xlu1 %2560 }
0x14fe   :  { %v2563_v22 = vadd.f32 %v2561_v46, %v2553_v34  ;;  %6750 = vmatmul.mubr.msk.bf16.vlgmr.msra.gmra.mrb[84].mxu0 %vm129_vm2, %v2801_v5 }
0x14ff   :  { %7183 = vmatpush3.bf16.msra.mxu0 %v8980_v43  ;;  %7186 = vmatprep.mubr.msk.bf16.mxu0 %vm8124_vm3, %v10542_v45 }
0x1500   :  { %7745 = vtanh.f32 %v2563_v22  ;;  %7184 = vmatprep.subr.bf16.mxu0 %v10542_v45 }
0x1501   :  { %7747 = vpow2.f32 %v6742_v14 }
0x1503   :  { %7185 = vmatpush3.bf16.msra.mxu0 %v8992_v51 }
0x1504   :  { %7190 = vmatprep.subr.bf16.mxu0 %v10542_v45 }
0x150a   :  { %v7746_v6 = vpop.eup %7745 }
0x150b   :  { %2566 = vrot.lane.b32.xlu0 %v7746_v6, %s8122_s8  ;;  %v7748_v3 = vpop.eup %7747 }
0x150c   :  { %v2547_v9 = vadd.f32 1.0, %v7748_v3 }
0x150e   :  { %7749 = vrcp.f32 %v2547_v9 }
0x1518   :  { %v7750_v62 = vpop.eup %7749 }
0x156c   :  { %v2925_v19 = vpop.permute.xlu0 %2924 }
0x156d   :  { %7187 = vmatmul.mubr.msk.bf16.vlgmr.msra.gmra.mrb[88].mxu0 %vm891_vm4, %v2925_v19 }
0x156e   :  { %7191 = vmatpush3.bf16.msra.mxu0 %v9062_v35  ;;  %7198 = vmatprep.mubr.msk.bf16.mxu0 %vm8124_vm3, %v10542_v45 }
0x156f   :  { %7192 = vmatprep.subr.bf16.mxu0 %v10542_v45 }
0x1572   :  { %7193 = vmatpush3.bf16.msra.mxu0 %v9074_v56 }
0x1573   :  { %7194 = vmatprep.subr.bf16.mxu0 %v10542_v45 }
0x1576   :  { %7195 = vmatpush3.bf16.msra.mxu0 %v9083_v63 }
0x1577   :  { %7196 = vmatprep.subr.bf16.mxu0 %v10542_v45 }
0x157a   :  { %7197 = vmatpush3.bf16.msra.mxu0 %v9092_v4 }
0x157b   :  { %7222 = vmatprep.subr.bf16.mxu0 %v10542_v45 }
0x157d   :  { %7199 = vmatmul.mubr.msk.bf16.vlgmr.msra.gmra.mrb[92].mxu0 %vm129_vm2, %v2801_v5  ;;  %v2567_v0 = vpop.permute.xlu0 %2566 }
0x157e   :  { %v2569_v42 = vmul.f32 %v7750_v62, %v2567_v0  ;;  %7226 = vmatprep.mubr.msk.bf16.mxu0 %vm8124_vm3, %v10542_v45 }
0x1580   :  { %v2800_v1 = vpack.c.bf16 %v2569_v42, %v2569_v42 }
0x1582   :  { %6751 = vmatmul.mubr.msk.bf16.vlgmr.msra.gmra.mrb[84].mxu1 %vm129_vm2, %v2800_v1 }
0x1583   :  { %7203 = vmatpush3.bf16.msra.mxu1 %v8980_v43  ;;  %7206 = vmatprep.mubr.msk.bf16.mxu1 %vm8124_vm3, %v10542_v45 }
0x1584   :  { %7204 = vmatprep.subr.bf16.mxu1 %v10542_v45 }
0x1587   :  { %7205 = vmatpush3.bf16.msra.mxu1 %v8992_v51 }
0x1588   :  { %7210 = vmatprep.subr.bf16.mxu1 %v10542_v45 }
0x15d1   :  { %v2839_v59 = vpop.f32.mrb[84].mxu0 }
0x15d2   :  { %v2841_v18 = vpop.f32.mrb[85].mxu0 }
0x15d3   :  { %v2843_v30 = vpop.f32.mrb[86].mxu0 }
0x15d4   :  { %v2844_v50 = vpop.f32.mrb[87].mxu0 }
0x1640   :  { %v2963_v25 = vpop.f32.mrb[88].mxu0 }
0x1641   :  { %v7188_v40 = vpop.f32.mrb[89].mxu0 }
0x1642   :  { %v2966_v12 = vpop.f32.mrb[90].mxu0 }
0x1643   :  { %v7189_v13 = vpop.f32.mrb[91].mxu0 }
0x1650   :  { %v3003_v24 = vpop.f32.mrb[92].mxu0 }
0x1651   :  { %v3004_v11 = vadd.f32 %v3003_v24, %v2963_v25  ;;  %v7200_v43 = vpop.f32.mrb[93].mxu0 }
0x1652   :  { %v3006_v52 = vpop.f32.mrb[94].mxu0 }
0x1653   :  { %v3009_v23 = vadd.f32 %v9131_v16, %v3004_v11  ;;  %v7201_v7 = vpop.f32.mrb[95].mxu0 }
0x1655   :  { %7751 = vtanh.f32 %v3009_v23  ;;  %v2883_v54 = vpop.f32.mrb[84].mxu1  ;;  %v6756_v33 = vmul.f32 -1.442695, %v3009_v23 }
0x1656   :  { %v2884_v51 = vadd.f32 %v2883_v54, %v2839_v59  ;;  %v2885_v29 = vpop.f32.mrb[85].mxu1 }
0x1657   :  { %v2886_v48 = vadd.f32 %v2885_v29, %v2841_v18  ;;  %v2887_v21 = vpop.f32.mrb[86].mxu1  ;;  %v7445_v29 = vld [vmem:[%s10501_s10 + $0x8] sm:$0xff]  }
0x1658   :  { %v2888_v36 = vpop.f32.mrb[87].mxu1  ;;  %v2890_v32 = vadd.f32 %v2884_v51, %v8484_v58  ;;  %v9328_v21 = vld [vmem:[%s10504_s13] sm:$0xff]  }
0x1659   :  { %v2891_v61 = vadd.f32 %v2886_v48, %v8477_v38  ;;  %v9334_v36 = vld [vmem:[%s10504_s13 + $0x8] sm:$0xff]  }
0x165a   :  { %v6752_v26 = vmul.f32 -1.442695, %v2890_v32 }
0x165b   :  { %7753 = vtanh.f32 %v2891_v61 }
0x165c   :  { %7755 = vpow2.f32 %v6756_v33  ;;  %v7447_v33 = vld [vmem:[%s10503_s12] sm:$0xff]  }
0x165d   :  { %7757 = vpow2.f32 %v6752_v26 }
0x165f   :  { %v7752_v10 = vpop.eup %7751 }
0x1660   :  { %3019 = vrot.lane.b32.xlu1 %v7752_v10, %s8125_s0 }
0x1665   :  { %v7754_v49 = vpop.eup %7753 }
0x1666   :  { %2907 = vrot.lane.b32.xlu1 %v7754_v49, %s8122_s8  ;;  %v7756_v60 = vpop.eup %7755 }
0x1667   :  { %v3013_v47 = vadd.f32 1.0, %v7756_v60  ;;  %v7758_v28 = vpop.eup %7757 }
0x1668   :  { %v2898_v39 = vadd.f32 1.0, %v7758_v28 }
0x1669   :  { %7759 = vrcp.f32 %v3013_v47 }
0x166a   :  { %7761 = vrcp.f32 %v2898_v39  ;;  %v6760_v39 = vld [vmem:[%s10502_s11] ss:$0 sm:$0xff] }
0x1673   :  { %v7760_v38 = vpop.eup %7759 }
0x1674   :  { %v7762_v44 = vpop.eup %7761  ;;  %v3017_v58 = vmul.f32 %v7760_v38, %v9246_v41  ;;  %v6753_v41 = vmul.f32 -1.442695, %v2891_v61 }
0x1675   :  { %v2905_v37 = vmul.f32 %v7762_v44, %v9248_v8 }
0x16d2   :  { %v3020_v15 = vpop.permute.xlu1 %3019 }
0x16d3   :  { %v3022_v17 = vmul.f32 %v7760_v38, %v3020_v15 }
0x16d5   :  { %3024 = vrot.lane.b32.xlu0 %v3022_v17, %s8125_s0 }
0x16d8   :  { %v2908_v27 = vpop.permute.xlu1 %2907 }
0x16d9   :  { %v2910_v57 = vmul.f32 %v7762_v44, %v2908_v27 }
0x16db   :  { %2912 = vrot.lane.b32.xlu1 %v2910_v57, %s8122_s8 }
0x1747   :  { %v3025_v53 = vpop.permute.xlu0 %3024 }
0x1748   :  { %v3027_v55 = vadd.f32 %v3025_v53, %v3017_v58  ;;  %v9361_v53 = vld [vmem:[%s10505_s14] ss:$0 sm:$0xff] }
0x174a   :  { %7763 = vtanh.f32 %v3027_v55 }
0x174d   :  { %v2913_v5 = vpop.permute.xlu1 %2912 }
0x174e   :  { %v2915_v34 = vadd.f32 %v2913_v5, %v2905_v37 }
0x1750   :  { %7765 = vtanh.f32 %v2915_v34 }
0x1751   :  { %7767 = vpow2.f32 %v6753_v41 }
0x1754   :  { %v7764_v46 = vpop.eup %7763 }
0x1755   :  { %3030 = vrot.lane.b32.xlu0 %v7764_v46, %s8125_s0 }
0x175a   :  { %v7766_v22 = vpop.eup %7765 }
0x175b   :  { %2918 = vrot.lane.b32.xlu1 %v7766_v22, %s8122_s8  ;;  %v7768_v19 = vpop.eup %7767 }
0x175c   :  { %v2899_v9 = vadd.f32 1.0, %v7768_v19 }
0x175e   :  { %7769 = vrcp.f32 %v2899_v9 }
0x1768   :  { %v7770_v0 = vpop.eup %7769 }
0x17c7   :  { %v3031_v6 = vpop.permute.xlu0 %3030 }
0x17c8   :  { %v3033_v14 = vmul.f32 %v7760_v38, %v3031_v6 }
0x17ca   :  { %v3035_v3 = vpack.c.bf16 %v3033_v14, %v3033_v14 }
0x17cc   :  { %3037 = vrot.lane.b32.xlu0 %v3035_v3, %s8122_s8 }
0x17cd   :  { %v2919_v62 = vpop.permute.xlu1 %2918 }
0x17ce   :  { %v2921_v42 = vmul.f32 %v7770_v0, %v2919_v62 }
0x17d0   :  { %v3034_v1 = vpack.c.bf16 %v2921_v42, %v2921_v42  ;;  %v9373_v42 = vld [vmem:[%s10507_s16 + $0x4] ss:$8 sps:$4 sm:$0xff]  }
0x183e   :  { %v3038_v8 = vpop.permute.xlu0 %3037 }
0x183f   :  { %7207 = vmatmul.mubr.msk.bf16.vlgmr.msra.gmra.mrb[88].mxu1 %vm891_vm4, %v3038_v8 }
0x1840   :  { %7211 = vmatpush3.bf16.msra.mxu1 %v9062_v35  ;;  %7218 = vmatprep.mubr.msk.bf16.mxu1 %vm8124_vm3, %v10542_v45 }
0x1841   :  { %7212 = vmatprep.subr.bf16.mxu1 %v10542_v45 }
0x1844   :  { %7213 = vmatpush3.bf16.msra.mxu1 %v9074_v56 }
0x1845   :  { %7214 = vmatprep.subr.bf16.mxu1 %v10542_v45 }
0x1848   :  { %7215 = vmatpush3.bf16.msra.mxu1 %v9083_v63 }
0x1849   :  { %7216 = vmatprep.subr.bf16.mxu1 %v10542_v45 }
0x184c   :  { %7217 = vmatpush3.bf16.msra.mxu1 %v9092_v4 }
0x184d   :  { %7236 = vmatprep.subr.bf16.mxu1 %v10542_v45 }
0x184f   :  { %7219 = vmatmul.mubr.msk.bf16.vlgmr.msra.gmra.mrb[92].mxu1 %vm129_vm2, %v3034_v1  ;;  %v9378_v1 = vld [vmem:[%s10507_s16] ss:$8 sps:$4 sm:$0xff]  }
0x1850   :  { %7240 = vmatprep.mubr.msk.bf16.mxu1 %vm8124_vm3, %v10542_v45  ;;  %7237 = vmatpush3.bf16.msra.mxu1 %v9328_v21 }
0x1851   :  { %7238 = vmatprep.subr.bf16.mxu1 %v10542_v45 }
0x1854   :  { %7239 = vmatpush3.bf16.msra.mxu1 %v9334_v36 }
0x1855   :  { %3489 = vmatprep.subr.bf16.mxu1 %v9373_v42 }
0x1857   :  { %7241 = vmatmul.mubr.bf16.vlgmr.msra.gmra.mrb[96].mxu1 %v8121_v2 }
0x1858   :  { %3521 = vmatprep.mubr.bf16.mxu1 %v8121_v2  ;;  %3490 = vmatpush1.bf16.msra.mxu1 %v9378_v1 }
0x1912   :  { %v3076_v35 = vpop.f32.mrb[88].mxu1 }
0x1913   :  { %v7208_v56 = vpop.f32.mrb[89].mxu1 }
0x1914   :  { %v3079_v59 = vpop.f32.mrb[90].mxu1  ;;  %v9390_v56 = vld [vmem:[%s10507_s16 + $0x10] ss:$8 sps:$4 sm:$0xff]  }
0x1915   :  { %v7209_v18 = vpop.f32.mrb[91].mxu1 }
0x1916   :  { %v9398_v18 = vld [vmem:[%s10507_s16 + $0x24] ss:$8 sps:$4 sm:$0xff]  }
0x1922   :  { %v3119_v30 = vpop.f32.mrb[92].mxu1 }
0x1923   :  { %v3120_v50 = vadd.f32 %v3119_v30, %v3076_v35  ;;  %v7220_v63 = vpop.f32.mrb[93].mxu1  ;;  %v9383_v35 = vld [vmem:[%s10507_s16 + $0x14] ss:$8 sps:$4 sm:$0xff]   ;;  %v9403_v30 = vld [vmem:[%s10506_s15 + $0x4] ss:$8 sps:$4 sm:$0xff]  }
0x1924   :  { %v3122_v25 = vpop.f32.mrb[94].mxu1  ;;  %3491 = vmatprep.subr.bf16.mxu1 %v9383_v35  ;;  %v9416_v63 = vld [vmem:[%s10507_s16 + $0x34] ss:$8 sps:$4 sm:$0xff]  }
0x1925   :  { %v3125_v40 = vadd.f32 %v9131_v16, %v3120_v50  ;;  %v7221_v12 = vpop.f32.mrb[95].mxu1  ;;  %v7444_v16 = vld [vmem:[%s10501_s10] sm:$0xff]   ;;  %3492 = vmatpush1.bf16.msra.mxu1 %v9390_v56  ;;  %v9421_v25 = vld [vmem:[%s10507_s16 + $0x30] ss:$8 sps:$4 sm:$0xff]  }
0x1926   :  { %7223 = vmatpush3.bf16.msra.mxu0 %v7444_v16  ;;  %v9408_v50 = vld [vmem:[%s10507_s16 + $0x20] ss:$8 sps:$4 sm:$0xff]   ;;  %3493 = vmatprep.subr.bf16.mxu1 %v9398_v18 }
0x1927   :  { %7771 = vtanh.f32 %v3125_v40  ;;  %v6759_v13 = vmul.f32 -1.442695, %v3125_v40  ;;  %7224 = vmatprep.subr.bf16.mxu0 %v10542_v45 }
0x1929   :  { %7773 = vpow2.f32 %v6759_v13  ;;  %3494 = vmatpush1.bf16.msra.mxu1 %v9408_v50  ;;  %v9439_v13 = vld [vmem:[%s10506_s15] ss:$8 sps:$4 sm:$0xff]  }
0x192a   :  { %7225 = vmatpush3.bf16.msra.mxu0 %v7445_v29  ;;  %v3325_v26 = vpop.f32.mrb[96].mxu1  ;;  %3495 = vmatprep.subr.bf16.mxu1 %v9416_v63 }
0x192b   :  { %7230 = vmatprep.subr.bf16.mxu0 %v10542_v45  ;;  %v7242_v60 = vpop.f32.mrb[97].mxu1 }
0x192c   :  { %v3328_v47 = vpop.f32.mrb[98].mxu1 }
0x192d   :  { %v7243_v28 = vpop.f32.mrb[99].mxu1  ;;  %3496 = vmatpush1.bf16.msra.mxu1 %v9421_v25 }
0x192e   :  { %3712 = vmatprep.subr.bf16.mxu1 %v9373_v42 }
0x1930   :  { %3522 = vmatmul.mubr.bf16.vlgmr.msra.gmra.mrb[100].mxu1 %v8121_v2 }
0x1931   :  { %v7772_v4 = vpop.eup %7771  ;;  %3713 = vmatpush1.bf16.msra.mxu1 %v9378_v1  ;;  %3744 = vmatprep.mubr.bf16.mxu1 %v8121_v2 }
0x1932   :  { %3135 = vrot.lane.b32.xlu0 %v7772_v4, %s8125_s0  ;;  %3714 = vmatprep.subr.bf16.mxu1 %v9383_v35 }
0x1933   :  { %v7774_v24 = vpop.eup %7773 }
0x1934   :  { %v3129_v11 = vadd.f32 1.0, %v7774_v24  ;;  %v9444_v24 = vld [vmem:[%s10506_s15 + $0x14] ss:$8 sps:$4 sm:$0xff]  }
0x1935   :  { %3715 = vmatpush1.bf16.msra.mxu1 %v9390_v56 }
0x1936   :  { %7775 = vrcp.f32 %v3129_v11  ;;  %3716 = vmatprep.subr.bf16.mxu1 %v9398_v18 }
0x1939   :  { %3717 = vmatpush1.bf16.msra.mxu1 %v9408_v50 }
0x193a   :  { %3718 = vmatprep.subr.bf16.mxu1 %v9416_v63 }
0x193d   :  { %3719 = vmatpush1.bf16.msra.mxu1 %v9421_v25 }
0x1940   :  { %v7776_v43 = vpop.eup %7775 }
0x1941   :  { %v3133_v7 = vmul.f32 %v7776_v43, %v3027_v55 }
0x19a4   :  { %v3136_v52 = vpop.permute.xlu0 %3135 }
0x19a5   :  { %v3138_v23 = vmul.f32 %v7776_v43, %v3136_v52 }
0x19a7   :  { %3140 = vrot.lane.b32.xlu1 %v3138_v23, %s8125_s0 }
0x1a03   :  { %v3523_v52 = vpop.f32.mrb[100].mxu1 }
0x1a04   :  { %v3525_v23 = vpop.f32.mrb[101].mxu1 }
0x1a19   :  { %v3141_v54 = vpop.permute.xlu1 %3140 }
0x1a1a   :  { %v3143_v51 = vadd.f32 %v3141_v54, %v3133_v7  ;;  %v3527_v7 = vpop.f32.mrb[102].mxu1 }
0x1a1b   :  { %v3528_v54 = vpop.f32.mrb[103].mxu1  ;;  %v9497_v7 = vld [vmem:[%s10510_s19 + $0x4] ss:$8 sps:$4 sm:$0xff]  }
0x1a1c   :  { %7777 = vtanh.f32 %v3143_v51  ;;  %v9502_v54 = vld [vmem:[%s10509_s18 + $0x4] ss:$8 sps:$4 sm:$0xff]  }
0x1a1d   :  { %3963 = vmatprep.subr.bf16.mxu1 %v9502_v54 }
0x1a26   :  { %v7778_v48 = vpop.eup %7777 }
0x1a27   :  { %3146 = vrot.lane.b32.xlu0 %v7778_v48, %s8125_s0 }
0x1a99   :  { %v3147_v61 = vpop.permute.xlu0 %3146 }
0x1a9a   :  { %v3149_v10 = vmul.f32 %v7776_v43, %v3147_v61  ;;  %v9451_v43 = vld [vmem:[%s10506_s15 + $0x10] ss:$8 sps:$4 sm:$0xff]  }
0x1a9c   :  { %v3150_v49 = vpack.c.bf16 %v3149_v10, %v3149_v10 }
0x1a9e   :  { %3163 = vrot.lane.b32.xlu1 %v3150_v49, %s8122_s8 }
0x1b10   :  { %v3164_v32 = vpop.permute.xlu1 %3163 }
0x1b11   :  { %7227 = vmatmul.mubr.msk.bf16.vlgmr.msra.gmra.mrb[96].mxu0 %vm891_vm4, %v3164_v32 }
0x1b12   :  { %7231 = vmatpush3.bf16.msra.mxu0 %v7447_v33  ;;  %7232 = vmatprep.mubr.msk.bf16.mxu0 %vm8124_vm3, %v10542_v45 }
0x1b13   :  { %7244 = vmatprep.subr.bf16.mxu0 %v10542_v45 }
0x1be4   :  { %v3214_v38 = vpop.f32.mrb[96].mxu0 }
0x1be5   :  { %v3215_v15 = vadd.f32 %v6760_v39, %v3214_v38  ;;  %v7228_v17 = vpop.f32.mrb[97].mxu0 }
0x1be6   :  { %v3217_v44 = vpop.f32.mrb[98].mxu0 }
0x1be7   :  { %v3222_v27 = vpack.c.bf16 %v3215_v15, %v3215_v15  ;;  %v7229_v57 = vpop.f32.mrb[99].mxu0  ;;  %3221 = vst.msk [vmem:[#allocation2] sm:$0x3] %vm3220_vm5, %v3215_v15 }
0x1be8   :  { %v3591_v57 = vld [vmem:[%s10508_s17] sm:$0x3] }
0x1be9   :  { %7233 = vmatmul.mubr.msk.bf16.vlgmr.msra.gmra.mrb[100].mxu0 %vm3231_vm6, %v3222_v27 }
0x1bea   :  { %7245 = vmatpush3.bf16.msra.mxu0 %v9328_v21  ;;  %7248 = vmatprep.mubr.msk.bf16.mxu0 %vm8124_vm3, %v10542_v45 }
0x1beb   :  { %7246 = vmatprep.subr.bf16.mxu0 %v10542_v45 }
0x1bee   :  { %7247 = vmatpush3.bf16.msra.mxu0 %v9334_v36 }
0x1bef   :  { %3550 = vmatprep.subr.bf16.mxu0 %v9403_v30 }
0x1cbc   :  { %v9356_v58 = vpop.f32.mrb[100].mxu0 }
0x1cbd   :  { %v3331_v55 = vadd.f32 %v3325_v26, %v9356_v58  ;;  %v7234_v37 = vpop.f32.mrb[101].mxu0 }
0x1cbe   :  { %v3272_v5 = vpop.f32.mrb[102].mxu0 }
0x1cbf   :  { %v3339_v34 = vadd.f32 %v9361_v53, %v3331_v55  ;;  %v7235_v46 = vpop.f32.mrb[103].mxu0  ;;  %v9472_v55 = vrot.slane %v3591_v57, %v8331_v20 }
0x1cc1   :  { %7779 = vtanh.f32 %v3339_v34  ;;  %v6769_v6 = vmul.f32 -1.442695, %v3339_v34 }
0x1cc3   :  { %7781 = vpow2.f32 %v6769_v6 }
0x1ccb   :  { %v7780_v22 = vpop.eup %7779 }
0x1ccc   :  { %3349 = vrot.lane.b32.xlu0 %v7780_v22, %s8125_s0 }
0x1ccd   :  { %v7782_v14 = vpop.eup %7781 }
0x1cce   :  { %v3343_v3 = vadd.f32 1.0, %v7782_v14  ;;  %v9482_v14 = vrot.slane %v3591_v57, %v8341_v31  ;;  %v9588_v57 = vld [vmem:[%s10509_s18 + $0x20] ss:$8 sps:$4 sm:$0xff]  }
0x1cd0   :  { %7783 = vrcp.f32 %v3343_v3 }
0x1cda   :  { %v7784_v41 = vpop.eup %7783 }
0x1cdb   :  { %v3347_v8 = vmul.f32 0.0, %v7784_v41 }
0x1d3e   :  { %v3350_v19 = vpop.permute.xlu0 %3349 }
0x1d3f   :  { %v3352_v9 = vmul.f32 %v7784_v41, %v3350_v19 }
0x1d41   :  { %3354 = vrot.lane.b32.xlu1 %v3352_v9, %s8125_s0 }
0x1db3   :  { %v3355_v62 = vpop.permute.xlu1 %3354 }
0x1db4   :  { %v9367_v0 = vadd.f32 %v3355_v62, %v3347_v8 }
0x1db6   :  { %7785 = vtanh.f32 %v9367_v0 }
0x1dc0   :  { %v7786_v59 = vpop.eup %7785 }
0x1dc1   :  { %3360 = vrot.lane.b32.xlu0 %v7786_v59, %s8125_s0 }
0x1e33   :  { %v3361_v40 = vpop.permute.xlu0 %3360 }
0x1e34   :  { %v3363_v12 = vmul.f32 %v7784_v41, %v3361_v40 }
0x1e36   :  { %v3364_v4 = vpack.c.bf16 %v3363_v12, %v3363_v12 }
0x1e38   :  { %3366 = vrot.lane.b32.xlu1 %v3364_v4, %s8122_s8 }
0x1eaa   :  { %v3367_v11 = vpop.permute.xlu1 %3366 }
0x1eab   :  { %7249 = vmatmul.mubr.msk.bf16.vlgmr.msra.gmra.mrb[104].mxu0 %vm891_vm4, %v3367_v11 }
0x1eac   :  { %3551 = vmatpush1.bf16.msra.mxu0 %v9439_v13  ;;  %3582 = vmatprep.mubr.bf16.mxu0 %v8121_v2 }
0x1ead   :  { %3552 = vmatprep.subr.bf16.mxu0 %v9444_v24 }
0x1eb0   :  { %3553 = vmatpush1.bf16.msra.mxu0 %v9451_v43 }
0x1eb1   :  { %7252 = vmatprep.subr.bf16.mxu0 %v10542_v45 }
0x1eb3   :  { %6784 = vmatmul.mubr.msk.bf16.vlgmr.msra.gmra.mrb[108].mxu0 %vm891_vm4, %v3367_v11 }
0x1eb4   :  { %7253 = vmatpush3.bf16.msra.mxu0 %v9328_v21  ;;  %7256 = vmatprep.mubr.msk.bf16.mxu0 %vm8124_vm3, %v10542_v45 }
0x1eb5   :  { %7254 = vmatprep.subr.bf16.mxu0 %v10542_v45 }
0x1eb8   :  { %7255 = vmatpush3.bf16.msra.mxu0 %v9334_v36 }
0x1eb9   :  { %3753 = vmatprep.subr.bf16.mxu0 %v9403_v30 }
0x1f7e   :  { %v3405_v51 = vpop.f32.mrb[104].mxu0 }
0x1f7f   :  { %v3411_v16 = vadd.f32 %v3405_v51, %v9356_v58  ;;  %v7250_v29 = vpop.f32.mrb[105].mxu0  ;;  %v9508_v51 = vld [vmem:[%s10510_s19] ss:$8 sps:$4 sm:$0xff]  }
0x1f80   :  { %v3408_v48 = vpop.f32.mrb[106].mxu0  ;;  %v9523_v29 = vld [vmem:[%s10510_s19 + $0x10] ss:$8 sps:$4 sm:$0xff]  }
0x1f81   :  { %v3412_v61 = vadd.f32 %v9361_v53, %v3411_v16  ;;  %v7251_v10 = vpop.f32.mrb[107].mxu0  ;;  %v9517_v16 = vld [vmem:[%s10510_s19 + $0x14] ss:$8 sps:$4 sm:$0xff]   ;;  %v9530_v48 = vld [vmem:[%s10510_s19 + $0x24] ss:$8 sps:$4 sm:$0xff]  }
0x1f83   :  { %7787 = vtanh.f32 %v3412_v61  ;;  %v6771_v39 = vmul.f32 -1.442695, %v3412_v61  ;;  %v9535_v61 = vld [vmem:[%s10510_s19 + $0x20] ss:$8 sps:$4 sm:$0xff]  }
0x1f85   :  { %7789 = vpow2.f32 %v6771_v39 }
0x1f86   :  { %v3584_v49 = vpop.f32.mrb[108].mxu0 }
0x1f87   :  { %v3585_v33 = vadd.f32 %v3584_v49, %v3523_v52  ;;  %v3586_v32 = vpop.f32.mrb[109].mxu0  ;;  %v9543_v49 = vld [vmem:[%s10510_s19 + $0x34] ss:$8 sps:$4 sm:$0xff]  }
0x1f88   :  { %v3587_v26 = vadd.f32 %v3586_v32, %v3525_v23  ;;  %v3588_v60 = vpop.f32.mrb[110].mxu0 }
0x1f89   :  { %v3589_v47 = vpop.f32.mrb[111].mxu0  ;;  %v3603_v3 = vadd.f32 %v9482_v14, %v3585_v33  ;;  %v9548_v33 = vld [vmem:[%s10510_s19 + $0x30] ss:$8 sps:$4 sm:$0xff]  }
0x1f8a   :  { %v3604_v46 = vadd.f32 %v9472_v55, %v3587_v26 }
0x1f8b   :  { %v6785_v41 = vmul.f32 -1.442695, %v3603_v3 }
0x1f8c   :  { %v6786_v32 = vmul.f32 -1.442695, %v3604_v46 }
0x1f8d   :  { %v7788_v28 = vpop.eup %7787 }
0x1f8e   :  { %3422 = vrot.lane.b32.xlu0 %v7788_v28, %s8125_s0 }
0x1f8f   :  { %v7790_v38 = vpop.eup %7789 }
0x1f90   :  { %v3416_v15 = vadd.f32 1.0, %v7790_v38  ;;  %v9563_v38 = vld [vmem:[%s10509_s18] ss:$8 sps:$4 sm:$0xff]  }
0x1f92   :  { %7791 = vrcp.f32 %v3416_v15 }
0x1f9c   :  { %v7792_v17 = vpop.eup %7791 }
0x1f9d   :  { %v3420_v37 = vmul.f32 %v7792_v17, %v9367_v0 }
0x2000   :  { %v3423_v44 = vpop.permute.xlu0 %3422 }
0x2001   :  { %v3425_v27 = vmul.f32 %v7792_v17, %v3423_v44  ;;  %v9575_v44 = vld [vmem:[%s10509_s18 + $0x10] ss:$8 sps:$4 sm:$0xff]  }
0x2003   :  { %3427 = vrot.lane.b32.xlu1 %v3425_v27, %s8125_s0  ;;  %v9582_v27 = vld [vmem:[%s10509_s18 + $0x24] ss:$8 sps:$4 sm:$0xff]  }
0x2075   :  { %v3428_v5 = vpop.permute.xlu1 %3427 }
0x2076   :  { %v9475_v34 = vadd.f32 %v3428_v5, %v3420_v37  ;;  %v9594_v37 = vld [vmem:[%s10509_s18 + $0x34] ss:$8 sps:$4 sm:$0xff]   ;;  %v9600_v5 = vld [vmem:[%s10509_s18 + $0x30] ss:$8 sps:$4 sm:$0xff]  }
0x2078   :  { %7793 = vtanh.f32 %v9475_v34 }
0x2079   :  { %7795 = vtanh.f32 %v3604_v46 }
0x207a   :  { %7797 = vpow2.f32 %v6785_v41 }
0x2082   :  { %v7794_v22 = vpop.eup %7793 }
0x2083   :  { %3433 = vrot.lane.b32.xlu0 %v7794_v22, %s8125_s0  ;;  %v7796_v6 = vpop.eup %7795 }
0x2084   :  { %v7798_v19 = vpop.eup %7797 }
0x2085   :  { %v3611_v9 = vadd.f32 1.0, %v7798_v19 }
0x2087   :  { %3620 = vrot.lane.b32.xlu0 %v7796_v6, %s8122_s8  ;;  %7799 = vrcp.f32 %v3611_v9 }
0x2091   :  { %v7800_v40 = vpop.eup %7799 }
0x2092   :  { %v3618_v11 = vmul.f32 0.0, %v7800_v40 }
0x20f5   :  { %v3434_v8 = vpop.permute.xlu0 %3433 }
0x20f6   :  { %v3436_v62 = vmul.f32 %v7792_v17, %v3434_v8  ;;  %v9568_v17 = vld [vmem:[%s10509_s18 + $0x14] ss:$8 sps:$4 sm:$0xff]  }
0x20f8   :  { %v3635_v0 = vpack.c.bf16 %v3436_v62, %v3436_v62 }
0x20f9   :  { %v3621_v59 = vpop.permute.xlu0 %3620 }
0x20fa   :  { %3637 = vrot.lane.b32.xlu1 %v3635_v0, %s8122_s8  ;;  %v3623_v12 = vmul.f32 %v7800_v40, %v3621_v59 }
0x20fe   :  { %3625 = vrot.lane.b32.xlu1 %v3623_v12, %s8122_s8 }
0x216c   :  { %v3638_v4 = vpop.permute.xlu1 %3637 }
0x216d   :  { %7257 = vmatmul.mubr.msk.bf16.vlgmr.msra.gmra.mrb[112].mxu0 %vm891_vm4, %v3638_v4 }
0x216e   :  { %3754 = vmatpush1.bf16.msra.mxu0 %v9439_v13  ;;  %3785 = vmatprep.mubr.bf16.mxu0 %v8121_v2 }
0x216f   :  { %3755 = vmatprep.subr.bf16.mxu0 %v9444_v24 }
0x2170   :  { %v3626_v52 = vpop.permute.xlu1 %3625 }
0x2171   :  { %v9491_v23 = vadd.f32 %v3626_v52, %v3618_v11 }
0x2172   :  { %3756 = vmatpush1.bf16.msra.mxu0 %v9451_v43 }
0x2173   :  { %7801 = vtanh.f32 %v9491_v23  ;;  %3882 = vmatprep.subr.bf16.mxu0 %v9497_v7 }
0x2174   :  { %7803 = vpow2.f32 %v6786_v32 }
0x2175   :  { %6790 = vmatmul.mubr.msk.bf16.vlgmr.msra.gmra.mrb[116].mxu0 %vm891_vm4, %v3638_v4 }
0x2176   :  { %3883 = vmatpush1.bf16.msra.mxu0 %v9508_v51  ;;  %3914 = vmatprep.mubr.bf16.mxu0 %v8121_v2 }
0x2177   :  { %3884 = vmatprep.subr.bf16.mxu0 %v9517_v16 }
0x217a   :  { %3885 = vmatpush1.bf16.msra.mxu0 %v9523_v29 }
0x217b   :  { %3886 = vmatprep.subr.bf16.mxu0 %v9530_v48 }
0x217d   :  { %v7802_v10 = vpop.eup %7801 }
0x217e   :  { %3631 = vrot.lane.b32.xlu1 %v7802_v10, %s8122_s8  ;;  %3887 = vmatpush1.bf16.msra.mxu0 %v9535_v61  ;;  %v7804_v26 = vpop.eup %7803 }
0x217f   :  { %3888 = vmatprep.subr.bf16.mxu0 %v9543_v49  ;;  %v3612_v60 = vadd.f32 1.0, %v7804_v26 }
0x2181   :  { %7805 = vrcp.f32 %v3612_v60 }
0x2182   :  { %3889 = vmatpush1.bf16.msra.mxu0 %v9548_v33 }
0x2183   :  { %7260 = vmatprep.subr.bf16.mxu0 %v10542_v45 }
0x2185   :  { %3915 = vmatmul.mubr.bf16.vlgmr.msra.gmra.mrb[120].mxu0 %v8121_v2 }
0x2186   :  { %7261 = vmatpush3.bf16.msra.mxu0 %v9328_v21  ;;  %7264 = vmatprep.mubr.msk.bf16.mxu0 %vm8124_vm3, %v10542_v45 }
0x2187   :  { %7262 = vmatprep.subr.bf16.mxu0 %v10542_v45 }
0x218a   :  { %7263 = vmatpush3.bf16.msra.mxu0 %v9334_v36 }
0x218b   :  { %4166 = vmatprep.subr.bf16.mxu0 %v9403_v30  ;;  %v7806_v47 = vpop.eup %7805 }
0x21f0   :  { %v3632_v28 = vpop.permute.xlu1 %3631 }
0x21f1   :  { %v3634_v39 = vmul.f32 %v7806_v47, %v3632_v28 }
0x21f3   :  { %v3708_v15 = vpack.c.bf16 %v3634_v39, %v3634_v39 }
0x21f5   :  { %6789 = vmatmul.mubr.msk.bf16.vlgmr.msra.gmra.mrb[104].mxu1 %vm129_vm2, %v3708_v15 }
0x21f6   :  { %3964 = vmatpush1.bf16.msra.mxu1 %v9563_v38  ;;  %3995 = vmatprep.mubr.bf16.mxu1 %v8121_v2 }
0x21f7   :  { %3965 = vmatprep.subr.bf16.mxu1 %v9568_v17 }
0x21fa   :  { %3966 = vmatpush1.bf16.msra.mxu1 %v9575_v44 }
0x21fb   :  { %3967 = vmatprep.subr.bf16.mxu1 %v9582_v27 }
0x21fe   :  { %3968 = vmatpush1.bf16.msra.mxu1 %v9588_v57 }
0x21ff   :  { %3969 = vmatprep.subr.bf16.mxu1 %v9594_v37 }
0x2202   :  { %3970 = vmatpush1.bf16.msra.mxu1 %v9600_v5 }
0x2203   :  { %4125 = vmatprep.subr.bf16.mxu1 %v9373_v42 }
0x2205   :  { %6809 = vmatmul.mubr.msk.bf16.vlgmr.msra.gmra.mrb[108].mxu1 %vm129_vm2, %v3708_v15 }
0x2206   :  { %4126 = vmatpush1.bf16.msra.mxu1 %v9378_v1  ;;  %4157 = vmatprep.mubr.bf16.mxu1 %v8121_v2 }
0x2207   :  { %4127 = vmatprep.subr.bf16.mxu1 %v9383_v35 }
0x220a   :  { %4128 = vmatpush1.bf16.msra.mxu1 %v9390_v56 }
0x220b   :  { %4129 = vmatprep.subr.bf16.mxu1 %v9398_v18 }
0x220e   :  { %4130 = vmatpush1.bf16.msra.mxu1 %v9408_v50 }
0x220f   :  { %4131 = vmatprep.subr.bf16.mxu1 %v9416_v63 }
0x2212   :  { %4132 = vmatpush1.bf16.msra.mxu1 %v9421_v25 }
0x2213   :  { %4284 = vmatprep.subr.bf16.mxu1 %v9502_v54 }
0x2240   :  { %v3676_v46 = vpop.f32.mrb[112].mxu0 }
0x2241   :  { %v3682_v22 = vadd.f32 %v3676_v46, %v9356_v58  ;;  %v7258_v6 = vpop.f32.mrb[113].mxu0 }
0x2242   :  { %v3679_v3 = vpop.f32.mrb[114].mxu0 }
0x2243   :  { %v3683_v41 = vadd.f32 %v9361_v53, %v3682_v22  ;;  %v7259_v19 = vpop.f32.mrb[115].mxu0 }
0x2245   :  { %7807 = vtanh.f32 %v3683_v41  ;;  %v6788_v52 = vmul.f32 -1.442695, %v3683_v41 }
0x2247   :  { %7809 = vpow2.f32 %v6788_v52 }
0x2248   :  { %v3787_v9 = vpop.f32.mrb[116].mxu0 }
0x2249   :  { %v3789_v8 = vpop.f32.mrb[117].mxu0 }
0x224a   :  { %v3791_v62 = vpop.f32.mrb[118].mxu0 }
0x224b   :  { %v3792_v0 = vpop.f32.mrb[119].mxu0 }
0x224f   :  { %v7808_v59 = vpop.eup %7807 }
0x2250   :  { %3693 = vrot.lane.b32.xlu0 %v7808_v59, %s8125_s0 }
0x2251   :  { %v7810_v10 = vpop.eup %7809 }
0x2252   :  { %v3687_v32 = vadd.f32 1.0, %v7810_v10 }
0x2254   :  { %7811 = vrcp.f32 %v3687_v32 }
0x2258   :  { %v3916_v40 = vpop.f32.mrb[120].mxu0 }
0x2259   :  { %v3918_v12 = vpop.f32.mrb[121].mxu0 }
0x225a   :  { %v3920_v4 = vpop.f32.mrb[122].mxu0 }
0x225b   :  { %v3921_v11 = vpop.f32.mrb[123].mxu0 }
0x225e   :  { %v7812_v26 = vpop.eup %7811 }
0x225f   :  { %v3691_v4 = vmul.f32 %v7812_v26, %v9475_v34  ;;  %v4004_v34 = vld [vmem:[%s10511_s20] sm:$0x3] }
0x22c2   :  { %v3694_v60 = vpop.permute.xlu0 %3693 }
0x22c3   :  { %v3696_v47 = vmul.f32 %v7812_v26, %v3694_v60 }
0x22c5   :  { %3698 = vrot.lane.b32.xlu0 %v3696_v47, %s8125_s0  ;;  %v9631_v47 = vrot.slane %v4004_v34, %v8331_v20  ;;  %v9641_v20 = vrot.slane %v4004_v34, %v8341_v31 }
0x22c8   :  { %v3746_v28 = vpop.f32.mrb[104].mxu1 }
0x22c9   :  { %v3788_v39 = vadd.f32 %v3787_v9, %v3746_v28  ;;  %v3748_v15 = vpop.f32.mrb[105].mxu1 }
0x22ca   :  { %v3790_v46 = vadd.f32 %v3789_v8, %v3748_v15  ;;  %v3750_v22 = vpop.f32.mrb[106].mxu1 }
0x22cb   :  { %v3751_v6 = vpop.f32.mrb[107].mxu1 }
0x22cc   :  { %v3795_v10 = vadd.f32 %v3790_v46, %v9472_v55 }
0x22d8   :  { %v3997_v3 = vpop.f32.mrb[108].mxu1 }
0x22d9   :  { %v3998_v19 = vadd.f32 %v3997_v3, %v3916_v40  ;;  %v3999_v62 = vpop.f32.mrb[109].mxu1  ;;  %v3794_v40 = vadd.f32 %v3788_v39, %v9482_v14 }
0x22da   :  { %v4000_v0 = vadd.f32 %v3999_v62, %v3918_v12  ;;  %v4001_v41 = vpop.f32.mrb[110].mxu1 }
0x22db   :  { %v4002_v59 = vpop.f32.mrb[111].mxu1  ;;  %v6791_v12 = vmul.f32 -1.442695, %v3794_v40 }
0x22dc   :  { %v9634_v28 = vadd.f32 %v9631_v47, %v4000_v0  ;;  %v4016_v0 = vadd.f32 %v9641_v20, %v3998_v19 }
0x22de   :  { %v6810_v41 = vmul.f32 -1.442695, %v4016_v0 }
0x2337   :  { %v3699_v11 = vpop.permute.xlu0 %3698 }
0x2338   :  { %v9620_v52 = vadd.f32 %v3699_v11, %v3691_v4 }
0x233a   :  { %7813 = vtanh.f32 %v9620_v52 }
0x233b   :  { %7815 = vtanh.f32 %v3795_v10 }
0x233c   :  { %7817 = vpow2.f32 %v6791_v12  ;;  %v6792_v12 = vmul.f32 -1.442695, %v3795_v10 }
0x2344   :  { %v7814_v9 = vpop.eup %7813 }
0x2345   :  { %3704 = vrot.lane.b32.xlu1 %v7814_v9, %s8125_s0  ;;  %v7816_v8 = vpop.eup %7815 }
0x2346   :  { %v7818_v32 = vpop.eup %7817 }
0x2347   :  { %v3802_v60 = vadd.f32 1.0, %v7818_v32 }
0x2349   :  { %3811 = vrot.lane.b32.xlu1 %v7816_v8, %s8122_s8  ;;  %7819 = vrcp.f32 %v3802_v60 }
0x234a   :  { %7821 = vtanh.f32 %v9634_v28 }
0x234b   :  { %7823 = vpow2.f32 %v6810_v41 }
0x2353   :  { %v7820_v22 = vpop.eup %7819 }
0x2354   :  { %v7822_v62 = vpop.eup %7821  ;;  %v3809_v11 = vmul.f32 %v7820_v22, %v9491_v23 }
0x2355   :  { %v7824_v59 = vpop.eup %7823 }
0x23b7   :  { %v3705_v15 = vpop.permute.xlu1 %3704 }
0x23b8   :  { %v3707_v46 = vmul.f32 %v7812_v26, %v3705_v15  ;;  %v4024_v26 = vadd.f32 1.0, %v7824_v59 }
0x23ba   :  { %v4048_v39 = vpack.c.bf16 %v3707_v46, %v3707_v46  ;;  %7825 = vrcp.f32 %v4024_v26 }
0x23bb   :  { %v3812_v6 = vpop.permute.xlu1 %3811 }
0x23bc   :  { %v3814_v3 = vmul.f32 %v7820_v22, %v3812_v6  ;;  %4050 = vrot.lane.b32.xlu0 %v4048_v39, %s8122_s8 }
0x23be   :  { %3816 = vrot.lane.b32.xlu1 %v3814_v3, %s8122_s8 }
0x23c0   :  { %4033 = vrot.lane.b32.xlu0 %v7822_v62, %s8122_s8 }
0x23c4   :  { %v7826_v31 = vpop.eup %7825 }
0x23c5   :  { %v4031_v60 = vmul.f32 0.0, %v7826_v31 }
0x242e   :  { %v4051_v4 = vpop.permute.xlu0 %4050 }
0x242f   :  { %7265 = vmatmul.mubr.msk.bf16.vlgmr.msra.gmra.mrb[124].mxu0 %vm891_vm4, %v4051_v4 }
0x2430   :  { %4167 = vmatpush1.bf16.msra.mxu0 %v9439_v13  ;;  %v3817_v9 = vpop.permute.xlu1 %3816  ;;  %4198 = vmatprep.mubr.bf16.mxu0 %v8121_v2 }
0x2431   :  { %v9648_v8 = vadd.f32 %v3817_v9, %v3809_v11  ;;  %4168 = vmatprep.subr.bf16.mxu0 %v9444_v24  ;;  %v6811_v11 = vmul.f32 -1.442695, %v9634_v28 }
0x2432   :  { %v4034_v19 = vpop.permute.xlu0 %4033 }
0x2433   :  { %7827 = vtanh.f32 %v9648_v8  ;;  %v4036_v40 = vmul.f32 %v7826_v31, %v4034_v19 }
0x2434   :  { %4169 = vmatpush1.bf16.msra.mxu0 %v9451_v43  ;;  %7829 = vpow2.f32 %v6792_v12 }
0x2435   :  { %4038 = vrot.lane.b32.xlu0 %v4036_v40, %s8122_s8  ;;  %4243 = vmatprep.subr.bf16.mxu0 %v9497_v7 }
0x2437   :  { %6815 = vmatmul.mubr.msk.bf16.vlgmr.msra.gmra.mrb[128].mxu0 %vm891_vm4, %v4051_v4 }
0x2438   :  { %4244 = vmatpush1.bf16.msra.mxu0 %v9508_v51  ;;  %4275 = vmatprep.mubr.bf16.mxu0 %v8121_v2 }
0x2439   :  { %4245 = vmatprep.subr.bf16.mxu0 %v9517_v16 }
0x243c   :  { %4246 = vmatpush1.bf16.msra.mxu0 %v9523_v29 }
0x243d   :  { %v7828_v23 = vpop.eup %7827  ;;  %4247 = vmatprep.subr.bf16.mxu0 %v9530_v48 }
0x243e   :  { %3822 = vrot.lane.b32.xlu1 %v7828_v23, %s8122_s8  ;;  %v7830_v32 = vpop.eup %7829 }
0x243f   :  { %v3803_v34 = vadd.f32 1.0, %v7830_v32 }
0x2440   :  { %4248 = vmatpush1.bf16.msra.mxu0 %v9535_v61 }
0x2441   :  { %4249 = vmatprep.subr.bf16.mxu0 %v9543_v49  ;;  %7831 = vrcp.f32 %v3803_v34 }
0x2444   :  { %4250 = vmatpush1.bf16.msra.mxu0 %v9548_v33 }
0x2445   :  { %7268 = vmatprep.subr.bf16.mxu0 %v10542_v45 }
0x244b   :  { %v7832_v39 = vpop.eup %7831 }
0x24a7   :  { %v4039_v15 = vpop.permute.xlu0 %4038 }
0x24a8   :  { %v9666_v46 = vadd.f32 %v4039_v15, %v4031_v60 }
0x24aa   :  { %7833 = vtanh.f32 %v9666_v46 }
0x24b0   :  { %v3823_v22 = vpop.permute.xlu1 %3822 }
0x24b1   :  { %v3825_v6 = vmul.f32 %v7832_v39, %v3823_v22 }
0x24b3   :  { %v4121_v3 = vpack.c.bf16 %v3825_v6, %v3825_v6 }
0x24b4   :  { %v7834_v62 = vpop.eup %7833 }
0x24b5   :  { %4044 = vrot.lane.b32.xlu1 %v7834_v62, %s8122_s8  ;;  %6814 = vmatmul.mubr.msk.bf16.vlgmr.msra.gmra.mrb[112].mxu1 %vm129_vm2, %v4121_v3 }
0x24b6   :  { %4285 = vmatpush1.bf16.msra.mxu1 %v9563_v38  ;;  %4316 = vmatprep.mubr.bf16.mxu1 %v8121_v2 }
0x24b7   :  { %4286 = vmatprep.subr.bf16.mxu1 %v9568_v17 }
0x24ba   :  { %4287 = vmatpush1.bf16.msra.mxu1 %v9575_v44 }
0x24bb   :  { %4288 = vmatprep.subr.bf16.mxu1 %v9582_v27 }
0x24be   :  { %4289 = vmatpush1.bf16.msra.mxu1 %v9588_v57 }
0x24bf   :  { %4290 = vmatprep.subr.bf16.mxu1 %v9594_v37 }
0x24c2   :  { %4291 = vmatpush1.bf16.msra.mxu1 %v9600_v5 }
0x24c3   :  { %4434 = vmatprep.subr.bf16.mxu1 %v9373_v42 }
0x24c5   :  { %6819 = vmatmul.mubr.msk.bf16.vlgmr.msra.gmra.mrb[116].mxu1 %vm129_vm2, %v4121_v3 }
0x24c6   :  { %4435 = vmatpush1.bf16.msra.mxu1 %v9378_v1  ;;  %4466 = vmatprep.mubr.bf16.mxu1 %v8121_v2 }
0x24c7   :  { %4436 = vmatprep.subr.bf16.mxu1 %v9383_v35 }
0x24ca   :  { %4437 = vmatpush1.bf16.msra.mxu1 %v9390_v56 }
0x24cb   :  { %4438 = vmatprep.subr.bf16.mxu1 %v9398_v18 }
0x24ce   :  { %4439 = vmatpush1.bf16.msra.mxu1 %v9408_v50 }
0x24cf   :  { %4440 = vmatprep.subr.bf16.mxu1 %v9416_v63 }
0x24d2   :  { %4441 = vmatpush1.bf16.msra.mxu1 %v9421_v25 }
0x24d3   :  { %4593 = vmatprep.subr.bf16.mxu1 %v9502_v54 }
0x2502   :  { %v4089_v10 = vpop.f32.mrb[124].mxu0 }
0x2503   :  { %v4095_v0 = vadd.f32 %v4089_v10, %v9356_v58  ;;  %v7266_v41 = vpop.f32.mrb[125].mxu0 }
0x2504   :  { %v4092_v59 = vpop.f32.mrb[126].mxu0 }
0x2505   :  { %v4096_v26 = vadd.f32 %v9361_v53, %v4095_v0  ;;  %v7267_v4 = vpop.f32.mrb[127].mxu0 }
0x2507   :  { %7835 = vtanh.f32 %v4096_v26  ;;  %v6813_v28 = vmul.f32 -1.442695, %v4096_v26 }
0x2508   :  { %7837 = vpow2.f32 %v6811_v11 }
0x250a   :  { %v4200_v9 = vpop.f32.mrb[128].mxu0 }
0x250b   :  { %v4202_v31 = vpop.f32.mrb[129].mxu0 }
0x250c   :  { %v4204_v19 = vpop.f32.mrb[130].mxu0 }
0x250d   :  { %v4205_v40 = vpop.f32.mrb[131].mxu0 }
0x2511   :  { %v7836_v23 = vpop.eup %7835 }
0x2512   :  { %4106 = vrot.lane.b32.xlu0 %v7836_v23, %s8125_s0  ;;  %v7838_v12 = vpop.eup %7837 }
0x2513   :  { %v4025_v32 = vadd.f32 1.0, %v7838_v12 }
0x2515   :  { %7839 = vrcp.f32 %v4025_v32 }
0x2516   :  { %7841 = vpow2.f32 %v6813_v28 }
0x251f   :  { %v7840_v34 = vpop.eup %7839 }
0x2520   :  { %v7842_v22 = vpop.eup %7841 }
0x2521   :  { %v4100_v6 = vadd.f32 1.0, %v7842_v22 }
0x2523   :  { %7843 = vrcp.f32 %v4100_v6 }
0x2527   :  { %v4045_v60 = vpop.permute.xlu1 %4044 }
0x2528   :  { %v4047_v15 = vmul.f32 %v7840_v34, %v4045_v60 }
0x252a   :  { %v9694_v39 = vpack.c.bf16 %v4047_v15, %v4047_v15 }
0x252c   :  { %6818 = vmatmul.mubr.msk.bf16.vlgmr.msra.gmra.mrb[132].mxu0 %vm129_vm2, %v9694_v39 }
0x252d   :  { %7269 = vmatpush3.bf16.msra.mxu0 %v9328_v21  ;;  %7272 = vmatprep.mubr.msk.bf16.mxu0 %vm8124_vm3, %v10542_v45  ;;  %v7844_v3 = vpop.eup %7843 }
0x252e   :  { %7270 = vmatprep.subr.bf16.mxu0 %v10542_v45  ;;  %v4104_v26 = vmul.f32 %v7844_v3, %v9620_v52 }
0x2531   :  { %7271 = vmatpush3.bf16.msra.mxu0 %v9334_v36 }
0x2532   :  { %4475 = vmatprep.subr.bf16.mxu0 %v9403_v30 }
0x2584   :  { %v4107_v62 = vpop.permute.xlu0 %4106 }
0x2585   :  { %v4109_v10 = vmul.f32 %v7844_v3, %v4107_v62 }
0x2587   :  { %4111 = vrot.lane.b32.xlu0 %v4109_v10, %s8125_s0 }
0x2588   :  { %v4159_v21 = vpop.f32.mrb[112].mxu1 }
0x2589   :  { %v4201_v0 = vadd.f32 %v4200_v9, %v4159_v21  ;;  %v4161_v41 = vpop.f32.mrb[113].mxu1 }
0x258a   :  { %v4203_v59 = vadd.f32 %v4202_v31, %v4161_v41  ;;  %v4163_v4 = vpop.f32.mrb[114].mxu1 }
0x258b   :  { %v4164_v11 = vpop.f32.mrb[115].mxu1  ;;  %v4207_v62 = vadd.f32 %v4201_v0, %v9482_v14 }
0x258c   :  { %v9709_v34 = vadd.f32 %v4203_v59, %v9472_v55 }
0x258d   :  { %v6816_v10 = vmul.f32 -1.442695, %v4207_v62 }
0x2598   :  { %v4318_v19 = vpop.f32.mrb[116].mxu1 }
0x2599   :  { %v4320_v36 = vpop.f32.mrb[117].mxu1 }
0x259a   :  { %v4322_v40 = vpop.f32.mrb[118].mxu1 }
0x259b   :  { %v4323_v23 = vpop.f32.mrb[119].mxu1 }
0x25f9   :  { %v4112_v12 = vpop.permute.xlu0 %4111 }
0x25fa   :  { %v9706_v32 = vadd.f32 %v4112_v12, %v4104_v26 }
0x25fc   :  { %7845 = vtanh.f32 %v9706_v32 }
0x25fd   :  { %7847 = vtanh.f32 %v9709_v34 }
0x25fe   :  { %7849 = vpow2.f32 %v6816_v10 }
0x25ff   :  { %v4277_v60 = vpop.f32.mrb[132].mxu0 }
0x2600   :  { %v4319_v9 = vadd.f32 %v4318_v19, %v4277_v60  ;;  %v4279_v31 = vpop.f32.mrb[133].mxu0 }
0x2601   :  { %v4321_v15 = vadd.f32 %v4320_v36, %v4279_v31  ;;  %v4281_v28 = vpop.f32.mrb[134].mxu0 }
0x2602   :  { %v4282_v22 = vpop.f32.mrb[135].mxu0  ;;  %v4325_v26 = vadd.f32 %v4319_v9, %v9641_v20 }
0x2603   :  { %v9717_v59 = vadd.f32 %v4321_v15, %v9631_v47 }
0x2604   :  { %v6820_v12 = vmul.f32 -1.442695, %v4325_v26 }
0x2606   :  { %v7846_v6 = vpop.eup %7845 }
0x2607   :  { %4117 = vrot.lane.b32.xlu1 %v7846_v6, %s8125_s0  ;;  %v7848_v52 = vpop.eup %7847 }
0x2608   :  { %v7850_v21 = vpop.eup %7849 }
0x2609   :  { %v4215_v41 = vadd.f32 1.0, %v7850_v21 }
0x260b   :  { %4224 = vrot.lane.b32.xlu1 %v7848_v52, %s8122_s8  ;;  %7851 = vrcp.f32 %v4215_v41 }
0x260c   :  { %7853 = vtanh.f32 %v9717_v59 }
0x260d   :  { %7855 = vpow2.f32 %v6820_v12 }
0x2615   :  { %v7852_v36 = vpop.eup %7851 }
0x2616   :  { %v7854_v0 = vpop.eup %7853 }
0x2617   :  { %v7856_v60 = vpop.eup %7855 }
0x2618   :  { %v4333_v31 = vadd.f32 1.0, %v7856_v60 }
0x261a   :  { %7857 = vrcp.f32 %v4333_v31 }
0x2624   :  { %v7858_v9 = vpop.eup %7857 }
0x2625   :  { %v4340_v62 = vmul.f32 %v7858_v9, %v9666_v46 }
0x2679   :  { %v4118_v4 = vpop.permute.xlu1 %4117 }
0x267a   :  { %v4120_v11 = vmul.f32 %v7844_v3, %v4118_v4  ;;  %v4222_v3 = vmul.f32 %v7852_v36, %v9648_v8 }
0x267c   :  { %v4357_v19 = vpack.c.bf16 %v4120_v11, %v4120_v11 }
0x267d   :  { %v4225_v40 = vpop.permute.xlu1 %4224 }
0x267e   :  { %v4227_v23 = vmul.f32 %v7852_v36, %v4225_v40  ;;  %4359 = vrot.lane.b32.xlu0 %v4357_v19, %s8122_s8 }
0x2680   :  { %4229 = vrot.lane.b32.xlu1 %v4227_v23, %s8122_s8 }
0x2682   :  { %4342 = vrot.lane.b32.xlu0 %v7854_v0, %s8122_s8 }
0x26f0   :  { %v4360_v15 = vpop.permute.xlu0 %4359 }
0x26f1   :  { %7273 = vmatmul.mubr.msk.bf16.vlgmr.msra.gmra.mrb[136].mxu0 %vm891_vm4, %v4360_v15 }
0x26f2   :  { %4476 = vmatpush1.bf16.msra.mxu0 %v9439_v13  ;;  %v4230_v28 = vpop.permute.xlu1 %4229  ;;  %4507 = vmatprep.mubr.bf16.mxu0 %v8121_v2 }
0x26f3   :  { %v9728_v22 = vadd.f32 %v4230_v28, %v4222_v3  ;;  %4477 = vmatprep.subr.bf16.mxu0 %v9444_v24  ;;  %v6817_v24 = vmul.f32 -1.442695, %v9709_v34 }
0x26f4   :  { %v4343_v6 = vpop.permute.xlu0 %4342 }
0x26f5   :  { %7859 = vtanh.f32 %v9728_v22  ;;  %v4345_v52 = vmul.f32 %v7858_v9, %v4343_v6 }
0x26f6   :  { %4478 = vmatpush1.bf16.msra.mxu0 %v9451_v43  ;;  %7861 = vpow2.f32 %v6817_v24 }
0x26f7   :  { %4347 = vrot.lane.b32.xlu0 %v4345_v52, %s8122_s8  ;;  %4552 = vmatprep.subr.bf16.mxu0 %v9497_v7 }
0x26f9   :  { %6825 = vmatmul.mubr.msk.bf16.vlgmr.msra.gmra.mrb[140].mxu0 %vm891_vm4, %v4360_v15 }
0x26fa   :  { %4553 = vmatpush1.bf16.msra.mxu0 %v9508_v51  ;;  %4584 = vmatprep.mubr.bf16.mxu0 %v8121_v2 }
0x26fb   :  { %4554 = vmatprep.subr.bf16.mxu0 %v9517_v16 }
0x26fe   :  { %4555 = vmatpush1.bf16.msra.mxu0 %v9523_v29 }
0x26ff   :  { %v7860_v13 = vpop.eup %7859  ;;  %4556 = vmatprep.subr.bf16.mxu0 %v9530_v48 }
0x2700   :  { %4235 = vrot.lane.b32.xlu1 %v7860_v13, %s8122_s8  ;;  %v7862_v43 = vpop.eup %7861 }
0x2701   :  { %v4216_v8 = vadd.f32 1.0, %v7862_v43 }
0x2702   :  { %4557 = vmatpush1.bf16.msra.mxu0 %v9535_v61 }
0x2703   :  { %4558 = vmatprep.subr.bf16.mxu0 %v9543_v49  ;;  %7863 = vrcp.f32 %v4216_v8 }
0x2706   :  { %4559 = vmatpush1.bf16.msra.mxu0 %v9548_v33 }
0x2707   :  { %7276 = vmatprep.subr.bf16.mxu0 %v10542_v45 }
0x270d   :  { %v7864_v41 = vpop.eup %7863 }
0x2769   :  { %v4348_v10 = vpop.permute.xlu0 %4347 }
0x276a   :  { %v9748_v21 = vadd.f32 %v4348_v10, %v4340_v62 }
0x276c   :  { %7865 = vtanh.f32 %v9748_v21 }
0x2772   :  { %v4236_v4 = vpop.permute.xlu1 %4235 }
0x2773   :  { %v4238_v11 = vmul.f32 %v7864_v41, %v4236_v4 }
0x2775   :  { %v4430_v19 = vpack.c.bf16 %v4238_v11, %v4238_v11 }
0x2776   :  { %v7866_v36 = vpop.eup %7865 }
0x2777   :  { %4353 = vrot.lane.b32.xlu0 %v7866_v36, %s8122_s8  ;;  %6824 = vmatmul.mubr.msk.bf16.vlgmr.msra.gmra.mrb[120].mxu1 %vm129_vm2, %v4430_v19 }
0x2778   :  { %4594 = vmatpush1.bf16.msra.mxu1 %v9563_v38  ;;  %4625 = vmatprep.mubr.bf16.mxu1 %v8121_v2 }
0x2779   :  { %4595 = vmatprep.subr.bf16.mxu1 %v9568_v17 }
0x277c   :  { %4596 = vmatpush1.bf16.msra.mxu1 %v9575_v44 }
0x277d   :  { %4597 = vmatprep.subr.bf16.mxu1 %v9582_v27 }
0x2780   :  { %4598 = vmatpush1.bf16.msra.mxu1 %v9588_v57 }
0x2781   :  { %4599 = vmatprep.subr.bf16.mxu1 %v9594_v37 }
0x2784   :  { %4600 = vmatpush1.bf16.msra.mxu1 %v9600_v5 }
0x2785   :  { %4743 = vmatprep.subr.bf16.mxu1 %v9373_v42 }
0x2787   :  { %6829 = vmatmul.mubr.msk.bf16.vlgmr.msra.gmra.mrb[124].mxu1 %vm129_vm2, %v4430_v19 }
0x2788   :  { %4744 = vmatpush1.bf16.msra.mxu1 %v9378_v1  ;;  %4775 = vmatprep.mubr.bf16.mxu1 %v8121_v2 }
0x2789   :  { %4745 = vmatprep.subr.bf16.mxu1 %v9383_v35 }
0x278c   :  { %4746 = vmatpush1.bf16.msra.mxu1 %v9390_v56  ;;  %v6821_v56 = vmul.f32 -1.442695, %v9717_v59  ;;  %v9792_v59 = vld [vmem:[%s10504_s13 + $0x8] sm:$0xff]  }
0x278d   :  { %4747 = vmatprep.subr.bf16.mxu1 %v9398_v18 }
0x2790   :  { %4748 = vmatpush1.bf16.msra.mxu1 %v9408_v50 }
0x2791   :  { %4749 = vmatprep.subr.bf16.mxu1 %v9416_v63 }
0x2794   :  { %4750 = vmatpush1.bf16.msra.mxu1 %v9421_v25 }
0x2795   :  { %4902 = vmatprep.subr.bf16.mxu1 %v9502_v54 }
0x27c4   :  { %v4398_v42 = vpop.f32.mrb[136].mxu0 }
0x27c5   :  { %v4404_v46 = vadd.f32 %v4398_v42, %v9356_v58  ;;  %v7274_v1 = vpop.f32.mrb[137].mxu0 }
0x27c6   :  { %v4401_v34 = vpop.f32.mrb[138].mxu0 }
0x27c7   :  { %v4405_v40 = vadd.f32 %v9361_v53, %v4404_v46  ;;  %v7275_v35 = vpop.f32.mrb[139].mxu0  ;;  %v9783_v53 = vld [vmem:[%s10504_s13] sm:$0xff]  }
0x27c9   :  { %7867 = vtanh.f32 %v4405_v40  ;;  %v6823_v3 = vmul.f32 -1.442695, %v4405_v40 }
0x27ca   :  { %7869 = vpow2.f32 %v6821_v56 }
0x27cc   :  { %v4509_v18 = vpop.f32.mrb[140].mxu0 }
0x27cd   :  { %v4511_v23 = vpop.f32.mrb[141].mxu0 }
0x27ce   :  { %v4513_v50 = vpop.f32.mrb[142].mxu0 }
0x27cf   :  { %v4514_v63 = vpop.f32.mrb[143].mxu0 }
0x27d3   :  { %v7868_v0 = vpop.eup %7867 }
0x27d4   :  { %4415 = vrot.lane.b32.xlu1 %v7868_v0, %s8125_s0  ;;  %v7870_v25 = vpop.eup %7869 }
0x27d5   :  { %v4334_v26 = vadd.f32 1.0, %v7870_v25 }
0x27d7   :  { %7871 = vrcp.f32 %v4334_v26 }
0x27d8   :  { %7873 = vpow2.f32 %v6823_v3 }
0x27e1   :  { %v7872_v12 = vpop.eup %7871 }
0x27e2   :  { %v7874_v28 = vpop.eup %7873 }
0x27e3   :  { %v4409_v9 = vadd.f32 1.0, %v7874_v28 }
0x27e5   :  { %7875 = vrcp.f32 %v4409_v9 }
0x27e9   :  { %v4354_v60 = vpop.permute.xlu0 %4353 }
0x27ea   :  { %v4356_v31 = vmul.f32 %v7872_v12, %v4354_v60 }
0x27ec   :  { %v9776_v15 = vpack.c.bf16 %v4356_v31, %v4356_v31 }
0x27ee   :  { %6828 = vmatmul.mubr.msk.bf16.vlgmr.msra.gmra.mrb[144].mxu0 %vm129_vm2, %v9776_v15 }
0x27ef   :  { %7277 = vmatpush3.bf16.msra.mxu0 %v9783_v53  ;;  %7280 = vmatprep.mubr.msk.bf16.mxu0 %vm8124_vm3, %v10542_v45  ;;  %v7876_v6 = vpop.eup %7875 }
0x27f0   :  { %7278 = vmatprep.subr.bf16.mxu0 %v10542_v45  ;;  %v4413_v36 = vmul.f32 %v7876_v6, %v9706_v32 }
0x27f3   :  { %7279 = vmatpush3.bf16.msra.mxu0 %v9792_v59 }
0x27f4   :  { %4784 = vmatprep.subr.bf16.mxu0 %v9403_v30 }
0x2846   :  { %v4416_v52 = vpop.permute.xlu1 %4415 }
0x2847   :  { %v4418_v13 = vmul.f32 %v7876_v6, %v4416_v52 }
0x2849   :  { %4420 = vrot.lane.b32.xlu0 %v4418_v13, %s8125_s0 }
0x284a   :  { %v4468_v24 = vpop.f32.mrb[120].mxu1 }
0x284b   :  { %v4510_v43 = vadd.f32 %v4509_v18, %v4468_v24  ;;  %v4470_v8 = vpop.f32.mrb[121].mxu1 }
0x284c   :  { %v4512_v62 = vadd.f32 %v4511_v23, %v4470_v8  ;;  %v4472_v10 = vpop.f32.mrb[122].mxu1 }
0x284d   :  { %v4473_v41 = vpop.f32.mrb[123].mxu1  ;;  %v4516_v63 = vadd.f32 %v4510_v43, %v9482_v14 }
0x284e   :  { %v9801_v1 = vadd.f32 %v4512_v62, %v9472_v55  ;;  %v9821_v41 = vld [vmem:[%s10506_s15] ss:$8 sps:$4 sm:$0xff]  }
0x284f   :  { %v6826_v0 = vmul.f32 -1.442695, %v4516_v63 }
0x285a   :  { %v4627_v4 = vpop.f32.mrb[124].mxu1 }
0x285b   :  { %v4629_v11 = vpop.f32.mrb[125].mxu1 }
0x285c   :  { %v4631_v19 = vpop.f32.mrb[126].mxu1 }
0x285d   :  { %v4632_v30 = vpop.f32.mrb[127].mxu1  ;;  %v9830_v19 = vld [vmem:[%s10506_s15 + $0x14] ss:$8 sps:$4 sm:$0xff]  }
0x28bb   :  { %v4421_v42 = vpop.permute.xlu0 %4420 }
0x28bc   :  { %v9798_v46 = vadd.f32 %v4421_v42, %v4413_v36  ;;  %v9837_v42 = vld [vmem:[%s10506_s15 + $0x10] ss:$8 sps:$4 sm:$0xff]  }
0x28be   :  { %7877 = vtanh.f32 %v9798_v46 }
0x28bf   :  { %7879 = vtanh.f32 %v9801_v1 }
0x28c0   :  { %7881 = vpow2.f32 %v6826_v0 }
0x28c1   :  { %v4586_v34 = vpop.f32.mrb[144].mxu0 }
0x28c2   :  { %v4628_v40 = vadd.f32 %v4627_v4, %v4586_v34  ;;  %v4588_v35 = vpop.f32.mrb[145].mxu0 }
0x28c3   :  { %v4630_v56 = vadd.f32 %v4629_v11, %v4588_v35  ;;  %v4590_v18 = vpop.f32.mrb[146].mxu0 }
0x28c4   :  { %v4591_v23 = vpop.f32.mrb[147].mxu0  ;;  %v4634_v24 = vadd.f32 %v4628_v40, %v9641_v20 }
0x28c5   :  { %v9809_v12 = vadd.f32 %v4630_v56, %v9631_v47 }
0x28c6   :  { %v6830_v43 = vmul.f32 -1.442695, %v4634_v24 }
0x28c8   :  { %v7878_v50 = vpop.eup %7877 }
0x28c9   :  { %4426 = vrot.lane.b32.xlu1 %v7878_v50, %s8125_s0  ;;  %v7880_v32 = vpop.eup %7879 }
0x28ca   :  { %v7882_v25 = vpop.eup %7881 }
0x28cb   :  { %v4524_v26 = vadd.f32 1.0, %v7882_v25  ;;  %v6831_v25 = vmul.f32 -1.442695, %v9809_v12 }
0x28cd   :  { %4533 = vrot.lane.b32.xlu1 %v7880_v32, %s8122_s8  ;;  %7883 = vrcp.f32 %v4524_v26  ;;  %v9923_v32 = vld [vmem:[%s10505_s14] ss:$0 sm:$0xff] }
0x28ce   :  { %7885 = vtanh.f32 %v9809_v12  ;;  %v9940_v12 = vld [vmem:[%s10506_s15 + $0x4] ss:$8 sps:$4 sm:$0xff]  }
0x28cf   :  { %7887 = vpow2.f32 %v6830_v43 }
0x28d7   :  { %v7884_v28 = vpop.eup %7883 }
0x28d8   :  { %v7886_v13 = vpop.eup %7885 }
0x28d9   :  { %v7888_v8 = vpop.eup %7887 }
0x28da   :  { %v4642_v62 = vadd.f32 1.0, %v7888_v8 }
0x28dc   :  { %7889 = vrcp.f32 %v4642_v62 }
0x293b   :  { %v4427_v60 = vpop.permute.xlu1 %4426 }
0x293c   :  { %v4429_v31 = vmul.f32 %v7876_v6, %v4427_v60  ;;  %v4531_v6 = vmul.f32 %v7884_v28, %v9728_v22  ;;  %v7890_v22 = vpop.eup %7889 }
0x293e   :  { %v4666_v3 = vpack.c.bf16 %v4429_v31, %v4429_v31 }
0x293f   :  { %v4534_v9 = vpop.permute.xlu1 %4533 }
0x2940   :  { %v4536_v52 = vmul.f32 %v7884_v28, %v4534_v9  ;;  %4668 = vrot.lane.b32.xlu0 %v4666_v3, %s8122_s8 }
0x2942   :  { %4538 = vrot.lane.b32.xlu1 %v4536_v52, %s8122_s8 }
0x2944   :  { %4651 = vrot.lane.b32.xlu0 %v7886_v13, %s8122_s8 }
0x29b2   :  { %v4669_v10 = vpop.permute.xlu0 %4668 }
0x29b3   :  { %7281 = vmatmul.mubr.msk.bf16.vlgmr.msra.gmra.mrb[148].mxu0 %vm891_vm4, %v4669_v10 }
0x29b4   :  { %4785 = vmatpush1.bf16.msra.mxu0 %v9821_v41  ;;  %v4539_v4 = vpop.permute.xlu1 %4538  ;;  %4816 = vmatprep.mubr.bf16.mxu0 %v8121_v2 }
0x29b5   :  { %v9825_v11 = vadd.f32 %v4539_v4, %v4531_v6  ;;  %4786 = vmatprep.subr.bf16.mxu0 %v9830_v19 }
0x29b6   :  { %v4652_v30 = vpop.permute.xlu0 %4651 }
0x29b7   :  { %7891 = vtanh.f32 %v9825_v11  ;;  %v4654_v36 = vmul.f32 %v7890_v22, %v4652_v30 }
0x29b8   :  { %4787 = vmatpush1.bf16.msra.mxu0 %v9837_v42 }
0x29b9   :  { %4656 = vrot.lane.b32.xlu0 %v4654_v36, %s8122_s8  ;;  %4861 = vmatprep.subr.bf16.mxu0 %v9497_v7  ;;  %v6827_v7 = vmul.f32 -1.442695, %v9801_v1 }
0x29bb   :  { %6835 = vmatmul.mubr.msk.bf16.vlgmr.msra.gmra.mrb[152].mxu0 %vm891_vm4, %v4669_v10  ;;  %7893 = vpow2.f32 %v6827_v7 }
0x29bc   :  { %4862 = vmatpush1.bf16.msra.mxu0 %v9508_v51  ;;  %4893 = vmatprep.mubr.bf16.mxu0 %v8121_v2 }
0x29bd   :  { %4863 = vmatprep.subr.bf16.mxu0 %v9517_v16 }
0x29c0   :  { %4864 = vmatpush1.bf16.msra.mxu0 %v9523_v29  ;;  %v4649_v29 = vmul.f32 %v7890_v22, %v9748_v21  ;;  %v9871_v21 = vld [vmem:[%s10507_s16 + $0x4] ss:$8 sps:$4 sm:$0xff]  }
0x29c1   :  { %v7892_v34 = vpop.eup %7891  ;;  %4865 = vmatprep.subr.bf16.mxu0 %v9530_v48 }
0x29c2   :  { %4544 = vrot.lane.b32.xlu1 %v7892_v34, %s8122_s8 }
0x29c4   :  { %4866 = vmatpush1.bf16.msra.mxu0 %v9535_v61 }
0x29c5   :  { %4867 = vmatprep.subr.bf16.mxu0 %v9543_v49  ;;  %v7894_v51 = vpop.eup %7893 }
0x29c6   :  { %v4525_v16 = vadd.f32 1.0, %v7894_v51 }
0x29c8   :  { %4868 = vmatpush1.bf16.msra.mxu0 %v9548_v33  ;;  %7895 = vrcp.f32 %v4525_v16 }
0x29c9   :  { %7284 = vmatprep.subr.bf16.mxu0 %v10542_v45 }
0x29d2   :  { %v7896_v61 = vpop.eup %7895 }
0x2a2b   :  { %v4657_v40 = vpop.permute.xlu0 %4656 }
0x2a2c   :  { %v9855_v48 = vadd.f32 %v4657_v40, %v4649_v29 }
0x2a2e   :  { %7897 = vtanh.f32 %v9855_v48 }
0x2a34   :  { %v4545_v35 = vpop.permute.xlu1 %4544 }
0x2a35   :  { %v4547_v49 = vmul.f32 %v7896_v61, %v4545_v35 }
0x2a37   :  { %v4739_v56 = vpack.c.bf16 %v4547_v49, %v4547_v49 }
0x2a38   :  { %v7898_v33 = vpop.eup %7897 }
0x2a39   :  { %4662 = vrot.lane.b32.xlu0 %v7898_v33, %s8122_s8  ;;  %6834 = vmatmul.mubr.msk.bf16.vlgmr.msra.gmra.mrb[128].mxu1 %vm129_vm2, %v4739_v56 }
0x2a3a   :  { %4903 = vmatpush1.bf16.msra.mxu1 %v9563_v38  ;;  %4934 = vmatprep.mubr.bf16.mxu1 %v8121_v2  ;;  %v9878_v38 = vld [vmem:[%s10507_s16] ss:$8 sps:$4 sm:$0xff]  }
0x2a3b   :  { %4904 = vmatprep.subr.bf16.mxu1 %v9568_v17  ;;  %v9885_v17 = vld [vmem:[%s10507_s16 + $0x14] ss:$8 sps:$4 sm:$0xff]  }
0x2a3e   :  { %4905 = vmatpush1.bf16.msra.mxu1 %v9575_v44  ;;  %v9891_v44 = vld [vmem:[%s10507_s16 + $0x10] ss:$8 sps:$4 sm:$0xff]  }
0x2a3f   :  { %4906 = vmatprep.subr.bf16.mxu1 %v9582_v27  ;;  %v9897_v27 = vld [vmem:[%s10507_s16 + $0x24] ss:$8 sps:$4 sm:$0xff]  }
0x2a42   :  { %4907 = vmatpush1.bf16.msra.mxu1 %v9588_v57  ;;  %v9903_v57 = vld [vmem:[%s10507_s16 + $0x20] ss:$8 sps:$4 sm:$0xff]  }
0x2a43   :  { %4908 = vmatprep.subr.bf16.mxu1 %v9594_v37  ;;  %v9909_v37 = vld [vmem:[%s10507_s16 + $0x34] ss:$8 sps:$4 sm:$0xff]  }
0x2a46   :  { %4909 = vmatpush1.bf16.msra.mxu1 %v9600_v5  ;;  %v9915_v5 = vld [vmem:[%s10507_s16 + $0x30] ss:$8 sps:$4 sm:$0xff]  }
0x2a47   :  { %5052 = vmatprep.subr.bf16.mxu1 %v9871_v21 }
0x2a49   :  { %6839 = vmatmul.mubr.msk.bf16.vlgmr.msra.gmra.mrb[132].mxu1 %vm129_vm2, %v4739_v56 }
0x2a4a   :  { %5053 = vmatpush1.bf16.msra.mxu1 %v9878_v38  ;;  %5084 = vmatprep.mubr.bf16.mxu1 %v8121_v2 }
0x2a4b   :  { %5054 = vmatprep.subr.bf16.mxu1 %v9885_v17 }
0x2a4e   :  { %5055 = vmatpush1.bf16.msra.mxu1 %v9891_v44 }
0x2a4f   :  { %5056 = vmatprep.subr.bf16.mxu1 %v9897_v27 }
0x2a52   :  { %5057 = vmatpush1.bf16.msra.mxu1 %v9903_v57 }
0x2a53   :  { %5058 = vmatprep.subr.bf16.mxu1 %v9909_v37 }
0x2a56   :  { %5059 = vmatpush1.bf16.msra.mxu1 %v9915_v5 }
0x2a57   :  { %5211 = vmatprep.subr.bf16.mxu1 %v9502_v54 }
0x2a86   :  { %v4707_v1 = vpop.f32.mrb[148].mxu0 }
0x2a87   :  { %v4713_v18 = vadd.f32 %v4707_v1, %v9356_v58  ;;  %v7282_v23 = vpop.f32.mrb[149].mxu0 }
0x2a88   :  { %v4710_v50 = vpop.f32.mrb[150].mxu0 }
0x2a89   :  { %v4714_v63 = vadd.f32 %v9923_v32, %v4713_v18  ;;  %v7283_v0 = vpop.f32.mrb[151].mxu0 }
0x2a8b   :  { %7899 = vtanh.f32 %v4714_v63  ;;  %v6833_v8 = vmul.f32 -1.442695, %v4714_v63 }
0x2a8c   :  { %7901 = vpow2.f32 %v6831_v25 }
0x2a8e   :  { %v4818_v26 = vpop.f32.mrb[152].mxu0 }
0x2a8f   :  { %v4820_v60 = vpop.f32.mrb[153].mxu0 }
0x2a90   :  { %v4822_v54 = vpop.f32.mrb[154].mxu0 }
0x2a91   :  { %v4823_v31 = vpop.f32.mrb[155].mxu0 }
0x2a95   :  { %v7900_v3 = vpop.eup %7899 }
0x2a96   :  { %4724 = vrot.lane.b32.xlu1 %v7900_v3, %s8125_s0  ;;  %v7902_v28 = vpop.eup %7901 }
0x2a97   :  { %v4643_v9 = vadd.f32 1.0, %v7902_v28 }
0x2a99   :  { %7903 = vrcp.f32 %v4643_v9 }
0x2a9a   :  { %7905 = vpow2.f32 %v6833_v8 }
0x2aa3   :  { %v7904_v52 = vpop.eup %7903 }
0x2aa4   :  { %v7906_v62 = vpop.eup %7905 }
0x2aa5   :  { %v4718_v10 = vadd.f32 1.0, %v7906_v62 }
0x2aa7   :  { %7907 = vrcp.f32 %v4718_v10 }
0x2aab   :  { %v4663_v13 = vpop.permute.xlu0 %4662 }
0x2aac   :  { %v4665_v24 = vmul.f32 %v7904_v52, %v4663_v13 }
0x2aae   :  { %v9928_v43 = vpack.c.bf16 %v4665_v24, %v4665_v24 }
0x2ab0   :  { %6838 = vmatmul.mubr.msk.bf16.vlgmr.msra.gmra.mrb[156].mxu0 %vm129_vm2, %v9928_v43 }
0x2ab1   :  { %7285 = vmatpush3.bf16.msra.mxu0 %v9783_v53  ;;  %7288 = vmatprep.mubr.msk.bf16.mxu0 %vm8124_vm3, %v10542_v45  ;;  %v7908_v6 = vpop.eup %7907 }
0x2ab2   :  { %7286 = vmatprep.subr.bf16.mxu0 %v10542_v45  ;;  %v4722_v18 = vmul.f32 %v7908_v6, %v9798_v46 }
0x2ab5   :  { %7287 = vmatpush3.bf16.msra.mxu0 %v9792_v59 }
0x2ab6   :  { %5093 = vmatprep.subr.bf16.mxu0 %v9940_v12 }
0x2b08   :  { %v4725_v4 = vpop.permute.xlu1 %4724 }
0x2b09   :  { %v4727_v22 = vmul.f32 %v7908_v6, %v4725_v4 }
0x2b0b   :  { %4729 = vrot.lane.b32.xlu0 %v4727_v22, %s8125_s0 }
0x2b0c   :  { %v4777_v30 = vpop.f32.mrb[128].mxu1 }
0x2b0d   :  { %v4819_v36 = vadd.f32 %v4818_v26, %v4777_v30  ;;  %v4779_v34 = vpop.f32.mrb[129].mxu1 }
0x2b0e   :  { %v4821_v7 = vadd.f32 %v4820_v60, %v4779_v34  ;;  %v4781_v51 = vpop.f32.mrb[130].mxu1 }
0x2b0f   :  { %v4782_v16 = vpop.f32.mrb[131].mxu1  ;;  %v4825_v33 = vadd.f32 %v4819_v36, %v9482_v14 }
0x2b10   :  { %v4826_v29 = vadd.f32 %v4821_v7, %v9472_v55 }
0x2b11   :  { %v6836_v1 = vmul.f32 -1.442695, %v4825_v33 }
0x2b12   :  { %7909 = vtanh.f32 %v4826_v29 }
0x2b13   :  { %7911 = vpow2.f32 %v6836_v1 }
0x2b1c   :  { %v7910_v40 = vpop.eup %7909  ;;  %v4936_v61 = vpop.f32.mrb[132].mxu1 }
0x2b1d   :  { %v4938_v35 = vpop.f32.mrb[133].mxu1  ;;  %4842 = vrot.lane.b32.xlu0 %v7910_v40, %s8122_s8  ;;  %v7912_v0 = vpop.eup %7911 }
0x2b1e   :  { %v4940_v49 = vpop.f32.mrb[134].mxu1  ;;  %v4833_v3 = vadd.f32 1.0, %v7912_v0  ;;  %v10004_v0 = vld [vmem:[%s10510_s19 + $0x24] ss:$8 sps:$4 sm:$0xff]  }
0x2b1f   :  { %v4941_v56 = vpop.f32.mrb[135].mxu1  ;;  %v6837_v49 = vmul.f32 -1.442695, %v4826_v29  ;;  %v9975_v29 = vld [vmem:[%s10510_s19 + $0x4] ss:$8 sps:$4 sm:$0xff]  }
0x2b7d   :  { %v4730_v23 = vpop.permute.xlu0 %4729 }
0x2b7e   :  { %v9948_v50 = vadd.f32 %v4730_v23, %v4722_v18  ;;  %v9985_v23 = vld [vmem:[%s10510_s19] ss:$8 sps:$4 sm:$0xff]  }
0x2b80   :  { %7913 = vtanh.f32 %v9948_v50 }
0x2b83   :  { %v4895_v63 = vpop.f32.mrb[156].mxu0 }
0x2b84   :  { %v4937_v25 = vadd.f32 %v4936_v61, %v4895_v63  ;;  %v4897_v26 = vpop.f32.mrb[157].mxu0  ;;  %v9998_v63 = vld [vmem:[%s10510_s19 + $0x10] ss:$8 sps:$4 sm:$0xff]  }
0x2b85   :  { %v4939_v60 = vadd.f32 %v4938_v35, %v4897_v26  ;;  %v4899_v54 = vpop.f32.mrb[158].mxu0  ;;  %v10016_v26 = vld [vmem:[%s10510_s19 + $0x34] ss:$8 sps:$4 sm:$0xff]  }
0x2b86   :  { %v4900_v31 = vpop.f32.mrb[159].mxu0  ;;  %v4943_v8 = vadd.f32 %v4937_v25, %v9641_v20  ;;  %v10010_v25 = vld [vmem:[%s10510_s19 + $0x20] ss:$8 sps:$4 sm:$0xff]  }
0x2b87   :  { %v9952_v28 = vadd.f32 %v4939_v60, %v9631_v47 }
0x2b88   :  { %v6840_v62 = vmul.f32 -1.442695, %v4943_v8  ;;  %v10050_v8 = vld [vmem:[%s10509_s18 + $0x24] ss:$8 sps:$4 sm:$0xff]  }
0x2b89   :  { %7915 = vtanh.f32 %v9952_v28 }
0x2b8a   :  { %v7914_v9 = vpop.eup %7913  ;;  %7917 = vrcp.f32 %v4833_v3  ;;  %v10023_v3 = vld [vmem:[%s10510_s19 + $0x30] ss:$8 sps:$4 sm:$0xff]  }
0x2b8b   :  { %4735 = vrot.lane.b32.xlu1 %v7914_v9, %s8125_s0  ;;  %7919 = vpow2.f32 %v6840_v62  ;;  %v10056_v62 = vld [vmem:[%s10509_s18 + $0x20] ss:$8 sps:$4 sm:$0xff]  }
0x2b8f   :  { %v4843_v52 = vpop.permute.xlu0 %4842 }
0x2b93   :  { %v7916_v46 = vpop.eup %7915 }
0x2b94   :  { %4960 = vrot.lane.b32.xlu1 %v7916_v46, %s8122_s8  ;;  %v7918_v13 = vpop.eup %7917 }
0x2b95   :  { %v4845_v24 = vmul.f32 %v7918_v13, %v4843_v52  ;;  %v7920_v10 = vpop.eup %7919  ;;  %v4840_v16 = vmul.f32 %v7918_v13, %v9825_v11  ;;  %v10031_v52 = vld [vmem:[%s10509_s18] ss:$8 sps:$4 sm:$0xff]   ;;  %v10038_v13 = vld [vmem:[%s10509_s18 + $0x14] ss:$8 sps:$4 sm:$0xff]  }
0x2b96   :  { %v4951_v4 = vadd.f32 1.0, %v7920_v10  ;;  %v10062_v10 = vld [vmem:[%s10509_s18 + $0x34] ss:$8 sps:$4 sm:$0xff]  }
0x2b98   :  { %4847 = vrot.lane.b32.xlu1 %v4845_v24, %s8122_s8  ;;  %7921 = vrcp.f32 %v4951_v4  ;;  %v10044_v24 = vld [vmem:[%s10509_s18 + $0x10] ss:$8 sps:$4 sm:$0xff]  }
0x2b99   :  { %v10068_v4 = vld [vmem:[%s10509_s18 + $0x30] ss:$8 sps:$4 sm:$0xff]  }
0x2ba2   :  { %v7922_v34 = vpop.eup %7921 }
0x2ba3   :  { %v4958_v56 = vmul.f32 %v7922_v34, %v9855_v48  ;;  %v9992_v48 = vld [vmem:[%s10510_s19 + $0x14] ss:$8 sps:$4 sm:$0xff]  }
0x2bfd   :  { %v4736_v22 = vpop.permute.xlu1 %4735 }
0x2bfe   :  { %v4738_v30 = vmul.f32 %v7908_v6, %v4736_v22  ;;  %v10084_v22 = vld [vmem:[%s10509_s18 + $0x4] ss:$8 sps:$4 sm:$0xff]  }
0x2c00   :  { %v4975_v36 = vpack.c.bf16 %v4738_v30, %v4738_v30  ;;  %v6841_v30 = vmul.f32 -1.442695, %v9952_v28 }
0x2c02   :  { %4977 = vrot.lane.b32.xlu0 %v4975_v36, %s8122_s8 }
0x2c06   :  { %v4961_v7 = vpop.permute.xlu1 %4960 }
0x2c07   :  { %v4963_v51 = vmul.f32 %v7922_v34, %v4961_v7 }
0x2c09   :  { %4965 = vrot.lane.b32.xlu0 %v4963_v51, %s8122_s8 }
0x2c0a   :  { %v4848_v40 = vpop.permute.xlu1 %4847 }
0x2c0b   :  { %v9962_v61 = vadd.f32 %v4848_v40, %v4840_v16 }
0x2c0d   :  { %7923 = vtanh.f32 %v9962_v61 }
0x2c0e   :  { %7925 = vpow2.f32 %v6837_v49 }
0x2c17   :  { %v7924_v35 = vpop.eup %7923 }
0x2c18   :  { %4853 = vrot.lane.b32.xlu1 %v7924_v35, %s8122_s8  ;;  %v7926_v11 = vpop.eup %7925 }
0x2c19   :  { %v4834_v1 = vadd.f32 1.0, %v7926_v11 }
0x2c74   :  { %v4978_v6 = vpop.permute.xlu0 %4977 }
0x2c75   :  { %7289 = vmatmul.mubr.msk.bf16.vlgmr.msra.gmra.mrb[160].mxu0 %vm891_vm4, %v4978_v6 }
0x2c76   :  { %5094 = vmatpush1.bf16.msra.mxu0 %v9821_v41  ;;  %5125 = vmatprep.mubr.bf16.mxu0 %v8121_v2 }
0x2c77   :  { %5095 = vmatprep.subr.bf16.mxu0 %v9830_v19 }
0x2c7a   :  { %5096 = vmatpush1.bf16.msra.mxu0 %v9837_v42 }
0x2c7b   :  { %v4966_v33 = vpop.permute.xlu0 %4965  ;;  %5170 = vmatprep.subr.bf16.mxu0 %v9975_v29 }
0x2c7c   :  { %v9978_v18 = vadd.f32 %v4966_v33, %v4958_v56 }
0x2c7d   :  { %6845 = vmatmul.mubr.msk.bf16.vlgmr.msra.gmra.mrb[164].mxu0 %vm891_vm4, %v4978_v6 }
0x2c7e   :  { %7927 = vtanh.f32 %v9978_v18  ;;  %5171 = vmatpush1.bf16.msra.mxu0 %v9985_v23  ;;  %5202 = vmatprep.mubr.bf16.mxu0 %v8121_v2 }
0x2c7f   :  { %5172 = vmatprep.subr.bf16.mxu0 %v9992_v48  ;;  %7929 = vrcp.f32 %v4834_v1 }
0x2c80   :  { %7931 = vpow2.f32 %v6841_v30 }
0x2c82   :  { %5173 = vmatpush1.bf16.msra.mxu0 %v9998_v63 }
0x2c83   :  { %5174 = vmatprep.subr.bf16.mxu0 %v10004_v0 }
0x2c86   :  { %5175 = vmatpush1.bf16.msra.mxu0 %v10010_v25 }
0x2c87   :  { %5176 = vmatprep.subr.bf16.mxu0 %v10016_v26 }
0x2c88   :  { %v7928_v60 = vpop.eup %7927 }
0x2c89   :  { %4971 = vrot.lane.b32.xlu0 %v7928_v60, %s8122_s8  ;;  %v7930_v54 = vpop.eup %7929 }
0x2c8a   :  { %v4854_v31 = vpop.permute.xlu1 %4853  ;;  %5177 = vmatpush1.bf16.msra.mxu0 %v10023_v3  ;;  %v7932_v36 = vpop.eup %7931 }
0x2c8b   :  { %v4856_v9 = vmul.f32 %v7930_v54, %v4854_v31  ;;  %7292 = vmatprep.subr.bf16.mxu0 %v10542_v45  ;;  %v4952_v34 = vadd.f32 1.0, %v7932_v36 }
0x2c8d   :  { %v5048_v46 = vpack.c.bf16 %v4856_v9, %v4856_v9  ;;  %7933 = vrcp.f32 %v4952_v34 }
0x2c8f   :  { %6844 = vmatmul.mubr.msk.bf16.vlgmr.msra.gmra.mrb[136].mxu1 %vm129_vm2, %v5048_v46 }
0x2c90   :  { %5212 = vmatpush1.bf16.msra.mxu1 %v10031_v52  ;;  %5243 = vmatprep.mubr.bf16.mxu1 %v8121_v2 }
0x2c91   :  { %5213 = vmatprep.subr.bf16.mxu1 %v10038_v13 }
0x2c94   :  { %5214 = vmatpush1.bf16.msra.mxu1 %v10044_v24 }
0x2c95   :  { %5215 = vmatprep.subr.bf16.mxu1 %v10050_v8 }
0x2c97   :  { %v7934_v7 = vpop.eup %7933 }
0x2c98   :  { %5216 = vmatpush1.bf16.msra.mxu1 %v10056_v62 }
0x2c99   :  { %5217 = vmatprep.subr.bf16.mxu1 %v10062_v10 }
0x2c9c   :  { %5218 = vmatpush1.bf16.msra.mxu1 %v10068_v4 }
0x2c9d   :  { %5361 = vmatprep.subr.bf16.mxu1 %v9871_v21 }
0x2c9f   :  { %6849 = vmatmul.mubr.msk.bf16.vlgmr.msra.gmra.mrb[140].mxu1 %vm129_vm2, %v5048_v46 }
0x2ca0   :  { %5362 = vmatpush1.bf16.msra.mxu1 %v9878_v38  ;;  %5393 = vmatprep.mubr.bf16.mxu1 %v8121_v2 }
0x2ca1   :  { %5363 = vmatprep.subr.bf16.mxu1 %v9885_v17 }
0x2ca4   :  { %5364 = vmatpush1.bf16.msra.mxu1 %v9891_v44 }
0x2ca5   :  { %5365 = vmatprep.subr.bf16.mxu1 %v9897_v27 }
0x2ca8   :  { %5366 = vmatpush1.bf16.msra.mxu1 %v9903_v57 }
0x2ca9   :  { %5367 = vmatprep.subr.bf16.mxu1 %v9909_v37 }
0x2cac   :  { %5368 = vmatpush1.bf16.msra.mxu1 %v9915_v5 }
0x2cad   :  { %5520 = vmatprep.subr.bf16.mxu1 %v10084_v22 }
0x2cfb   :  { %v4972_v51 = vpop.permute.xlu0 %4971 }
0x2cfc   :  { %v4974_v16 = vmul.f32 %v7934_v7, %v4972_v51 }
0x2cfe   :  { %v10088_v40 = vpack.c.bf16 %v4974_v16, %v4974_v16 }
0x2d00   :  { %6848 = vmatmul.mubr.msk.bf16.vlgmr.msra.gmra.mrb[168].mxu0 %vm129_vm2, %v10088_v40 }
0x2d01   :  { %7293 = vmatpush3.bf16.msra.mxu0 %v9783_v53  ;;  %7296 = vmatprep.mubr.msk.bf16.mxu0 %vm8124_vm3, %v10542_v45 }
0x2d02   :  { %7294 = vmatprep.subr.bf16.mxu0 %v10542_v45 }
0x2d05   :  { %7295 = vmatpush3.bf16.msra.mxu0 %v9792_v59 }
0x2d06   :  { %5402 = vmatprep.subr.bf16.mxu0 %v9940_v12 }
0x2d48   :  { %v5016_v28 = vpop.f32.mrb[160].mxu0 }
0x2d49   :  { %v5022_v35 = vadd.f32 %v5016_v28, %v9356_v58  ;;  %v7290_v49 = vpop.f32.mrb[161].mxu0 }
0x2d4a   :  { %v5019_v6 = vpop.f32.mrb[162].mxu0 }
0x2d4b   :  { %v5023_v11 = vadd.f32 %v9923_v32, %v5022_v35  ;;  %v7291_v56 = vpop.f32.mrb[163].mxu0 }
0x2d4d   :  { %7935 = vtanh.f32 %v5023_v11  ;;  %v6843_v49 = vmul.f32 -1.442695, %v5023_v11 }
0x2d50   :  { %v5127_v33 = vpop.f32.mrb[164].mxu0 }
0x2d51   :  { %v5129_v53 = vpop.f32.mrb[165].mxu0 }
0x2d52   :  { %v5131_v1 = vpop.f32.mrb[166].mxu0 }
0x2d53   :  { %v5132_v60 = vpop.f32.mrb[167].mxu0 }
0x2d57   :  { %v7936_v54 = vpop.eup %7935 }
0x2d58   :  { %5033 = vrot.lane.b32.xlu1 %v7936_v54, %s8125_s0 }
0x2d62   :  { %v5086_v31 = vpop.f32.mrb[136].mxu1 }
0x2d63   :  { %v5128_v59 = vadd.f32 %v5127_v33, %v5086_v31  ;;  %v5088_v9 = vpop.f32.mrb[137].mxu1 }
0x2d64   :  { %v5130_v46 = vadd.f32 %v5129_v53, %v5088_v9  ;;  %v5090_v30 = vpop.f32.mrb[138].mxu1 }
0x2d65   :  { %v5091_v36 = vpop.f32.mrb[139].mxu1  ;;  %v5134_v33 = vadd.f32 %v5128_v59, %v9482_v14 }
0x2d66   :  { %v5135_v34 = vadd.f32 %v5130_v46, %v9472_v55 }
0x2d67   :  { %v6846_v53 = vmul.f32 -1.442695, %v5134_v33 }
0x2d68   :  { %7937 = vtanh.f32 %v5135_v34 }
0x2d69   :  { %7939 = vpow2.f32 %v6843_v49 }
0x2d72   :  { %v7938_v7 = vpop.eup %7937  ;;  %v5245_v51 = vpop.f32.mrb[140].mxu1 }
0x2d73   :  { %v5247_v16 = vpop.f32.mrb[141].mxu1  ;;  %5151 = vrot.lane.b32.xlu1 %v7938_v7, %s8122_s8  ;;  %v7940_v6 = vpop.eup %7939 }
0x2d74   :  { %v5249_v28 = vpop.f32.mrb[142].mxu1  ;;  %v5027_v56 = vadd.f32 1.0, %v7940_v6 }
0x2d75   :  { %v5250_v35 = vpop.f32.mrb[143].mxu1 }
0x2d76   :  { %7941 = vrcp.f32 %v5027_v56 }
0x2d77   :  { %7943 = vpow2.f32 %v6846_v53 }
0x2d80   :  { %v7942_v1 = vpop.eup %7941 }
0x2d81   :  { %v7944_v9 = vpop.eup %7943  ;;  %v5031_v33 = vmul.f32 %v7942_v1, %v9948_v50 }
0x2d82   :  { %v5142_v28 = vadd.f32 1.0, %v7944_v9 }
0x2dca   :  { %v5034_v60 = vpop.permute.xlu1 %5033 }
0x2dcb   :  { %v5036_v54 = vmul.f32 %v7942_v1, %v5034_v60 }
0x2dcd   :  { %5038 = vrot.lane.b32.xlu0 %v5036_v54, %s8125_s0 }
0x2dd3   :  { %v5204_v31 = vpop.f32.mrb[168].mxu0 }
0x2dd4   :  { %v5246_v46 = vadd.f32 %v5245_v51, %v5204_v31  ;;  %v5206_v30 = vpop.f32.mrb[169].mxu0 }
0x2dd5   :  { %v5248_v36 = vadd.f32 %v5247_v16, %v5206_v30  ;;  %v5208_v7 = vpop.f32.mrb[170].mxu0 }
0x2dd6   :  { %v5209_v11 = vpop.f32.mrb[171].mxu0  ;;  %v5252_v51 = vadd.f32 %v5246_v46, %v9641_v20 }
0x2dd7   :  { %v10106_v35 = vadd.f32 %v5248_v36, %v9631_v47 }
0x2dd8   :  { %v6850_v16 = vmul.f32 -1.442695, %v5252_v51 }
0x2dd9   :  { %7945 = vtanh.f32 %v10106_v35 }
0x2dda   :  { %7947 = vrcp.f32 %v5142_v28 }
0x2ddb   :  { %7949 = vpow2.f32 %v6850_v16 }
0x2de3   :  { %v7946_v59 = vpop.eup %7945 }
0x2de4   :  { %5269 = vrot.lane.b32.xlu0 %v7946_v59, %s8122_s8  ;;  %v7948_v49 = vpop.eup %7947  ;;  %v6847_v59 = vmul.f32 -1.442695, %v5135_v34 }
0x2de5   :  { %v5152_v6 = vpop.permute.xlu1 %5151  ;;  %v7950_v54 = vpop.eup %7949  ;;  %v5149_v46 = vmul.f32 %v7948_v49, %v9962_v61 }
0x2de6   :  { %v5154_v56 = vmul.f32 %v7948_v49, %v5152_v6  ;;  %v5260_v31 = vadd.f32 1.0, %v7950_v54 }
0x2de8   :  { %5156 = vrot.lane.b32.xlu0 %v5154_v56, %s8122_s8 }
0x2e3f   :  { %v5039_v53 = vpop.permute.xlu0 %5038 }
0x2e40   :  { %v10113_v60 = vadd.f32 %v5039_v53, %v5031_v33 }
0x2e42   :  { %7951 = vtanh.f32 %v10113_v60 }
0x2e43   :  { %7953 = vrcp.f32 %v5260_v31 }
0x2e4c   :  { %v7952_v9 = vpop.eup %7951 }
0x2e4d   :  { %5044 = vrot.lane.b32.xlu1 %v7952_v9, %s8125_s0  ;;  %v7954_v30 = vpop.eup %7953 }
0x2e4e   :  { %v5267_v33 = vmul.f32 %v7954_v30, %v9978_v18  ;;  %v6851_v18 = vmul.f32 -1.442695, %v10106_v35 }
0x2e56   :  { %v5270_v36 = vpop.permute.xlu0 %5269 }
0x2e57   :  { %v5272_v7 = vmul.f32 %v7954_v30, %v5270_v36 }
0x2e59   :  { %5274 = vrot.lane.b32.xlu1 %v5272_v7, %s8122_s8 }
0x2e5a   :  { %v5157_v11 = vpop.permute.xlu0 %5156 }
0x2e5b   :  { %v10119_v50 = vadd.f32 %v5157_v11, %v5149_v46 }
0x2e5d   :  { %7955 = vtanh.f32 %v10119_v50 }
0x2e5e   :  { %7957 = vpow2.f32 %v6847_v59 }
0x2e67   :  { %v7956_v28 = vpop.eup %7955 }
0x2e68   :  { %5162 = vrot.lane.b32.xlu1 %v7956_v28, %s8122_s8  ;;  %v7958_v16 = vpop.eup %7957 }
0x2e69   :  { %v5143_v61 = vadd.f32 1.0, %v7958_v16 }
0x2ebf   :  { %v5045_v6 = vpop.permute.xlu1 %5044 }
0x2ec0   :  { %v5047_v56 = vmul.f32 %v7942_v1, %v5045_v6 }
0x2ec2   :  { %v5284_v51 = vpack.c.bf16 %v5047_v56, %v5047_v56 }
0x2ec4   :  { %5286 = vrot.lane.b32.xlu0 %v5284_v51, %s8122_s8 }
0x2ecb   :  { %v5275_v53 = vpop.permute.xlu1 %5274 }
0x2ecc   :  { %v10125_v49 = vadd.f32 %v5275_v53, %v5267_v33 }
0x2ece   :  { %7959 = vtanh.f32 %v10125_v49 }
0x2ecf   :  { %7961 = vrcp.f32 %v5143_v61 }
0x2ed0   :  { %7963 = vpow2.f32 %v6851_v18 }
0x2ed8   :  { %v7960_v54 = vpop.eup %7959 }
0x2ed9   :  { %5280 = vrot.lane.b32.xlu0 %v7960_v54, %s8122_s8  ;;  %v7962_v34 = vpop.eup %7961 }
0x2eda   :  { %v5163_v31 = vpop.permute.xlu1 %5162 }
0x2edb   :  { %v5165_v9 = vmul.f32 %v7962_v34, %v5163_v31 }
0x2edd   :  { %v5357_v1 = vpack.c.bf16 %v5165_v9, %v5165_v9 }
0x2edf   :  { %6854 = vmatmul.mubr.msk.bf16.vlgmr.msra.gmra.mrb[144].mxu1 %vm129_vm2, %v5357_v1 }
0x2ee0   :  { %5521 = vmatpush1.bf16.msra.mxu1 %v10031_v52  ;;  %5552 = vmatprep.mubr.bf16.mxu1 %v8121_v2 }
0x2ee1   :  { %5522 = vmatprep.subr.bf16.mxu1 %v10038_v13 }
0x2ee4   :  { %5523 = vmatpush1.bf16.msra.mxu1 %v10044_v24 }
0x2ee5   :  { %5524 = vmatprep.subr.bf16.mxu1 %v10050_v8 }
0x2ee8   :  { %5525 = vmatpush1.bf16.msra.mxu1 %v10056_v62 }
0x2ee9   :  { %5526 = vmatprep.subr.bf16.mxu1 %v10062_v10 }
0x2eec   :  { %5527 = vmatpush1.bf16.msra.mxu1 %v10068_v4 }
0x2eed   :  { %5645 = vmatprep.subr.bf16.mxu1 %v9940_v12  ;;  %v7964_v12 = vpop.eup %7963 }
0x2eee   :  { %v5261_v36 = vadd.f32 1.0, %v7964_v12 }
0x2eef   :  { %6859 = vmatmul.mubr.msk.bf16.vlgmr.msra.gmra.mrb[148].mxu1 %vm129_vm2, %v5357_v1 }
0x2ef0   :  { %5646 = vmatpush1.bf16.msra.mxu1 %v9821_v41  ;;  %5677 = vmatprep.mubr.bf16.mxu1 %v8121_v2  ;;  %7965 = vrcp.f32 %v5261_v36 }
0x2ef1   :  { %5647 = vmatprep.subr.bf16.mxu1 %v9830_v19 }
0x2ef4   :  { %5648 = vmatpush1.bf16.msra.mxu1 %v9837_v42 }
0x2ef5   :  { %5722 = vmatprep.subr.bf16.mxu1 %v9975_v29 }
0x2f36   :  { %v5287_v30 = vpop.permute.xlu0 %5286 }
0x2f37   :  { %7297 = vmatmul.mubr.msk.bf16.vlgmr.msra.gmra.mrb[172].mxu0 %vm891_vm4, %v5287_v30 }
0x2f38   :  { %5403 = vmatpush1.bf16.msra.mxu0 %v9821_v41  ;;  %5434 = vmatprep.mubr.bf16.mxu0 %v8121_v2  ;;  %v7966_v41 = vpop.eup %7965 }
0x2f39   :  { %5404 = vmatprep.subr.bf16.mxu0 %v9830_v19 }
0x2f3c   :  { %5405 = vmatpush1.bf16.msra.mxu0 %v9837_v42 }
0x2f3d   :  { %5479 = vmatprep.subr.bf16.mxu0 %v9975_v29 }
0x2f3f   :  { %6855 = vmatmul.mubr.msk.bf16.vlgmr.msra.gmra.mrb[176].mxu0 %vm891_vm4, %v5287_v30 }
0x2f40   :  { %5480 = vmatpush1.bf16.msra.mxu0 %v9985_v23  ;;  %5511 = vmatprep.mubr.bf16.mxu0 %v8121_v2 }
0x2f41   :  { %5481 = vmatprep.subr.bf16.mxu0 %v9992_v48 }
0x2f44   :  { %5482 = vmatpush1.bf16.msra.mxu0 %v9998_v63 }
0x2f45   :  { %5483 = vmatprep.subr.bf16.mxu0 %v10004_v0 }
0x2f48   :  { %5484 = vmatpush1.bf16.msra.mxu0 %v10010_v25 }
0x2f49   :  { %5485 = vmatprep.subr.bf16.mxu0 %v10016_v26 }
0x2f4b   :  { %v5281_v19 = vpop.permute.xlu0 %5280 }
0x2f4c   :  { %v5283_v42 = vmul.f32 %v7966_v41, %v5281_v19  ;;  %5486 = vmatpush1.bf16.msra.mxu0 %v10023_v3 }
0x2f4d   :  { %5598 = vmatprep.subr.bf16.mxu0 %v9871_v21 }
0x2f4e   :  { %v10162_v35 = vpack.c.bf16 %v5283_v42, %v5283_v42 }
0x2f50   :  { %6858 = vmatmul.mubr.msk.bf16.vlgmr.msra.gmra.mrb[180].mxu0 %vm129_vm2, %v10162_v35 }
0x2f51   :  { %5599 = vmatpush1.bf16.msra.mxu0 %v9878_v38  ;;  %5630 = vmatprep.mubr.bf16.mxu0 %v8121_v2 }
0x2f52   :  { %5600 = vmatprep.subr.bf16.mxu0 %v9885_v17 }
0x2f55   :  { %5601 = vmatpush1.bf16.msra.mxu0 %v9891_v44 }
0x2f56   :  { %5602 = vmatprep.subr.bf16.mxu0 %v9897_v27 }
0x2f59   :  { %5603 = vmatpush1.bf16.msra.mxu0 %v9903_v57 }
0x2f5a   :  { %5604 = vmatprep.subr.bf16.mxu0 %v9909_v37 }
0x2f5d   :  { %5605 = vmatpush1.bf16.msra.mxu0 %v9915_v5 }
0x2f5e   :  { %5763 = vmatprep.subr.bf16.mxu0 %v10084_v22 }
0x2fb2   :  { %v5395_v21 = vpop.f32.mrb[144].mxu1 }
0x2fb3   :  { %v5397_v7 = vpop.f32.mrb[145].mxu1 }
0x2fb4   :  { %v5399_v46 = vpop.f32.mrb[146].mxu1 }
0x2fb5   :  { %v5400_v38 = vpop.f32.mrb[147].mxu1 }
0x2fc2   :  { %v5554_v11 = vpop.f32.mrb[148].mxu1 }
0x2fc3   :  { %v5556_v28 = vpop.f32.mrb[149].mxu1 }
0x2fc4   :  { %v5558_v59 = vpop.f32.mrb[150].mxu1 }
0x2fc5   :  { %v5559_v17 = vpop.f32.mrb[151].mxu1 }
0x300a   :  { %v5325_v6 = vpop.f32.mrb[172].mxu0 }
0x300b   :  { %v5331_v44 = vadd.f32 %v5325_v6, %v9356_v58  ;;  %v7298_v27 = vpop.f32.mrb[173].mxu0 }
0x300c   :  { %v5328_v56 = vpop.f32.mrb[174].mxu0 }
0x300d   :  { %v5332_v57 = vadd.f32 %v9923_v32, %v5331_v44  ;;  %v7299_v37 = vpop.f32.mrb[175].mxu0 }
0x300f   :  { %7967 = vtanh.f32 %v5332_v57  ;;  %v6853_v41 = vmul.f32 -1.442695, %v5332_v57 }
0x3012   :  { %v5436_v5 = vpop.f32.mrb[176].mxu0 }
0x3013   :  { %v5437_v51 = vadd.f32 %v5436_v5, %v5395_v21  ;;  %v5438_v16 = vpop.f32.mrb[177].mxu0 }
0x3014   :  { %v5439_v33 = vadd.f32 %v5438_v16, %v5397_v7  ;;  %v5440_v53 = vpop.f32.mrb[178].mxu0 }
0x3015   :  { %v5441_v61 = vpop.f32.mrb[179].mxu0  ;;  %v5443_v19 = vadd.f32 %v5437_v51, %v9482_v14 }
0x3016   :  { %v5444_v54 = vadd.f32 %v5439_v33, %v9472_v55 }
0x3017   :  { %v6856_v42 = vmul.f32 -1.442695, %v5443_v19 }
0x3018   :  { %7969 = vtanh.f32 %v5444_v54 }
0x3019   :  { %v7968_v34 = vpop.eup %7967 }
0x301a   :  { %5342 = vrot.lane.b32.xlu1 %v7968_v34, %s8125_s0 }
0x3022   :  { %v7970_v31 = vpop.eup %7969 }
0x3023   :  { %5460 = vrot.lane.b32.xlu0 %v7970_v31, %s8122_s8  ;;  %v5513_v58 = vpop.f32.mrb[180].mxu0 }
0x3024   :  { %v5555_v9 = vadd.f32 %v5554_v11, %v5513_v58  ;;  %v5515_v32 = vpop.f32.mrb[181].mxu0 }
0x3025   :  { %v5557_v1 = vadd.f32 %v5556_v28, %v5515_v32  ;;  %v5517_v18 = vpop.f32.mrb[182].mxu0 }
0x3026   :  { %v5518_v30 = vpop.f32.mrb[183].mxu0  ;;  %v5561_v38 = vadd.f32 %v5555_v9, %v9641_v20 }
0x3027   :  { %v10181_v12 = vadd.f32 %v5557_v1, %v9631_v47 }
0x3028   :  { %v6860_v28 = vmul.f32 -1.442695, %v5561_v38 }
0x3029   :  { %7971 = vtanh.f32 %v10181_v12 }
0x302a   :  { %7973 = vpow2.f32 %v6853_v41 }
0x302b   :  { %7975 = vpow2.f32 %v6856_v42 }
0x3033   :  { %v7972_v36 = vpop.eup %7971 }
0x3034   :  { %5578 = vrot.lane.b32.xlu0 %v7972_v36, %s8122_s8  ;;  %v7974_v21 = vpop.eup %7973 }
0x3035   :  { %v5336_v7 = vadd.f32 1.0, %v7974_v21  ;;  %v7976_v46 = vpop.eup %7975 }
0x3036   :  { %v5451_v11 = vadd.f32 1.0, %v7976_v46 }
0x3037   :  { %7977 = vrcp.f32 %v5336_v7 }
0x3038   :  { %7979 = vrcp.f32 %v5451_v11 }
0x3039   :  { %7981 = vpow2.f32 %v6860_v28 }
0x3041   :  { %v7978_v59 = vpop.eup %7977 }
0x3042   :  { %v7980_v44 = vpop.eup %7979  ;;  %v5340_v33 = vmul.f32 %v7978_v59, %v10113_v60 }
0x3043   :  { %v7982_v27 = vpop.eup %7981  ;;  %v5458_v34 = vmul.f32 %v7980_v44, %v10119_v50  ;;  %v6857_v50 = vmul.f32 -1.442695, %v5444_v54 }
0x3044   :  { %v5569_v37 = vadd.f32 1.0, %v7982_v27 }
0x3046   :  { %7983 = vrcp.f32 %v5569_v37 }
0x3050   :  { %v7984_v5 = vpop.eup %7983 }
0x3051   :  { %v5576_v1 = vmul.f32 %v7984_v5, %v10125_v49 }
0x308c   :  { %v5343_v17 = vpop.permute.xlu1 %5342 }
0x308d   :  { %v5345_v6 = vmul.f32 %v7978_v59, %v5343_v17 }
0x308f   :  { %5347 = vrot.lane.b32.xlu1 %v5345_v6, %s8125_s0 }
0x3095   :  { %v5461_v56 = vpop.permute.xlu0 %5460 }
0x3096   :  { %v5463_v57 = vmul.f32 %v7980_v44, %v5461_v56 }
0x3098   :  { %5465 = vrot.lane.b32.xlu1 %v5463_v57, %s8122_s8 }
0x30a6   :  { %v5579_v51 = vpop.permute.xlu0 %5578 }
0x30a7   :  { %v5581_v16 = vmul.f32 %v7984_v5, %v5579_v51 }
0x30a9   :  { %5583 = vrot.lane.b32.xlu1 %v5581_v16, %s8122_s8 }
0x3101   :  { %v5348_v53 = vpop.permute.xlu1 %5347 }
0x3102   :  { %v5350_v61 = vadd.f32 %v5348_v53, %v5340_v33 }
0x3104   :  { %7985 = vtanh.f32 %v5350_v61 }
0x310a   :  { %v5466_v31 = vpop.permute.xlu1 %5465 }
0x310b   :  { %v10192_v58 = vadd.f32 %v5466_v31, %v5458_v34 }
0x310d   :  { %7987 = vtanh.f32 %v10192_v58 }
0x310e   :  { %v7986_v9 = vpop.eup %7985 }
0x310f   :  { %5353 = vrot.lane.b32.xlu0 %v7986_v9, %s8125_s0  ;;  %s8126_s0 = smov [#allocation2]  }
0x3110   :  { %s6616_s28 = sshll.u32 %s8126_s0, 4  ;;  %s6617_s28 = int_to_ptr.vmem [resolvable:$true] %s6616_s28 }
0x3111   :  { %p8102_p1 = scmp.lt.s32.totalorder %s6617_s28, %s6617_s28 }
0x3117   :  { %v7988_v32 = vpop.eup %7987 }
0x3118   :  { %5471 = vrot.lane.b32.xlu0 %v7988_v32, %s8122_s8 }
0x311b   :  { %v5584_v18 = vpop.permute.xlu1 %5583 }
0x311c   :  { %v10198_v60 = vadd.f32 %v5584_v18, %v5576_v1 }
0x311e   :  { %7989 = vtanh.f32 %v10198_v60 }
0x311f   :  { %7991 = vpow2.f32 %v6857_v50 }
0x3128   :  { %v7990_v30 = vpop.eup %7989 }
0x3129   :  { %5589 = vrot.lane.b32.xlu0 %v7990_v30, %s8122_s8  ;;  %v7992_v36 = vpop.eup %7991 }
0x312a   :  { %v5452_v41 = vadd.f32 1.0, %v7992_v36 }
0x312c   :  { %7993 = vrcp.f32 %v5452_v41 }
0x3136   :  { %v7994_v7 = vpop.eup %7993 }
0x3181   :  { %v5354_v19 = vpop.permute.xlu0 %5353 }
0x3182   :  { %v5356_v42 = vmul.f32 %v7978_v59, %v5354_v19 }
0x3184   :  { %v5593_v21 = vpack.c.bf16 %v5356_v42, %v5356_v42 }
0x3186   :  { %5640 = vrot.lane.b32.xlu1 %v5593_v21, %s8122_s8 }
0x318a   :  { %v5472_v49 = vpop.permute.xlu0 %5471 }
0x318b   :  { %v5474_v46 = vmul.f32 %v7994_v7, %v5472_v49 }
0x318d   :  { %v5594_v38 = vpack.c.bf16 %v5474_v46, %v5474_v46 }
0x318f   :  { %6862 = vmatmul.mubr.msk.bf16.vlgmr.msra.gmra.mrb[184].mxu0 %vm129_vm2, %v5594_v38 }
0x3190   :  { %5764 = vmatpush1.bf16.msra.mxu0 %v10031_v52  ;;  %5795 = vmatprep.mubr.bf16.mxu0 %v8121_v2 }
0x3191   :  { %5765 = vmatprep.subr.bf16.mxu0 %v10038_v13 }
0x3194   :  { %5766 = vmatpush1.bf16.msra.mxu0 %v10044_v24 }
0x3195   :  { %5767 = vmatprep.subr.bf16.mxu0 %v10050_v8 }
0x3198   :  { %5768 = vmatpush1.bf16.msra.mxu0 %v10056_v62 }
0x3199   :  { %5769 = vmatprep.subr.bf16.mxu0 %v10062_v10 }
0x319c   :  { %5770 = vmatpush1.bf16.msra.mxu0 %v10068_v4 }
0x319d   :  { %5885 = vmatprep.subr.bf16.mxu0 %v10084_v22  ;;  %v6861_v22 = vmul.f32 -1.442695, %v10181_v12 }
0x319f   :  { %6867 = vmatmul.mubr.msk.bf16.vlgmr.msra.gmra.mrb[188].mxu0 %vm129_vm2, %v5594_v38  ;;  %7995 = vpow2.f32 %v6861_v22 }
0x31a0   :  { %5886 = vmatpush1.bf16.msra.mxu0 %v10031_v52  ;;  %5917 = vmatprep.mubr.bf16.mxu0 %v8121_v2 }
0x31a1   :  { %5887 = vmatprep.subr.bf16.mxu0 %v10038_v13  ;;  %v5590_v13 = vpop.permute.xlu0 %5589 }
0x31a4   :  { %5888 = vmatpush1.bf16.msra.mxu0 %v10044_v24 }
0x31a5   :  { %5889 = vmatprep.subr.bf16.mxu0 %v10050_v8 }
0x31a8   :  { %5890 = vmatpush1.bf16.msra.mxu0 %v10056_v62 }
0x31a9   :  { %5891 = vmatprep.subr.bf16.mxu0 %v10062_v10  ;;  %v7996_v52 = vpop.eup %7995 }
0x31aa   :  { %v5570_v54 = vadd.f32 1.0, %v7996_v52 }
0x31ac   :  { %5892 = vmatpush1.bf16.msra.mxu0 %v10068_v4  ;;  %7997 = vrcp.f32 %v5570_v54 }
0x31ad   :  { %7312 = vmatprep.subr.bf16.mxu0 %v10542_v45 }
0x31b6   :  { %v7998_v24 = vpop.eup %7997 }
0x31b7   :  { %v5592_v8 = vmul.f32 %v7998_v24, %v5590_v13 }
0x31b9   :  { %v10233_v62 = vpack.c.bf16 %v5592_v8, %v5592_v8 }
0x31f8   :  { %v5641_v11 = vpop.permute.xlu1 %5640 }
0x31f9   :  { %6863 = vmatmul.mubr.msk.bf16.vlgmr.msra.gmra.mrb[152].mxu1 %vm891_vm4, %v5641_v11 }
0x31fa   :  { %5723 = vmatpush1.bf16.msra.mxu1 %v9985_v23  ;;  %5754 = vmatprep.mubr.bf16.mxu1 %v8121_v2 }
0x31fb   :  { %5724 = vmatprep.subr.bf16.mxu1 %v9992_v48 }
0x31fe   :  { %5725 = vmatpush1.bf16.msra.mxu1 %v9998_v63 }
0x31ff   :  { %5726 = vmatprep.subr.bf16.mxu1 %v10004_v0 }
0x3202   :  { %5727 = vmatpush1.bf16.msra.mxu1 %v10010_v25 }
0x3203   :  { %5728 = vmatprep.subr.bf16.mxu1 %v10016_v26 }
0x3206   :  { %5729 = vmatpush1.bf16.msra.mxu1 %v10023_v3 }
0x3207   :  { %5841 = vmatprep.subr.bf16.mxu1 %v9975_v29 }
0x3209   :  { %6866 = vmatmul.mubr.msk.bf16.vlgmr.msra.gmra.mrb[156].mxu1 %vm129_vm2, %v10233_v62 }
0x320a   :  { %5842 = vmatpush1.bf16.msra.mxu1 %v9985_v23  ;;  %5873 = vmatprep.mubr.bf16.mxu1 %v8121_v2 }
0x320b   :  { %5843 = vmatprep.subr.bf16.mxu1 %v9992_v48 }
0x320e   :  { %5844 = vmatpush1.bf16.msra.mxu1 %v9998_v63 }
0x320f   :  { %5845 = vmatprep.subr.bf16.mxu1 %v10004_v0 }
0x3212   :  { %5846 = vmatpush1.bf16.msra.mxu1 %v10010_v25 }
0x3213   :  { %5847 = vmatprep.subr.bf16.mxu1 %v10016_v26 }
0x3216   :  { %5848 = vmatpush1.bf16.msra.mxu1 %v10023_v3 }
0x3217   :  { %7300 = vmatprep.subr.bf16.mxu1 %v10542_v45 }
0x3262   :  { %v5632_v29 = vpop.f32.mrb[184].mxu0 }
0x3263   :  { %v5634_v10 = vpop.f32.mrb[185].mxu0 }
0x3264   :  { %v5636_v4 = vpop.f32.mrb[186].mxu0 }
0x3265   :  { %v5637_v23 = vpop.f32.mrb[187].mxu0  ;;  %v7492_v4 = vld [vmem:[%s10512_s21 + $0x8] sm:$0xff]  }
0x3266   :  { %v7493_v23 = vld [vmem:[%s10512_s21 + $0x10] sm:$0xff]  }
0x3272   :  { %v5797_v12 = vpop.f32.mrb[188].mxu0 }
0x3273   :  { %v5799_v2 = vpop.f32.mrb[189].mxu0 }
0x3274   :  { %v5801_v28 = vpop.f32.mrb[190].mxu0 }
0x3275   :  { %v5802_v48 = vpop.f32.mrb[191].mxu0 }
0x32cc   :  { %v5679_v59 = vpop.f32.mrb[152].mxu1 }
0x32cd   :  { %v5680_v63 = vadd.f32 %v5679_v59, %v5632_v29  ;;  %v5681_v17 = vpop.f32.mrb[153].mxu1  ;;  %v7491_v29 = vld [vmem:[%s10512_s21] sm:$0xff]  }
0x32ce   :  { %v5682_v0 = vadd.f32 %v5681_v17, %v5634_v10  ;;  %v5683_v6 = vpop.f32.mrb[154].mxu1  ;;  %v7495_v59 = vld [vmem:[%s10512_s21] sm:$0xff]  }
0x32cf   :  { %v5684_v25 = vpop.f32.mrb[155].mxu1  ;;  %v5686_v33 = vadd.f32 %v5680_v63, %v9482_v14  ;;  %v7496_v63 = vld [vmem:[%s10512_s21] sm:$0xff]   ;;  %v7498_v6 = vld [vmem:[%s10512_s21 + $0x8] sm:$0xff]  }
0x32d0   :  { %v5687_v26 = vadd.f32 %v5682_v0, %v9472_v55  ;;  %v7497_v0 = vld [vmem:[%s10512_s21 + $0x8] sm:$0xff]   ;;  %v7500_v25 = vld [vmem:[%s10512_s21 + $0x10] sm:$0xff]  }
0x32d1   :  { %v6864_v53 = vmul.f32 -1.442695, %v5686_v33  ;;  %v7515_v33 = vld [vmem:[%s10512_s21] sm:$0xff]  }
0x32d2   :  { %7999 = vtanh.f32 %v5687_v26  ;;  %v6865_v22 = vmul.f32 -1.442695, %v5687_v26  ;;  %v7501_v26 = vld [vmem:[%s10512_s21 + $0x18] sm:$0xff]  }
0x32dc   :  { %v8000_v3 = vpop.eup %7999  ;;  %v5756_v44 = vpop.f32.mrb[156].mxu1 }
0x32dd   :  { %v5798_v27 = vadd.f32 %v5797_v12, %v5756_v44  ;;  %v5758_v56 = vpop.f32.mrb[157].mxu1  ;;  %5703 = vrot.lane.b32.xlu1 %v8000_v3, %s8122_s8  ;;  %v7494_v12 = vld [vmem:[%s10512_s21 + $0x18] sm:$0xff]   ;;  %v7503_v44 = vld [vmem:[%s10512_s21] sm:$0xff]  }
0x32de   :  { %v5800_v57 = vadd.f32 %v5799_v2, %v5758_v56  ;;  %v5760_v37 = vpop.f32.mrb[158].mxu1  ;;  %v7502_v3 = vld [vmem:[%s10512_s21 + $0x18] sm:$0xff]   ;;  %v7505_v56 = vld [vmem:[%s10512_s21 + $0x8] sm:$0xff]  }
0x32df   :  { %v5761_v5 = vpop.f32.mrb[159].mxu1  ;;  %v5804_v55 = vadd.f32 %v5798_v27, %v9641_v20  ;;  %v7504_v27 = vld [vmem:[%s10512_s21] sm:$0xff]   ;;  %v7509_v37 = vld [vmem:[%s10512_s21 + $0x18] sm:$0xff]  }
0x32e0   :  { %v5805_v51 = vadd.f32 %v5800_v57, %v9631_v47  ;;  %v7506_v57 = vld [vmem:[%s10512_s21 + $0x8] sm:$0xff]   ;;  %v7510_v5 = vld [vmem:[%s10512_s21 + $0x18] sm:$0xff]  }
0x32e1   :  { %v6868_v34 = vmul.f32 -1.442695, %v5804_v55  ;;  %v7517_v55 = vld [vmem:[%s10512_s21 + $0x10] sm:$0xff]  }
0x32e2   :  { %8001 = vtanh.f32 %v5805_v51 }
0x32e3   :  { %8003 = vpow2.f32 %v6864_v53  ;;  %v7516_v53 = vld [vmem:[%s10512_s21 + $0x8] sm:$0xff]  }
0x32e4   :  { %8005 = vpow2.f32 %v6868_v34 }
0x32ec   :  { %v8002_v16 = vpop.eup %8001 }
0x32ed   :  { %5821 = vrot.lane.b32.xlu0 %v8002_v16, %s8122_s8  ;;  %v8004_v61 = vpop.eup %8003  ;;  %v7512_v16 = vld [vmem:[%s10512_s21 + $0x8] sm:$0xff]  }
0x32ee   :  { %v5694_v31 = vadd.f32 1.0, %v8004_v61  ;;  %v8006_v9 = vpop.eup %8005 }
0x32ef   :  { %v5812_v30 = vadd.f32 1.0, %v8006_v9 }
0x32f0   :  { %8007 = vrcp.f32 %v5694_v31 }
0x32f1   :  { %8009 = vrcp.f32 %v5812_v30 }
0x32fa   :  { %v8008_v32 = vpop.eup %8007 }
0x32fb   :  { %v8010_v50 = vpop.eup %8009  ;;  %v5701_v41 = vmul.f32 %v8008_v32, %v10192_v58  ;;  %v6869_v58 = vmul.f32 -1.442695, %v5805_v51  ;;  %v7511_v51 = vld [vmem:[%s10512_s21] sm:$0xff]  }
0x32fc   :  { %v5819_v7 = vmul.f32 %v8010_v50, %v10198_v60 }
0x334f   :  { %v5704_v1 = vpop.permute.xlu1 %5703 }
0x3350   :  { %v5706_v18 = vmul.f32 %v8008_v32, %v5704_v1  ;;  %v10411_v32 = vld [vmem:[%s10513_s22] ss:$0 sm:$0xff] }
0x3352   :  { %5708 = vrot.lane.b32.xlu1 %v5706_v18, %s8122_s8 }
0x335f   :  { %v5822_v36 = vpop.permute.xlu0 %5821 }
0x3360   :  { %v5824_v14 = vmul.f32 %v8010_v50, %v5822_v36 }
0x3362   :  { %5826 = vrot.lane.b32.xlu0 %v5824_v14, %s8122_s8 }
0x33c4   :  { %v5709_v19 = vpop.permute.xlu1 %5708 }
0x33c5   :  { %v5711_v42 = vadd.f32 %v5709_v19, %v5701_v41 }
0x33c7   :  { %8011 = vtanh.f32 %v5711_v42 }
0x33d1   :  { %v8012_v21 = vpop.eup %8011 }
0x33d2   :  { %5714 = vrot.lane.b32.xlu1 %v8012_v21, %s8122_s8 }
0x33d4   :  { %v5827_v49 = vpop.permute.xlu0 %5826 }
0x33d5   :  { %v10258_v46 = vadd.f32 %v5827_v49, %v5819_v7 }
0x33d7   :  { %8013 = vtanh.f32 %v10258_v46 }
0x33d8   :  { %8015 = vpow2.f32 %v6865_v22 }
0x33d9   :  { %8017 = vpow2.f32 %v6869_v58 }
0x33e1   :  { %v8014_v38 = vpop.eup %8013 }
0x33e2   :  { %5832 = vrot.lane.b32.xlu0 %v8014_v38, %s8122_s8  ;;  %v8016_v52 = vpop.eup %8015 }
0x33e3   :  { %v5695_v54 = vadd.f32 1.0, %v8016_v52  ;;  %v8018_v11 = vpop.eup %8017 }
0x33e4   :  { %v5813_v60 = vadd.f32 1.0, %v8018_v11 }
0x33e5   :  { %8019 = vrcp.f32 %v5695_v54 }
0x33e6   :  { %8021 = vrcp.f32 %v5813_v60 }
0x33ef   :  { %v8020_v13 = vpop.eup %8019 }
0x33f0   :  { %v8022_v2 = vpop.eup %8021 }
0x3444   :  { %v5715_v24 = vpop.permute.xlu1 %5714 }
0x3445   :  { %v5717_v8 = vmul.f32 %v8020_v13, %v5715_v24 }
0x3447   :  { %v5836_v10 = vpack.c.bf16 %v5717_v8, %v5717_v8 }
0x3449   :  { %6871 = vmatmul.mubr.msk.bf16.vlgmr.msra.gmra.mrb[192].mxu0 %vm129_vm2, %v5836_v10 }
0x344a   :  { %7313 = vmatpush3.bf16.msra.mxu0 %v7491_v29  ;;  %7320 = vmatprep.mubr.msk.bf16.mxu0 %vm8124_vm3, %v10542_v45 }
0x344b   :  { %7314 = vmatprep.subr.bf16.mxu0 %v10542_v45 }
0x344e   :  { %7315 = vmatpush3.bf16.msra.mxu0 %v7492_v4 }
0x344f   :  { %7316 = vmatprep.subr.bf16.mxu0 %v10542_v45 }
0x3452   :  { %7317 = vmatpush3.bf16.msra.mxu0 %v7493_v23 }
0x3453   :  { %7318 = vmatprep.subr.bf16.mxu0 %v10542_v45 }
0x3454   :  { %v5833_v28 = vpop.permute.xlu0 %5832 }
0x3455   :  { %v5835_v48 = vmul.f32 %v8022_v2, %v5833_v28 }
0x3456   :  { %7319 = vmatpush3.bf16.msra.mxu0 %v7494_v12 }
0x3457   :  { %v10286_v17 = vpack.c.bf16 %v5835_v48, %v5835_v48  ;;  %7336 = vmatprep.subr.bf16.mxu0 %v10542_v45 }
0x3459   :  { %6870 = vmatmul.mubr.msk.bf16.vlgmr.msra.gmra.mrb[160].mxu1 %vm129_vm2, %v10286_v17  ;;  %7321 = vmatmul.mubr.msk.bf16.vlgmr.msra.gmra.mrb[196].mxu0 %vm129_vm2, %v9776_v15  ;;  %v7499_v15 = vld [vmem:[%s10512_s21 + $0x10] sm:$0xff]  }
0x345a   :  { %7301 = vmatpush3.bf16.msra.mxu1 %v7495_v59  ;;  %7337 = vmatpush3.bf16.msra.mxu0 %v7496_v63 }
0x345b   :  { %7302 = vmatprep.subr.bf16.mxu1 %v10542_v45  ;;  %7338 = vmatprep.subr.bf16.mxu0 %v10542_v45 }
0x345c   :  { %7308 = vmatprep.mubr.msk.bf16.mxu1 %vm8124_vm3, %v10542_v45  ;;  %7344 = vmatprep.mubr.msk.bf16.mxu0 %vm8124_vm3, %v10542_v45 }
0x345e   :  { %7303 = vmatpush3.bf16.msra.mxu1 %v7497_v0  ;;  %7339 = vmatpush3.bf16.msra.mxu0 %v7498_v6 }
0x345f   :  { %7304 = vmatprep.subr.bf16.mxu1 %v10542_v45  ;;  %7340 = vmatprep.subr.bf16.mxu0 %v10542_v45 }
0x3462   :  { %7305 = vmatpush3.bf16.msra.mxu1 %v7499_v15  ;;  %7341 = vmatpush3.bf16.msra.mxu0 %v7500_v25 }
0x3463   :  { %7306 = vmatprep.subr.bf16.mxu1 %v10542_v45  ;;  %7342 = vmatprep.subr.bf16.mxu0 %v10542_v45 }
0x3466   :  { %7307 = vmatpush3.bf16.msra.mxu1 %v7501_v26  ;;  %7343 = vmatpush3.bf16.msra.mxu0 %v7502_v3 }
0x3467   :  { %7324 = vmatprep.subr.bf16.mxu1 %v10542_v45  ;;  %7360 = vmatprep.subr.bf16.mxu0 %v10542_v45 }
0x3469   :  { %7309 = vmatmul.mubr.msk.bf16.vlgmr.msra.gmra.mrb[164].mxu1 %vm129_vm2, %v9694_v39  ;;  %7345 = vmatmul.mubr.msk.bf16.vlgmr.msra.gmra.mrb[200].mxu0 %vm129_vm2, %v10088_v40  ;;  %v7507_v39 = vld [vmem:[%s10512_s21 + $0x10] sm:$0xff]  }
0x346a   :  { %7325 = vmatpush3.bf16.msra.mxu1 %v7503_v44  ;;  %7361 = vmatpush3.bf16.msra.mxu0 %v7504_v27  ;;  %v7508_v40 = vld [vmem:[%s10512_s21 + $0x10] sm:$0xff]  }
0x346b   :  { %7326 = vmatprep.subr.bf16.mxu1 %v10542_v45  ;;  %7362 = vmatprep.subr.bf16.mxu0 %v10542_v45 }
0x346c   :  { %7332 = vmatprep.mubr.msk.bf16.mxu1 %vm8124_vm3, %v10542_v45  ;;  %7368 = vmatprep.mubr.msk.bf16.mxu0 %vm8124_vm3, %v10542_v45 }
0x346e   :  { %7327 = vmatpush3.bf16.msra.mxu1 %v7505_v56  ;;  %7363 = vmatpush3.bf16.msra.mxu0 %v7506_v57 }
0x346f   :  { %7328 = vmatprep.subr.bf16.mxu1 %v10542_v45  ;;  %7364 = vmatprep.subr.bf16.mxu0 %v10542_v45 }
0x3472   :  { %7329 = vmatpush3.bf16.msra.mxu1 %v7507_v39  ;;  %7365 = vmatpush3.bf16.msra.mxu0 %v7508_v40 }
0x3473   :  { %7330 = vmatprep.subr.bf16.mxu1 %v10542_v45  ;;  %7366 = vmatprep.subr.bf16.mxu0 %v10542_v45 }
0x3476   :  { %7331 = vmatpush3.bf16.msra.mxu1 %v7509_v37  ;;  %7367 = vmatpush3.bf16.msra.mxu0 %v7510_v5 }
0x3477   :  { %7348 = vmatprep.subr.bf16.mxu1 %v10542_v45  ;;  %7384 = vmatprep.subr.bf16.mxu0 %v10542_v45 }
0x3479   :  { %7333 = vmatmul.mubr.msk.bf16.vlgmr.msra.gmra.mrb[168].mxu1 %vm129_vm2, %v9928_v43  ;;  %7369 = vmatmul.mubr.msk.bf16.vlgmr.msra.gmra.mrb[204].mxu0 %vm129_vm2, %v10233_v62  ;;  %v7513_v43 = vld [vmem:[%s10512_s21 + $0x10] sm:$0xff]   ;;  %v7514_v62 = vld [vmem:[%s10512_s21 + $0x18] sm:$0xff]  }
0x347a   :  { %7349 = vmatpush3.bf16.msra.mxu1 %v7511_v51  ;;  %7356 = vmatprep.mubr.msk.bf16.mxu1 %vm8124_vm3, %v10542_v45 }
0x347b   :  { %7350 = vmatprep.subr.bf16.mxu1 %v10542_v45  ;;  %7392 = vmatprep.mubr.msk.bf16.mxu0 %vm8124_vm3, %v10542_v45 }
0x347e   :  { %7351 = vmatpush3.bf16.msra.mxu1 %v7512_v16 }
0x347f   :  { %7352 = vmatprep.subr.bf16.mxu1 %v10542_v45 }
0x3482   :  { %7353 = vmatpush3.bf16.msra.mxu1 %v7513_v43  ;;  %v7519_v43 = vld [vmem:[%s10512_s21] sm:$0xff]  }
0x3483   :  { %7354 = vmatprep.subr.bf16.mxu1 %v10542_v45  ;;  %7385 = vmatpush3.bf16.msra.mxu0 %v7519_v43 }
0x3484   :  { %7386 = vmatprep.subr.bf16.mxu0 %v10542_v45 }
0x3486   :  { %7355 = vmatpush3.bf16.msra.mxu1 %v7514_v62  ;;  %v7520_v62 = vld [vmem:[%s10512_s21 + $0x8] sm:$0xff]  }
0x3487   :  { %7372 = vmatprep.subr.bf16.mxu1 %v10542_v45  ;;  %7387 = vmatpush3.bf16.msra.mxu0 %v7520_v62 }
0x3488   :  { %7388 = vmatprep.subr.bf16.mxu0 %v10542_v45 }
0x3489   :  { %7357 = vmatmul.mubr.msk.bf16.vlgmr.msra.gmra.mrb[172].mxu1 %vm129_vm2, %v10162_v35  ;;  %v7518_v35 = vld [vmem:[%s10512_s21 + $0x18] sm:$0xff]  }
0x348a   :  { %7373 = vmatpush3.bf16.msra.mxu1 %v7515_v33  ;;  %7380 = vmatprep.mubr.msk.bf16.mxu1 %vm8124_vm3, %v10542_v45 }
0x348b   :  { %7374 = vmatprep.subr.bf16.mxu1 %v10542_v45 }
0x348e   :  { %7375 = vmatpush3.bf16.msra.mxu1 %v7516_v53 }
0x348f   :  { %7376 = vmatprep.subr.bf16.mxu1 %v10542_v45 }
0x3492   :  { %7377 = vmatpush3.bf16.msra.mxu1 %v7517_v55 }
0x3493   :  { %7378 = vmatprep.subr.bf16.mxu1 %v10542_v45 }
0x3496   :  { %7379 = vmatpush3.bf16.msra.mxu1 %v7518_v35  ;;  %v7522_v35 = vld [vmem:[%s10512_s21 + $0x18] sm:$0xff]  }
0x3499   :  { %7381 = vmatmul.mubr.msk.bf16.vlgmr.msra.gmra.mrb[176].mxu1 %vm129_vm2, %v10286_v17 }
0x351c   :  { %v5919_v61 = vpop.f32.mrb[192].mxu0 }
0x351d   :  { %v5921_v34 = vpop.f32.mrb[193].mxu0 }
0x351e   :  { %v5923_v31 = vpop.f32.mrb[194].mxu0 }
0x351f   :  { %v5924_v9 = vpop.f32.mrb[195].mxu0 }
0x352c   :  { %v5875_v1 = vpop.f32.mrb[160].mxu1  ;;  %v6112_v18 = vpop.f32.mrb[196].mxu0 }
0x352d   :  { %v5920_v30 = vadd.f32 %v5919_v61, %v5875_v1  ;;  %v6113_v50 = vadd.f32 %v10411_v32, %v6112_v18  ;;  %v5877_v36 = vpop.f32.mrb[161].mxu1  ;;  %v7322_v14 = vpop.f32.mrb[197].mxu0 }
0x352e   :  { %v5922_v41 = vadd.f32 %v5921_v34, %v5877_v36  ;;  %v5879_v19 = vpop.f32.mrb[162].mxu1  ;;  %v6115_v42 = vpop.f32.mrb[198].mxu0 }
0x352f   :  { %6886 = vst.msk [vmem:[%s10515_s24 + $0x2] sm:$0x3] %vm6037_vm7, %v6113_v50  ;;  %v5880_v21 = vpop.f32.mrb[163].mxu1  ;;  %v7323_v7 = vpop.f32.mrb[199].mxu0  ;;  %v5926_v57 = vadd.f32 %v5920_v30, %v9641_v20  ;;  %v7521_v20 = vld [vmem:[%s10512_s21 + $0x10] sm:$0xff]   ;;  %s8097_s21 = scalar_lea.vmem %s6617_s28, 32 }
0x3530   :  { %v10419_v49 = vadd.f32 %v5922_v41, %v9631_v47  ;;  %7389 = vmatpush3.bf16.msra.mxu0 %v7521_v20  ;;  %p8098_p0 = scmp.ne.s32.totalorder %s6617_s28, %s8097_s21  ;;  %p8103_p2 = scmp.lt.s32.totalorder %s8097_s21, %s8097_s21 }
0x3531   :  { %v6872_v39 = vmul.f32 -1.442695, %v5926_v57  ;;  %7390 = vmatprep.subr.bf16.mxu0 %v10542_v45 }
0x3532   :  { %8023 = vtanh.f32 %v10419_v49  ;;  %v6873_v34 = vmul.f32 -1.442695, %v10419_v49  ;;  %p8104_p3 = por %p8103_p2, %p8102_p1 }
0x3533   :  { %8025 = vpow2.f32 %v6872_v39 }
0x3534   :  { %7391 = vmatpush3.bf16.msra.mxu0 %v7522_v35  ;;  %p8105_p4 = pnand %p8104_p3, %p8098_p0 }
0x353c   :  { %v8024_v38 = vpop.eup %8023  ;;  %v6031_v22 = vpop.f32.mrb[164].mxu1 }
0x353d   :  { %v6274_v52 = vpop.f32.mrb[200].mxu0  ;;  %v6032_v58 = vadd.f32 %v10411_v32, %v6031_v22  ;;  %v7310_v54 = vpop.f32.mrb[165].mxu1  ;;  %5943 = vrot.lane.b32.xlu1 %v8024_v38, %s8122_s8 }
0x353e   :  { %v6275_v11 = vadd.f32 %v10411_v32, %v6274_v52  ;;  %v7346_v13 = vpop.f32.mrb[201].mxu0  ;;  %v6034_v24 = vpop.f32.mrb[166].mxu1 }
0x353f   :  { %v6277_v8 = vpop.f32.mrb[202].mxu0  ;;  %6038 = vst.msk [vmem:[%s10515_s24] sm:$0x3] %vm6037_vm7, %v6032_v58  ;;  %v7311_v47 = vpop.f32.mrb[167].mxu1 }
0x3540   :  { %6900 = vst.msk [vmem:[%s10515_s24 + $0x6] sm:$0x3] %vm6037_vm7, %v6275_v11  ;;  %v7347_v60 = vpop.f32.mrb[203].mxu0  ;;  %v8026_v40 = vpop.eup %8025 }
0x3541   :  { %v5934_v37 = vadd.f32 1.0, %v8026_v40 }
0x3543   :  { %8027 = vrcp.f32 %v5934_v37 }
0x354c   :  { %v6193_v29 = vpop.f32.mrb[168].mxu1  ;;  %v6436_v10 = vpop.f32.mrb[204].mxu0 }
0x354d   :  { %v6194_v4 = vadd.f32 %v10411_v32, %v6193_v29  ;;  %v7334_v23 = vpop.f32.mrb[169].mxu1  ;;  %v6437_v12 = vadd.f32 %v10411_v32, %v6436_v10  ;;  %v7370_v2 = vpop.f32.mrb[205].mxu0 }
0x354e   :  { %v6196_v28 = vpop.f32.mrb[170].mxu1  ;;  %v6439_v48 = vpop.f32.mrb[206].mxu0 }
0x354f   :  { %6893 = vst.msk [vmem:[%s10515_s24 + $0x4] sm:$0x3] %vm6037_vm7, %v6194_v4  ;;  %6914 = vst.msk [vmem:[%s10515_s24 + $0xa] sm:$0x3] %vm6037_vm7, %v6437_v12  ;;  %v7335_v59 = vpop.f32.mrb[171].mxu1  ;;  %v7371_v63 = vpop.f32.mrb[207].mxu0 }
0x3550   :  { %v8028_v5 = vpop.eup %8027 }
0x3551   :  { %v5941_v33 = vmul.f32 %v8028_v5, %v10258_v46 }
0x355c   :  { %v6355_v17 = vpop.f32.mrb[172].mxu1 }
0x355d   :  { %v6356_v0 = vadd.f32 %v10411_v32, %v6355_v17  ;;  %v7358_v6 = vpop.f32.mrb[173].mxu1 }
0x355e   :  { %v6358_v15 = vpop.f32.mrb[174].mxu1 }
0x355f   :  { %6907 = vst.msk [vmem:[%s10515_s24 + $0x8] sm:$0x3] %vm6037_vm7, %v6356_v0  ;;  %v7359_v25 = vpop.f32.mrb[175].mxu1 }
0x356c   :  { %v6517_v26 = vpop.f32.mrb[176].mxu1 }
0x356d   :  { %v6518_v3 = vadd.f32 %v10411_v32, %v6517_v26  ;;  %v7382_v44 = vpop.f32.mrb[177].mxu1 }
0x356e   :  { %v6520_v27 = vpop.f32.mrb[178].mxu1 }
0x356f   :  { %6921 = vst.msk [vmem:[%s10515_s24 + $0xc] sm:$0x3] %vm6037_vm7, %v6518_v3  ;;  %v7383_v56 = vpop.f32.mrb[179].mxu1 }
0x35af   :  { %v5944_v51 = vpop.permute.xlu1 %5943 }
0x35b0   :  { %v5946_v16 = vmul.f32 %v8028_v5, %v5944_v51 }
0x35b2   :  { %5948 = vrot.lane.b32.xlu0 %v5946_v16, %s8122_s8 }
0x3624   :  { %v5949_v53 = vpop.permute.xlu0 %5948 }
0x3625   :  { %v5951_v55 = vadd.f32 %v5949_v53, %v5941_v33 }
0x3627   :  { %8029 = vtanh.f32 %v5951_v55 }
0x3628   :  { %8031 = vpow2.f32 %v6873_v34 }
0x3631   :  { %v8030_v61 = vpop.eup %8029 }
0x3632   :  { %5954 = vrot.lane.b32.xlu1 %v8030_v61, %s8122_s8  ;;  %v8032_v31 = vpop.eup %8031 }
0x3633   :  { %v5935_v9 = vadd.f32 1.0, %v8032_v31 }
0x3635   :  { %8033 = vrcp.f32 %v5935_v9 }
0x363f   :  { %v8034_v45 = vpop.eup %8033 }
0x36a4   :  { %v5955_v1 = vpop.permute.xlu1 %5954 }
0x36a5   :  { %v5957_v46 = vmul.f32 %v8034_v45, %v5955_v1 }
0x36a7   :  { %v6525_v18 = vpack.c.bf16 %v5957_v46, %v5957_v46 }
0x36a9   :  { %7393 = vmatmul.mubr.msk.bf16.vlgmr.msra.gmra.mrb[208].mxu0 %vm129_vm2, %v6525_v18 }
0x36aa   :  { %8108 = shalt.err (!%p8105_p4)
}
0x36ab   :  { %s8109_s30 = scalar_lea.hbm %s10514_s23, 32 }
0x36ac   :  { %p8110_p5 = scmp.ne.s32.totalorder %s10514_s23, %s8109_s30  ;;  %p8113_p6 = scmp.lt.u32.totalorder %s8109_s30, %s10514_s23 }
0x36ae   :  { %p8115_p7 = pnand %p8113_p6, %p8110_p5 }
0x36b0   :  { %8118 = shalt.err (!%p8115_p7)
}
0x36b1   :  { %6619 = dma.vmem_to_hbm [thread:$0]  %s6617_s28, 32, %s10514_s23, [#allocation3]  }
0x377c   :  { %v6602_v30 = vpop.f32.mrb[208].mxu0 }
0x377d   :  { %v6603_v50 = vadd.f32 %v10411_v32, %v6602_v30  ;;  %v7394_v36 = vpop.f32.mrb[209].mxu0 }
0x377e   :  { %v6605_v14 = vpop.f32.mrb[210].mxu0 }
0x377f   :  { %6928 = vst.msk [vmem:[%s10515_s24 + $0xe] sm:$0x3] %vm6037_vm7, %v6603_v50  ;;  %v7395_v41 = vpop.f32.mrb[211].mxu0 }
0x3780   :  { %8119 = dma.done.wait [#allocation3], 32  }
0x3781   :  { %8120 = vsyncadd [#allocation3], 4294967264 }
0x3782   :  { %6627 = vsyncpa [#allocation3], 1 }

</bundles_post_ra>
